<compile_context>
chip_gen: v5e
topology: v5e:2x2
jax: 0.10.0
libtpu: 0.0.40
codegen_flags: <defaults>
</compile_context>

<pallas_src>
import functools

import jax
import jax.numpy as jnp
from jax.experimental import pallas as pl
from jax.experimental.pallas import tpu as pltpu

LN_EPS = 1e-5
_MXU = jnp.bfloat16          # MXU operand dtype (accumulation is always f32)
_ROW_BLOCK = 512             # row tile for LN / projection / transition kernels
_VMEM_LIMIT = 64 * 1024 * 1024


def _cparams(*sem):
    return pltpu.CompilerParams(dimension_semantics=sem,
                                vmem_limit_bytes=_VMEM_LIMIT)


def _ln(x, gamma, beta):
    x = x.astype(jnp.float32)
    mu = jnp.mean(x, axis=-1, keepdims=True)
    var = jnp.mean((x - mu) ** 2, axis=-1, keepdims=True)
    return (x - mu) * jax.lax.rsqrt(var + LN_EPS) * gamma + beta


# ----------------------------- Pallas kernels -----------------------------

def _make_ln_proj_kernel(out_widths, acts, has_bias):
    """Fused LayerNorm + one concatenated projection, split into several outputs."""
    offs = [0]
    for w in out_widths:
        offs.append(offs[-1] + w)

    def kernel(x_ref, lng_ref, lnb_ref, w_ref, *rest):
        if has_bias:
            b_ref, out_refs = rest[0], rest[1:]
        else:
            b_ref, out_refs = None, rest
        y = _ln(x_ref[...], lng_ref[...], lnb_ref[...])
        z = jnp.dot(y.astype(_MXU), w_ref[...].astype(_MXU),
                    preferred_element_type=jnp.float32)
        if b_ref is not None:
            z = z + b_ref[...]
        for i, o_ref in enumerate(out_refs):
            v = z[:, offs[i]:offs[i + 1]]
            if acts[i] == "sigmoid":
                v = jax.nn.sigmoid(v)
            elif acts[i] == "relu":
                v = jnp.maximum(v, 0.0)
            o_ref[...] = v.astype(o_ref.dtype)

    return kernel


def _make_attn_kernel(n_heads, head_dim, has_bias):
    """All heads of one row: softmax(q k^T + bias) v, gate, concat heads, out-proj."""

    def kernel(*refs):
        if has_bias:
            q_ref, k_ref, v_ref, g_ref, b_ref, wo_ref, bo_ref, o_ref = refs
        else:
            q_ref, k_ref, v_ref, g_ref, wo_ref, bo_ref, o_ref = refs
        q = q_ref[0]
        k = k_ref[0]
        v = v_ref[0]
        outs = []
        for h in range(n_heads):
            lo, hi = h * head_dim, (h + 1) * head_dim
            logits = jax.lax.dot_general(
                q[:, lo:hi].astype(_MXU), k[:, lo:hi].astype(_MXU),
                (((1,), (1,)), ((), ())), preferred_element_type=jnp.float32)
            if has_bias:
                logits = logits + b_ref[h].astype(jnp.float32)
            m = jnp.max(logits, axis=-1, keepdims=True)
            p = jnp.exp(logits - m)
            a = p * pl.reciprocal(jnp.sum(p, axis=-1, keepdims=True), approx=True)
            outs.append(jnp.dot(a.astype(_MXU), v[:, lo:hi].astype(_MXU),
                                preferred_element_type=jnp.float32))
        out = jnp.concatenate(outs, axis=-1)                  # (N, H*D), lane-dense
        gated = (g_ref[0].astype(jnp.float32) * out).astype(_MXU)
        proj = jnp.dot(gated, wo_ref[...].astype(_MXU),
                       preferred_element_type=jnp.float32) + bo_ref[...]
        o_ref[0] = proj.astype(o_ref.dtype)

    return kernel


def _transition_kernel(x_ref, g_ref, b_ref, w1_ref, b1_ref, w2_ref, b2_ref, o_ref):
    y = _ln(x_ref[...], g_ref[...], b_ref[...])
    h = jnp.dot(y.astype(_MXU), w1_ref[...].astype(_MXU),
                preferred_element_type=jnp.float32) + b1_ref[...]
    h = jnp.maximum(h, 0.0)
    o = jnp.dot(h.astype(_MXU), w2_ref[...].astype(_MXU),
                preferred_element_type=jnp.float32) + b2_ref[...]
    o_ref[...] = o.astype(o_ref.dtype)


def _linear_kernel(x_ref, w_ref, b_ref, o_ref):
    o_ref[...] = (jnp.dot(x_ref[...].astype(_MXU), w_ref[...].astype(_MXU),
                          preferred_element_type=jnp.float32)
                  + b_ref[...]).astype(o_ref.dtype)


def _opm_matmul_kernel(a_ref, b_ref, o_ref, acc_ref, *, inv_s):
    # out = (a^T @ b) * inv_s, contraction over the leading (sequence) axis.
    @pl.when(pl.program_id(2) == 0)
    def _():
        acc_ref[...] = jnp.zeros_like(acc_ref)

    acc_ref[...] += jax.lax.dot_general(
        a_ref[...].astype(_MXU), b_ref[...].astype(_MXU),
        (((0,), (0,)), ((), ())), preferred_element_type=jnp.float32)

    @pl.when(pl.program_id(2) == pl.num_programs(2) - 1)
    def _():
        o_ref[...] = (acc_ref[...] * inv_s).astype(o_ref.dtype)


def _make_tri_mul_kernel(incoming):
    cdim = 0 if incoming else 1  # outgoing: sum_k a[i,k]b[j,k]; incoming: sum_k a[k,i]b[k,j]

    def kernel(a_ref, b_ref, o_ref):
        o_ref[0] = jax.lax.dot_general(
            a_ref[0].astype(_MXU), b_ref[0].astype(_MXU),
            (((cdim,), (cdim,)), ((), ())),
            preferred_element_type=jnp.float32).astype(o_ref.dtype)

    return kernel


def _ln_tri_proj_kernel(x_ref, lng_ref, lnb_ref, w_ref, b_ref,
                        a_ref, bb_ref, g_ref, *, c):
    # LN -> fused 5 projections [ag|ap|bg|bp|g] -> a = sig(ag)*ap, b = sig(bg)*bp, g = sig(g)
    y = _ln(x_ref[...], lng_ref[...], lnb_ref[...])
    z = jnp.dot(y.astype(_MXU), w_ref[...].astype(_MXU),
                preferred_element_type=jnp.float32) + b_ref[...]
    a_ref[...] = (jax.nn.sigmoid(z[:, :c]) * z[:, c:2 * c]).astype(a_ref.dtype)
    bb_ref[...] = (jax.nn.sigmoid(z[:, 2 * c:3 * c]) * z[:, 3 * c:4 * c]).astype(bb_ref.dtype)
    g_ref[...] = jax.nn.sigmoid(z[:, 4 * c:]).astype(g_ref.dtype)


def _tri_out_kernel(x_ref, g_ref, lng_ref, lnb_ref, wo_ref, bo_ref, o_ref):
    y = _ln(x_ref[...], lng_ref[...], lnb_ref[...])
    o = jnp.dot(y.astype(_MXU), wo_ref[...].astype(_MXU),
                preferred_element_type=jnp.float32) + bo_ref[...]
    o_ref[...] = (g_ref[...].astype(jnp.float32) * o).astype(o_ref.dtype)


# ----------------------------- Pallas wrappers -----------------------------

def ln_proj(x2, ln_g, ln_b, w, b, out_widths, acts):
    """Row-tiled fused LayerNorm + projection(s). x2: (M, C); w: (C, sum(out_widths))."""
    M, C = x2.shape
    bm = min(M, _ROW_BLOCK)
    total = sum(out_widths)
    has_bias = b is not None
    in_specs = [pl.BlockSpec((bm, C), lambda i: (i, 0)),
                pl.BlockSpec((1, C), lambda i: (0, 0)),
                pl.BlockSpec((1, C), lambda i: (0, 0)),
                pl.BlockSpec((C, total), lambda i: (0, 0))]
    args = [x2, ln_g, ln_b, w]
    if has_bias:
        in_specs.append(pl.BlockSpec((1, total), lambda i: (0, 0)))
        args.append(b.reshape(1, total))
    out_shapes = tuple(jax.ShapeDtypeStruct((M, wd), x2.dtype) for wd in out_widths)
    out_specs = tuple(pl.BlockSpec((bm, wd), lambda i: (i, 0)) for wd in out_widths)
    outs = pl.pallas_call(
        _make_ln_proj_kernel(tuple(out_widths), tuple(acts), has_bias),
        out_shape=out_shapes, grid=(pl.cdiv(M, bm),),
        in_specs=in_specs, out_specs=out_specs,
        compiler_params=_cparams("parallel"),
    )(*args)
    return outs if isinstance(outs, tuple) else (outs,)


def fused_gated_attention(q, k, v, g, bias, wo, bo, n_heads, head_dim):
    """q,k,v,g: (B, N, H*D) head-major (q pre-scaled); bias: (H, N, N) or None.
       Returns gate * attn projected through wo/bo -> (B, N, C)."""
    B, N, HD = q.shape
    C = wo.shape[1]
    qspec = pl.BlockSpec((1, N, HD), lambda b: (b, 0, 0))
    in_specs = [qspec, qspec, qspec, qspec]
    args = [q, k, v, g]
    if bias is not None:
        H = bias.shape[0]
        # block index is constant across the grid -> bias stays resident in VMEM
        in_specs.append(pl.BlockSpec((H, N, N), lambda b: (0, 0, 0)))
        args.append(bias)
    in_specs += [pl.BlockSpec((HD, C), lambda b: (0, 0)),
                 pl.BlockSpec((1, C), lambda b: (0, 0))]
    args += [wo, bo.reshape(1, C)]
    return pl.pallas_call(
        _make_attn_kernel(n_heads, head_dim, bias is not None),
        out_shape=jax.ShapeDtypeStruct((B, N, C), q.dtype),
        grid=(B,),
        in_specs=in_specs,
        out_specs=pl.BlockSpec((1, N, C), lambda b: (b, 0, 0)),
        compiler_params=_cparams("parallel"),
    )(*args)


def transition(x, p):
    lead, C = x.shape[:-1], x.shape[-1]
    x2 = x.reshape(-1, C)
    M = x2.shape[0]
    E = p["w1"].shape[1]
    bm = min(M, _ROW_BLOCK)
    out = pl.pallas_call(
        _transition_kernel,
        out_shape=jax.ShapeDtypeStruct((M, C), x.dtype),
        grid=(pl.cdiv(M, bm),),
        in_specs=[pl.BlockSpec((bm, C), lambda i: (i, 0)),
                  pl.BlockSpec((1, C), lambda i: (0, 0)),
                  pl.BlockSpec((1, C), lambda i: (0, 0)),
                  pl.BlockSpec((C, E), lambda i: (0, 0)),
                  pl.BlockSpec((1, E), lambda i: (0, 0)),
                  pl.BlockSpec((E, C), lambda i: (0, 0)),
                  pl.BlockSpec((1, C), lambda i: (0, 0))],
        out_specs=pl.BlockSpec((bm, C), lambda i: (i, 0)),
        compiler_params=_cparams("parallel"),
    )(x2, p["ln_g"], p["ln_b"], p["w1"], p["b1"].reshape(1, E),
      p["w2"], p["b2"].reshape(1, C))
    return out.reshape(*lead, C)


def linear(x, w, b):
    lead, K = x.shape[:-1], x.shape[-1]
    Nout = w.shape[1]
    x2 = x.reshape(-1, K)
    M = x2.shape[0]
    bm = min(M, _ROW_BLOCK)
    out = pl.pallas_call(
        _linear_kernel,
        out_shape=jax.ShapeDtypeStruct((M, Nout), x.dtype),
        grid=(pl.cdiv(M, bm),),
        in_specs=[pl.BlockSpec((bm, K), lambda i: (i, 0)),
                  pl.BlockSpec((K, Nout), lambda i: (0, 0)),
                  pl.BlockSpec((1, Nout), lambda i: (0, 0))],
        out_specs=pl.BlockSpec((bm, Nout), lambda i: (i, 0)),
        compiler_params=_cparams("parallel"),
    )(x2, w, b.reshape(1, Nout))
    return out.reshape(*lead, Nout)


def opm_outer_matmul(a2, b2, inv_s, tm=256, tn=256, tk=512):
    """(a2^T @ b2) * inv_s with a tiled MXU matmul and an f32 VMEM accumulator."""
    S, Nc = a2.shape
    tm = min(tm, Nc)
    tn = min(tn, Nc)
    tk = min(tk, S)
    grid = (pl.cdiv(Nc, tm), pl.cdiv(Nc, tn), pl.cdiv(S, tk))
    return pl.pallas_call(
        functools.partial(_opm_matmul_kernel, inv_s=inv_s),
        out_shape=jax.ShapeDtypeStruct((Nc, Nc), a2.dtype),
        grid=grid,
        in_specs=[pl.BlockSpec((tk, tm), lambda i, j, k: (k, i)),
                  pl.BlockSpec((tk, tn), lambda i, j, k: (k, j))],
        out_specs=pl.BlockSpec((tm, tn), lambda i, j, k: (i, j)),
        scratch_shapes=[pltpu.VMEM((tm, tn), jnp.float32)],
        compiler_params=_cparams("parallel", "parallel", "arbitrary"),
    )(a2, b2)


def tri_mul(a_cm, b_cm, incoming):
    """a_cm, b_cm: (C, N, N) channel-major -> (C, N, N) per-channel MXU matmul."""
    C, N, _ = a_cm.shape
    spec = pl.BlockSpec((1, N, N), lambda c: (c, 0, 0))
    return pl.pallas_call(
        _make_tri_mul_kernel(incoming),
        out_shape=jax.ShapeDtypeStruct((C, N, N), a_cm.dtype),
        grid=(C,),
        in_specs=[spec, spec],
        out_specs=spec,
        compiler_params=_cparams("parallel"),
    )(a_cm, b_cm)


# ----------------------------- Modules (glue around kernels) -----------------------------

def _head_major_perm(n_heads, head_dim):
    # torch view is (..., head_dim, n_heads): flat column d*H + h.
    # Kernels want head-major lanes: flat column h*D + d.
    idx = jnp.arange(n_heads * head_dim)
    return (idx % head_dim) * n_heads + idx // head_dim


def _fused_qkvg_weights(p, n_heads, head_dim):
    perm = _head_major_perm(n_heads, head_dim)
    HD = n_heads * head_dim
    wq, wk, wv = jnp.split(p["w_qkv"], 3, axis=1)
    scale = 1.0 / (head_dim ** 0.5)                     # folded into the Q weights
    w_fused = jnp.concatenate(
        [wq[:, perm] * scale, wk[:, perm], wv[:, perm], p["w_g"][:, perm]], axis=1)
    b_fused = jnp.concatenate([jnp.zeros((3 * HD,), jnp.float32), p["b_g"][perm]])
    return w_fused, b_fused, p["w_o"][perm, :], perm


def gated_row_attention(x, bias_src, p, n_heads, proj_dim):
    """MSARowAttentionWithPairBias / TriangleAttention(starting node) semantics.
       x: (R, N, Cx) rows attend over N with pair bias from bias_src (N, N, Cb)."""
    R, N, Cx = x.shape
    H, D = n_heads, proj_dim
    HD = H * D
    w_fused, b_fused, wo, _ = _fused_qkvg_weights(p, H, D)

    q, k, v, g = ln_proj(x.reshape(R * N, Cx), p["ln_g"], p["ln_b"],
                         w_fused, b_fused,
                         out_widths=(HD, HD, HD, HD),
                         acts=(None, None, None, "sigmoid"))
    q = q.reshape(R, N, HD)
    k = k.reshape(R, N, HD)
    v = v.reshape(R, N, HD)
    g = g.reshape(R, N, HD)

    Cb = bias_src.shape[-1]
    (bias,) = ln_proj(bias_src.reshape(N * N, Cb), p["lnb_g"], p["lnb_b"],
                      p["w_b"], None, out_widths=(H,), acts=(None,))
    bias = jnp.transpose(bias.reshape(N, N, H), (2, 0, 1))   # (H, N, N), VMEM-resident

    return fused_gated_attention(q, k, v, g, bias, wo, p["b_o"], H, D)


def msa_column_attention(msa, p, n_heads, proj_dim):
    S, N, C = msa.shape
    H, D = n_heads, proj_dim
    HD = H * D
    w_fused, b_fused, wo, _ = _fused_qkvg_weights(p, H, D)

    x_t = jnp.transpose(msa, (1, 0, 2))                      # (N, S, C): attention axis is S
    q, k, v, g = ln_proj(x_t.reshape(N * S, C), p["ln_g"], p["ln_b"],
                         w_fused, b_fused,
                         out_widths=(HD, HD, HD, HD),
                         acts=(None, None, None, "sigmoid"))
    q = q.reshape(N, S, HD)
    k = k.reshape(N, S, HD)
    v = v.reshape(N, S, HD)
    g = g.reshape(N, S, HD)

    out = fused_gated_attention(q, k, v, g, None, wo, p["b_o"], H, D)
    return jnp.transpose(out, (1, 0, 2))                     # back to (S, N, C)


def outer_product_mean(msa, p, outer_dim, pair_dim):
    # TODO(synk): OuterProductMean source not provided; standard AlphaFold2 formulation assumed.
    S, N, Cm = msa.shape
    c = outer_dim
    a, b = ln_proj(msa.reshape(S * N, Cm), p["ln_g"], p["ln_b"],
                   jnp.concatenate([p["w_a"], p["w_b"]], axis=1),
                   jnp.concatenate([p["b_a"], p["b_b"]]),
                   out_widths=(c, c), acts=(None, None))
    A = a.reshape(S, N * c)
    B = b.reshape(S, N * c)
    P = opm_outer_matmul(A, B, inv_s=1.0 / S)                # mean over S folded into epilogue
    outer = P.reshape(N, c, N, c).transpose(0, 2, 1, 3).reshape(N * N, c * c)
    out = linear(outer, p["w_o"], p["b_o"])
    return out.reshape(N, N, pair_dim)


def triangle_multiplication(z, p, incoming):
    # TODO(synk): TriangleMultiplication source not provided; standard AF2 (gated) formulation assumed.
    N, _, C = z.shape
    M = N * N
    bm = min(M, _ROW_BLOCK)
    W = jnp.concatenate([p["w_ag"], p["w_ap"], p["w_bg"], p["w_bp"], p["w_g"]], axis=1)
    Bb = jnp.concatenate([p["b_ag"], p["b_ap"], p["b_bg"], p["b_bp"], p["b_g"]]).reshape(1, 5 * C)

    a, b, g = pl.pallas_call(
        functools.partial(_ln_tri_proj_kernel, c=C),
        out_shape=(jax.ShapeDtypeStruct((M, C), z.dtype),) * 3,
        grid=(pl.cdiv(M, bm),),
        in_specs=[pl.BlockSpec((bm, C), lambda i: (i, 0)),
                  pl.BlockSpec((1, C), lambda i: (0, 0)),
                  pl.BlockSpec((1, C), lambda i: (0, 0)),
                  pl.BlockSpec((C, 5 * C), lambda i: (0, 0)),
                  pl.BlockSpec((1, 5 * C), lambda i: (0, 0))],
        out_specs=(pl.BlockSpec((bm, C), lambda i: (i, 0)),) * 3,
        compiler_params=_cparams("parallel"),
    )(z.reshape(M, C), p["ln_g"], p["ln_b"], W, Bb)

    # channel-major layout so each channel slice is a clean (N,N)x(N,N) MXU matmul
    a_cm = jnp.transpose(a.reshape(N, N, C), (2, 0, 1))
    b_cm = jnp.transpose(b.reshape(N, N, C), (2, 0, 1))
    x = jnp.transpose(tri_mul(a_cm, b_cm, incoming), (1, 2, 0)).reshape(M, C)

    out = pl.pallas_call(
        _tri_out_kernel,
        out_shape=jax.ShapeDtypeStruct((M, C), z.dtype),
        grid=(pl.cdiv(M, bm),),
        in_specs=[pl.BlockSpec((bm, C), lambda i: (i, 0)),
                  pl.BlockSpec((bm, C), lambda i: (i, 0)),
                  pl.BlockSpec((1, C), lambda i: (0, 0)),
                  pl.BlockSpec((1, C), lambda i: (0, 0)),
                  pl.BlockSpec((C, C), lambda i: (0, 0)),
                  pl.BlockSpec((1, C), lambda i: (0, 0))],
        out_specs=pl.BlockSpec((bm, C), lambda i: (i, 0)),
        compiler_params=_cparams("parallel"),
    )(x, g, p["ln2_g"], p["ln2_b"], p["w_o"], p["b_o"].reshape(1, C))
    return out.reshape(N, N, C)


def evoformer_block(msa, pair, params, cfg):
    # TODO(synk): DropoutRowwise/DropoutColumnwise are identity here (inference / eval mode).
    msa = msa + gated_row_attention(msa, pair, params["msa_row"],
                                    cfg["n_msa_heads"], cfg["msa_row_dim"])
    msa = msa + msa_column_attention(msa, params["msa_col"],
                                     cfg["n_msa_heads"], cfg["msa_col_dim"])
    msa = msa + transition(msa, params["msa_trans"])

    pair = pair + outer_product_mean(msa, params["opm"], cfg["outer_dim"], cfg["pair_dim"])
    pair = pair + triangle_multiplication(pair, params["tri_out"], incoming=False)
    pair = pair + triangle_multiplication(pair, params["tri_in"], incoming=True)
    # TODO(synk): TriangleAttention source not provided; standard AF2 starting/ending-node
    # formulation assumed (ending node == starting node applied to the transposed pair rep).
    pair = pair + gated_row_attention(pair, pair, params["tri_att_start"],
                                      cfg["n_tri_heads"], cfg["pair_dim"])
    pT = jnp.transpose(pair, (1, 0, 2))
    upd = gated_row_attention(pT, pT, params["tri_att_end"],
                              cfg["n_tri_heads"], cfg["pair_dim"])
    pair = pair + jnp.transpose(upd, (1, 0, 2))
    pair = pair + transition(pair, params["pair_trans"])
    return msa, pair


# ----------------------------- Deterministic parameter init -----------------------------

class KeyGen:
    def __init__(self, seed):
        self.key = jax.random.PRNGKey(seed)

    def __call__(self):
        self.key, sub = jax.random.split(self.key)
        return sub


def init_linear(kg, din, dout, bias=True):
    W = jax.random.normal(kg(), (din, dout), jnp.float32) * (1.0 / (din ** 0.5))
    b = (jax.random.normal(kg(), (dout,), jnp.float32) * 0.02) if bias else None
    return W, b


def init_ln(dim):
    return jnp.ones((1, dim), jnp.float32), jnp.zeros((1, dim), jnp.float32)


def init_row_attn(kg, x_dim, bias_dim, proj_dim, n_heads):
    p = {}
    p["ln_g"], p["ln_b"] = init_ln(x_dim)
    p["w_qkv"], _ = init_linear(kg, x_dim, 3 * n_heads * proj_dim, bias=False)
    p["lnb_g"], p["lnb_b"] = init_ln(bias_dim)
    p["w_b"], _ = init_linear(kg, bias_dim, n_heads, bias=False)
    p["w_g"], p["b_g"] = init_linear(kg, x_dim, n_heads * proj_dim)
    p["w_o"], p["b_o"] = init_linear(kg, n_heads * proj_dim, x_dim)
    return p


def init_col_attn(kg, x_dim, proj_dim, n_heads):
    p = {}
    p["ln_g"], p["ln_b"] = init_ln(x_dim)
    p["w_qkv"], _ = init_linear(kg, x_dim, 3 * n_heads * proj_dim, bias=False)
    p["w_g"], p["b_g"] = init_linear(kg, x_dim, n_heads * proj_dim)
    p["w_o"], p["b_o"] = init_linear(kg, n_heads * proj_dim, x_dim)
    return p


def init_transition(kg, dim, scale):
    p = {}
    p["ln_g"], p["ln_b"] = init_ln(dim)
    p["w1"], p["b1"] = init_linear(kg, dim, dim * scale)
    p["w2"], p["b2"] = init_linear(kg, dim * scale, dim)
    return p


def init_opm(kg, msa_dim, c, pair_dim):
    p = {}
    p["ln_g"], p["ln_b"] = init_ln(msa_dim)
    p["w_a"], p["b_a"] = init_linear(kg, msa_dim, c)
    p["w_b"], p["b_b"] = init_linear(kg, msa_dim, c)
    p["w_o"], p["b_o"] = init_linear(kg, c * c, pair_dim)
    return p


def init_tri_mul(kg, dim):
    p = {}
    p["ln_g"], p["ln_b"] = init_ln(dim)
    for name in ("ag", "ap", "bg", "bp", "g"):
        p["w_" + name], p["b_" + name] = init_linear(kg, dim, dim)
    p["ln2_g"], p["ln2_b"] = init_ln(dim)
    p["w_o"], p["b_o"] = init_linear(kg, dim, dim)
    return p


# ----------------------------- main -----------------------------

if __name__ == "__main__":
    S, N = 4, 8                     # n_seq, n_res
    msa_dim, pair_dim = 32, 16
    msa_row_dim, msa_col_dim = 8, 8
    outer_dim = 8
    n_tri_heads, n_msa_heads = 2, 2
    msa_trans_scale, pair_trans_scale = 4, 4

    cfg = dict(n_msa_heads=n_msa_heads, n_tri_heads=n_tri_heads,
               msa_row_dim=msa_row_dim, msa_col_dim=msa_col_dim,
               outer_dim=outer_dim, pair_dim=pair_dim)

    kg = KeyGen(42)
    params = {
        "msa_row": init_row_attn(kg, msa_dim, pair_dim, msa_row_dim, n_msa_heads),
        "msa_col": init_col_attn(kg, msa_dim, msa_col_dim, n_msa_heads),
        "msa_trans": init_transition(kg, msa_dim, msa_trans_scale),
        "opm": init_opm(kg, msa_dim, outer_dim, pair_dim),
        "tri_out": init_tri_mul(kg, pair_dim),
        "tri_in": init_tri_mul(kg, pair_dim),
        "tri_att_start": init_row_attn(kg, pair_dim, pair_dim, pair_dim, n_tri_heads),
        "tri_att_end": init_row_attn(kg, pair_dim, pair_dim, pair_dim, n_tri_heads),
        "pair_trans": init_transition(kg, pair_dim, pair_trans_scale),
    }

    k1, k2 = jax.random.split(jax.random.PRNGKey(0))
    msa_rep = jax.random.normal(k1, (S, N, msa_dim), jnp.float32)
    pair_rep = jax.random.normal(k2, (N, N, pair_dim), jnp.float32)

    fwd = jax.jit(lambda m, z, prm: evoformer_block(m, z, prm, cfg))
    msa_out, pair_out = fwd(msa_rep, pair_rep, params)
    jax.block_until_ready((msa_out, pair_out))

    assert msa_out.shape == (S, N, msa_dim)
    assert pair_out.shape == (N, N, pair_dim)
    assert bool(jnp.all(jnp.isfinite(msa_out))) and bool(jnp.all(jnp.isfinite(pair_out)))
    print("KERNEL_OK")
</pallas_src>

<mosaic_0001>
module attributes {stable_mosaic.version = 11 : i64} {
  func.func @kernel(%arg0: i32, %arg1: memref<32x32xf32, #tpu.memory_space<vmem>>, %arg2: memref<1x32xf32, #tpu.memory_space<vmem>>, %arg3: memref<1x32xf32, #tpu.memory_space<vmem>>, %arg4: memref<32x64xf32, #tpu.memory_space<vmem>>, %arg5: memref<1x64xf32, #tpu.memory_space<vmem>>, %arg6: memref<32x16xf32, #tpu.memory_space<vmem>>, %arg7: memref<32x16xf32, #tpu.memory_space<vmem>>, %arg8: memref<32x16xf32, #tpu.memory_space<vmem>>, %arg9: memref<32x16xf32, #tpu.memory_space<vmem>>) attributes {dimension_semantics = [#tpu.dimension_semantics<parallel>], iteration_bounds = array<i64: 1>, scalar_prefetch = 0 : i64, scratch_operands = 0 : i64, tpu.core_type = #tpu.core_type<tc>, window_params = [{transform_indices = @transform_0, window_bounds = array<i64: 32, 32>}, {pipeline_mode = #tpu.pipeline_mode<synchronous>, transform_indices = @transform_1, window_bounds = array<i64: 1, 32>}, {pipeline_mode = #tpu.pipeline_mode<synchronous>, transform_indices = @transform_2, window_bounds = array<i64: 1, 32>}, {pipeline_mode = #tpu.pipeline_mode<synchronous>, transform_indices = @transform_3, window_bounds = array<i64: 32, 64>}, {pipeline_mode = #tpu.pipeline_mode<synchronous>, transform_indices = @transform_4, window_bounds = array<i64: 1, 64>}, {transform_indices = @transform_5, window_bounds = array<i64: 32, 16>}, {transform_indices = @transform_6, window_bounds = array<i64: 32, 16>}, {transform_indices = @transform_7, window_bounds = array<i64: 32, 16>}, {transform_indices = @transform_8, window_bounds = array<i64: 32, 16>}]} {
    %c0 = arith.constant 0 : index
    %c0_0 = arith.constant 0 : index
    %0 = vector.load %arg1[%c0, %c0_0] : memref<32x32xf32, #tpu.memory_space<vmem>>, vector<32x32xf32>
    %c0_1 = arith.constant 0 : index
    %c0_2 = arith.constant 0 : index
    %1 = vector.load %arg2[%c0_1, %c0_2] : memref<1x32xf32, #tpu.memory_space<vmem>>, vector<1x32xf32>
    %c0_3 = arith.constant 0 : index
    %c0_4 = arith.constant 0 : index
    %2 = vector.load %arg3[%c0_3, %c0_4] : memref<1x32xf32, #tpu.memory_space<vmem>>, vector<1x32xf32>
    %cst = arith.constant dense<0.000000e+00> : vector<32xf32>
    %3 = vector.multi_reduction <add>, %0, %cst [1] : vector<32x32xf32> to vector<32xf32>
    %4 = vector.shape_cast %3 : vector<32xf32> to vector<32x1xf32>
    %cst_5 = arith.constant 3.200000e+01 : f32
    %5 = vector.broadcast %cst_5 : f32 to vector<32x1xf32>
    %6 = arith.divf %4, %5 : vector<32x1xf32>
    %7 = vector.broadcast %6 : vector<32x1xf32> to vector<32x32xf32>
    %8 = arith.subf %0, %7 : vector<32x32xf32>
    %9 = arith.mulf %8, %8 : vector<32x32xf32>
    %cst_6 = arith.constant dense<0.000000e+00> : vector<32xf32>
    %10 = vector.multi_reduction <add>, %9, %cst_6 [1] : vector<32x32xf32> to vector<32xf32>
    %11 = vector.shape_cast %10 : vector<32xf32> to vector<32x1xf32>
    %cst_7 = arith.constant 3.200000e+01 : f32
    %12 = vector.broadcast %cst_7 : f32 to vector<32x1xf32>
    %13 = arith.divf %11, %12 : vector<32x1xf32>
    %14 = vector.broadcast %6 : vector<32x1xf32> to vector<32x32xf32>
    %15 = arith.subf %0, %14 : vector<32x32xf32>
    %cst_8 = arith.constant 9.99999974E-6 : f32
    %16 = vector.broadcast %cst_8 : f32 to vector<32x1xf32>
    %17 = arith.addf %13, %16 : vector<32x1xf32>
    %18 = math.rsqrt %17 : vector<32x1xf32>
    %19 = vector.broadcast %18 : vector<32x1xf32> to vector<32x32xf32>
    %20 = arith.mulf %15, %19 : vector<32x32xf32>
    %21 = vector.broadcast %1 : vector<1x32xf32> to vector<32x32xf32>
    %22 = arith.mulf %20, %21 : vector<32x32xf32>
    %23 = vector.broadcast %2 : vector<1x32xf32> to vector<32x32xf32>
    %24 = arith.addf %22, %23 : vector<32x32xf32>
    %25 = arith.truncf %24 : vector<32x32xf32> to vector<32x32xbf16>
    %c0_9 = arith.constant 0 : index
    %c0_10 = arith.constant 0 : index
    %26 = vector.load %arg4[%c0_9, %c0_10] : memref<32x64xf32, #tpu.memory_space<vmem>>, vector<32x64xf32>
    %27 = arith.truncf %26 : vector<32x64xf32> to vector<32x64xbf16>
    %cst_11 = arith.constant dense<0.000000e+00> : vector<32x64xf32>
    %28 = tpu.matmul %25, %27, %cst_11 {dimension_numbers = #tpu.dot_dimension_numbers<[1], [0], [0], [1], [0, 0, 1, 1], [], []>} : vector<32x32xbf16>, vector<32x64xbf16>, vector<32x64xf32> -> vector<32x64xf32>
    %c0_12 = arith.constant 0 : index
    %c0_13 = arith.constant 0 : index
    %29 = vector.load %arg5[%c0_12, %c0_13] : memref<1x64xf32, #tpu.memory_space<vmem>>, vector<1x64xf32>
    %30 = vector.broadcast %29 : vector<1x64xf32> to vector<32x64xf32>
    %31 = arith.addf %28, %30 : vector<32x64xf32>
    %32 = vector.extract_strided_slice %31 {offsets = [0, 0], sizes = [32, 16], strides = [1, 1]} : vector<32x64xf32> to vector<32x16xf32>
    %c0_14 = arith.constant 0 : index
    %c0_15 = arith.constant 0 : index
    %33 = vector.load %arg6[%c0_14, %c0_15] : memref<32x16xf32, #tpu.memory_space<vmem>>, vector<32x16xf32>
    tpu.vector_store %arg6[%c0_14, %c0_15], %32 {strides = array<i32>} : memref<32x16xf32, #tpu.memory_space<vmem>>, vector<32x16xf32>,
    %34 = vector.extract_strided_slice %31 {offsets = [0, 16], sizes = [32, 16], strides = [1, 1]} : vector<32x64xf32> to vector<32x16xf32>
    %c0_16 = arith.constant 0 : index
    %c0_17 = arith.constant 0 : index
    %35 = vector.load %arg7[%c0_16, %c0_17] : memref<32x16xf32, #tpu.memory_space<vmem>>, vector<32x16xf32>
    tpu.vector_store %arg7[%c0_16, %c0_17], %34 {strides = array<i32>} : memref<32x16xf32, #tpu.memory_space<vmem>>, vector<32x16xf32>,
    %36 = vector.extract_strided_slice %31 {offsets = [0, 32], sizes = [32, 16], strides = [1, 1]} : vector<32x64xf32> to vector<32x16xf32>
    %c0_18 = arith.constant 0 : index
    %c0_19 = arith.constant 0 : index
    %37 = vector.load %arg8[%c0_18, %c0_19] : memref<32x16xf32, #tpu.memory_space<vmem>>, vector<32x16xf32>
    tpu.vector_store %arg8[%c0_18, %c0_19], %36 {strides = array<i32>} : memref<32x16xf32, #tpu.memory_space<vmem>>, vector<32x16xf32>,
    %38 = vector.extract_strided_slice %31 {offsets = [0, 48], sizes = [32, 16], strides = [1, 1]} : vector<32x64xf32> to vector<32x16xf32>
    %39 = arith.negf %38 : vector<32x16xf32>
    %40 = math.exp %39 : vector<32x16xf32>
    %cst_20 = arith.constant 1.000000e+00 : f32
    %41 = vector.broadcast %cst_20 : f32 to vector<32x16xf32>
    %42 = arith.addf %41, %40 : vector<32x16xf32>
    %43 = arith.divf %41, %42 : vector<32x16xf32>
    %c0_21 = arith.constant 0 : index
    %c0_22 = arith.constant 0 : index
    %44 = vector.load %arg9[%c0_21, %c0_22] : memref<32x16xf32, #tpu.memory_space<vmem>>, vector<32x16xf32>
    tpu.vector_store %arg9[%c0_21, %c0_22], %43 {strides = array<i32>} : memref<32x16xf32, #tpu.memory_space<vmem>>, vector<32x16xf32>,
    return
  }
  func.func @transform_0(%arg0: i32) -> (i32, i32) {
    %c0_i32 = arith.constant 0 : i32
    %c0_i32_0 = arith.constant 0 : i32
    return %arg0, %c0_i32 : i32, i32
  }
  func.func @transform_1(%arg0: i32) -> (i32, i32) {
    %c0_i32 = arith.constant 0 : i32
    %c0_i32_0 = arith.constant 0 : i32
    %c0_i32_1 = arith.constant 0 : i32
    return %c0_i32, %c0_i32_0 : i32, i32
  }
  func.func @transform_2(%arg0: i32) -> (i32, i32) {
    %c0_i32 = arith.constant 0 : i32
    %c0_i32_0 = arith.constant 0 : i32
    %c0_i32_1 = arith.constant 0 : i32
    return %c0_i32, %c0_i32_0 : i32, i32
  }
  func.func @transform_3(%arg0: i32) -> (i32, i32) {
    %c0_i32 = arith.constant 0 : i32
    %c0_i32_0 = arith.constant 0 : i32
    %c0_i32_1 = arith.constant 0 : i32
    return %c0_i32, %c0_i32_0 : i32, i32
  }
  func.func @transform_4(%arg0: i32) -> (i32, i32) {
    %c0_i32 = arith.constant 0 : i32
    %c0_i32_0 = arith.constant 0 : i32
    %c0_i32_1 = arith.constant 0 : i32
    return %c0_i32, %c0_i32_0 : i32, i32
  }
  func.func @transform_5(%arg0: i32) -> (i32, i32) {
    %c0_i32 = arith.constant 0 : i32
    %c0_i32_0 = arith.constant 0 : i32
    return %arg0, %c0_i32 : i32, i32
  }
  func.func @transform_6(%arg0: i32) -> (i32, i32) {
    %c0_i32 = arith.constant 0 : i32
    %c0_i32_0 = arith.constant 0 : i32
    return %arg0, %c0_i32 : i32, i32
  }
  func.func @transform_7(%arg0: i32) -> (i32, i32) {
    %c0_i32 = arith.constant 0 : i32
    %c0_i32_0 = arith.constant 0 : i32
    return %arg0, %c0_i32 : i32, i32
  }
  func.func @transform_8(%arg0: i32) -> (i32, i32) {
    %c0_i32 = arith.constant 0 : i32
    %c0_i32_0 = arith.constant 0 : i32
    return %arg0, %c0_i32 : i32, i32
  }
}

module attributes {stable_mosaic.version = 11 : i64} {
  func.func @kernel(%arg0: i32, %arg1: memref<64x16xf32, #tpu.memory_space<vmem>>, %arg2: memref<1x16xf32, #tpu.memory_space<vmem>>, %arg3: memref<1x16xf32, #tpu.memory_space<vmem>>, %arg4: memref<16x2xf32, #tpu.memory_space<vmem>>, %arg5: memref<64x2xf32, #tpu.memory_space<vmem>>) attributes {dimension_semantics = [#tpu.dimension_semantics<parallel>], iteration_bounds = array<i64: 1>, scalar_prefetch = 0 : i64, scratch_operands = 0 : i64, tpu.core_type = #tpu.core_type<tc>, window_params = [{transform_indices = @transform_0, window_bounds = array<i64: 64, 16>}, {pipeline_mode = #tpu.pipeline_mode<synchronous>, transform_indices = @transform_1, window_bounds = array<i64: 1, 16>}, {pipeline_mode = #tpu.pipeline_mode<synchronous>, transform_indices = @transform_2, window_bounds = array<i64: 1, 16>}, {pipeline_mode = #tpu.pipeline_mode<synchronous>, transform_indices = @transform_3, window_bounds = array<i64: 16, 2>}, {transform_indices = @transform_4, window_bounds = array<i64: 64, 2>}]} {
    %c0 = arith.constant 0 : index
    %c0_0 = arith.constant 0 : index
    %0 = vector.load %arg1[%c0, %c0_0] : memref<64x16xf32, #tpu.memory_space<vmem>>, vector<64x16xf32>
    %c0_1 = arith.constant 0 : index
    %c0_2 = arith.constant 0 : index
    %1 = vector.load %arg2[%c0_1, %c0_2] : memref<1x16xf32, #tpu.memory_space<vmem>>, vector<1x16xf32>
    %c0_3 = arith.constant 0 : index
    %c0_4 = arith.constant 0 : index
    %2 = vector.load %arg3[%c0_3, %c0_4] : memref<1x16xf32, #tpu.memory_space<vmem>>, vector<1x16xf32>
    %cst = arith.constant dense<0.000000e+00> : vector<64xf32>
    %3 = vector.multi_reduction <add>, %0, %cst [1] : vector<64x16xf32> to vector<64xf32>
    %4 = vector.shape_cast %3 : vector<64xf32> to vector<64x1xf32>
    %cst_5 = arith.constant 1.600000e+01 : f32
    %5 = vector.broadcast %cst_5 : f32 to vector<64x1xf32>
    %6 = arith.divf %4, %5 : vector<64x1xf32>
    %7 = vector.broadcast %6 : vector<64x1xf32> to vector<64x16xf32>
    %8 = arith.subf %0, %7 : vector<64x16xf32>
    %9 = arith.mulf %8, %8 : vector<64x16xf32>
    %cst_6 = arith.constant dense<0.000000e+00> : vector<64xf32>
    %10 = vector.multi_reduction <add>, %9, %cst_6 [1] : vector<64x16xf32> to vector<64xf32>
    %11 = vector.shape_cast %10 : vector<64xf32> to vector<64x1xf32>
    %cst_7 = arith.constant 1.600000e+01 : f32
    %12 = vector.broadcast %cst_7 : f32 to vector<64x1xf32>
    %13 = arith.divf %11, %12 : vector<64x1xf32>
    %14 = vector.broadcast %6 : vector<64x1xf32> to vector<64x16xf32>
    %15 = arith.subf %0, %14 : vector<64x16xf32>
    %cst_8 = arith.constant 9.99999974E-6 : f32
    %16 = vector.broadcast %cst_8 : f32 to vector<64x1xf32>
    %17 = arith.addf %13, %16 : vector<64x1xf32>
    %18 = math.rsqrt %17 : vector<64x1xf32>
    %19 = vector.broadcast %18 : vector<64x1xf32> to vector<64x16xf32>
    %20 = arith.mulf %15, %19 : vector<64x16xf32>
    %21 = vector.broadcast %1 : vector<1x16xf32> to vector<64x16xf32>
    %22 = arith.mulf %20, %21 : vector<64x16xf32>
    %23 = vector.broadcast %2 : vector<1x16xf32> to vector<64x16xf32>
    %24 = arith.addf %22, %23 : vector<64x16xf32>
    %25 = arith.truncf %24 : vector<64x16xf32> to vector<64x16xbf16>
    %c0_9 = arith.constant 0 : index
    %c0_10 = arith.constant 0 : index
    %26 = vector.load %arg4[%c0_9, %c0_10] : memref<16x2xf32, #tpu.memory_space<vmem>>, vector<16x2xf32>
    %27 = arith.truncf %26 : vector<16x2xf32> to vector<16x2xbf16>
    %cst_11 = arith.constant dense<0.000000e+00> : vector<64x2xf32>
    %28 = tpu.matmul %25, %27, %cst_11 {dimension_numbers = #tpu.dot_dimension_numbers<[1], [0], [0], [1], [0, 0, 1, 1], [], []>} : vector<64x16xbf16>, vector<16x2xbf16>, vector<64x2xf32> -> vector<64x2xf32>
    %c0_12 = arith.constant 0 : index
    %c0_13 = arith.constant 0 : index
    %29 = vector.load %arg5[%c0_12, %c0_13] : memref<64x2xf32, #tpu.memory_space<vmem>>, vector<64x2xf32>
    tpu.vector_store %arg5[%c0_12, %c0_13], %28 {strides = array<i32>} : memref<64x2xf32, #tpu.memory_space<vmem>>, vector<64x2xf32>,
    return
  }
  func.func @transform_0(%arg0: i32) -> (i32, i32) {
    %c0_i32 = arith.constant 0 : i32
    %c0_i32_0 = arith.constant 0 : i32
    return %arg0, %c0_i32 : i32, i32
  }
  func.func @transform_1(%arg0: i32) -> (i32, i32) {
    %c0_i32 = arith.constant 0 : i32
    %c0_i32_0 = arith.constant 0 : i32
    %c0_i32_1 = arith.constant 0 : i32
    return %c0_i32, %c0_i32_0 : i32, i32
  }
  func.func @transform_2(%arg0: i32) -> (i32, i32) {
    %c0_i32 = arith.constant 0 : i32
    %c0_i32_0 = arith.constant 0 : i32
    %c0_i32_1 = arith.constant 0 : i32
    return %c0_i32, %c0_i32_0 : i32, i32
  }
  func.func @transform_3(%arg0: i32) -> (i32, i32) {
    %c0_i32 = arith.constant 0 : i32
    %c0_i32_0 = arith.constant 0 : i32
    %c0_i32_1 = arith.constant 0 : i32
    return %c0_i32, %c0_i32_0 : i32, i32
  }
  func.func @transform_4(%arg0: i32) -> (i32, i32) {
    %c0_i32 = arith.constant 0 : i32
    %c0_i32_0 = arith.constant 0 : i32
    return %arg0, %c0_i32 : i32, i32
  }
}

module attributes {stable_mosaic.version = 11 : i64} {
  func.func @kernel(%arg0: i32, %arg1: memref<1x8x16xf32, #tpu.memory_space<vmem>>, %arg2: memref<1x8x16xf32, #tpu.memory_space<vmem>>, %arg3: memref<1x8x16xf32, #tpu.memory_space<vmem>>, %arg4: memref<1x8x16xf32, #tpu.memory_space<vmem>>, %arg5: memref<2x8x8xf32, #tpu.memory_space<vmem>>, %arg6: memref<16x32xf32, #tpu.memory_space<vmem>>, %arg7: memref<1x32xf32, #tpu.memory_space<vmem>>, %arg8: memref<1x8x32xf32, #tpu.memory_space<vmem>>) attributes {dimension_semantics = [#tpu.dimension_semantics<parallel>], iteration_bounds = array<i64: 4>, scalar_prefetch = 0 : i64, scratch_operands = 0 : i64, tpu.core_type = #tpu.core_type<tc>, window_params = [{transform_indices = @transform_0, window_bounds = array<i64: 1, 8, 16>}, {transform_indices = @transform_1, window_bounds = array<i64: 1, 8, 16>}, {transform_indices = @transform_2, window_bounds = array<i64: 1, 8, 16>}, {transform_indices = @transform_3, window_bounds = array<i64: 1, 8, 16>}, {pipeline_mode = #tpu.pipeline_mode<synchronous>, transform_indices = @transform_4, window_bounds = array<i64: 2, 8, 8>}, {pipeline_mode = #tpu.pipeline_mode<synchronous>, transform_indices = @transform_5, window_bounds = array<i64: 16, 32>}, {pipeline_mode = #tpu.pipeline_mode<synchronous>, transform_indices = @transform_6, window_bounds = array<i64: 1, 32>}, {transform_indices = @transform_7, window_bounds = array<i64: 1, 8, 32>}]} {
    %c0 = arith.constant 0 : index
    %c0_0 = arith.constant 0 : index
    %c0_1 = arith.constant 0 : index
    %0 = vector.load %arg1[%c0, %c0_0, %c0_1] : memref<1x8x16xf32, #tpu.memory_space<vmem>>, vector<1x8x16xf32>
    %1 = vector.shape_cast %0 : vector<1x8x16xf32> to vector<8x16xf32>
    %c0_2 = arith.constant 0 : index
    %c0_3 = arith.constant 0 : index
    %c0_4 = arith.constant 0 : index
    %2 = vector.load %arg2[%c0_2, %c0_3, %c0_4] : memref<1x8x16xf32, #tpu.memory_space<vmem>>, vector<1x8x16xf32>
    %3 = vector.shape_cast %2 : vector<1x8x16xf32> to vector<8x16xf32>
    %c0_5 = arith.constant 0 : index
    %c0_6 = arith.constant 0 : index
    %c0_7 = arith.constant 0 : index
    %4 = vector.load %arg3[%c0_5, %c0_6, %c0_7] : memref<1x8x16xf32, #tpu.memory_space<vmem>>, vector<1x8x16xf32>
    %5 = vector.shape_cast %4 : vector<1x8x16xf32> to vector<8x16xf32>
    %6 = vector.extract_strided_slice %1 {offsets = [0, 0], sizes = [8, 8], strides = [1, 1]} : vector<8x16xf32> to vector<8x8xf32>
    %7 = arith.truncf %6 : vector<8x8xf32> to vector<8x8xbf16>
    %8 = vector.extract_strided_slice %3 {offsets = [0, 0], sizes = [8, 8], strides = [1, 1]} : vector<8x16xf32> to vector<8x8xf32>
    %9 = arith.truncf %8 : vector<8x8xf32> to vector<8x8xbf16>
    %cst = arith.constant dense<0.000000e+00> : vector<8x8xf32>
    %10 = tpu.matmul %7, %9, %cst {dimension_numbers = #tpu.dot_dimension_numbers<[1], [1], [0], [0], [0, 0, 1, 0], [], []>} : vector<8x8xbf16>, vector<8x8xbf16>, vector<8x8xf32> -> vector<8x8xf32>
    %c0_8 = arith.constant 0 : index
    %c0_9 = arith.constant 0 : index
    %c0_10 = arith.constant 0 : index
    %11 = vector.load %arg5[%c0_8, %c0_9, %c0_10] : memref<2x8x8xf32, #tpu.memory_space<vmem>>, vector<1x8x8xf32>
    %12 = vector.shape_cast %11 : vector<1x8x8xf32> to vector<8x8xf32>
    %13 = arith.addf %10, %12 : vector<8x8xf32>
    %cst_11 = arith.constant dense<0xFF800000> : vector<8xf32>
    %14 = vector.multi_reduction <maximumf>, %13, %cst_11 [1] : vector<8x8xf32> to vector<8xf32>
    %15 = vector.shape_cast %14 : vector<8xf32> to vector<8x1xf32>
    %16 = vector.broadcast %15 : vector<8x1xf32> to vector<8x8xf32>
    %17 = arith.subf %13, %16 : vector<8x8xf32>
    %18 = math.exp %17 : vector<8x8xf32>
    %cst_12 = arith.constant dense<0.000000e+00> : vector<8xf32>
    %19 = vector.multi_reduction <add>, %18, %cst_12 [1] : vector<8x8xf32> to vector<8xf32>
    %20 = vector.shape_cast %19 : vector<8xf32> to vector<8x1xf32>
    %21 = tpu.reciprocal %20 {approx = true} : vector<8x1xf32> -> vector<8x1xf32>
    %22 = vector.broadcast %21 : vector<8x1xf32> to vector<8x8xf32>
    %23 = arith.mulf %18, %22 : vector<8x8xf32>
    %24 = arith.truncf %23 : vector<8x8xf32> to vector<8x8xbf16>
    %25 = vector.extract_strided_slice %5 {offsets = [0, 0], sizes = [8, 8], strides = [1, 1]} : vector<8x16xf32> to vector<8x8xf32>
    %26 = arith.truncf %25 : vector<8x8xf32> to vector<8x8xbf16>
    %cst_13 = arith.constant dense<0.000000e+00> : vector<8x8xf32>
    %27 = tpu.matmul %24, %26, %cst_13 {dimension_numbers = #tpu.dot_dimension_numbers<[1], [0], [0], [1], [0, 0, 1, 1], [], []>} : vector<8x8xbf16>, vector<8x8xbf16>, vector<8x8xf32> -> vector<8x8xf32>
    %28 = vector.extract_strided_slice %1 {offsets = [0, 8], sizes = [8, 8], strides = [1, 1]} : vector<8x16xf32> to vector<8x8xf32>
    %29 = arith.truncf %28 : vector<8x8xf32> to vector<8x8xbf16>
    %30 = vector.extract_strided_slice %3 {offsets = [0, 8], sizes = [8, 8], strides = [1, 1]} : vector<8x16xf32> to vector<8x8xf32>
    %31 = arith.truncf %30 : vector<8x8xf32> to vector<8x8xbf16>
    %cst_14 = arith.constant dense<0.000000e+00> : vector<8x8xf32>
    %32 = tpu.matmul %29, %31, %cst_14 {dimension_numbers = #tpu.dot_dimension_numbers<[1], [1], [0], [0], [0, 0, 1, 0], [], []>} : vector<8x8xbf16>, vector<8x8xbf16>, vector<8x8xf32> -> vector<8x8xf32>
    %c1 = arith.constant 1 : index
    %c0_15 = arith.constant 0 : index
    %c0_16 = arith.constant 0 : index
    %33 = vector.load %arg5[%c1, %c0_15, %c0_16] : memref<2x8x8xf32, #tpu.memory_space<vmem>>, vector<1x8x8xf32>
    %34 = vector.shape_cast %33 : vector<1x8x8xf32> to vector<8x8xf32>
    %35 = arith.addf %32, %34 : vector<8x8xf32>
    %cst_17 = arith.constant dense<0xFF800000> : vector<8xf32>
    %36 = vector.multi_reduction <maximumf>, %35, %cst_17 [1] : vector<8x8xf32> to vector<8xf32>
    %37 = vector.shape_cast %36 : vector<8xf32> to vector<8x1xf32>
    %38 = vector.broadcast %37 : vector<8x1xf32> to vector<8x8xf32>
    %39 = arith.subf %35, %38 : vector<8x8xf32>
    %40 = math.exp %39 : vector<8x8xf32>
    %cst_18 = arith.constant dense<0.000000e+00> : vector<8xf32>
    %41 = vector.multi_reduction <add>, %40, %cst_18 [1] : vector<8x8xf32> to vector<8xf32>
    %42 = vector.shape_cast %41 : vector<8xf32> to vector<8x1xf32>
    %43 = tpu.reciprocal %42 {approx = true} : vector<8x1xf32> -> vector<8x1xf32>
    %44 = vector.broadcast %43 : vector<8x1xf32> to vector<8x8xf32>
    %45 = arith.mulf %40, %44 : vector<8x8xf32>
    %46 = arith.truncf %45 : vector<8x8xf32> to vector<8x8xbf16>
    %47 = vector.extract_strided_slice %5 {offsets = [0, 8], sizes = [8, 8], strides = [1, 1]} : vector<8x16xf32> to vector<8x8xf32>
    %48 = arith.truncf %47 : vector<8x8xf32> to vector<8x8xbf16>
    %cst_19 = arith.constant dense<0.000000e+00> : vector<8x8xf32>
    %49 = tpu.matmul %46, %48, %cst_19 {dimension_numbers = #tpu.dot_dimension_numbers<[1], [0], [0], [1], [0, 0, 1, 1], [], []>} : vector<8x8xbf16>, vector<8x8xbf16>, vector<8x8xf32> -> vector<8x8xf32>
    %50 = tpu.concatenate %27, %49 in 1 : vector<8x8xf32>, vector<8x8xf32> -> vector<8x16xf32>
    %c0_20 = arith.constant 0 : index
    %c0_21 = arith.constant 0 : index
    %c0_22 = arith.constant 0 : index
    %51 = vector.load %arg4[%c0_20, %c0_21, %c0_22] : memref<1x8x16xf32, #tpu.memory_space<vmem>>, vector<1x8x16xf32>
    %52 = vector.shape_cast %51 : vector<1x8x16xf32> to vector<8x16xf32>
    %53 = arith.mulf %52, %50 : vector<8x16xf32>
    %54 = arith.truncf %53 : vector<8x16xf32> to vector<8x16xbf16>
    %c0_23 = arith.constant 0 : index
    %c0_24 = arith.constant 0 : index
    %55 = vector.load %arg6[%c0_23, %c0_24] : memref<16x32xf32, #tpu.memory_space<vmem>>, vector<16x32xf32>
    %56 = arith.truncf %55 : vector<16x32xf32> to vector<16x32xbf16>
    %cst_25 = arith.constant dense<0.000000e+00> : vector<8x32xf32>
    %57 = tpu.matmul %54, %56, %cst_25 {dimension_numbers = #tpu.dot_dimension_numbers<[1], [0], [0], [1], [0, 0, 1, 1], [], []>} : vector<8x16xbf16>, vector<16x32xbf16>, vector<8x32xf32> -> vector<8x32xf32>
    %c0_26 = arith.constant 0 : index
    %c0_27 = arith.constant 0 : index
    %58 = vector.load %arg7[%c0_26, %c0_27] : memref<1x32xf32, #tpu.memory_space<vmem>>, vector<1x32xf32>
    %59 = vector.broadcast %58 : vector<1x32xf32> to vector<8x32xf32>
    %60 = arith.addf %57, %59 : vector<8x32xf32>
    %c0_28 = arith.constant 0 : index
    %c0_29 = arith.constant 0 : index
    %c0_30 = arith.constant 0 : index
    %61 = vector.load %arg8[%c0_28, %c0_29, %c0_30] : memref<1x8x32xf32, #tpu.memory_space<vmem>>, vector<1x8x32xf32>
    %62 = vector.shape_cast %61 : vector<1x8x32xf32> to vector<8x32xf32>
    %63 = vector.shape_cast %60 : vector<8x32xf32> to vector<1x8x32xf32>
    tpu.vector_store %arg8[%c0_28, %c0_29, %c0_30], %63 {strides = array<i32>} : memref<1x8x32xf32, #tpu.memory_space<vmem>>, vector<1x8x32xf32>,
    return
  }
  func.func @transform_0(%arg0: i32) -> (i32, i32, i32) {
    %c0_i32 = arith.constant 0 : i32
    %c0_i32_0 = arith.constant 0 : i32
    %c0_i32_1 = arith.constant 0 : i32
    return %arg0, %c0_i32, %c0_i32_0 : i32, i32, i32
  }
  func.func @transform_1(%arg0: i32) -> (i32, i32, i32) {
    %c0_i32 = arith.constant 0 : i32
    %c0_i32_0 = arith.constant 0 : i32
    %c0_i32_1 = arith.constant 0 : i32
    return %arg0, %c0_i32, %c0_i32_0 : i32, i32, i32
  }
  func.func @transform_2(%arg0: i32) -> (i32, i32, i32) {
    %c0_i32 = arith.constant 0 : i32
    %c0_i32_0 = arith.constant 0 : i32
    %c0_i32_1 = arith.constant 0 : i32
    return %arg0, %c0_i32, %c0_i32_0 : i32, i32, i32
  }
  func.func @transform_3(%arg0: i32) -> (i32, i32, i32) {
    %c0_i32 = arith.constant 0 : i32
    %c0_i32_0 = arith.constant 0 : i32
    %c0_i32_1 = arith.constant 0 : i32
    return %arg0, %c0_i32, %c0_i32_0 : i32, i32, i32
  }
  func.func @transform_4(%arg0: i32) -> (i32, i32, i32) {
    %c0_i32 = arith.constant 0 : i32
    %c0_i32_0 = arith.constant 0 : i32
    %c0_i32_1 = arith.constant 0 : i32
    %c0_i32_2 = arith.constant 0 : i32
    return %c0_i32, %c0_i32_0, %c0_i32_1 : i32, i32, i32
  }
  func.func @transform_5(%arg0: i32) -> (i32, i32) {
    %c0_i32 = arith.constant 0 : i32
    %c0_i32_0 = arith.constant 0 : i32
    %c0_i32_1 = arith.constant 0 : i32
    return %c0_i32, %c0_i32_0 : i32, i32
  }
  func.func @transform_6(%arg0: i32) -> (i32, i32) {
    %c0_i32 = arith.constant 0 : i32
    %c0_i32_0 = arith.constant 0 : i32
    %c0_i32_1 = arith.constant 0 : i32
    return %c0_i32, %c0_i32_0 : i32, i32
  }
  func.func @transform_7(%arg0: i32) -> (i32, i32, i32) {
    %c0_i32 = arith.constant 0 : i32
    %c0_i32_0 = arith.constant 0 : i32
    %c0_i32_1 = arith.constant 0 : i32
    return %arg0, %c0_i32, %c0_i32_0 : i32, i32, i32
  }
}

module attributes {stable_mosaic.version = 11 : i64} {
  func.func @kernel(%arg0: i32, %arg1: memref<1x4x16xf32, #tpu.memory_space<vmem>>, %arg2: memref<1x4x16xf32, #tpu.memory_space<vmem>>, %arg3: memref<1x4x16xf32, #tpu.memory_space<vmem>>, %arg4: memref<1x4x16xf32, #tpu.memory_space<vmem>>, %arg5: memref<16x32xf32, #tpu.memory_space<vmem>>, %arg6: memref<1x32xf32, #tpu.memory_space<vmem>>, %arg7: memref<1x4x32xf32, #tpu.memory_space<vmem>>) attributes {dimension_semantics = [#tpu.dimension_semantics<parallel>], iteration_bounds = array<i64: 8>, scalar_prefetch = 0 : i64, scratch_operands = 0 : i64, tpu.core_type = #tpu.core_type<tc>, window_params = [{transform_indices = @transform_0, window_bounds = array<i64: 1, 4, 16>}, {transform_indices = @transform_1, window_bounds = array<i64: 1, 4, 16>}, {transform_indices = @transform_2, window_bounds = array<i64: 1, 4, 16>}, {transform_indices = @transform_3, window_bounds = array<i64: 1, 4, 16>}, {pipeline_mode = #tpu.pipeline_mode<synchronous>, transform_indices = @transform_4, window_bounds = array<i64: 16, 32>}, {pipeline_mode = #tpu.pipeline_mode<synchronous>, transform_indices = @transform_5, window_bounds = array<i64: 1, 32>}, {transform_indices = @transform_6, window_bounds = array<i64: 1, 4, 32>}]} {
    %c0 = arith.constant 0 : index
    %c0_0 = arith.constant 0 : index
    %c0_1 = arith.constant 0 : index
    %0 = vector.load %arg1[%c0, %c0_0, %c0_1] : memref<1x4x16xf32, #tpu.memory_space<vmem>>, vector<1x4x16xf32>
    %1 = vector.shape_cast %0 : vector<1x4x16xf32> to vector<4x16xf32>
    %c0_2 = arith.constant 0 : index
    %c0_3 = arith.constant 0 : index
    %c0_4 = arith.constant 0 : index
    %2 = vector.load %arg2[%c0_2, %c0_3, %c0_4] : memref<1x4x16xf32, #tpu.memory_space<vmem>>, vector<1x4x16xf32>
    %3 = vector.shape_cast %2 : vector<1x4x16xf32> to vector<4x16xf32>
    %c0_5 = arith.constant 0 : index
    %c0_6 = arith.constant 0 : index
    %c0_7 = arith.constant 0 : index
    %4 = vector.load %arg3[%c0_5, %c0_6, %c0_7] : memref<1x4x16xf32, #tpu.memory_space<vmem>>, vector<1x4x16xf32>
    %5 = vector.shape_cast %4 : vector<1x4x16xf32> to vector<4x16xf32>
    %6 = vector.extract_strided_slice %1 {offsets = [0, 0], sizes = [4, 8], strides = [1, 1]} : vector<4x16xf32> to vector<4x8xf32>
    %7 = arith.truncf %6 : vector<4x8xf32> to vector<4x8xbf16>
    %8 = vector.extract_strided_slice %3 {offsets = [0, 0], sizes = [4, 8], strides = [1, 1]} : vector<4x16xf32> to vector<4x8xf32>
    %9 = arith.truncf %8 : vector<4x8xf32> to vector<4x8xbf16>
    %cst = arith.constant dense<0.000000e+00> : vector<4x4xf32>
    %10 = tpu.matmul %7, %9, %cst {dimension_numbers = #tpu.dot_dimension_numbers<[1], [1], [0], [0], [0, 0, 1, 0], [], []>} : vector<4x8xbf16>, vector<4x8xbf16>, vector<4x4xf32> -> vector<4x4xf32>
    %cst_8 = arith.constant dense<0xFF800000> : vector<4xf32>
    %11 = vector.multi_reduction <maximumf>, %10, %cst_8 [1] : vector<4x4xf32> to vector<4xf32>
    %12 = vector.shape_cast %11 : vector<4xf32> to vector<4x1xf32>
    %13 = vector.broadcast %12 : vector<4x1xf32> to vector<4x4xf32>
    %14 = arith.subf %10, %13 : vector<4x4xf32>
    %15 = math.exp %14 : vector<4x4xf32>
    %cst_9 = arith.constant dense<0.000000e+00> : vector<4xf32>
    %16 = vector.multi_reduction <add>, %15, %cst_9 [1] : vector<4x4xf32> to vector<4xf32>
    %17 = vector.shape_cast %16 : vector<4xf32> to vector<4x1xf32>
    %18 = tpu.reciprocal %17 {approx = true} : vector<4x1xf32> -> vector<4x1xf32>
    %19 = vector.broadcast %18 : vector<4x1xf32> to vector<4x4xf32>
    %20 = arith.mulf %15, %19 : vector<4x4xf32>
    %21 = arith.truncf %20 : vector<4x4xf32> to vector<4x4xbf16>
    %22 = vector.extract_strided_slice %5 {offsets = [0, 0], sizes = [4, 8], strides = [1, 1]} : vector<4x16xf32> to vector<4x8xf32>
    %23 = arith.truncf %22 : vector<4x8xf32> to vector<4x8xbf16>
    %cst_10 = arith.constant dense<0.000000e+00> : vector<4x8xf32>
    %24 = tpu.matmul %21, %23, %cst_10 {dimension_numbers = #tpu.dot_dimension_numbers<[1], [0], [0], [1], [0, 0, 1, 1], [], []>} : vector<4x4xbf16>, vector<4x8xbf16>, vector<4x8xf32> -> vector<4x8xf32>
    %25 = vector.extract_strided_slice %1 {offsets = [0, 8], sizes = [4, 8], strides = [1, 1]} : vector<4x16xf32> to vector<4x8xf32>
    %26 = arith.truncf %25 : vector<4x8xf32> to vector<4x8xbf16>
    %27 = vector.extract_strided_slice %3 {offsets = [0, 8], sizes = [4, 8], strides = [1, 1]} : vector<4x16xf32> to vector<4x8xf32>
    %28 = arith.truncf %27 : vector<4x8xf32> to vector<4x8xbf16>
    %cst_11 = arith.constant dense<0.000000e+00> : vector<4x4xf32>
    %29 = tpu.matmul %26, %28, %cst_11 {dimension_numbers = #tpu.dot_dimension_numbers<[1], [1], [0], [0], [0, 0, 1, 0], [], []>} : vector<4x8xbf16>, vector<4x8xbf16>, vector<4x4xf32> -> vector<4x4xf32>
    %cst_12 = arith.constant dense<0xFF800000> : vector<4xf32>
    %30 = vector.multi_reduction <maximumf>, %29, %cst_12 [1] : vector<4x4xf32> to vector<4xf32>
    %31 = vector.shape_cast %30 : vector<4xf32> to vector<4x1xf32>
    %32 = vector.broadcast %31 : vector<4x1xf32> to vector<4x4xf32>
    %33 = arith.subf %29, %32 : vector<4x4xf32>
    %34 = math.exp %33 : vector<4x4xf32>
    %cst_13 = arith.constant dense<0.000000e+00> : vector<4xf32>
    %35 = vector.multi_reduction <add>, %34, %cst_13 [1] : vector<4x4xf32> to vector<4xf32>
    %36 = vector.shape_cast %35 : vector<4xf32> to vector<4x1xf32>
    %37 = tpu.reciprocal %36 {approx = true} : vector<4x1xf32> -> vector<4x1xf32>
    %38 = vector.broadcast %37 : vector<4x1xf32> to vector<4x4xf32>
    %39 = arith.mulf %34, %38 : vector<4x4xf32>
    %40 = arith.truncf %39 : vector<4x4xf32> to vector<4x4xbf16>
    %41 = vector.extract_strided_slice %5 {offsets = [0, 8], sizes = [4, 8], strides = [1, 1]} : vector<4x16xf32> to vector<4x8xf32>
    %42 = arith.truncf %41 : vector<4x8xf32> to vector<4x8xbf16>
    %cst_14 = arith.constant dense<0.000000e+00> : vector<4x8xf32>
    %43 = tpu.matmul %40, %42, %cst_14 {dimension_numbers = #tpu.dot_dimension_numbers<[1], [0], [0], [1], [0, 0, 1, 1], [], []>} : vector<4x4xbf16>, vector<4x8xbf16>, vector<4x8xf32> -> vector<4x8xf32>
    %44 = tpu.concatenate %24, %43 in 1 : vector<4x8xf32>, vector<4x8xf32> -> vector<4x16xf32>
    %c0_15 = arith.constant 0 : index
    %c0_16 = arith.constant 0 : index
    %c0_17 = arith.constant 0 : index
    %45 = vector.load %arg4[%c0_15, %c0_16, %c0_17] : memref<1x4x16xf32, #tpu.memory_space<vmem>>, vector<1x4x16xf32>
    %46 = vector.shape_cast %45 : vector<1x4x16xf32> to vector<4x16xf32>
    %47 = arith.mulf %46, %44 : vector<4x16xf32>
    %48 = arith.truncf %47 : vector<4x16xf32> to vector<4x16xbf16>
    %c0_18 = arith.constant 0 : index
    %c0_19 = arith.constant 0 : index
    %49 = vector.load %arg5[%c0_18, %c0_19] : memref<16x32xf32, #tpu.memory_space<vmem>>, vector<16x32xf32>
    %50 = arith.truncf %49 : vector<16x32xf32> to vector<16x32xbf16>
    %cst_20 = arith.constant dense<0.000000e+00> : vector<4x32xf32>
    %51 = tpu.matmul %48, %50, %cst_20 {dimension_numbers = #tpu.dot_dimension_numbers<[1], [0], [0], [1], [0, 0, 1, 1], [], []>} : vector<4x16xbf16>, vector<16x32xbf16>, vector<4x32xf32> -> vector<4x32xf32>
    %c0_21 = arith.constant 0 : index
    %c0_22 = arith.constant 0 : index
    %52 = vector.load %arg6[%c0_21, %c0_22] : memref<1x32xf32, #tpu.memory_space<vmem>>, vector<1x32xf32>
    %53 = vector.broadcast %52 : vector<1x32xf32> to vector<4x32xf32>
    %54 = arith.addf %51, %53 : vector<4x32xf32>
    %c0_23 = arith.constant 0 : index
    %c0_24 = arith.constant 0 : index
    %c0_25 = arith.constant 0 : index
    %55 = vector.load %arg7[%c0_23, %c0_24, %c0_25] : memref<1x4x32xf32, #tpu.memory_space<vmem>>, vector<1x4x32xf32>
    %56 = vector.shape_cast %55 : vector<1x4x32xf32> to vector<4x32xf32>
    %57 = vector.shape_cast %54 : vector<4x32xf32> to vector<1x4x32xf32>
    tpu.vector_store %arg7[%c0_23, %c0_24, %c0_25], %57 {strides = array<i32>} : memref<1x4x32xf32, #tpu.memory_space<vmem>>, vector<1x4x32xf32>,
    return
  }
  func.func @transform_0(%arg0: i32) -> (i32, i32, i32) {
    %c0_i32 = arith.constant 0 : i32
    %c0_i32_0 = arith.constant 0 : i32
    %c0_i32_1 = arith.constant 0 : i32
    return %arg0, %c0_i32, %c0_i32_0 : i32, i32, i32
  }
  func.func @transform_1(%arg0: i32) -> (i32, i32, i32) {
    %c0_i32 = arith.constant 0 : i32
    %c0_i32_0 = arith.constant 0 : i32
    %c0_i32_1 = arith.constant 0 : i32
    return %arg0, %c0_i32, %c0_i32_0 : i32, i32, i32
  }
  func.func @transform_2(%arg0: i32) -> (i32, i32, i32) {
    %c0_i32 = arith.constant 0 : i32
    %c0_i32_0 = arith.constant 0 : i32
    %c0_i32_1 = arith.constant 0 : i32
    return %arg0, %c0_i32, %c0_i32_0 : i32, i32, i32
  }
  func.func @transform_3(%arg0: i32) -> (i32, i32, i32) {
    %c0_i32 = arith.constant 0 : i32
    %c0_i32_0 = arith.constant 0 : i32
    %c0_i32_1 = arith.constant 0 : i32
    return %arg0, %c0_i32, %c0_i32_0 : i32, i32, i32
  }
  func.func @transform_4(%arg0: i32) -> (i32, i32) {
    %c0_i32 = arith.constant 0 : i32
    %c0_i32_0 = arith.constant 0 : i32
    %c0_i32_1 = arith.constant 0 : i32
    return %c0_i32, %c0_i32_0 : i32, i32
  }
  func.func @transform_5(%arg0: i32) -> (i32, i32) {
    %c0_i32 = arith.constant 0 : i32
    %c0_i32_0 = arith.constant 0 : i32
    %c0_i32_1 = arith.constant 0 : i32
    return %c0_i32, %c0_i32_0 : i32, i32
  }
  func.func @transform_6(%arg0: i32) -> (i32, i32, i32) {
    %c0_i32 = arith.constant 0 : i32
    %c0_i32_0 = arith.constant 0 : i32
    %c0_i32_1 = arith.constant 0 : i32
    return %arg0, %c0_i32, %c0_i32_0 : i32, i32, i32
  }
}

module attributes {stable_mosaic.version = 11 : i64} {
  func.func @_transition_kernel(%arg0: i32, %arg1: memref<32x32xf32, #tpu.memory_space<vmem>>, %arg2: memref<1x32xf32, #tpu.memory_space<vmem>>, %arg3: memref<1x32xf32, #tpu.memory_space<vmem>>, %arg4: memref<32x128xf32, #tpu.memory_space<vmem>>, %arg5: memref<1x128xf32, #tpu.memory_space<vmem>>, %arg6: memref<128x32xf32, #tpu.memory_space<vmem>>, %arg7: memref<1x32xf32, #tpu.memory_space<vmem>>, %arg8: memref<32x32xf32, #tpu.memory_space<vmem>>) attributes {dimension_semantics = [#tpu.dimension_semantics<parallel>], iteration_bounds = array<i64: 1>, scalar_prefetch = 0 : i64, scratch_operands = 0 : i64, tpu.core_type = #tpu.core_type<tc>, window_params = [{transform_indices = @transform_0, window_bounds = array<i64: 32, 32>}, {pipeline_mode = #tpu.pipeline_mode<synchronous>, transform_indices = @transform_1, window_bounds = array<i64: 1, 32>}, {pipeline_mode = #tpu.pipeline_mode<synchronous>, transform_indices = @transform_2, window_bounds = array<i64: 1, 32>}, {pipeline_mode = #tpu.pipeline_mode<synchronous>, transform_indices = @transform_3, window_bounds = array<i64: 32, 128>}, {pipeline_mode = #tpu.pipeline_mode<synchronous>, transform_indices = @transform_4, window_bounds = array<i64: 1, 128>}, {pipeline_mode = #tpu.pipeline_mode<synchronous>, transform_indices = @transform_5, window_bounds = array<i64: 128, 32>}, {pipeline_mode = #tpu.pipeline_mode<synchronous>, transform_indices = @transform_6, window_bounds = array<i64: 1, 32>}, {transform_indices = @transform_7, window_bounds = array<i64: 32, 32>}]} {
    %c0 = arith.constant 0 : index
    %c0_0 = arith.constant 0 : index
    %0 = vector.load %arg1[%c0, %c0_0] : memref<32x32xf32, #tpu.memory_space<vmem>>, vector<32x32xf32>
    %c0_1 = arith.constant 0 : index
    %c0_2 = arith.constant 0 : index
    %1 = vector.load %arg2[%c0_1, %c0_2] : memref<1x32xf32, #tpu.memory_space<vmem>>, vector<1x32xf32>
    %c0_3 = arith.constant 0 : index
    %c0_4 = arith.constant 0 : index
    %2 = vector.load %arg3[%c0_3, %c0_4] : memref<1x32xf32, #tpu.memory_space<vmem>>, vector<1x32xf32>
    %cst = arith.constant dense<0.000000e+00> : vector<32xf32>
    %3 = vector.multi_reduction <add>, %0, %cst [1] : vector<32x32xf32> to vector<32xf32>
    %4 = vector.shape_cast %3 : vector<32xf32> to vector<32x1xf32>
    %cst_5 = arith.constant 3.200000e+01 : f32
    %5 = vector.broadcast %cst_5 : f32 to vector<32x1xf32>
    %6 = arith.divf %4, %5 : vector<32x1xf32>
    %7 = vector.broadcast %6 : vector<32x1xf32> to vector<32x32xf32>
    %8 = arith.subf %0, %7 : vector<32x32xf32>
    %9 = arith.mulf %8, %8 : vector<32x32xf32>
    %cst_6 = arith.constant dense<0.000000e+00> : vector<32xf32>
    %10 = vector.multi_reduction <add>, %9, %cst_6 [1] : vector<32x32xf32> to vector<32xf32>
    %11 = vector.shape_cast %10 : vector<32xf32> to vector<32x1xf32>
    %cst_7 = arith.constant 3.200000e+01 : f32
    %12 = vector.broadcast %cst_7 : f32 to vector<32x1xf32>
    %13 = arith.divf %11, %12 : vector<32x1xf32>
    %14 = vector.broadcast %6 : vector<32x1xf32> to vector<32x32xf32>
    %15 = arith.subf %0, %14 : vector<32x32xf32>
    %cst_8 = arith.constant 9.99999974E-6 : f32
    %16 = vector.broadcast %cst_8 : f32 to vector<32x1xf32>
    %17 = arith.addf %13, %16 : vector<32x1xf32>
    %18 = math.rsqrt %17 : vector<32x1xf32>
    %19 = vector.broadcast %18 : vector<32x1xf32> to vector<32x32xf32>
    %20 = arith.mulf %15, %19 : vector<32x32xf32>
    %21 = vector.broadcast %1 : vector<1x32xf32> to vector<32x32xf32>
    %22 = arith.mulf %20, %21 : vector<32x32xf32>
    %23 = vector.broadcast %2 : vector<1x32xf32> to vector<32x32xf32>
    %24 = arith.addf %22, %23 : vector<32x32xf32>
    %25 = arith.truncf %24 : vector<32x32xf32> to vector<32x32xbf16>
    %c0_9 = arith.constant 0 : index
    %c0_10 = arith.constant 0 : index
    %26 = vector.load %arg4[%c0_9, %c0_10] : memref<32x128xf32, #tpu.memory_space<vmem>>, vector<32x128xf32>
    %27 = arith.truncf %26 : vector<32x128xf32> to vector<32x128xbf16>
    %cst_11 = arith.constant dense<0.000000e+00> : vector<32x128xf32>
    %28 = tpu.matmul %25, %27, %cst_11 {dimension_numbers = #tpu.dot_dimension_numbers<[1], [0], [0], [1], [0, 0, 1, 1], [], []>} : vector<32x32xbf16>, vector<32x128xbf16>, vector<32x128xf32> -> vector<32x128xf32>
    %c0_12 = arith.constant 0 : index
    %c0_13 = arith.constant 0 : index
    %29 = vector.load %arg5[%c0_12, %c0_13] : memref<1x128xf32, #tpu.memory_space<vmem>>, vector<1x128xf32>
    %30 = vector.broadcast %29 : vector<1x128xf32> to vector<32x128xf32>
    %31 = arith.addf %28, %30 : vector<32x128xf32>
    %cst_14 = arith.constant 0.000000e+00 : f32
    %32 = vector.broadcast %cst_14 : f32 to vector<32x128xf32>
    %33 = arith.maximumf %31, %32 : vector<32x128xf32>
    %34 = arith.truncf %33 : vector<32x128xf32> to vector<32x128xbf16>
    %c0_15 = arith.constant 0 : index
    %c0_16 = arith.constant 0 : index
    %35 = vector.load %arg6[%c0_15, %c0_16] : memref<128x32xf32, #tpu.memory_space<vmem>>, vector<128x32xf32>
    %36 = arith.truncf %35 : vector<128x32xf32> to vector<128x32xbf16>
    %cst_17 = arith.constant dense<0.000000e+00> : vector<32x32xf32>
    %37 = tpu.matmul %34, %36, %cst_17 {dimension_numbers = #tpu.dot_dimension_numbers<[1], [0], [0], [1], [0, 0, 1, 1], [], []>} : vector<32x128xbf16>, vector<128x32xbf16>, vector<32x32xf32> -> vector<32x32xf32>
    %c0_18 = arith.constant 0 : index
    %c0_19 = arith.constant 0 : index
    %38 = vector.load %arg7[%c0_18, %c0_19] : memref<1x32xf32, #tpu.memory_space<vmem>>, vector<1x32xf32>
    %39 = vector.broadcast %38 : vector<1x32xf32> to vector<32x32xf32>
    %40 = arith.addf %37, %39 : vector<32x32xf32>
    %c0_20 = arith.constant 0 : index
    %c0_21 = arith.constant 0 : index
    %41 = vector.load %arg8[%c0_20, %c0_21] : memref<32x32xf32, #tpu.memory_space<vmem>>, vector<32x32xf32>
    tpu.vector_store %arg8[%c0_20, %c0_21], %40 {strides = array<i32>} : memref<32x32xf32, #tpu.memory_space<vmem>>, vector<32x32xf32>,
    return
  }
  func.func @transform_0(%arg0: i32) -> (i32, i32) {
    %c0_i32 = arith.constant 0 : i32
    %c0_i32_0 = arith.constant 0 : i32
    return %arg0, %c0_i32 : i32, i32
  }
  func.func @transform_1(%arg0: i32) -> (i32, i32) {
    %c0_i32 = arith.constant 0 : i32
    %c0_i32_0 = arith.constant 0 : i32
    %c0_i32_1 = arith.constant 0 : i32
    return %c0_i32, %c0_i32_0 : i32, i32
  }
  func.func @transform_2(%arg0: i32) -> (i32, i32) {
    %c0_i32 = arith.constant 0 : i32
    %c0_i32_0 = arith.constant 0 : i32
    %c0_i32_1 = arith.constant 0 : i32
    return %c0_i32, %c0_i32_0 : i32, i32
  }
  func.func @transform_3(%arg0: i32) -> (i32, i32) {
    %c0_i32 = arith.constant 0 : i32
    %c0_i32_0 = arith.constant 0 : i32
    %c0_i32_1 = arith.constant 0 : i32
    return %c0_i32, %c0_i32_0 : i32, i32
  }
  func.func @transform_4(%arg0: i32) -> (i32, i32) {
    %c0_i32 = arith.constant 0 : i32
    %c0_i32_0 = arith.constant 0 : i32
    %c0_i32_1 = arith.constant 0 : i32
    return %c0_i32, %c0_i32_0 : i32, i32
  }
  func.func @transform_5(%arg0: i32) -> (i32, i32) {
    %c0_i32 = arith.constant 0 : i32
    %c0_i32_0 = arith.constant 0 : i32
    %c0_i32_1 = arith.constant 0 : i32
    return %c0_i32, %c0_i32_0 : i32, i32
  }
  func.func @transform_6(%arg0: i32) -> (i32, i32) {
    %c0_i32 = arith.constant 0 : i32
    %c0_i32_0 = arith.constant 0 : i32
    %c0_i32_1 = arith.constant 0 : i32
    return %c0_i32, %c0_i32_0 : i32, i32
  }
  func.func @transform_7(%arg0: i32) -> (i32, i32) {
    %c0_i32 = arith.constant 0 : i32
    %c0_i32_0 = arith.constant 0 : i32
    return %arg0, %c0_i32 : i32, i32
  }
}

module attributes {stable_mosaic.version = 11 : i64} {
  func.func @_opm_matmul_kernel(%arg0: i32, %arg1: i32, %arg2: i32, %arg3: memref<4x64xf32, #tpu.memory_space<vmem>>, %arg4: memref<4x64xf32, #tpu.memory_space<vmem>>, %arg5: memref<64x64xf32, #tpu.memory_space<vmem>>, %arg6: memref<64x64xf32, #tpu.memory_space<vmem>>) attributes {dimension_semantics = [#tpu.dimension_semantics<parallel>, #tpu.dimension_semantics<parallel>, #tpu.dimension_semantics<arbitrary>], iteration_bounds = array<i64: 1, 1, 1>, scalar_prefetch = 0 : i64, scratch_operands = 1 : i64, tpu.core_type = #tpu.core_type<tc>, window_params = [{transform_indices = @transform_0, window_bounds = array<i64: 4, 64>}, {transform_indices = @transform_1, window_bounds = array<i64: 4, 64>}, {transform_indices = @transform_2, window_bounds = array<i64: 64, 64>}]} {
    %c0_i32 = arith.constant 0 : i32
    %0 = arith.cmpi eq, %arg2, %c0_i32 : i32
    %1 = arith.extui %0 : i1 to i32
    %c0_i32_0 = arith.constant 0 : i32
    %2 = arith.cmpi ne, %1, %c0_i32_0 : i32
    scf.if %2 {
      %cst_10 = arith.constant 0.000000e+00 : f32
      %14 = vector.broadcast %cst_10 : f32 to vector<64x64xf32>
      %c0_11 = arith.constant 0 : index
      %c0_12 = arith.constant 0 : index
      %15 = vector.load %arg6[%c0_11, %c0_12] : memref<64x64xf32, #tpu.memory_space<vmem>>, vector<64x64xf32>
      tpu.vector_store %arg6[%c0_11, %c0_12], %14 {strides = array<i32>} : memref<64x64xf32, #tpu.memory_space<vmem>>, vector<64x64xf32>,
    } else {
    }
    %c0 = arith.constant 0 : index
    %c0_1 = arith.constant 0 : index
    %3 = vector.load %arg6[%c0, %c0_1] : memref<64x64xf32, #tpu.memory_space<vmem>>, vector<64x64xf32>
    %c0_2 = arith.constant 0 : index
    %c0_3 = arith.constant 0 : index
    %4 = vector.load %arg3[%c0_2, %c0_3] : memref<4x64xf32, #tpu.memory_space<vmem>>, vector<4x64xf32>
    %5 = arith.truncf %4 : vector<4x64xf32> to vector<4x64xbf16>
    %c0_4 = arith.constant 0 : index
    %c0_5 = arith.constant 0 : index
    %6 = vector.load %arg4[%c0_4, %c0_5] : memref<4x64xf32, #tpu.memory_space<vmem>>, vector<4x64xf32>
    %7 = arith.truncf %6 : vector<4x64xf32> to vector<4x64xbf16>
    %cst = arith.constant dense<0.000000e+00> : vector<64x64xf32>
    %8 = tpu.matmul %5, %7, %cst {dimension_numbers = #tpu.dot_dimension_numbers<[0], [0], [1], [1], [0, 1, 1, 1], [], []>} : vector<4x64xbf16>, vector<4x64xbf16>, vector<64x64xf32> -> vector<64x64xf32>
    %9 = arith.addf %3, %8 : vector<64x64xf32>
    %c0_6 = arith.constant 0 : index
    %c0_7 = arith.constant 0 : index
    %10 = vector.load %arg6[%c0_6, %c0_7] : memref<64x64xf32, #tpu.memory_space<vmem>>, vector<64x64xf32>
    tpu.vector_store %arg6[%c0_6, %c0_7], %9 {strides = array<i32>} : memref<64x64xf32, #tpu.memory_space<vmem>>, vector<64x64xf32>,
    %c0_i32_8 = arith.constant 0 : i32
    %11 = arith.cmpi eq, %arg2, %c0_i32_8 : i32
    %12 = arith.extui %11 : i1 to i32
    %c0_i32_9 = arith.constant 0 : i32
    %13 = arith.cmpi ne, %12, %c0_i32_9 : i32
    scf.if %13 {
      %c0_10 = arith.constant 0 : index
      %c0_11 = arith.constant 0 : index
      %14 = vector.load %arg6[%c0_10, %c0_11] : memref<64x64xf32, #tpu.memory_space<vmem>>, vector<64x64xf32>
      %cst_12 = arith.constant 2.500000e-01 : f32
      %15 = vector.broadcast %cst_12 : f32 to vector<64x64xf32>
      %16 = arith.mulf %14, %15 : vector<64x64xf32>
      %c0_13 = arith.constant 0 : index
      %c0_14 = arith.constant 0 : index
      %17 = vector.load %arg5[%c0_13, %c0_14] : memref<64x64xf32, #tpu.memory_space<vmem>>, vector<64x64xf32>
      tpu.vector_store %arg5[%c0_13, %c0_14], %16 {strides = array<i32>} : memref<64x64xf32, #tpu.memory_space<vmem>>, vector<64x64xf32>,
    } else {
    }
    return
  }
  func.func @transform_0(%arg0: i32, %arg1: i32, %arg2: i32) -> (i32, i32) {
    %c0_i32 = arith.constant 0 : i32
    return %arg2, %arg0 : i32, i32
  }
  func.func @transform_1(%arg0: i32, %arg1: i32, %arg2: i32) -> (i32, i32) {
    %c0_i32 = arith.constant 0 : i32
    return %arg2, %arg1 : i32, i32
  }
  func.func @transform_2(%arg0: i32, %arg1: i32, %arg2: i32) -> (i32, i32) {
    %c0_i32 = arith.constant 0 : i32
    return %arg0, %arg1 : i32, i32
  }
}

module attributes {stable_mosaic.version = 11 : i64} {
  func.func @kernel(%arg0: i32, %arg1: memref<32x32xf32, #tpu.memory_space<vmem>>, %arg2: memref<1x32xf32, #tpu.memory_space<vmem>>, %arg3: memref<1x32xf32, #tpu.memory_space<vmem>>, %arg4: memref<32x16xf32, #tpu.memory_space<vmem>>, %arg5: memref<1x16xf32, #tpu.memory_space<vmem>>, %arg6: memref<32x8xf32, #tpu.memory_space<vmem>>, %arg7: memref<32x8xf32, #tpu.memory_space<vmem>>) attributes {dimension_semantics = [#tpu.dimension_semantics<parallel>], iteration_bounds = array<i64: 1>, scalar_prefetch = 0 : i64, scratch_operands = 0 : i64, tpu.core_type = #tpu.core_type<tc>, window_params = [{transform_indices = @transform_0, window_bounds = array<i64: 32, 32>}, {pipeline_mode = #tpu.pipeline_mode<synchronous>, transform_indices = @transform_1, window_bounds = array<i64: 1, 32>}, {pipeline_mode = #tpu.pipeline_mode<synchronous>, transform_indices = @transform_2, window_bounds = array<i64: 1, 32>}, {pipeline_mode = #tpu.pipeline_mode<synchronous>, transform_indices = @transform_3, window_bounds = array<i64: 32, 16>}, {pipeline_mode = #tpu.pipeline_mode<synchronous>, transform_indices = @transform_4, window_bounds = array<i64: 1, 16>}, {transform_indices = @transform_5, window_bounds = array<i64: 32, 8>}, {transform_indices = @transform_6, window_bounds = array<i64: 32, 8>}]} {
    %c0 = arith.constant 0 : index
    %c0_0 = arith.constant 0 : index
    %0 = vector.load %arg1[%c0, %c0_0] : memref<32x32xf32, #tpu.memory_space<vmem>>, vector<32x32xf32>
    %c0_1 = arith.constant 0 : index
    %c0_2 = arith.constant 0 : index
    %1 = vector.load %arg2[%c0_1, %c0_2] : memref<1x32xf32, #tpu.memory_space<vmem>>, vector<1x32xf32>
    %c0_3 = arith.constant 0 : index
    %c0_4 = arith.constant 0 : index
    %2 = vector.load %arg3[%c0_3, %c0_4] : memref<1x32xf32, #tpu.memory_space<vmem>>, vector<1x32xf32>
    %cst = arith.constant dense<0.000000e+00> : vector<32xf32>
    %3 = vector.multi_reduction <add>, %0, %cst [1] : vector<32x32xf32> to vector<32xf32>
    %4 = vector.shape_cast %3 : vector<32xf32> to vector<32x1xf32>
    %cst_5 = arith.constant 3.200000e+01 : f32
    %5 = vector.broadcast %cst_5 : f32 to vector<32x1xf32>
    %6 = arith.divf %4, %5 : vector<32x1xf32>
    %7 = vector.broadcast %6 : vector<32x1xf32> to vector<32x32xf32>
    %8 = arith.subf %0, %7 : vector<32x32xf32>
    %9 = arith.mulf %8, %8 : vector<32x32xf32>
    %cst_6 = arith.constant dense<0.000000e+00> : vector<32xf32>
    %10 = vector.multi_reduction <add>, %9, %cst_6 [1] : vector<32x32xf32> to vector<32xf32>
    %11 = vector.shape_cast %10 : vector<32xf32> to vector<32x1xf32>
    %cst_7 = arith.constant 3.200000e+01 : f32
    %12 = vector.broadcast %cst_7 : f32 to vector<32x1xf32>
    %13 = arith.divf %11, %12 : vector<32x1xf32>
    %14 = vector.broadcast %6 : vector<32x1xf32> to vector<32x32xf32>
    %15 = arith.subf %0, %14 : vector<32x32xf32>
    %cst_8 = arith.constant 9.99999974E-6 : f32
    %16 = vector.broadcast %cst_8 : f32 to vector<32x1xf32>
    %17 = arith.addf %13, %16 : vector<32x1xf32>
    %18 = math.rsqrt %17 : vector<32x1xf32>
    %19 = vector.broadcast %18 : vector<32x1xf32> to vector<32x32xf32>
    %20 = arith.mulf %15, %19 : vector<32x32xf32>
    %21 = vector.broadcast %1 : vector<1x32xf32> to vector<32x32xf32>
    %22 = arith.mulf %20, %21 : vector<32x32xf32>
    %23 = vector.broadcast %2 : vector<1x32xf32> to vector<32x32xf32>
    %24 = arith.addf %22, %23 : vector<32x32xf32>
    %25 = arith.truncf %24 : vector<32x32xf32> to vector<32x32xbf16>
    %c0_9 = arith.constant 0 : index
    %c0_10 = arith.constant 0 : index
    %26 = vector.load %arg4[%c0_9, %c0_10] : memref<32x16xf32, #tpu.memory_space<vmem>>, vector<32x16xf32>
    %27 = arith.truncf %26 : vector<32x16xf32> to vector<32x16xbf16>
    %cst_11 = arith.constant dense<0.000000e+00> : vector<32x16xf32>
    %28 = tpu.matmul %25, %27, %cst_11 {dimension_numbers = #tpu.dot_dimension_numbers<[1], [0], [0], [1], [0, 0, 1, 1], [], []>} : vector<32x32xbf16>, vector<32x16xbf16>, vector<32x16xf32> -> vector<32x16xf32>
    %c0_12 = arith.constant 0 : index
    %c0_13 = arith.constant 0 : index
    %29 = vector.load %arg5[%c0_12, %c0_13] : memref<1x16xf32, #tpu.memory_space<vmem>>, vector<1x16xf32>
    %30 = vector.broadcast %29 : vector<1x16xf32> to vector<32x16xf32>
    %31 = arith.addf %28, %30 : vector<32x16xf32>
    %32 = vector.extract_strided_slice %31 {offsets = [0, 0], sizes = [32, 8], strides = [1, 1]} : vector<32x16xf32> to vector<32x8xf32>
    %c0_14 = arith.constant 0 : index
    %c0_15 = arith.constant 0 : index
    %33 = vector.load %arg6[%c0_14, %c0_15] : memref<32x8xf32, #tpu.memory_space<vmem>>, vector<32x8xf32>
    tpu.vector_store %arg6[%c0_14, %c0_15], %32 {strides = array<i32>} : memref<32x8xf32, #tpu.memory_space<vmem>>, vector<32x8xf32>,
    %34 = vector.extract_strided_slice %31 {offsets = [0, 8], sizes = [32, 8], strides = [1, 1]} : vector<32x16xf32> to vector<32x8xf32>
    %c0_16 = arith.constant 0 : index
    %c0_17 = arith.constant 0 : index
    %35 = vector.load %arg7[%c0_16, %c0_17] : memref<32x8xf32, #tpu.memory_space<vmem>>, vector<32x8xf32>
    tpu.vector_store %arg7[%c0_16, %c0_17], %34 {strides = array<i32>} : memref<32x8xf32, #tpu.memory_space<vmem>>, vector<32x8xf32>,
    return
  }
  func.func @transform_0(%arg0: i32) -> (i32, i32) {
    %c0_i32 = arith.constant 0 : i32
    %c0_i32_0 = arith.constant 0 : i32
    return %arg0, %c0_i32 : i32, i32
  }
  func.func @transform_1(%arg0: i32) -> (i32, i32) {
    %c0_i32 = arith.constant 0 : i32
    %c0_i32_0 = arith.constant 0 : i32
    %c0_i32_1 = arith.constant 0 : i32
    return %c0_i32, %c0_i32_0 : i32, i32
  }
  func.func @transform_2(%arg0: i32) -> (i32, i32) {
    %c0_i32 = arith.constant 0 : i32
    %c0_i32_0 = arith.constant 0 : i32
    %c0_i32_1 = arith.constant 0 : i32
    return %c0_i32, %c0_i32_0 : i32, i32
  }
  func.func @transform_3(%arg0: i32) -> (i32, i32) {
    %c0_i32 = arith.constant 0 : i32
    %c0_i32_0 = arith.constant 0 : i32
    %c0_i32_1 = arith.constant 0 : i32
    return %c0_i32, %c0_i32_0 : i32, i32
  }
  func.func @transform_4(%arg0: i32) -> (i32, i32) {
    %c0_i32 = arith.constant 0 : i32
    %c0_i32_0 = arith.constant 0 : i32
    %c0_i32_1 = arith.constant 0 : i32
    return %c0_i32, %c0_i32_0 : i32, i32
  }
  func.func @transform_5(%arg0: i32) -> (i32, i32) {
    %c0_i32 = arith.constant 0 : i32
    %c0_i32_0 = arith.constant 0 : i32
    return %arg0, %c0_i32 : i32, i32
  }
  func.func @transform_6(%arg0: i32) -> (i32, i32) {
    %c0_i32 = arith.constant 0 : i32
    %c0_i32_0 = arith.constant 0 : i32
    return %arg0, %c0_i32 : i32, i32
  }
}

module attributes {stable_mosaic.version = 11 : i64} {
  func.func @_linear_kernel(%arg0: i32, %arg1: memref<64x64xf32, #tpu.memory_space<vmem>>, %arg2: memref<64x16xf32, #tpu.memory_space<vmem>>, %arg3: memref<1x16xf32, #tpu.memory_space<vmem>>, %arg4: memref<64x16xf32, #tpu.memory_space<vmem>>) attributes {dimension_semantics = [#tpu.dimension_semantics<parallel>], iteration_bounds = array<i64: 1>, scalar_prefetch = 0 : i64, scratch_operands = 0 : i64, tpu.core_type = #tpu.core_type<tc>, window_params = [{transform_indices = @transform_0, window_bounds = array<i64: 64, 64>}, {pipeline_mode = #tpu.pipeline_mode<synchronous>, transform_indices = @transform_1, window_bounds = array<i64: 64, 16>}, {pipeline_mode = #tpu.pipeline_mode<synchronous>, transform_indices = @transform_2, window_bounds = array<i64: 1, 16>}, {transform_indices = @transform_3, window_bounds = array<i64: 64, 16>}]} {
    %c0 = arith.constant 0 : index
    %c0_0 = arith.constant 0 : index
    %0 = vector.load %arg1[%c0, %c0_0] : memref<64x64xf32, #tpu.memory_space<vmem>>, vector<64x64xf32>
    %1 = arith.truncf %0 : vector<64x64xf32> to vector<64x64xbf16>
    %c0_1 = arith.constant 0 : index
    %c0_2 = arith.constant 0 : index
    %2 = vector.load %arg2[%c0_1, %c0_2] : memref<64x16xf32, #tpu.memory_space<vmem>>, vector<64x16xf32>
    %3 = arith.truncf %2 : vector<64x16xf32> to vector<64x16xbf16>
    %cst = arith.constant dense<0.000000e+00> : vector<64x16xf32>
    %4 = tpu.matmul %1, %3, %cst {dimension_numbers = #tpu.dot_dimension_numbers<[1], [0], [0], [1], [0, 0, 1, 1], [], []>} : vector<64x64xbf16>, vector<64x16xbf16>, vector<64x16xf32> -> vector<64x16xf32>
    %c0_3 = arith.constant 0 : index
    %c0_4 = arith.constant 0 : index
    %5 = vector.load %arg3[%c0_3, %c0_4] : memref<1x16xf32, #tpu.memory_space<vmem>>, vector<1x16xf32>
    %6 = vector.broadcast %5 : vector<1x16xf32> to vector<64x16xf32>
    %7 = arith.addf %4, %6 : vector<64x16xf32>
    %c0_5 = arith.constant 0 : index
    %c0_6 = arith.constant 0 : index
    %8 = vector.load %arg4[%c0_5, %c0_6] : memref<64x16xf32, #tpu.memory_space<vmem>>, vector<64x16xf32>
    tpu.vector_store %arg4[%c0_5, %c0_6], %7 {strides = array<i32>} : memref<64x16xf32, #tpu.memory_space<vmem>>, vector<64x16xf32>,
    return
  }
  func.func @transform_0(%arg0: i32) -> (i32, i32) {
    %c0_i32 = arith.constant 0 : i32
    %c0_i32_0 = arith.constant 0 : i32
    return %arg0, %c0_i32 : i32, i32
  }
  func.func @transform_1(%arg0: i32) -> (i32, i32) {
    %c0_i32 = arith.constant 0 : i32
    %c0_i32_0 = arith.constant 0 : i32
    %c0_i32_1 = arith.constant 0 : i32
    return %c0_i32, %c0_i32_0 : i32, i32
  }
  func.func @transform_2(%arg0: i32) -> (i32, i32) {
    %c0_i32 = arith.constant 0 : i32
    %c0_i32_0 = arith.constant 0 : i32
    %c0_i32_1 = arith.constant 0 : i32
    return %c0_i32, %c0_i32_0 : i32, i32
  }
  func.func @transform_3(%arg0: i32) -> (i32, i32) {
    %c0_i32 = arith.constant 0 : i32
    %c0_i32_0 = arith.constant 0 : i32
    return %arg0, %c0_i32 : i32, i32
  }
}

module attributes {stable_mosaic.version = 11 : i64} {
  func.func @_ln_tri_proj_kernel(%arg0: i32, %arg1: memref<64x16xf32, #tpu.memory_space<vmem>>, %arg2: memref<1x16xf32, #tpu.memory_space<vmem>>, %arg3: memref<1x16xf32, #tpu.memory_space<vmem>>, %arg4: memref<16x80xf32, #tpu.memory_space<vmem>>, %arg5: memref<1x80xf32, #tpu.memory_space<vmem>>, %arg6: memref<64x16xf32, #tpu.memory_space<vmem>>, %arg7: memref<64x16xf32, #tpu.memory_space<vmem>>, %arg8: memref<64x16xf32, #tpu.memory_space<vmem>>) attributes {dimension_semantics = [#tpu.dimension_semantics<parallel>], iteration_bounds = array<i64: 1>, scalar_prefetch = 0 : i64, scratch_operands = 0 : i64, tpu.core_type = #tpu.core_type<tc>, window_params = [{transform_indices = @transform_0, window_bounds = array<i64: 64, 16>}, {pipeline_mode = #tpu.pipeline_mode<synchronous>, transform_indices = @transform_1, window_bounds = array<i64: 1, 16>}, {pipeline_mode = #tpu.pipeline_mode<synchronous>, transform_indices = @transform_2, window_bounds = array<i64: 1, 16>}, {pipeline_mode = #tpu.pipeline_mode<synchronous>, transform_indices = @transform_3, window_bounds = array<i64: 16, 80>}, {pipeline_mode = #tpu.pipeline_mode<synchronous>, transform_indices = @transform_4, window_bounds = array<i64: 1, 80>}, {transform_indices = @transform_5, window_bounds = array<i64: 64, 16>}, {transform_indices = @transform_6, window_bounds = array<i64: 64, 16>}, {transform_indices = @transform_7, window_bounds = array<i64: 64, 16>}]} {
    %c0 = arith.constant 0 : index
    %c0_0 = arith.constant 0 : index
    %0 = vector.load %arg1[%c0, %c0_0] : memref<64x16xf32, #tpu.memory_space<vmem>>, vector<64x16xf32>
    %c0_1 = arith.constant 0 : index
    %c0_2 = arith.constant 0 : index
    %1 = vector.load %arg2[%c0_1, %c0_2] : memref<1x16xf32, #tpu.memory_space<vmem>>, vector<1x16xf32>
    %c0_3 = arith.constant 0 : index
    %c0_4 = arith.constant 0 : index
    %2 = vector.load %arg3[%c0_3, %c0_4] : memref<1x16xf32, #tpu.memory_space<vmem>>, vector<1x16xf32>
    %cst = arith.constant dense<0.000000e+00> : vector<64xf32>
    %3 = vector.multi_reduction <add>, %0, %cst [1] : vector<64x16xf32> to vector<64xf32>
    %4 = vector.shape_cast %3 : vector<64xf32> to vector<64x1xf32>
    %cst_5 = arith.constant 1.600000e+01 : f32
    %5 = vector.broadcast %cst_5 : f32 to vector<64x1xf32>
    %6 = arith.divf %4, %5 : vector<64x1xf32>
    %7 = vector.broadcast %6 : vector<64x1xf32> to vector<64x16xf32>
    %8 = arith.subf %0, %7 : vector<64x16xf32>
    %9 = arith.mulf %8, %8 : vector<64x16xf32>
    %cst_6 = arith.constant dense<0.000000e+00> : vector<64xf32>
    %10 = vector.multi_reduction <add>, %9, %cst_6 [1] : vector<64x16xf32> to vector<64xf32>
    %11 = vector.shape_cast %10 : vector<64xf32> to vector<64x1xf32>
    %cst_7 = arith.constant 1.600000e+01 : f32
    %12 = vector.broadcast %cst_7 : f32 to vector<64x1xf32>
    %13 = arith.divf %11, %12 : vector<64x1xf32>
    %14 = vector.broadcast %6 : vector<64x1xf32> to vector<64x16xf32>
    %15 = arith.subf %0, %14 : vector<64x16xf32>
    %cst_8 = arith.constant 9.99999974E-6 : f32
    %16 = vector.broadcast %cst_8 : f32 to vector<64x1xf32>
    %17 = arith.addf %13, %16 : vector<64x1xf32>
    %18 = math.rsqrt %17 : vector<64x1xf32>
    %19 = vector.broadcast %18 : vector<64x1xf32> to vector<64x16xf32>
    %20 = arith.mulf %15, %19 : vector<64x16xf32>
    %21 = vector.broadcast %1 : vector<1x16xf32> to vector<64x16xf32>
    %22 = arith.mulf %20, %21 : vector<64x16xf32>
    %23 = vector.broadcast %2 : vector<1x16xf32> to vector<64x16xf32>
    %24 = arith.addf %22, %23 : vector<64x16xf32>
    %25 = arith.truncf %24 : vector<64x16xf32> to vector<64x16xbf16>
    %c0_9 = arith.constant 0 : index
    %c0_10 = arith.constant 0 : index
    %26 = vector.load %arg4[%c0_9, %c0_10] : memref<16x80xf32, #tpu.memory_space<vmem>>, vector<16x80xf32>
    %27 = arith.truncf %26 : vector<16x80xf32> to vector<16x80xbf16>
    %cst_11 = arith.constant dense<0.000000e+00> : vector<64x80xf32>
    %28 = tpu.matmul %25, %27, %cst_11 {dimension_numbers = #tpu.dot_dimension_numbers<[1], [0], [0], [1], [0, 0, 1, 1], [], []>} : vector<64x16xbf16>, vector<16x80xbf16>, vector<64x80xf32> -> vector<64x80xf32>
    %c0_12 = arith.constant 0 : index
    %c0_13 = arith.constant 0 : index
    %29 = vector.load %arg5[%c0_12, %c0_13] : memref<1x80xf32, #tpu.memory_space<vmem>>, vector<1x80xf32>
    %30 = vector.broadcast %29 : vector<1x80xf32> to vector<64x80xf32>
    %31 = arith.addf %28, %30 : vector<64x80xf32>
    %32 = vector.extract_strided_slice %31 {offsets = [0, 0], sizes = [64, 16], strides = [1, 1]} : vector<64x80xf32> to vector<64x16xf32>
    %33 = arith.negf %32 : vector<64x16xf32>
    %34 = math.exp %33 : vector<64x16xf32>
    %cst_14 = arith.constant 1.000000e+00 : f32
    %35 = vector.broadcast %cst_14 : f32 to vector<64x16xf32>
    %36 = arith.addf %35, %34 : vector<64x16xf32>
    %37 = arith.divf %35, %36 : vector<64x16xf32>
    %38 = vector.extract_strided_slice %31 {offsets = [0, 16], sizes = [64, 16], strides = [1, 1]} : vector<64x80xf32> to vector<64x16xf32>
    %39 = arith.mulf %37, %38 : vector<64x16xf32>
    %c0_15 = arith.constant 0 : index
    %c0_16 = arith.constant 0 : index
    %40 = vector.load %arg6[%c0_15, %c0_16] : memref<64x16xf32, #tpu.memory_space<vmem>>, vector<64x16xf32>
    tpu.vector_store %arg6[%c0_15, %c0_16], %39 {strides = array<i32>} : memref<64x16xf32, #tpu.memory_space<vmem>>, vector<64x16xf32>,
    %41 = vector.extract_strided_slice %31 {offsets = [0, 32], sizes = [64, 16], strides = [1, 1]} : vector<64x80xf32> to vector<64x16xf32>
    %42 = arith.negf %41 : vector<64x16xf32>
    %43 = math.exp %42 : vector<64x16xf32>
    %cst_17 = arith.constant 1.000000e+00 : f32
    %44 = vector.broadcast %cst_17 : f32 to vector<64x16xf32>
    %45 = arith.addf %44, %43 : vector<64x16xf32>
    %46 = arith.divf %44, %45 : vector<64x16xf32>
    %47 = vector.extract_strided_slice %31 {offsets = [0, 48], sizes = [64, 16], strides = [1, 1]} : vector<64x80xf32> to vector<64x16xf32>
    %48 = arith.mulf %46, %47 : vector<64x16xf32>
    %c0_18 = arith.constant 0 : index
    %c0_19 = arith.constant 0 : index
    %49 = vector.load %arg7[%c0_18, %c0_19] : memref<64x16xf32, #tpu.memory_space<vmem>>, vector<64x16xf32>
    tpu.vector_store %arg7[%c0_18, %c0_19], %48 {strides = array<i32>} : memref<64x16xf32, #tpu.memory_space<vmem>>, vector<64x16xf32>,
    %50 = vector.extract_strided_slice %31 {offsets = [0, 64], sizes = [64, 16], strides = [1, 1]} : vector<64x80xf32> to vector<64x16xf32>
    %51 = arith.negf %50 : vector<64x16xf32>
    %52 = math.exp %51 : vector<64x16xf32>
    %cst_20 = arith.constant 1.000000e+00 : f32
    %53 = vector.broadcast %cst_20 : f32 to vector<64x16xf32>
    %54 = arith.addf %53, %52 : vector<64x16xf32>
    %55 = arith.divf %53, %54 : vector<64x16xf32>
    %c0_21 = arith.constant 0 : index
    %c0_22 = arith.constant 0 : index
    %56 = vector.load %arg8[%c0_21, %c0_22] : memref<64x16xf32, #tpu.memory_space<vmem>>, vector<64x16xf32>
    tpu.vector_store %arg8[%c0_21, %c0_22], %55 {strides = array<i32>} : memref<64x16xf32, #tpu.memory_space<vmem>>, vector<64x16xf32>,
    return
  }
  func.func @transform_0(%arg0: i32) -> (i32, i32) {
    %c0_i32 = arith.constant 0 : i32
    %c0_i32_0 = arith.constant 0 : i32
    return %arg0, %c0_i32 : i32, i32
  }
  func.func @transform_1(%arg0: i32) -> (i32, i32) {
    %c0_i32 = arith.constant 0 : i32
    %c0_i32_0 = arith.constant 0 : i32
    %c0_i32_1 = arith.constant 0 : i32
    return %c0_i32, %c0_i32_0 : i32, i32
  }
  func.func @transform_2(%arg0: i32) -> (i32, i32) {
    %c0_i32 = arith.constant 0 : i32
    %c0_i32_0 = arith.constant 0 : i32
    %c0_i32_1 = arith.constant 0 : i32
    return %c0_i32, %c0_i32_0 : i32, i32
  }
  func.func @transform_3(%arg0: i32) -> (i32, i32) {
    %c0_i32 = arith.constant 0 : i32
    %c0_i32_0 = arith.constant 0 : i32
    %c0_i32_1 = arith.constant 0 : i32
    return %c0_i32, %c0_i32_0 : i32, i32
  }
  func.func @transform_4(%arg0: i32) -> (i32, i32) {
    %c0_i32 = arith.constant 0 : i32
    %c0_i32_0 = arith.constant 0 : i32
    %c0_i32_1 = arith.constant 0 : i32
    return %c0_i32, %c0_i32_0 : i32, i32
  }
  func.func @transform_5(%arg0: i32) -> (i32, i32) {
    %c0_i32 = arith.constant 0 : i32
    %c0_i32_0 = arith.constant 0 : i32
    return %arg0, %c0_i32 : i32, i32
  }
  func.func @transform_6(%arg0: i32) -> (i32, i32) {
    %c0_i32 = arith.constant 0 : i32
    %c0_i32_0 = arith.constant 0 : i32
    return %arg0, %c0_i32 : i32, i32
  }
  func.func @transform_7(%arg0: i32) -> (i32, i32) {
    %c0_i32 = arith.constant 0 : i32
    %c0_i32_0 = arith.constant 0 : i32
    return %arg0, %c0_i32 : i32, i32
  }
}

module attributes {stable_mosaic.version = 11 : i64} {
  func.func @kernel(%arg0: i32, %arg1: memref<1x8x8xf32, #tpu.memory_space<vmem>>, %arg2: memref<1x8x8xf32, #tpu.memory_space<vmem>>, %arg3: memref<1x8x8xf32, #tpu.memory_space<vmem>>) attributes {dimension_semantics = [#tpu.dimension_semantics<parallel>], iteration_bounds = array<i64: 16>, scalar_prefetch = 0 : i64, scratch_operands = 0 : i64, tpu.core_type = #tpu.core_type<tc>, window_params = [{transform_indices = @transform_0, window_bounds = array<i64: 1, 8, 8>}, {transform_indices = @transform_1, window_bounds = array<i64: 1, 8, 8>}, {transform_indices = @transform_2, window_bounds = array<i64: 1, 8, 8>}]} {
    %c0 = arith.constant 0 : index
    %c0_0 = arith.constant 0 : index
    %c0_1 = arith.constant 0 : index
    %0 = vector.load %arg1[%c0, %c0_0, %c0_1] : memref<1x8x8xf32, #tpu.memory_space<vmem>>, vector<1x8x8xf32>
    %1 = vector.shape_cast %0 : vector<1x8x8xf32> to vector<8x8xf32>
    %2 = arith.truncf %1 : vector<8x8xf32> to vector<8x8xbf16>
    %c0_2 = arith.constant 0 : index
    %c0_3 = arith.constant 0 : index
    %c0_4 = arith.constant 0 : index
    %3 = vector.load %arg2[%c0_2, %c0_3, %c0_4] : memref<1x8x8xf32, #tpu.memory_space<vmem>>, vector<1x8x8xf32>
    %4 = vector.shape_cast %3 : vector<1x8x8xf32> to vector<8x8xf32>
    %5 = arith.truncf %4 : vector<8x8xf32> to vector<8x8xbf16>
    %cst = arith.constant dense<0.000000e+00> : vector<8x8xf32>
    %6 = tpu.matmul %2, %5, %cst {dimension_numbers = #tpu.dot_dimension_numbers<[1], [1], [0], [0], [0, 0, 1, 0], [], []>} : vector<8x8xbf16>, vector<8x8xbf16>, vector<8x8xf32> -> vector<8x8xf32>
    %c0_5 = arith.constant 0 : index
    %c0_6 = arith.constant 0 : index
    %c0_7 = arith.constant 0 : index
    %7 = vector.load %arg3[%c0_5, %c0_6, %c0_7] : memref<1x8x8xf32, #tpu.memory_space<vmem>>, vector<1x8x8xf32>
    %8 = vector.shape_cast %7 : vector<1x8x8xf32> to vector<8x8xf32>
    %9 = vector.shape_cast %6 : vector<8x8xf32> to vector<1x8x8xf32>
    tpu.vector_store %arg3[%c0_5, %c0_6, %c0_7], %9 {strides = array<i32>} : memref<1x8x8xf32, #tpu.memory_space<vmem>>, vector<1x8x8xf32>,
    return
  }
  func.func @transform_0(%arg0: i32) -> (i32, i32, i32) {
    %c0_i32 = arith.constant 0 : i32
    %c0_i32_0 = arith.constant 0 : i32
    %c0_i32_1 = arith.constant 0 : i32
    return %arg0, %c0_i32, %c0_i32_0 : i32, i32, i32
  }
  func.func @transform_1(%arg0: i32) -> (i32, i32, i32) {
    %c0_i32 = arith.constant 0 : i32
    %c0_i32_0 = arith.constant 0 : i32
    %c0_i32_1 = arith.constant 0 : i32
    return %arg0, %c0_i32, %c0_i32_0 : i32, i32, i32
  }
  func.func @transform_2(%arg0: i32) -> (i32, i32, i32) {
    %c0_i32 = arith.constant 0 : i32
    %c0_i32_0 = arith.constant 0 : i32
    %c0_i32_1 = arith.constant 0 : i32
    return %arg0, %c0_i32, %c0_i32_0 : i32, i32, i32
  }
}

module attributes {stable_mosaic.version = 11 : i64} {
  func.func @_tri_out_kernel(%arg0: i32, %arg1: memref<64x16xf32, #tpu.memory_space<vmem>>, %arg2: memref<64x16xf32, #tpu.memory_space<vmem>>, %arg3: memref<1x16xf32, #tpu.memory_space<vmem>>, %arg4: memref<1x16xf32, #tpu.memory_space<vmem>>, %arg5: memref<16x16xf32, #tpu.memory_space<vmem>>, %arg6: memref<1x16xf32, #tpu.memory_space<vmem>>, %arg7: memref<64x16xf32, #tpu.memory_space<vmem>>) attributes {dimension_semantics = [#tpu.dimension_semantics<parallel>], iteration_bounds = array<i64: 1>, scalar_prefetch = 0 : i64, scratch_operands = 0 : i64, tpu.core_type = #tpu.core_type<tc>, window_params = [{transform_indices = @transform_0, window_bounds = array<i64: 64, 16>}, {transform_indices = @transform_1, window_bounds = array<i64: 64, 16>}, {pipeline_mode = #tpu.pipeline_mode<synchronous>, transform_indices = @transform_2, window_bounds = array<i64: 1, 16>}, {pipeline_mode = #tpu.pipeline_mode<synchronous>, transform_indices = @transform_3, window_bounds = array<i64: 1, 16>}, {pipeline_mode = #tpu.pipeline_mode<synchronous>, transform_indices = @transform_4, window_bounds = array<i64: 16, 16>}, {pipeline_mode = #tpu.pipeline_mode<synchronous>, transform_indices = @transform_5, window_bounds = array<i64: 1, 16>}, {transform_indices = @transform_6, window_bounds = array<i64: 64, 16>}]} {
    %c0 = arith.constant 0 : index
    %c0_0 = arith.constant 0 : index
    %0 = vector.load %arg1[%c0, %c0_0] : memref<64x16xf32, #tpu.memory_space<vmem>>, vector<64x16xf32>
    %c0_1 = arith.constant 0 : index
    %c0_2 = arith.constant 0 : index
    %1 = vector.load %arg3[%c0_1, %c0_2] : memref<1x16xf32, #tpu.memory_space<vmem>>, vector<1x16xf32>
    %c0_3 = arith.constant 0 : index
    %c0_4 = arith.constant 0 : index
    %2 = vector.load %arg4[%c0_3, %c0_4] : memref<1x16xf32, #tpu.memory_space<vmem>>, vector<1x16xf32>
    %cst = arith.constant dense<0.000000e+00> : vector<64xf32>
    %3 = vector.multi_reduction <add>, %0, %cst [1] : vector<64x16xf32> to vector<64xf32>
    %4 = vector.shape_cast %3 : vector<64xf32> to vector<64x1xf32>
    %cst_5 = arith.constant 1.600000e+01 : f32
    %5 = vector.broadcast %cst_5 : f32 to vector<64x1xf32>
    %6 = arith.divf %4, %5 : vector<64x1xf32>
    %7 = vector.broadcast %6 : vector<64x1xf32> to vector<64x16xf32>
    %8 = arith.subf %0, %7 : vector<64x16xf32>
    %9 = arith.mulf %8, %8 : vector<64x16xf32>
    %cst_6 = arith.constant dense<0.000000e+00> : vector<64xf32>
    %10 = vector.multi_reduction <add>, %9, %cst_6 [1] : vector<64x16xf32> to vector<64xf32>
    %11 = vector.shape_cast %10 : vector<64xf32> to vector<64x1xf32>
    %cst_7 = arith.constant 1.600000e+01 : f32
    %12 = vector.broadcast %cst_7 : f32 to vector<64x1xf32>
    %13 = arith.divf %11, %12 : vector<64x1xf32>
    %14 = vector.broadcast %6 : vector<64x1xf32> to vector<64x16xf32>
    %15 = arith.subf %0, %14 : vector<64x16xf32>
    %cst_8 = arith.constant 9.99999974E-6 : f32
    %16 = vector.broadcast %cst_8 : f32 to vector<64x1xf32>
    %17 = arith.addf %13, %16 : vector<64x1xf32>
    %18 = math.rsqrt %17 : vector<64x1xf32>
    %19 = vector.broadcast %18 : vector<64x1xf32> to vector<64x16xf32>
    %20 = arith.mulf %15, %19 : vector<64x16xf32>
    %21 = vector.broadcast %1 : vector<1x16xf32> to vector<64x16xf32>
    %22 = arith.mulf %20, %21 : vector<64x16xf32>
    %23 = vector.broadcast %2 : vector<1x16xf32> to vector<64x16xf32>
    %24 = arith.addf %22, %23 : vector<64x16xf32>
    %25 = arith.truncf %24 : vector<64x16xf32> to vector<64x16xbf16>
    %c0_9 = arith.constant 0 : index
    %c0_10 = arith.constant 0 : index
    %26 = vector.load %arg5[%c0_9, %c0_10] : memref<16x16xf32, #tpu.memory_space<vmem>>, vector<16x16xf32>
    %27 = arith.truncf %26 : vector<16x16xf32> to vector<16x16xbf16>
    %cst_11 = arith.constant dense<0.000000e+00> : vector<64x16xf32>
    %28 = tpu.matmul %25, %27, %cst_11 {dimension_numbers = #tpu.dot_dimension_numbers<[1], [0], [0], [1], [0, 0, 1, 1], [], []>} : vector<64x16xbf16>, vector<16x16xbf16>, vector<64x16xf32> -> vector<64x16xf32>
    %c0_12 = arith.constant 0 : index
    %c0_13 = arith.constant 0 : index
    %29 = vector.load %arg6[%c0_12, %c0_13] : memref<1x16xf32, #tpu.memory_space<vmem>>, vector<1x16xf32>
    %30 = vector.broadcast %29 : vector<1x16xf32> to vector<64x16xf32>
    %31 = arith.addf %28, %30 : vector<64x16xf32>
    %c0_14 = arith.constant 0 : index
    %c0_15 = arith.constant 0 : index
    %32 = vector.load %arg2[%c0_14, %c0_15] : memref<64x16xf32, #tpu.memory_space<vmem>>, vector<64x16xf32>
    %33 = arith.mulf %32, %31 : vector<64x16xf32>
    %c0_16 = arith.constant 0 : index
    %c0_17 = arith.constant 0 : index
    %34 = vector.load %arg7[%c0_16, %c0_17] : memref<64x16xf32, #tpu.memory_space<vmem>>, vector<64x16xf32>
    tpu.vector_store %arg7[%c0_16, %c0_17], %33 {strides = array<i32>} : memref<64x16xf32, #tpu.memory_space<vmem>>, vector<64x16xf32>,
    return
  }
  func.func @transform_0(%arg0: i32) -> (i32, i32) {
    %c0_i32 = arith.constant 0 : i32
    %c0_i32_0 = arith.constant 0 : i32
    return %arg0, %c0_i32 : i32, i32
  }
  func.func @transform_1(%arg0: i32) -> (i32, i32) {
    %c0_i32 = arith.constant 0 : i32
    %c0_i32_0 = arith.constant 0 : i32
    return %arg0, %c0_i32 : i32, i32
  }
  func.func @transform_2(%arg0: i32) -> (i32, i32) {
    %c0_i32 = arith.constant 0 : i32
    %c0_i32_0 = arith.constant 0 : i32
    %c0_i32_1 = arith.constant 0 : i32
    return %c0_i32, %c0_i32_0 : i32, i32
  }
  func.func @transform_3(%arg0: i32) -> (i32, i32) {
    %c0_i32 = arith.constant 0 : i32
    %c0_i32_0 = arith.constant 0 : i32
    %c0_i32_1 = arith.constant 0 : i32
    return %c0_i32, %c0_i32_0 : i32, i32
  }
  func.func @transform_4(%arg0: i32) -> (i32, i32) {
    %c0_i32 = arith.constant 0 : i32
    %c0_i32_0 = arith.constant 0 : i32
    %c0_i32_1 = arith.constant 0 : i32
    return %c0_i32, %c0_i32_0 : i32, i32
  }
  func.func @transform_5(%arg0: i32) -> (i32, i32) {
    %c0_i32 = arith.constant 0 : i32
    %c0_i32_0 = arith.constant 0 : i32
    %c0_i32_1 = arith.constant 0 : i32
    return %c0_i32, %c0_i32_0 : i32, i32
  }
  func.func @transform_6(%arg0: i32) -> (i32, i32) {
    %c0_i32 = arith.constant 0 : i32
    %c0_i32_0 = arith.constant 0 : i32
    return %arg0, %c0_i32 : i32, i32
  }
}

module attributes {stable_mosaic.version = 11 : i64} {
  func.func @kernel(%arg0: i32, %arg1: memref<1x8x8xf32, #tpu.memory_space<vmem>>, %arg2: memref<1x8x8xf32, #tpu.memory_space<vmem>>, %arg3: memref<1x8x8xf32, #tpu.memory_space<vmem>>) attributes {dimension_semantics = [#tpu.dimension_semantics<parallel>], iteration_bounds = array<i64: 16>, scalar_prefetch = 0 : i64, scratch_operands = 0 : i64, tpu.core_type = #tpu.core_type<tc>, window_params = [{transform_indices = @transform_0, window_bounds = array<i64: 1, 8, 8>}, {transform_indices = @transform_1, window_bounds = array<i64: 1, 8, 8>}, {transform_indices = @transform_2, window_bounds = array<i64: 1, 8, 8>}]} {
    %c0 = arith.constant 0 : index
    %c0_0 = arith.constant 0 : index
    %c0_1 = arith.constant 0 : index
    %0 = vector.load %arg1[%c0, %c0_0, %c0_1] : memref<1x8x8xf32, #tpu.memory_space<vmem>>, vector<1x8x8xf32>
    %1 = vector.shape_cast %0 : vector<1x8x8xf32> to vector<8x8xf32>
    %2 = arith.truncf %1 : vector<8x8xf32> to vector<8x8xbf16>
    %c0_2 = arith.constant 0 : index
    %c0_3 = arith.constant 0 : index
    %c0_4 = arith.constant 0 : index
    %3 = vector.load %arg2[%c0_2, %c0_3, %c0_4] : memref<1x8x8xf32, #tpu.memory_space<vmem>>, vector<1x8x8xf32>
    %4 = vector.shape_cast %3 : vector<1x8x8xf32> to vector<8x8xf32>
    %5 = arith.truncf %4 : vector<8x8xf32> to vector<8x8xbf16>
    %cst = arith.constant dense<0.000000e+00> : vector<8x8xf32>
    %6 = tpu.matmul %2, %5, %cst {dimension_numbers = #tpu.dot_dimension_numbers<[0], [0], [1], [1], [0, 1, 1, 1], [], []>} : vector<8x8xbf16>, vector<8x8xbf16>, vector<8x8xf32> -> vector<8x8xf32>
    %c0_5 = arith.constant 0 : index
    %c0_6 = arith.constant 0 : index
    %c0_7 = arith.constant 0 : index
    %7 = vector.load %arg3[%c0_5, %c0_6, %c0_7] : memref<1x8x8xf32, #tpu.memory_space<vmem>>, vector<1x8x8xf32>
    %8 = vector.shape_cast %7 : vector<1x8x8xf32> to vector<8x8xf32>
    %9 = vector.shape_cast %6 : vector<8x8xf32> to vector<1x8x8xf32>
    tpu.vector_store %arg3[%c0_5, %c0_6, %c0_7], %9 {strides = array<i32>} : memref<1x8x8xf32, #tpu.memory_space<vmem>>, vector<1x8x8xf32>,
    return
  }
  func.func @transform_0(%arg0: i32) -> (i32, i32, i32) {
    %c0_i32 = arith.constant 0 : i32
    %c0_i32_0 = arith.constant 0 : i32
    %c0_i32_1 = arith.constant 0 : i32
    return %arg0, %c0_i32, %c0_i32_0 : i32, i32, i32
  }
  func.func @transform_1(%arg0: i32) -> (i32, i32, i32) {
    %c0_i32 = arith.constant 0 : i32
    %c0_i32_0 = arith.constant 0 : i32
    %c0_i32_1 = arith.constant 0 : i32
    return %arg0, %c0_i32, %c0_i32_0 : i32, i32, i32
  }
  func.func @transform_2(%arg0: i32) -> (i32, i32, i32) {
    %c0_i32 = arith.constant 0 : i32
    %c0_i32_0 = arith.constant 0 : i32
    %c0_i32_1 = arith.constant 0 : i32
    return %arg0, %c0_i32, %c0_i32_0 : i32, i32, i32
  }
}

module attributes {stable_mosaic.version = 11 : i64} {
  func.func @kernel(%arg0: i32, %arg1: memref<64x16xf32, #tpu.memory_space<vmem>>, %arg2: memref<1x16xf32, #tpu.memory_space<vmem>>, %arg3: memref<1x16xf32, #tpu.memory_space<vmem>>, %arg4: memref<16x128xf32, #tpu.memory_space<vmem>>, %arg5: memref<1x128xf32, #tpu.memory_space<vmem>>, %arg6: memref<64x32xf32, #tpu.memory_space<vmem>>, %arg7: memref<64x32xf32, #tpu.memory_space<vmem>>, %arg8: memref<64x32xf32, #tpu.memory_space<vmem>>, %arg9: memref<64x32xf32, #tpu.memory_space<vmem>>) attributes {dimension_semantics = [#tpu.dimension_semantics<parallel>], iteration_bounds = array<i64: 1>, scalar_prefetch = 0 : i64, scratch_operands = 0 : i64, tpu.core_type = #tpu.core_type<tc>, window_params = [{transform_indices = @transform_0, window_bounds = array<i64: 64, 16>}, {pipeline_mode = #tpu.pipeline_mode<synchronous>, transform_indices = @transform_1, window_bounds = array<i64: 1, 16>}, {pipeline_mode = #tpu.pipeline_mode<synchronous>, transform_indices = @transform_2, window_bounds = array<i64: 1, 16>}, {pipeline_mode = #tpu.pipeline_mode<synchronous>, transform_indices = @transform_3, window_bounds = array<i64: 16, 128>}, {pipeline_mode = #tpu.pipeline_mode<synchronous>, transform_indices = @transform_4, window_bounds = array<i64: 1, 128>}, {transform_indices = @transform_5, window_bounds = array<i64: 64, 32>}, {transform_indices = @transform_6, window_bounds = array<i64: 64, 32>}, {transform_indices = @transform_7, window_bounds = array<i64: 64, 32>}, {transform_indices = @transform_8, window_bounds = array<i64: 64, 32>}]} {
    %c0 = arith.constant 0 : index
    %c0_0 = arith.constant 0 : index
    %0 = vector.load %arg1[%c0, %c0_0] : memref<64x16xf32, #tpu.memory_space<vmem>>, vector<64x16xf32>
    %c0_1 = arith.constant 0 : index
    %c0_2 = arith.constant 0 : index
    %1 = vector.load %arg2[%c0_1, %c0_2] : memref<1x16xf32, #tpu.memory_space<vmem>>, vector<1x16xf32>
    %c0_3 = arith.constant 0 : index
    %c0_4 = arith.constant 0 : index
    %2 = vector.load %arg3[%c0_3, %c0_4] : memref<1x16xf32, #tpu.memory_space<vmem>>, vector<1x16xf32>
    %cst = arith.constant dense<0.000000e+00> : vector<64xf32>
    %3 = vector.multi_reduction <add>, %0, %cst [1] : vector<64x16xf32> to vector<64xf32>
    %4 = vector.shape_cast %3 : vector<64xf32> to vector<64x1xf32>
    %cst_5 = arith.constant 1.600000e+01 : f32
    %5 = vector.broadcast %cst_5 : f32 to vector<64x1xf32>
    %6 = arith.divf %4, %5 : vector<64x1xf32>
    %7 = vector.broadcast %6 : vector<64x1xf32> to vector<64x16xf32>
    %8 = arith.subf %0, %7 : vector<64x16xf32>
    %9 = arith.mulf %8, %8 : vector<64x16xf32>
    %cst_6 = arith.constant dense<0.000000e+00> : vector<64xf32>
    %10 = vector.multi_reduction <add>, %9, %cst_6 [1] : vector<64x16xf32> to vector<64xf32>
    %11 = vector.shape_cast %10 : vector<64xf32> to vector<64x1xf32>
    %cst_7 = arith.constant 1.600000e+01 : f32
    %12 = vector.broadcast %cst_7 : f32 to vector<64x1xf32>
    %13 = arith.divf %11, %12 : vector<64x1xf32>
    %14 = vector.broadcast %6 : vector<64x1xf32> to vector<64x16xf32>
    %15 = arith.subf %0, %14 : vector<64x16xf32>
    %cst_8 = arith.constant 9.99999974E-6 : f32
    %16 = vector.broadcast %cst_8 : f32 to vector<64x1xf32>
    %17 = arith.addf %13, %16 : vector<64x1xf32>
    %18 = math.rsqrt %17 : vector<64x1xf32>
    %19 = vector.broadcast %18 : vector<64x1xf32> to vector<64x16xf32>
    %20 = arith.mulf %15, %19 : vector<64x16xf32>
    %21 = vector.broadcast %1 : vector<1x16xf32> to vector<64x16xf32>
    %22 = arith.mulf %20, %21 : vector<64x16xf32>
    %23 = vector.broadcast %2 : vector<1x16xf32> to vector<64x16xf32>
    %24 = arith.addf %22, %23 : vector<64x16xf32>
    %25 = arith.truncf %24 : vector<64x16xf32> to vector<64x16xbf16>
    %c0_9 = arith.constant 0 : index
    %c0_10 = arith.constant 0 : index
    %26 = vector.load %arg4[%c0_9, %c0_10] : memref<16x128xf32, #tpu.memory_space<vmem>>, vector<16x128xf32>
    %27 = arith.truncf %26 : vector<16x128xf32> to vector<16x128xbf16>
    %cst_11 = arith.constant dense<0.000000e+00> : vector<64x128xf32>
    %28 = tpu.matmul %25, %27, %cst_11 {dimension_numbers = #tpu.dot_dimension_numbers<[1], [0], [0], [1], [0, 0, 1, 1], [], []>} : vector<64x16xbf16>, vector<16x128xbf16>, vector<64x128xf32> -> vector<64x128xf32>
    %c0_12 = arith.constant 0 : index
    %c0_13 = arith.constant 0 : index
    %29 = vector.load %arg5[%c0_12, %c0_13] : memref<1x128xf32, #tpu.memory_space<vmem>>, vector<1x128xf32>
    %30 = vector.broadcast %29 : vector<1x128xf32> to vector<64x128xf32>
    %31 = arith.addf %28, %30 : vector<64x128xf32>
    %32 = vector.extract_strided_slice %31 {offsets = [0, 0], sizes = [64, 32], strides = [1, 1]} : vector<64x128xf32> to vector<64x32xf32>
    %c0_14 = arith.constant 0 : index
    %c0_15 = arith.constant 0 : index
    %33 = vector.load %arg6[%c0_14, %c0_15] : memref<64x32xf32, #tpu.memory_space<vmem>>, vector<64x32xf32>
    tpu.vector_store %arg6[%c0_14, %c0_15], %32 {strides = array<i32>} : memref<64x32xf32, #tpu.memory_space<vmem>>, vector<64x32xf32>,
    %34 = vector.extract_strided_slice %31 {offsets = [0, 32], sizes = [64, 32], strides = [1, 1]} : vector<64x128xf32> to vector<64x32xf32>
    %c0_16 = arith.constant 0 : index
    %c0_17 = arith.constant 0 : index
    %35 = vector.load %arg7[%c0_16, %c0_17] : memref<64x32xf32, #tpu.memory_space<vmem>>, vector<64x32xf32>
    tpu.vector_store %arg7[%c0_16, %c0_17], %34 {strides = array<i32>} : memref<64x32xf32, #tpu.memory_space<vmem>>, vector<64x32xf32>,
    %36 = vector.extract_strided_slice %31 {offsets = [0, 64], sizes = [64, 32], strides = [1, 1]} : vector<64x128xf32> to vector<64x32xf32>
    %c0_18 = arith.constant 0 : index
    %c0_19 = arith.constant 0 : index
    %37 = vector.load %arg8[%c0_18, %c0_19] : memref<64x32xf32, #tpu.memory_space<vmem>>, vector<64x32xf32>
    tpu.vector_store %arg8[%c0_18, %c0_19], %36 {strides = array<i32>} : memref<64x32xf32, #tpu.memory_space<vmem>>, vector<64x32xf32>,
    %38 = vector.extract_strided_slice %31 {offsets = [0, 96], sizes = [64, 32], strides = [1, 1]} : vector<64x128xf32> to vector<64x32xf32>
    %39 = arith.negf %38 : vector<64x32xf32>
    %40 = math.exp %39 : vector<64x32xf32>
    %cst_20 = arith.constant 1.000000e+00 : f32
    %41 = vector.broadcast %cst_20 : f32 to vector<64x32xf32>
    %42 = arith.addf %41, %40 : vector<64x32xf32>
    %43 = arith.divf %41, %42 : vector<64x32xf32>
    %c0_21 = arith.constant 0 : index
    %c0_22 = arith.constant 0 : index
    %44 = vector.load %arg9[%c0_21, %c0_22] : memref<64x32xf32, #tpu.memory_space<vmem>>, vector<64x32xf32>
    tpu.vector_store %arg9[%c0_21, %c0_22], %43 {strides = array<i32>} : memref<64x32xf32, #tpu.memory_space<vmem>>, vector<64x32xf32>,
    return
  }
  func.func @transform_0(%arg0: i32) -> (i32, i32) {
    %c0_i32 = arith.constant 0 : i32
    %c0_i32_0 = arith.constant 0 : i32
    return %arg0, %c0_i32 : i32, i32
  }
  func.func @transform_1(%arg0: i32) -> (i32, i32) {
    %c0_i32 = arith.constant 0 : i32
    %c0_i32_0 = arith.constant 0 : i32
    %c0_i32_1 = arith.constant 0 : i32
    return %c0_i32, %c0_i32_0 : i32, i32
  }
  func.func @transform_2(%arg0: i32) -> (i32, i32) {
    %c0_i32 = arith.constant 0 : i32
    %c0_i32_0 = arith.constant 0 : i32
    %c0_i32_1 = arith.constant 0 : i32
    return %c0_i32, %c0_i32_0 : i32, i32
  }
  func.func @transform_3(%arg0: i32) -> (i32, i32) {
    %c0_i32 = arith.constant 0 : i32
    %c0_i32_0 = arith.constant 0 : i32
    %c0_i32_1 = arith.constant 0 : i32
    return %c0_i32, %c0_i32_0 : i32, i32
  }
  func.func @transform_4(%arg0: i32) -> (i32, i32) {
    %c0_i32 = arith.constant 0 : i32
    %c0_i32_0 = arith.constant 0 : i32
    %c0_i32_1 = arith.constant 0 : i32
    return %c0_i32, %c0_i32_0 : i32, i32
  }
  func.func @transform_5(%arg0: i32) -> (i32, i32) {
    %c0_i32 = arith.constant 0 : i32
    %c0_i32_0 = arith.constant 0 : i32
    return %arg0, %c0_i32 : i32, i32
  }
  func.func @transform_6(%arg0: i32) -> (i32, i32) {
    %c0_i32 = arith.constant 0 : i32
    %c0_i32_0 = arith.constant 0 : i32
    return %arg0, %c0_i32 : i32, i32
  }
  func.func @transform_7(%arg0: i32) -> (i32, i32) {
    %c0_i32 = arith.constant 0 : i32
    %c0_i32_0 = arith.constant 0 : i32
    return %arg0, %c0_i32 : i32, i32
  }
  func.func @transform_8(%arg0: i32) -> (i32, i32) {
    %c0_i32 = arith.constant 0 : i32
    %c0_i32_0 = arith.constant 0 : i32
    return %arg0, %c0_i32 : i32, i32
  }
}

module attributes {stable_mosaic.version = 11 : i64} {
  func.func @kernel(%arg0: i32, %arg1: memref<1x8x32xf32, #tpu.memory_space<vmem>>, %arg2: memref<1x8x32xf32, #tpu.memory_space<vmem>>, %arg3: memref<1x8x32xf32, #tpu.memory_space<vmem>>, %arg4: memref<1x8x32xf32, #tpu.memory_space<vmem>>, %arg5: memref<2x8x8xf32, #tpu.memory_space<vmem>>, %arg6: memref<32x16xf32, #tpu.memory_space<vmem>>, %arg7: memref<1x16xf32, #tpu.memory_space<vmem>>, %arg8: memref<1x8x16xf32, #tpu.memory_space<vmem>>) attributes {dimension_semantics = [#tpu.dimension_semantics<parallel>], iteration_bounds = array<i64: 8>, scalar_prefetch = 0 : i64, scratch_operands = 0 : i64, tpu.core_type = #tpu.core_type<tc>, window_params = [{transform_indices = @transform_0, window_bounds = array<i64: 1, 8, 32>}, {transform_indices = @transform_1, window_bounds = array<i64: 1, 8, 32>}, {transform_indices = @transform_2, window_bounds = array<i64: 1, 8, 32>}, {transform_indices = @transform_3, window_bounds = array<i64: 1, 8, 32>}, {pipeline_mode = #tpu.pipeline_mode<synchronous>, transform_indices = @transform_4, window_bounds = array<i64: 2, 8, 8>}, {pipeline_mode = #tpu.pipeline_mode<synchronous>, transform_indices = @transform_5, window_bounds = array<i64: 32, 16>}, {pipeline_mode = #tpu.pipeline_mode<synchronous>, transform_indices = @transform_6, window_bounds = array<i64: 1, 16>}, {transform_indices = @transform_7, window_bounds = array<i64: 1, 8, 16>}]} {
    %c0 = arith.constant 0 : index
    %c0_0 = arith.constant 0 : index
    %c0_1 = arith.constant 0 : index
    %0 = vector.load %arg1[%c0, %c0_0, %c0_1] : memref<1x8x32xf32, #tpu.memory_space<vmem>>, vector<1x8x32xf32>
    %1 = vector.shape_cast %0 : vector<1x8x32xf32> to vector<8x32xf32>
    %c0_2 = arith.constant 0 : index
    %c0_3 = arith.constant 0 : index
    %c0_4 = arith.constant 0 : index
    %2 = vector.load %arg2[%c0_2, %c0_3, %c0_4] : memref<1x8x32xf32, #tpu.memory_space<vmem>>, vector<1x8x32xf32>
    %3 = vector.shape_cast %2 : vector<1x8x32xf32> to vector<8x32xf32>
    %c0_5 = arith.constant 0 : index
    %c0_6 = arith.constant 0 : index
    %c0_7 = arith.constant 0 : index
    %4 = vector.load %arg3[%c0_5, %c0_6, %c0_7] : memref<1x8x32xf32, #tpu.memory_space<vmem>>, vector<1x8x32xf32>
    %5 = vector.shape_cast %4 : vector<1x8x32xf32> to vector<8x32xf32>
    %6 = vector.extract_strided_slice %1 {offsets = [0, 0], sizes = [8, 16], strides = [1, 1]} : vector<8x32xf32> to vector<8x16xf32>
    %7 = arith.truncf %6 : vector<8x16xf32> to vector<8x16xbf16>
    %8 = vector.extract_strided_slice %3 {offsets = [0, 0], sizes = [8, 16], strides = [1, 1]} : vector<8x32xf32> to vector<8x16xf32>
    %9 = arith.truncf %8 : vector<8x16xf32> to vector<8x16xbf16>
    %cst = arith.constant dense<0.000000e+00> : vector<8x8xf32>
    %10 = tpu.matmul %7, %9, %cst {dimension_numbers = #tpu.dot_dimension_numbers<[1], [1], [0], [0], [0, 0, 1, 0], [], []>} : vector<8x16xbf16>, vector<8x16xbf16>, vector<8x8xf32> -> vector<8x8xf32>
    %c0_8 = arith.constant 0 : index
    %c0_9 = arith.constant 0 : index
    %c0_10 = arith.constant 0 : index
    %11 = vector.load %arg5[%c0_8, %c0_9, %c0_10] : memref<2x8x8xf32, #tpu.memory_space<vmem>>, vector<1x8x8xf32>
    %12 = vector.shape_cast %11 : vector<1x8x8xf32> to vector<8x8xf32>
    %13 = arith.addf %10, %12 : vector<8x8xf32>
    %cst_11 = arith.constant dense<0xFF800000> : vector<8xf32>
    %14 = vector.multi_reduction <maximumf>, %13, %cst_11 [1] : vector<8x8xf32> to vector<8xf32>
    %15 = vector.shape_cast %14 : vector<8xf32> to vector<8x1xf32>
    %16 = vector.broadcast %15 : vector<8x1xf32> to vector<8x8xf32>
    %17 = arith.subf %13, %16 : vector<8x8xf32>
    %18 = math.exp %17 : vector<8x8xf32>
    %cst_12 = arith.constant dense<0.000000e+00> : vector<8xf32>
    %19 = vector.multi_reduction <add>, %18, %cst_12 [1] : vector<8x8xf32> to vector<8xf32>
    %20 = vector.shape_cast %19 : vector<8xf32> to vector<8x1xf32>
    %21 = tpu.reciprocal %20 {approx = true} : vector<8x1xf32> -> vector<8x1xf32>
    %22 = vector.broadcast %21 : vector<8x1xf32> to vector<8x8xf32>
    %23 = arith.mulf %18, %22 : vector<8x8xf32>
    %24 = arith.truncf %23 : vector<8x8xf32> to vector<8x8xbf16>
    %25 = vector.extract_strided_slice %5 {offsets = [0, 0], sizes = [8, 16], strides = [1, 1]} : vector<8x32xf32> to vector<8x16xf32>
    %26 = arith.truncf %25 : vector<8x16xf32> to vector<8x16xbf16>
    %cst_13 = arith.constant dense<0.000000e+00> : vector<8x16xf32>
    %27 = tpu.matmul %24, %26, %cst_13 {dimension_numbers = #tpu.dot_dimension_numbers<[1], [0], [0], [1], [0, 0, 1, 1], [], []>} : vector<8x8xbf16>, vector<8x16xbf16>, vector<8x16xf32> -> vector<8x16xf32>
    %28 = vector.extract_strided_slice %1 {offsets = [0, 16], sizes = [8, 16], strides = [1, 1]} : vector<8x32xf32> to vector<8x16xf32>
    %29 = arith.truncf %28 : vector<8x16xf32> to vector<8x16xbf16>
    %30 = vector.extract_strided_slice %3 {offsets = [0, 16], sizes = [8, 16], strides = [1, 1]} : vector<8x32xf32> to vector<8x16xf32>
    %31 = arith.truncf %30 : vector<8x16xf32> to vector<8x16xbf16>
    %cst_14 = arith.constant dense<0.000000e+00> : vector<8x8xf32>
    %32 = tpu.matmul %29, %31, %cst_14 {dimension_numbers = #tpu.dot_dimension_numbers<[1], [1], [0], [0], [0, 0, 1, 0], [], []>} : vector<8x16xbf16>, vector<8x16xbf16>, vector<8x8xf32> -> vector<8x8xf32>
    %c1 = arith.constant 1 : index
    %c0_15 = arith.constant 0 : index
    %c0_16 = arith.constant 0 : index
    %33 = vector.load %arg5[%c1, %c0_15, %c0_16] : memref<2x8x8xf32, #tpu.memory_space<vmem>>, vector<1x8x8xf32>
    %34 = vector.shape_cast %33 : vector<1x8x8xf32> to vector<8x8xf32>
    %35 = arith.addf %32, %34 : vector<8x8xf32>
    %cst_17 = arith.constant dense<0xFF800000> : vector<8xf32>
    %36 = vector.multi_reduction <maximumf>, %35, %cst_17 [1] : vector<8x8xf32> to vector<8xf32>
    %37 = vector.shape_cast %36 : vector<8xf32> to vector<8x1xf32>
    %38 = vector.broadcast %37 : vector<8x1xf32> to vector<8x8xf32>
    %39 = arith.subf %35, %38 : vector<8x8xf32>
    %40 = math.exp %39 : vector<8x8xf32>
    %cst_18 = arith.constant dense<0.000000e+00> : vector<8xf32>
    %41 = vector.multi_reduction <add>, %40, %cst_18 [1] : vector<8x8xf32> to vector<8xf32>
    %42 = vector.shape_cast %41 : vector<8xf32> to vector<8x1xf32>
    %43 = tpu.reciprocal %42 {approx = true} : vector<8x1xf32> -> vector<8x1xf32>
    %44 = vector.broadcast %43 : vector<8x1xf32> to vector<8x8xf32>
    %45 = arith.mulf %40, %44 : vector<8x8xf32>
    %46 = arith.truncf %45 : vector<8x8xf32> to vector<8x8xbf16>
    %47 = vector.extract_strided_slice %5 {offsets = [0, 16], sizes = [8, 16], strides = [1, 1]} : vector<8x32xf32> to vector<8x16xf32>
    %48 = arith.truncf %47 : vector<8x16xf32> to vector<8x16xbf16>
    %cst_19 = arith.constant dense<0.000000e+00> : vector<8x16xf32>
    %49 = tpu.matmul %46, %48, %cst_19 {dimension_numbers = #tpu.dot_dimension_numbers<[1], [0], [0], [1], [0, 0, 1, 1], [], []>} : vector<8x8xbf16>, vector<8x16xbf16>, vector<8x16xf32> -> vector<8x16xf32>
    %50 = tpu.concatenate %27, %49 in 1 : vector<8x16xf32>, vector<8x16xf32> -> vector<8x32xf32>
    %c0_20 = arith.constant 0 : index
    %c0_21 = arith.constant 0 : index
    %c0_22 = arith.constant 0 : index
    %51 = vector.load %arg4[%c0_20, %c0_21, %c0_22] : memref<1x8x32xf32, #tpu.memory_space<vmem>>, vector<1x8x32xf32>
    %52 = vector.shape_cast %51 : vector<1x8x32xf32> to vector<8x32xf32>
    %53 = arith.mulf %52, %50 : vector<8x32xf32>
    %54 = arith.truncf %53 : vector<8x32xf32> to vector<8x32xbf16>
    %c0_23 = arith.constant 0 : index
    %c0_24 = arith.constant 0 : index
    %55 = vector.load %arg6[%c0_23, %c0_24] : memref<32x16xf32, #tpu.memory_space<vmem>>, vector<32x16xf32>
    %56 = arith.truncf %55 : vector<32x16xf32> to vector<32x16xbf16>
    %cst_25 = arith.constant dense<0.000000e+00> : vector<8x16xf32>
    %57 = tpu.matmul %54, %56, %cst_25 {dimension_numbers = #tpu.dot_dimension_numbers<[1], [0], [0], [1], [0, 0, 1, 1], [], []>} : vector<8x32xbf16>, vector<32x16xbf16>, vector<8x16xf32> -> vector<8x16xf32>
    %c0_26 = arith.constant 0 : index
    %c0_27 = arith.constant 0 : index
    %58 = vector.load %arg7[%c0_26, %c0_27] : memref<1x16xf32, #tpu.memory_space<vmem>>, vector<1x16xf32>
    %59 = vector.broadcast %58 : vector<1x16xf32> to vector<8x16xf32>
    %60 = arith.addf %57, %59 : vector<8x16xf32>
    %c0_28 = arith.constant 0 : index
    %c0_29 = arith.constant 0 : index
    %c0_30 = arith.constant 0 : index
    %61 = vector.load %arg8[%c0_28, %c0_29, %c0_30] : memref<1x8x16xf32, #tpu.memory_space<vmem>>, vector<1x8x16xf32>
    %62 = vector.shape_cast %61 : vector<1x8x16xf32> to vector<8x16xf32>
    %63 = vector.shape_cast %60 : vector<8x16xf32> to vector<1x8x16xf32>
    tpu.vector_store %arg8[%c0_28, %c0_29, %c0_30], %63 {strides = array<i32>} : memref<1x8x16xf32, #tpu.memory_space<vmem>>, vector<1x8x16xf32>,
    return
  }
  func.func @transform_0(%arg0: i32) -> (i32, i32, i32) {
    %c0_i32 = arith.constant 0 : i32
    %c0_i32_0 = arith.constant 0 : i32
    %c0_i32_1 = arith.constant 0 : i32
    return %arg0, %c0_i32, %c0_i32_0 : i32, i32, i32
  }
  func.func @transform_1(%arg0: i32) -> (i32, i32, i32) {
    %c0_i32 = arith.constant 0 : i32
    %c0_i32_0 = arith.constant 0 : i32
    %c0_i32_1 = arith.constant 0 : i32
    return %arg0, %c0_i32, %c0_i32_0 : i32, i32, i32
  }
  func.func @transform_2(%arg0: i32) -> (i32, i32, i32) {
    %c0_i32 = arith.constant 0 : i32
    %c0_i32_0 = arith.constant 0 : i32
    %c0_i32_1 = arith.constant 0 : i32
    return %arg0, %c0_i32, %c0_i32_0 : i32, i32, i32
  }
  func.func @transform_3(%arg0: i32) -> (i32, i32, i32) {
    %c0_i32 = arith.constant 0 : i32
    %c0_i32_0 = arith.constant 0 : i32
    %c0_i32_1 = arith.constant 0 : i32
    return %arg0, %c0_i32, %c0_i32_0 : i32, i32, i32
  }
  func.func @transform_4(%arg0: i32) -> (i32, i32, i32) {
    %c0_i32 = arith.constant 0 : i32
    %c0_i32_0 = arith.constant 0 : i32
    %c0_i32_1 = arith.constant 0 : i32
    %c0_i32_2 = arith.constant 0 : i32
    return %c0_i32, %c0_i32_0, %c0_i32_1 : i32, i32, i32
  }
  func.func @transform_5(%arg0: i32) -> (i32, i32) {
    %c0_i32 = arith.constant 0 : i32
    %c0_i32_0 = arith.constant 0 : i32
    %c0_i32_1 = arith.constant 0 : i32
    return %c0_i32, %c0_i32_0 : i32, i32
  }
  func.func @transform_6(%arg0: i32) -> (i32, i32) {
    %c0_i32 = arith.constant 0 : i32
    %c0_i32_0 = arith.constant 0 : i32
    %c0_i32_1 = arith.constant 0 : i32
    return %c0_i32, %c0_i32_0 : i32, i32
  }
  func.func @transform_7(%arg0: i32) -> (i32, i32, i32) {
    %c0_i32 = arith.constant 0 : i32
    %c0_i32_0 = arith.constant 0 : i32
    %c0_i32_1 = arith.constant 0 : i32
    return %arg0, %c0_i32, %c0_i32_0 : i32, i32, i32
  }
}

module attributes {stable_mosaic.version = 11 : i64} {
  func.func @_transition_kernel(%arg0: i32, %arg1: memref<64x16xf32, #tpu.memory_space<vmem>>, %arg2: memref<1x16xf32, #tpu.memory_space<vmem>>, %arg3: memref<1x16xf32, #tpu.memory_space<vmem>>, %arg4: memref<16x64xf32, #tpu.memory_space<vmem>>, %arg5: memref<1x64xf32, #tpu.memory_space<vmem>>, %arg6: memref<64x16xf32, #tpu.memory_space<vmem>>, %arg7: memref<1x16xf32, #tpu.memory_space<vmem>>, %arg8: memref<64x16xf32, #tpu.memory_space<vmem>>) attributes {dimension_semantics = [#tpu.dimension_semantics<parallel>], iteration_bounds = array<i64: 1>, scalar_prefetch = 0 : i64, scratch_operands = 0 : i64, tpu.core_type = #tpu.core_type<tc>, window_params = [{transform_indices = @transform_0, window_bounds = array<i64: 64, 16>}, {pipeline_mode = #tpu.pipeline_mode<synchronous>, transform_indices = @transform_1, window_bounds = array<i64: 1, 16>}, {pipeline_mode = #tpu.pipeline_mode<synchronous>, transform_indices = @transform_2, window_bounds = array<i64: 1, 16>}, {pipeline_mode = #tpu.pipeline_mode<synchronous>, transform_indices = @transform_3, window_bounds = array<i64: 16, 64>}, {pipeline_mode = #tpu.pipeline_mode<synchronous>, transform_indices = @transform_4, window_bounds = array<i64: 1, 64>}, {pipeline_mode = #tpu.pipeline_mode<synchronous>, transform_indices = @transform_5, window_bounds = array<i64: 64, 16>}, {pipeline_mode = #tpu.pipeline_mode<synchronous>, transform_indices = @transform_6, window_bounds = array<i64: 1, 16>}, {transform_indices = @transform_7, window_bounds = array<i64: 64, 16>}]} {
    %c0 = arith.constant 0 : index
    %c0_0 = arith.constant 0 : index
    %0 = vector.load %arg1[%c0, %c0_0] : memref<64x16xf32, #tpu.memory_space<vmem>>, vector<64x16xf32>
    %c0_1 = arith.constant 0 : index
    %c0_2 = arith.constant 0 : index
    %1 = vector.load %arg2[%c0_1, %c0_2] : memref<1x16xf32, #tpu.memory_space<vmem>>, vector<1x16xf32>
    %c0_3 = arith.constant 0 : index
    %c0_4 = arith.constant 0 : index
    %2 = vector.load %arg3[%c0_3, %c0_4] : memref<1x16xf32, #tpu.memory_space<vmem>>, vector<1x16xf32>
    %cst = arith.constant dense<0.000000e+00> : vector<64xf32>
    %3 = vector.multi_reduction <add>, %0, %cst [1] : vector<64x16xf32> to vector<64xf32>
    %4 = vector.shape_cast %3 : vector<64xf32> to vector<64x1xf32>
    %cst_5 = arith.constant 1.600000e+01 : f32
    %5 = vector.broadcast %cst_5 : f32 to vector<64x1xf32>
    %6 = arith.divf %4, %5 : vector<64x1xf32>
    %7 = vector.broadcast %6 : vector<64x1xf32> to vector<64x16xf32>
    %8 = arith.subf %0, %7 : vector<64x16xf32>
    %9 = arith.mulf %8, %8 : vector<64x16xf32>
    %cst_6 = arith.constant dense<0.000000e+00> : vector<64xf32>
    %10 = vector.multi_reduction <add>, %9, %cst_6 [1] : vector<64x16xf32> to vector<64xf32>
    %11 = vector.shape_cast %10 : vector<64xf32> to vector<64x1xf32>
    %cst_7 = arith.constant 1.600000e+01 : f32
    %12 = vector.broadcast %cst_7 : f32 to vector<64x1xf32>
    %13 = arith.divf %11, %12 : vector<64x1xf32>
    %14 = vector.broadcast %6 : vector<64x1xf32> to vector<64x16xf32>
    %15 = arith.subf %0, %14 : vector<64x16xf32>
    %cst_8 = arith.constant 9.99999974E-6 : f32
    %16 = vector.broadcast %cst_8 : f32 to vector<64x1xf32>
    %17 = arith.addf %13, %16 : vector<64x1xf32>
    %18 = math.rsqrt %17 : vector<64x1xf32>
    %19 = vector.broadcast %18 : vector<64x1xf32> to vector<64x16xf32>
    %20 = arith.mulf %15, %19 : vector<64x16xf32>
    %21 = vector.broadcast %1 : vector<1x16xf32> to vector<64x16xf32>
    %22 = arith.mulf %20, %21 : vector<64x16xf32>
    %23 = vector.broadcast %2 : vector<1x16xf32> to vector<64x16xf32>
    %24 = arith.addf %22, %23 : vector<64x16xf32>
    %25 = arith.truncf %24 : vector<64x16xf32> to vector<64x16xbf16>
    %c0_9 = arith.constant 0 : index
    %c0_10 = arith.constant 0 : index
    %26 = vector.load %arg4[%c0_9, %c0_10] : memref<16x64xf32, #tpu.memory_space<vmem>>, vector<16x64xf32>
    %27 = arith.truncf %26 : vector<16x64xf32> to vector<16x64xbf16>
    %cst_11 = arith.constant dense<0.000000e+00> : vector<64x64xf32>
    %28 = tpu.matmul %25, %27, %cst_11 {dimension_numbers = #tpu.dot_dimension_numbers<[1], [0], [0], [1], [0, 0, 1, 1], [], []>} : vector<64x16xbf16>, vector<16x64xbf16>, vector<64x64xf32> -> vector<64x64xf32>
    %c0_12 = arith.constant 0 : index
    %c0_13 = arith.constant 0 : index
    %29 = vector.load %arg5[%c0_12, %c0_13] : memref<1x64xf32, #tpu.memory_space<vmem>>, vector<1x64xf32>
    %30 = vector.broadcast %29 : vector<1x64xf32> to vector<64x64xf32>
    %31 = arith.addf %28, %30 : vector<64x64xf32>
    %cst_14 = arith.constant 0.000000e+00 : f32
    %32 = vector.broadcast %cst_14 : f32 to vector<64x64xf32>
    %33 = arith.maximumf %31, %32 : vector<64x64xf32>
    %34 = arith.truncf %33 : vector<64x64xf32> to vector<64x64xbf16>
    %c0_15 = arith.constant 0 : index
    %c0_16 = arith.constant 0 : index
    %35 = vector.load %arg6[%c0_15, %c0_16] : memref<64x16xf32, #tpu.memory_space<vmem>>, vector<64x16xf32>
    %36 = arith.truncf %35 : vector<64x16xf32> to vector<64x16xbf16>
    %cst_17 = arith.constant dense<0.000000e+00> : vector<64x16xf32>
    %37 = tpu.matmul %34, %36, %cst_17 {dimension_numbers = #tpu.dot_dimension_numbers<[1], [0], [0], [1], [0, 0, 1, 1], [], []>} : vector<64x64xbf16>, vector<64x16xbf16>, vector<64x16xf32> -> vector<64x16xf32>
    %c0_18 = arith.constant 0 : index
    %c0_19 = arith.constant 0 : index
    %38 = vector.load %arg7[%c0_18, %c0_19] : memref<1x16xf32, #tpu.memory_space<vmem>>, vector<1x16xf32>
    %39 = vector.broadcast %38 : vector<1x16xf32> to vector<64x16xf32>
    %40 = arith.addf %37, %39 : vector<64x16xf32>
    %c0_20 = arith.constant 0 : index
    %c0_21 = arith.constant 0 : index
    %41 = vector.load %arg8[%c0_20, %c0_21] : memref<64x16xf32, #tpu.memory_space<vmem>>, vector<64x16xf32>
    tpu.vector_store %arg8[%c0_20, %c0_21], %40 {strides = array<i32>} : memref<64x16xf32, #tpu.memory_space<vmem>>, vector<64x16xf32>,
    return
  }
  func.func @transform_0(%arg0: i32) -> (i32, i32) {
    %c0_i32 = arith.constant 0 : i32
    %c0_i32_0 = arith.constant 0 : i32
    return %arg0, %c0_i32 : i32, i32
  }
  func.func @transform_1(%arg0: i32) -> (i32, i32) {
    %c0_i32 = arith.constant 0 : i32
    %c0_i32_0 = arith.constant 0 : i32
    %c0_i32_1 = arith.constant 0 : i32
    return %c0_i32, %c0_i32_0 : i32, i32
  }
  func.func @transform_2(%arg0: i32) -> (i32, i32) {
    %c0_i32 = arith.constant 0 : i32
    %c0_i32_0 = arith.constant 0 : i32
    %c0_i32_1 = arith.constant 0 : i32
    return %c0_i32, %c0_i32_0 : i32, i32
  }
  func.func @transform_3(%arg0: i32) -> (i32, i32) {
    %c0_i32 = arith.constant 0 : i32
    %c0_i32_0 = arith.constant 0 : i32
    %c0_i32_1 = arith.constant 0 : i32
    return %c0_i32, %c0_i32_0 : i32, i32
  }
  func.func @transform_4(%arg0: i32) -> (i32, i32) {
    %c0_i32 = arith.constant 0 : i32
    %c0_i32_0 = arith.constant 0 : i32
    %c0_i32_1 = arith.constant 0 : i32
    return %c0_i32, %c0_i32_0 : i32, i32
  }
  func.func @transform_5(%arg0: i32) -> (i32, i32) {
    %c0_i32 = arith.constant 0 : i32
    %c0_i32_0 = arith.constant 0 : i32
    %c0_i32_1 = arith.constant 0 : i32
    return %c0_i32, %c0_i32_0 : i32, i32
  }
  func.func @transform_6(%arg0: i32) -> (i32, i32) {
    %c0_i32 = arith.constant 0 : i32
    %c0_i32_0 = arith.constant 0 : i32
    %c0_i32_1 = arith.constant 0 : i32
    return %c0_i32, %c0_i32_0 : i32, i32
  }
  func.func @transform_7(%arg0: i32) -> (i32, i32) {
    %c0_i32 = arith.constant 0 : i32
    %c0_i32_0 = arith.constant 0 : i32
    return %arg0, %c0_i32 : i32, i32
  }
}

</mosaic_0001>

<bundles_post_ra>
// kernel: _lambda_.22
= control target key start
LH: loop header
LB: loop body
LE: loop exit
PB: predicated region body
PF: predicated region fallthrough
CT: control target
= control target key end

     0   :  { %vm31_vm0 = vcmask 261120   ;;  %v372_v8 = vmov 32.0   ;;  %vm178_vm14 = vcmask 130048   ;;  %s373_s25 = smov 112   ;;  %s548_s0 = inlined_call_operand.vmem [shape: f32[32,32], index: 0, kind: input, shape index: {}]   ;;  %s549_s1 = inlined_call_operand.vmem [shape: f32[1,32], index: 1, kind: input, shape index: {}]   ;;  %s550_s2 = inlined_call_operand.vmem [shape: f32[1,32], index: 2, kind: input, shape index: {}]   ;;  %s551_s4 = inlined_call_operand.vmem [shape: f32[1,64], index: 4, kind: input, shape index: {}]   ;;  %s552_s3 = inlined_call_operand.vmem [shape: f32[32,64], index: 3, kind: input, shape index: {}]   ;;  %s553_s5 = inlined_call_operand.vmem [shape: f32[32,16], index: 5, kind: output, shape index: {0}]   ;;  %s554_s6 = inlined_call_operand.vmem [shape: f32[32,16], index: 6, kind: output, shape index: {1}]   ;;  %s555_s7 = inlined_call_operand.vmem [shape: f32[32,16], index: 7, kind: output, shape index: {2}]   ;;  %s556_s8 = inlined_call_operand.vmem [shape: f32[32,16], index: 8, kind: output, shape index: {3}]  }
   0x1   :  { %v27_v0 = vld [vmem:[%s548_s0 + $0x10] sm:$0xff]  ;;  %v25_v1 = vld [vmem:[%s548_s0] sm:$0xff]  ;;  %v28_v4 = vld [vmem:[%s548_s0 + $0x18] sm:$0xff]  ;;  %346 = vrcp.f32 %v372_v8 }
   0x2   :  { %v38_v2 = vsel %vm31_vm0, %v27_v0, 0.0  ;;  %v32_v3 = vsel %vm31_vm0, %v25_v1, 0.0  ;;  %v26_v5 = vld [vmem:[%s548_s0 + $0x8] sm:$0xff]  ;;  %v41_v6 = vsel %vm31_vm0, %v28_v4, 0.0  ;;  %v145_v35 = vld [vmem:[%s552_s3 + $0x10] sm:$0xff]  ;;  %v146_v36 = vld [vmem:[%s552_s3 + $0x18] sm:$0xff] }
   0x3   :  { %39 = vadd.xlane.f32.xlu1 %v38_v2  ;;  %33 = vadd.xlane.f32.xlu0 %v32_v3  ;;  %v35_v7 = vsel %vm31_vm0, %v26_v5, 0.0  ;;  %v148_v37 = vpack.c.bf16 %v146_v36, %v145_v35  ;;  %v143_v40 = vld [vmem:[%s552_s3] sm:$0xff]  ;;  %v144_v41 = vld [vmem:[%s552_s3 + $0x8] sm:$0xff] }
   0x4   :  { %v147_v44 = vpack.c.bf16 %v144_v41, %v143_v40 }
   0x5   :  { %165 = vmatpush.bf16.msra.mxu0 %v148_v37  ;;  %337 = vmatpush.bf16.msra.mxu1 %v148_v37 }
   0x7   :  { %v347_v9 = vpop.eup %346 }
   0x8   :  { %v45_v10 = vmul.f32 32.0, %v347_v9  ;;  %vm49_vm1 = vweird.f32 %v347_v9 }
   0x9   :  { %166 = vmatpush.bf16.msra.mxu0 %v147_v44  ;;  %338 = vmatpush.bf16.msra.mxu1 %v147_v44 }
   0xa   :  { %v46_v11 = vsub.f32 1.0, %v45_v10 }
   0xb   :  { %42 = vadd.xlane.f32.xlu1 %v41_v6  ;;  %36 = vadd.xlane.f32.xlu0 %v35_v7 }
   0xc   :  { %v47_v12 = vmul.f32 %v347_v9, %v46_v11 }
   0xe   :  { %v48_v13 = vadd.f32 %v347_v9, %v47_v12 }
  0x10   :  { %v50_v14 = vsel %vm49_vm1, %v347_v9, %v48_v13 }
  0x76   :  { %v40_v15 = vpop.xlane.xlu1 %39  ;;  %v34_v16 = vpop.xlane.xlu0 %33 }
  0x77   :  { %v53_v17 = vmul.f32 %v50_v14, %v40_v15  ;;  %v51_v18 = vmul.f32 %v50_v14, %v34_v16 }
  0x79   :  { %v437_v19 = vsub.f32 %v27_v0, %v53_v17  ;;  %v439_v20 = vsub.f32 %v25_v1, %v51_v18 }
  0x7b   :  { %v61_v21 = vmul.f32 %v437_v19, %v437_v19  ;;  %v59_v22 = vmul.f32 %v439_v20, %v439_v20 }
  0x7d   :  { %v69_v23 = vsel %vm31_vm0, %v61_v21, 0.0  ;;  %v63_v24 = vsel %vm31_vm0, %v59_v22, 0.0 }
  0x7e   :  { %v43_v25 = vpop.xlane.xlu1 %42  ;;  %70 = vadd.xlane.f32.xlu0 %v69_v23  ;;  %64 = vadd.xlane.f32.xlu2 %v63_v24  ;;  %v37_v26 = vpop.xlane.xlu0 %36 }
  0x7f   :  { %v54_v27 = vmul.f32 %v50_v14, %v43_v25  ;;  %v52_v28 = vmul.f32 %v50_v14, %v37_v26 }
  0x81   :  { %v447_v29 = vsub.f32 %v28_v4, %v54_v27  ;;  %v449_v30 = vsub.f32 %v26_v5, %v52_v28 }
  0x83   :  { %v62_v31 = vmul.f32 %v447_v29, %v447_v29  ;;  %v60_v32 = vmul.f32 %v449_v30, %v449_v30 }
  0x85   :  { %v72_v33 = vsel %vm31_vm0, %v62_v31, 0.0  ;;  %v66_v34 = vsel %vm31_vm0, %v60_v32, 0.0 }
  0x86   :  { %73 = vadd.xlane.f32.xlu1 %v72_v33  ;;  %67 = vadd.xlane.f32.xlu2 %v66_v34 }
  0xf1   :  { %v65_v38 = vpop.xlane.xlu2 %64  ;;  %v71_v39 = vpop.xlane.xlu0 %70 }
  0xf2   :  { %v75_v42 = vmul.f32 %v65_v38, %v50_v14  ;;  %v77_v43 = vmul.f32 %v71_v39, %v50_v14 }
  0xf4   :  { %v79_v45 = vadd.f32 1e-05, %v75_v42  ;;  %v81_v46 = vadd.f32 1e-05, %v77_v43 }
  0xf6   :  { %348 = vrsqrt.f32 %v79_v45  ;;  %vm109_vm2 = vweird.f32 %v81_v46  ;;  %vm89_vm5 = vweird.f32 %v79_v45 }
  0xf7   :  { %350 = vrsqrt.f32 %v81_v46 }
  0xf9   :  { %v74_v47 = vpop.xlane.xlu1 %73  ;;  %v68_v48 = vpop.xlane.xlu2 %67 }
  0xfa   :  { %v78_v49 = vmul.f32 %v74_v47, %v50_v14  ;;  %v76_v50 = vmul.f32 %v68_v48, %v50_v14  ;;  %v343_v14 = vld [vmem:[%s549_s1] ss:$0 sm:$0xff] }
  0xfc   :  { %v349_v51 = vpop.eup %348  ;;  %v82_v52 = vadd.f32 1e-05, %v78_v49  ;;  %v80_v53 = vadd.f32 1e-05, %v76_v50 }
  0xfd   :  { %v351_v54 = vpop.eup %350  ;;  %v84_v55 = vmul.f32 %v349_v51, %v79_v45  ;;  %vm90_vm4 = vweird.f32 %v349_v51 }
  0xfe   :  { %v104_v56 = vmul.f32 %v351_v54, %v81_v46  ;;  %352 = vrsqrt.f32 %v82_v52  ;;  %vm110_vm3 = vweird.f32 %v351_v54  ;;  %vm91_vm7 = vmor %vm89_vm5, %vm90_vm4  ;;  %vm119_vm8 = vweird.f32 %v82_v52 }
  0xff   :  { %v85_v57 = vmul.f32 %v349_v51, %v84_v55  ;;  %354 = vrsqrt.f32 %v80_v53  ;;  %vm111_vm6 = vmor %vm109_vm2, %vm110_vm3  ;;  %vm99_vm12 = vweird.f32 %v80_v53 }
 0x100   :  { %v105_v58 = vmul.f32 %v351_v54, %v104_v56 }
 0x101   :  { %v86_v59 = vmul.f32 0.5, %v85_v57 }
 0x102   :  { %v106_v60 = vmul.f32 0.5, %v105_v58 }
 0x103   :  { %v87_v61 = vsub.f32 1.5, %v86_v59 }
 0x104   :  { %v353_v62 = vpop.eup %352  ;;  %v107_v63 = vsub.f32 1.5, %v106_v60 }
 0x105   :  { %v355_v0 = vpop.eup %354  ;;  %v114_v1 = vmul.f32 %v353_v62, %v82_v52  ;;  %v88_v2 = vmul.f32 %v349_v51, %v87_v61  ;;  %vm120_vm9 = vweird.f32 %v353_v62 }
 0x106   :  { %v108_v3 = vmul.f32 %v351_v54, %v107_v63  ;;  %v94_v4 = vmul.f32 %v355_v0, %v80_v53  ;;  %vm100_vm10 = vweird.f32 %v355_v0  ;;  %vm121_vm11 = vmor %vm119_vm8, %vm120_vm9 }
 0x107   :  { %v115_v5 = vmul.f32 %v353_v62, %v114_v1  ;;  %v92_v9 = vsel %vm91_vm7, %v349_v51, %v88_v2  ;;  %vm101_vm13 = vmor %vm99_vm12, %vm100_vm10 }
 0x108   :  { %v95_v6 = vmul.f32 %v355_v0, %v94_v4  ;;  %v112_v7 = vsel %vm111_vm6, %v351_v54, %v108_v3  ;;  %v123_v15 = vmul.f32 %v92_v9, %v439_v20 }
 0x109   :  { %v116_v8 = vmul.f32 0.5, %v115_v5  ;;  %v125_v12 = vmul.f32 %v112_v7, %v437_v19  ;;  %v344_v19 = vld [vmem:[%s550_s2] ss:$0 sm:$0xff] }
 0x10a   :  { %v96_v10 = vmul.f32 0.5, %v95_v6  ;;  %v130_v25 = vmul.f32 %v343_v14, %v123_v15 }
 0x10b   :  { %v117_v11 = vsub.f32 1.5, %v116_v8  ;;  %v132_v23 = vmul.f32 %v343_v14, %v125_v12 }
 0x10c   :  { %v97_v13 = vsub.f32 1.5, %v96_v10  ;;  %v137_v31 = vadd.f32 %v344_v19, %v130_v25 }
 0x10d   :  { %v118_v16 = vmul.f32 %v353_v62, %v117_v11  ;;  %v139_v20 = vadd.f32 %v344_v19, %v132_v23 }
 0x10e   :  { %v98_v17 = vmul.f32 %v355_v0, %v97_v13 }
 0x10f   :  { %v122_v18 = vsel %vm121_vm11, %v353_v62, %v118_v16 }
 0x110   :  { %v126_v21 = vmul.f32 %v122_v18, %v447_v29  ;;  %v102_v22 = vsel %vm101_vm13, %v355_v0, %v98_v17  ;;  %v345_v29 = vld [vmem:[%s551_s4] ss:$0 sm:$0xff]  ;;  %s374_s4 = smov 96  }
 0x111   :  { %v124_v24 = vmul.f32 %v102_v22, %v449_v30 }
 0x112   :  { %v133_v26 = vmul.f32 %v343_v14, %v126_v21 }
 0x113   :  { %v131_v27 = vmul.f32 %v343_v14, %v124_v24 }
 0x114   :  { %v140_v28 = vadd.f32 %v344_v19, %v133_v26 }
 0x115   :  { %v138_v32 = vadd.f32 %v344_v19, %v131_v27 }
 0x116   :  { %v142_v33 = vpack.c.bf16 %v140_v28, %v139_v20 }
 0x117   :  { %v141_v34 = vpack.c.bf16 %v138_v32, %v137_v31 }
 0x118   :  { %332 = vmatmul.msk.bf16.vlgmr.msra.gmra.mxu1 %vm31_vm0, %v142_v33 }
 0x119   :  { %331 = vmatmul.msk.bf16.vlgmr.msra.gmra.mxu0 %vm31_vm0, %v141_v34 }
 0x195   :  { %v173_v35 = vpop.f32.mrf.mxu1 }
 0x196   :  { %v168_v30 = vpop.f32.mrf.mxu0  ;;  %v174_v36 = vadd.f32 %v345_v29, %v173_v35 }
 0x197   :  { %v169_v37 = vadd.f32 %v345_v29, %v168_v30 }
 0x198   :  { %181 = vst.msk [vmem:[%s553_s5 + $0x10] sm:$0xff] %vm178_vm14, %v174_v36  ;;  %v335_v38 = vmul.f32 -1.442695, %v174_v36  ;;  %191 = vrot.lane.b32.xlu1 %v174_v36, %s373_s25 }
 0x199   :  { %179 = vst.msk [vmem:[%s553_s5] sm:$0xff] %vm178_vm14, %v169_v37  ;;  %v333_v39 = vmul.f32 -1.442695, %v169_v37  ;;  %203 = vrot.lane.b32.xlu0 %v169_v37, %s374_s4  ;;  %187 = vrot.lane.b32.xlu2 %v169_v37, %s373_s25 }
 0x19a   :  { %356 = vpow2.f32 %v335_v38 }
 0x19b   :  { %358 = vpow2.f32 %v333_v39 }
 0x19d   :  { %v175_v40 = vpop.f32.mrf.mxu1 }
 0x19e   :  { %v170_v41 = vpop.f32.mrf.mxu0  ;;  %v176_v42 = vadd.f32 %v345_v29, %v175_v40 }
 0x19f   :  { %v171_v43 = vadd.f32 %v345_v29, %v170_v41 }
 0x1a0   :  { %v357_v44 = vpop.eup %356  ;;  %182 = vst.msk [vmem:[%s553_s5 + $0x18] sm:$0xff] %vm178_vm14, %v176_v42  ;;  %v336_v45 = vmul.f32 -1.442695, %v176_v42  ;;  %207 = vrot.lane.b32.xlu1 %v174_v36, %s374_s4 }
 0x1a1   :  { %v359_v46 = vpop.eup %358  ;;  %v233_v47 = vadd.f32 1.0, %v357_v44  ;;  %180 = vst.msk [vmem:[%s553_s5 + $0x8] sm:$0xff] %vm178_vm14, %v171_v43  ;;  %v334_v48 = vmul.f32 -1.442695, %v171_v43  ;;  %189 = vrot.lane.b32.xlu0 %v171_v43, %s373_s25  ;;  %193 = vrot.lane.b32.xlu2 %v176_v42, %s373_s25  ;;  %s375_s5 = smov 80  }
 0x1a2   :  { %v231_v49 = vadd.f32 1.0, %v359_v46  ;;  %360 = vpow2.f32 %v336_v45 }
 0x1a3   :  { %362 = vrcp.f32 %v233_v47  ;;  %v274_v60 = vand.u32 2147483647, %v233_v47  ;;  %v276_v61 = vand.u32 2147483648, %v233_v47  ;;  %vm270_vm1 = vweird.f32 %v233_v47 }
 0x1a4   :  { %364 = vrcp.f32 %v231_v49  ;;  %v246_v62 = vand.u32 2147483648, %v231_v49  ;;  %v244_v1 = vand.u32 2147483647, %v231_v49  ;;  %vm240_vm2 = vweird.f32 %v231_v49 }
 0x1a5   :  { %366 = vpow2.f32 %v334_v48  ;;  %v277_v5 = vor.u32 1.1754944e-38, %v276_v61  ;;  %vm275_vm5 = vcmp.eq.f32.partialorder %v274_v60, 8.507059e+37 }
 0x1a6   :  { %v247_v6 = vor.u32 1.1754944e-38, %v246_v62  ;;  %vm245_vm6 = vcmp.eq.f32.partialorder %v244_v1, 8.507059e+37 }
 0x1a8   :  { %v361_v50 = vpop.eup %360 }
 0x1a9   :  { %v363_v51 = vpop.eup %362  ;;  %v234_v52 = vadd.f32 1.0, %v361_v50  ;;  %209 = vrot.lane.b32.xlu0 %v176_v42, %s374_s4  ;;  %205 = vrot.lane.b32.xlu2 %v171_v43, %s374_s4 }
 0x1aa   :  { %v365_v53 = vpop.eup %364  ;;  %v266_v54 = vmul.f32 %v363_v51, %v233_v47  ;;  %vm271_vm15 = vweird.f32 %v363_v51 }
 0x1ab   :  { %v367_v55 = vpop.eup %366  ;;  %368 = vrcp.f32 %v234_v52  ;;  %v236_v56 = vmul.f32 %v365_v53, %v231_v49  ;;  %vm241_vm0 = vweird.f32 %v365_v53  ;;  %vm272_vm3 = vmor %vm270_vm1, %vm271_vm15  ;;  %v291_v14 = vand.u32 2147483648, %v234_v52 }
 0x1ac   :  { %v232_v57 = vadd.f32 1.0, %v367_v55  ;;  %v267_v58 = vsub.f32 1.0, %v266_v54  ;;  %vm242_vm4 = vmor %vm240_vm2, %vm241_vm0  ;;  %v289_v17 = vand.u32 2147483647, %v234_v52  ;;  %vm285_vm8 = vweird.f32 %v234_v52 }
 0x1ad   :  { %v237_v59 = vsub.f32 1.0, %v236_v56  ;;  %v292_v19 = vor.u32 1.1754944e-38, %v291_v14 }
 0x1ae   :  { %370 = vrcp.f32 %v232_v57  ;;  %v268_v63 = vmul.f32 %v363_v51, %v267_v58  ;;  %v261_v22 = vand.u32 2147483648, %v232_v57  ;;  %v259_v24 = vand.u32 2147483647, %v232_v57 }
 0x1af   :  { %v238_v0 = vmul.f32 %v365_v53, %v237_v59  ;;  %vm290_vm11 = vcmp.eq.f32.partialorder %v289_v17, 8.507059e+37  ;;  %vm255_vm12 = vweird.f32 %v232_v57 }
 0x1b0   :  { %v269_v2 = vadd.f32 %v363_v51, %v268_v63  ;;  %v262_v20 = vor.u32 1.1754944e-38, %v261_v22  ;;  %vm260_vm15 = vcmp.eq.f32.partialorder %v259_v24, 8.507059e+37 }
 0x1b1   :  { %v369_v3 = vpop.eup %368  ;;  %v239_v4 = vadd.f32 %v365_v53, %v238_v0 }
 0x1b2   :  { %v273_v7 = vsel %vm272_vm3, %v363_v51, %v269_v2  ;;  %v281_v8 = vmul.f32 %v369_v3, %v234_v52  ;;  %vm286_vm7 = vweird.f32 %v369_v3 }
 0x1b3   :  { %v243_v9 = vsel %vm242_vm4, %v365_v53, %v239_v4  ;;  %v278_v10 = vsel %vm275_vm5, %v277_v5, %v273_v7  ;;  %vm287_vm9 = vmor %vm285_vm8, %vm286_vm7 }
 0x1b4   :  { %v371_v11 = vpop.eup %370  ;;  %v248_v12 = vsel %vm245_vm6, %v247_v6, %v243_v9  ;;  %303 = vrot.lane.b32.xlu0 %v278_v10, %s375_s5  ;;  %v282_v13 = vsub.f32 1.0, %v281_v8 }
 0x1b5   :  { %299 = vrot.lane.b32.xlu2 %v248_v12, %s375_s5  ;;  %v251_v15 = vmul.f32 %v371_v11, %v232_v57  ;;  %vm256_vm10 = vweird.f32 %v371_v11 }
 0x1b6   :  { %v283_v16 = vmul.f32 %v369_v3, %v282_v13  ;;  %vm257_vm13 = vmor %vm255_vm12, %vm256_vm10 }
 0x1b7   :  { %v252_v18 = vsub.f32 1.0, %v251_v15 }
 0x1b8   :  { %v284_v21 = vadd.f32 %v369_v3, %v283_v16 }
 0x1b9   :  { %v253_v23 = vmul.f32 %v371_v11, %v252_v18 }
 0x1ba   :  { %v288_v25 = vsel %vm287_vm9, %v369_v3, %v284_v21 }
 0x1bb   :  { %v293_v26 = vsel %vm290_vm11, %v292_v19, %v288_v25  ;;  %v254_v27 = vadd.f32 %v371_v11, %v253_v23 }
 0x1bd   :  { %305 = vrot.lane.b32.xlu2 %v293_v26, %s375_s5  ;;  %v258_v28 = vsel %vm257_vm13, %v371_v11, %v254_v27 }
 0x1be   :  { %v263_v31 = vsel %vm260_vm15, %v262_v20, %v258_v28 }
 0x1bf   :  { %301 = vrot.lane.b32.xlu1 %v263_v31, %s375_s5 }
 0x1f3   :  { %v188_v32 = vpop.permute.xlu2 %187 }
 0x1f4   :  { %199 = vst.msk [vmem:[%s554_s6] sm:$0xff] %vm178_vm14, %v188_v32 }
 0x1fb   :  { %v194_v33 = vpop.permute.xlu2 %193 }
 0x1fc   :  { %202 = vst.msk [vmem:[%s554_s6 + $0x18] sm:$0xff] %vm178_vm14, %v194_v33 }
 0x203   :  { %v206_v34 = vpop.permute.xlu2 %205 }
 0x204   :  { %216 = vst.msk [vmem:[%s555_s7 + $0x8] sm:$0xff] %vm178_vm14, %v206_v34 }
 0x20a   :  { %v192_v29 = vpop.permute.xlu1 %191 }
 0x20b   :  { %201 = vst.msk [vmem:[%s554_s6 + $0x10] sm:$0xff] %vm178_vm14, %v192_v29  ;;  %v204_v35 = vpop.permute.xlu0 %203 }
 0x20c   :  { %215 = vst.msk [vmem:[%s555_s7] sm:$0xff] %vm178_vm14, %v204_v35 }
 0x20f   :  { %v300_v30 = vpop.permute.xlu2 %299 }
 0x210   :  { %311 = vst.msk [vmem:[%s556_s8] sm:$0xff] %vm178_vm14, %v300_v30 }
 0x212   :  { %v208_v36 = vpop.permute.xlu1 %207 }
 0x213   :  { %217 = vst.msk [vmem:[%s555_s7 + $0x10] sm:$0xff] %vm178_vm14, %v208_v36  ;;  %v190_v37 = vpop.permute.xlu0 %189 }
 0x214   :  { %200 = vst.msk [vmem:[%s554_s6 + $0x8] sm:$0xff] %vm178_vm14, %v190_v37 }
 0x217   :  { %v306_v38 = vpop.permute.xlu2 %305 }
 0x218   :  { %314 = vst.msk [vmem:[%s556_s8 + $0x18] sm:$0xff] %vm178_vm14, %v306_v38 }
 0x21b   :  { %v210_v39 = vpop.permute.xlu0 %209 }
 0x21c   :  { %218 = vst.msk [vmem:[%s555_s7 + $0x18] sm:$0xff] %vm178_vm14, %v210_v39 }
 0x226   :  { %v304_v40 = vpop.permute.xlu0 %303 }
 0x227   :  { %313 = vst.msk [vmem:[%s556_s8 + $0x10] sm:$0xff] %vm178_vm14, %v304_v40 }
 0x231   :  { %v302_v41 = vpop.permute.xlu1 %301 }
 0x232   :  { %312 = vst.msk [vmem:[%s556_s8 + $0x8] sm:$0xff] %vm178_vm14, %v302_v41 }

// kernel: _lambda_.23
= control target key start
LH: loop header
LB: loop body
LE: loop exit
PB: predicated region body
PF: predicated region fallthrough
CT: control target
= control target key end

     0   :  { %vm28_vm0 = vcmask 130048   ;;  %v323_v16 = vmov 16.0   ;;  %s555_s0 = inlined_call_operand.vmem [shape: f32[64,16], index: 0, kind: input, shape index: {}]   ;;  %s556_s1 = inlined_call_operand.vmem [shape: f32[1,16], index: 1, kind: input, shape index: {}]   ;;  %s557_s2 = inlined_call_operand.vmem [shape: f32[1,16], index: 2, kind: input, shape index: {}]   ;;  %s558_s3 = inlined_call_operand.vmem [shape: f32[16,2], index: 3, kind: input, shape index: {}]   ;;  %s559_s4 = inlined_call_operand.vmem [shape: f32[64,2], index: 4, kind: output, shape index: {}]  }
   0x1   :  { %v24_v0 = vld [vmem:[%s555_s0 + $0x30] sm:$0xff]  ;;  %v22_v1 = vld [vmem:[%s555_s0 + $0x20] sm:$0xff]  ;;  %v25_v6 = vld [vmem:[%s555_s0 + $0x38] sm:$0xff]  ;;  %305 = vrcp.f32 %v323_v16 }
   0x2   :  { %v18_v2 = vld [vmem:[%s555_s0] sm:$0xff]  ;;  %v47_v3 = vsel %vm28_vm0, %v24_v0, 0.0  ;;  %v41_v4 = vsel %vm28_vm0, %v22_v1, 0.0  ;;  %v23_v7 = vld [vmem:[%s555_s0 + $0x28] sm:$0xff]  ;;  %v50_v9 = vsel %vm28_vm0, %v25_v6, 0.0  ;;  %v20_v12 = vld [vmem:[%s555_s0 + $0x10] sm:$0xff] }
   0x3   :  { %v29_v5 = vsel %vm28_vm0, %v18_v2, 0.0  ;;  %48 = vadd.xlane.f32.xlu1 %v47_v3  ;;  %42 = vadd.xlane.f32.xlu0 %v41_v4  ;;  %v19_v8 = vld [vmem:[%s555_s0 + $0x8] sm:$0xff]  ;;  %v44_v10 = vsel %vm28_vm0, %v23_v7, 0.0  ;;  %v21_v13 = vld [vmem:[%s555_s0 + $0x18] sm:$0xff]  ;;  %v35_v14 = vsel %vm28_vm0, %v20_v12, 0.0 }
   0x4   :  { %30 = vadd.xlane.f32.xlu2 %v29_v5  ;;  %v32_v11 = vsel %vm28_vm0, %v19_v8, 0.0  ;;  %v38_v15 = vsel %vm28_vm0, %v21_v13, 0.0  ;;  %v238_v5 = vld [vmem:[%s558_s3] sm:$0xff] }
   0x7   :  { %v306_v17 = vpop.eup %305 }
   0x8   :  { %v54_v18 = vmul.f32 16.0, %v306_v17  ;;  %vm58_vm1 = vweird.f32 %v306_v17 }
   0xa   :  { %v55_v19 = vsub.f32 1.0, %v54_v18 }
   0xb   :  { %51 = vadd.xlane.f32.xlu1 %v50_v9  ;;  %45 = vadd.xlane.f32.xlu0 %v44_v10 }
   0xc   :  { %33 = vadd.xlane.f32.xlu2 %v32_v11  ;;  %v56_v20 = vmul.f32 %v306_v17, %v55_v19 }
   0xe   :  { %v57_v21 = vadd.f32 %v306_v17, %v56_v20 }
  0x10   :  { %v381_v22 = vsel %vm58_vm1, %v306_v17, %v57_v21 }
  0x13   :  { %36 = vadd.xlane.f32.xlu0 %v35_v14  ;;  %39 = vadd.xlane.f32.xlu1 %v38_v15 }
  0x76   :  { %v49_v23 = vpop.xlane.xlu1 %48  ;;  %v43_v24 = vpop.xlane.xlu0 %42 }
  0x77   :  { %v66_v25 = vmul.f32 %v381_v22, %v49_v23  ;;  %v64_v26 = vmul.f32 %v381_v22, %v43_v24  ;;  %v31_v27 = vpop.xlane.xlu2 %30 }
  0x78   :  { %v60_v36 = vmul.f32 %v381_v22, %v31_v27 }
  0x79   :  { %v385_v28 = vsub.f32 %v24_v0, %v66_v25  ;;  %v387_v29 = vsub.f32 %v22_v1, %v64_v26 }
  0x7a   :  { %v405_v44 = vsub.f32 %v18_v2, %v60_v36 }
  0x7b   :  { %v82_v30 = vmul.f32 %v385_v28, %v385_v28  ;;  %v80_v31 = vmul.f32 %v387_v29, %v387_v29 }
  0x7c   :  { %v76_v55 = vmul.f32 %v405_v44, %v405_v44 }
  0x7d   :  { %v102_v32 = vsel %vm28_vm0, %v82_v30, 0.0  ;;  %v96_v33 = vsel %vm28_vm0, %v80_v31, 0.0 }
  0x7e   :  { %v52_v34 = vpop.xlane.xlu1 %51  ;;  %v46_v35 = vpop.xlane.xlu0 %45  ;;  %103 = vadd.xlane.f32.xlu1 %v102_v32  ;;  %97 = vadd.xlane.f32.xlu2 %v96_v33  ;;  %v84_v59 = vsel %vm28_vm0, %v76_v55, 0.0 }
  0x7f   :  { %v67_v37 = vmul.f32 %v381_v22, %v52_v34  ;;  %v65_v38 = vmul.f32 %v381_v22, %v46_v35  ;;  %v34_v39 = vpop.xlane.xlu2 %33 }
  0x80   :  { %v61_v40 = vmul.f32 %v381_v22, %v34_v39 }
  0x81   :  { %v399_v41 = vsub.f32 %v25_v6, %v67_v37  ;;  %v401_v42 = vsub.f32 %v23_v7, %v65_v38  ;;  %v239_v6 = vld [vmem:[%s558_s3 + $0x8] sm:$0xff] }
  0x82   :  { %v403_v43 = vsub.f32 %v19_v8, %v61_v40  ;;  %v240_v7 = vpack.c.bf16 %v239_v6, %v238_v5 }
  0x83   :  { %v81_v45 = vmul.f32 %v401_v42, %v401_v42  ;;  %v83_v46 = vmul.f32 %v399_v41, %v399_v41 }
  0x84   :  { %v77_v47 = vmul.f32 %v403_v43, %v403_v43  ;;  %300 = vmatpush.bf16.msra.mxu2 %v240_v7  ;;  %301 = vmatpush.bf16.msra.mxu3 %v240_v7 }
  0x85   :  { %v99_v48 = vsel %vm28_vm0, %v81_v45, 0.0  ;;  %v105_v49 = vsel %vm28_vm0, %v83_v46, 0.0  ;;  %260 = vmatpush.bf16.msra.mxu0 %v240_v7  ;;  %299 = vmatpush.bf16.msra.mxu1 %v240_v7 }
  0x86   :  { %100 = vadd.xlane.f32.xlu0 %v99_v48  ;;  %v37_v50 = vpop.xlane.xlu0 %36  ;;  %106 = vadd.xlane.f32.xlu2 %v105_v49  ;;  %v87_v51 = vsel %vm28_vm0, %v77_v47, 0.0  ;;  %v40_v52 = vpop.xlane.xlu1 %39 }
  0x87   :  { %v62_v53 = vmul.f32 %v381_v22, %v37_v50  ;;  %88 = vadd.xlane.f32.xlu1 %v87_v51  ;;  %v63_v54 = vmul.f32 %v381_v22, %v40_v52 }
  0x89   :  { %v420_v56 = vsub.f32 %v20_v12, %v62_v53  ;;  %v422_v57 = vsub.f32 %v21_v13, %v63_v54 }
  0x8b   :  { %v78_v58 = vmul.f32 %v420_v56, %v420_v56  ;;  %v79_v61 = vmul.f32 %v422_v57, %v422_v57 }
  0x8d   :  { %v90_v60 = vsel %vm28_vm0, %v78_v58, 0.0  ;;  %v93_v62 = vsel %vm28_vm0, %v79_v61, 0.0 }
  0x8e   :  { %91 = vadd.xlane.f32.xlu2 %v90_v60  ;;  %85 = vadd.xlane.f32.xlu0 %v84_v59 }
  0x96   :  { %94 = vadd.xlane.f32.xlu0 %v93_v62 }
  0xf1   :  { %v104_v63 = vpop.xlane.xlu1 %103  ;;  %v98_v0 = vpop.xlane.xlu2 %97 }
  0xf2   :  { %v114_v1 = vmul.f32 %v104_v63, %v381_v22  ;;  %v112_v2 = vmul.f32 %v98_v0, %v381_v22  ;;  %v478_v0 = vld [vmem:[%s556_s1] ss:$0 sm:$0xff] }
  0xf4   :  { %v122_v3 = vadd.f32 1e-05, %v114_v1  ;;  %v120_v4 = vadd.f32 1e-05, %v112_v2 }
  0xf6   :  { %307 = vrsqrt.f32 %v122_v3  ;;  %vm190_vm2 = vweird.f32 %v122_v3  ;;  %vm170_vm5 = vweird.f32 %v120_v4 }
  0xf7   :  { %309 = vrsqrt.f32 %v120_v4 }
  0xf9   :  { %v101_v8 = vpop.xlane.xlu0 %100  ;;  %v107_v9 = vpop.xlane.xlu2 %106 }
  0xfa   :  { %v113_v10 = vmul.f32 %v101_v8, %v381_v22  ;;  %v89_v11 = vpop.xlane.xlu1 %88  ;;  %v115_v12 = vmul.f32 %v107_v9, %v381_v22 }
  0xfb   :  { %v109_v13 = vmul.f32 %v89_v11, %v381_v22 }
  0xfc   :  { %v308_v14 = vpop.eup %307  ;;  %v121_v15 = vadd.f32 1e-05, %v113_v10  ;;  %v442_v16 = vadd.f32 1e-05, %v115_v12  ;;  %v304_v12 = vld [vmem:[%s557_s2] ss:$0 sm:$0xff] }
  0xfd   :  { %v310_v17 = vpop.eup %309  ;;  %v185_v18 = vmul.f32 %v308_v14, %v122_v3  ;;  %v117_v19 = vadd.f32 1e-05, %v109_v13  ;;  %vm191_vm4 = vweird.f32 %v308_v14 }
  0xfe   :  { %v165_v20 = vmul.f32 %v310_v17, %v120_v4  ;;  %311 = vrsqrt.f32 %v121_v15  ;;  %vm171_vm3 = vweird.f32 %v310_v17  ;;  %vm180_vm7 = vweird.f32 %v121_v15  ;;  %vm465_vm8 = vmor %vm190_vm2, %vm191_vm4 }
  0xff   :  { %v186_v21 = vmul.f32 %v308_v14, %v185_v18  ;;  %313 = vrsqrt.f32 %v117_v19  ;;  %vm455_vm6 = vmor %vm170_vm5, %vm171_vm3  ;;  %vm140_vm9 = vweird.f32 %v117_v19  ;;  %vm200_vm12 = vweird.f32 %v442_v16 }
 0x100   :  { %v166_v23 = vmul.f32 %v310_v17, %v165_v20  ;;  %315 = vrsqrt.f32 %v442_v16 }
 0x101   :  { %v187_v24 = vmul.f32 0.5, %v186_v21  ;;  %v86_v25 = vpop.xlane.xlu0 %85  ;;  %v92_v26 = vpop.xlane.xlu2 %91 }
 0x102   :  { %v167_v27 = vmul.f32 0.5, %v166_v23  ;;  %v108_v30 = vmul.f32 %v86_v25, %v381_v22  ;;  %v110_v31 = vmul.f32 %v92_v26, %v381_v22 }
 0x103   :  { %v188_v32 = vsub.f32 1.5, %v187_v24 }
 0x104   :  { %v312_v33 = vpop.eup %311  ;;  %v168_v34 = vsub.f32 1.5, %v167_v27  ;;  %v447_v35 = vadd.f32 1e-05, %v108_v30  ;;  %v451_v38 = vadd.f32 1e-05, %v110_v31 }
 0x105   :  { %v449_v36 = vpop.eup %313  ;;  %v175_v37 = vmul.f32 %v312_v33, %v121_v15  ;;  %v189_v40 = vmul.f32 %v308_v14, %v188_v32  ;;  %vm181_vm10 = vweird.f32 %v312_v33 }
 0x106   :  { %v316_v39 = vpop.eup %315  ;;  %v169_v45 = vmul.f32 %v310_v17, %v168_v34  ;;  %v135_v46 = vmul.f32 %v449_v36, %v117_v19  ;;  %317 = vrsqrt.f32 %v447_v35  ;;  %vm141_vm11 = vweird.f32 %v449_v36  ;;  %vm182_vm14 = vmor %vm180_vm7, %vm181_vm10 }
 0x107   :  { %v176_v48 = vmul.f32 %v312_v33, %v175_v37  ;;  %v195_v49 = vmul.f32 %v316_v39, %v442_v16  ;;  %319 = vrsqrt.f32 %v451_v38  ;;  %v193_v58 = vsel %vm465_vm8, %v308_v14, %v189_v40  ;;  %vm487_vm15 = vmor %vm140_vm9, %vm141_vm11 }
 0x108   :  { %v173_v50 = vsel %vm455_vm6, %v310_v17, %v169_v45  ;;  %v136_v51 = vmul.f32 %v449_v36, %v135_v46  ;;  %vm201_vm13 = vweird.f32 %v316_v39  ;;  %v210_v4 = vmul.f32 %v193_v58, %v385_v28 }
 0x109   :  { %v177_v53 = vmul.f32 0.5, %v176_v48  ;;  %v196_v54 = vmul.f32 %v316_v39, %v195_v49  ;;  %v95_v55 = vpop.xlane.xlu0 %94  ;;  %v208_v61 = vmul.f32 %v173_v50, %v387_v29  ;;  %vm202_vm1 = vmor %vm200_vm12, %vm201_vm13  ;;  %vm130_vm2 = vweird.f32 %v447_v35 }
 0x10a   :  { %v137_v59 = vmul.f32 0.5, %v136_v51  ;;  %v111_v60 = vmul.f32 %v95_v55, %v381_v22  ;;  %v221_v19 = vmul.f32 %v478_v0, %v210_v4  ;;  %vm150_vm4 = vweird.f32 %v451_v38 }
 0x10b   :  { %v178_v62 = vsub.f32 1.5, %v177_v53  ;;  %v197_v63 = vmul.f32 0.5, %v196_v54  ;;  %v219_v28 = vmul.f32 %v478_v0, %v208_v61  ;;  %vm282_vm11 = vcmask 15360  }
 0x10c   :  { %v318_v1 = vpop.eup %317  ;;  %v138_v2 = vsub.f32 1.5, %v137_v59  ;;  %v119_v3 = vadd.f32 1e-05, %v111_v60 }
 0x10d   :  { %v179_v22 = vmul.f32 %v312_v33, %v178_v62  ;;  %v198_v29 = vsub.f32 1.5, %v197_v63  ;;  %v125_v5 = vmul.f32 %v318_v1, %v447_v35  ;;  %v320_v8 = vpop.eup %319  ;;  %vm131_vm3 = vweird.f32 %v318_v1 }
 0x10e   :  { %v139_v6 = vmul.f32 %v449_v36, %v138_v2  ;;  %321 = vrsqrt.f32 %v119_v3  ;;  %v145_v14 = vmul.f32 %v320_v8, %v451_v38  ;;  %v230_v16 = vadd.f32 %v304_v12, %v219_v28  ;;  %vm132_vm5 = vmor %vm130_vm2, %vm131_vm3 }
 0x10f   :  { %v183_v9 = vsel %vm182_vm14, %v312_v33, %v179_v22  ;;  %v199_v10 = vmul.f32 %v316_v39, %v198_v29  ;;  %v126_v11 = vmul.f32 %v318_v1, %v125_v5  ;;  %vm151_vm6 = vweird.f32 %v320_v8 }
 0x110   :  { %v209_v13 = vmul.f32 %v183_v9, %v401_v42  ;;  %v143_v15 = vsel %vm487_vm15, %v449_v36, %v139_v6  ;;  %v146_v21 = vmul.f32 %v320_v8, %v145_v14  ;;  %vm152_vm7 = vmor %vm150_vm4, %vm151_vm6  ;;  %vm160_vm9 = vweird.f32 %v119_v3 }
 0x111   :  { %v203_v17 = vsel %vm202_vm1, %v316_v39, %v199_v10  ;;  %v127_v18 = vmul.f32 0.5, %v126_v11  ;;  %v205_v25 = vmul.f32 %v143_v15, %v403_v43 }
 0x112   :  { %v211_v20 = vmul.f32 %v203_v17, %v399_v41  ;;  %v220_v23 = vmul.f32 %v478_v0, %v209_v13  ;;  %v147_v26 = vmul.f32 0.5, %v146_v21  ;;  %v232_v41 = vadd.f32 %v304_v12, %v221_v19 }
 0x113   :  { %v128_v42 = vsub.f32 1.5, %v127_v18  ;;  %v216_v45 = vmul.f32 %v478_v0, %v205_v25 }
 0x114   :  { %v322_v24 = vpop.eup %321  ;;  %v231_v27 = vadd.f32 %v304_v12, %v220_v23  ;;  %v222_v30 = vmul.f32 %v478_v0, %v211_v20  ;;  %v148_v33 = vsub.f32 1.5, %v147_v26 }
 0x115   :  { %v129_v31 = vmul.f32 %v318_v1, %v128_v42  ;;  %v155_v32 = vmul.f32 %v322_v24, %v119_v3  ;;  %vm161_vm8 = vweird.f32 %v322_v24  ;;  %v227_v51 = vadd.f32 %v304_v12, %v216_v45 }
 0x116   :  { %v236_v34 = vpack.c.bf16 %v231_v27, %v230_v16  ;;  %v233_v36 = vadd.f32 %v304_v12, %v222_v30  ;;  %v149_v40 = vmul.f32 %v320_v8, %v148_v33  ;;  %vm162_vm10 = vmor %vm160_vm9, %vm161_vm8 }
 0x117   :  { %v133_v35 = vsel %vm132_vm5, %v318_v1, %v129_v31  ;;  %v156_v37 = vmul.f32 %v322_v24, %v155_v32 }
 0x118   :  { %v204_v39 = vmul.f32 %v133_v35, %v405_v44  ;;  %297 = vmatmul.msk.bf16.vlgmr.msra.gmra.mxu2 %vm28_vm0, %v236_v34  ;;  %v237_v43 = vpack.c.bf16 %v233_v36, %v232_v41  ;;  %v153_v47 = vsel %vm152_vm7, %v320_v8, %v149_v40 }
 0x119   :  { %v157_v46 = vmul.f32 0.5, %v156_v37  ;;  %v206_v50 = vmul.f32 %v153_v47, %v420_v56 }
 0x11a   :  { %298 = vmatmul.msk.bf16.vlgmr.msra.gmra.mxu3 %vm28_vm0, %v237_v43  ;;  %v215_v48 = vmul.f32 %v478_v0, %v204_v39 }
 0x11b   :  { %v158_v49 = vsub.f32 1.5, %v157_v46  ;;  %v217_v55 = vmul.f32 %v478_v0, %v206_v50 }
 0x11c   :  { %v226_v44 = vadd.f32 %v304_v12, %v215_v48 }
 0x11d   :  { %v159_v52 = vmul.f32 %v322_v24, %v158_v49  ;;  %v228_v59 = vadd.f32 %v304_v12, %v217_v55 }
 0x11e   :  { %v234_v53 = vpack.c.bf16 %v227_v51, %v226_v44 }
 0x11f   :  { %v163_v54 = vsel %vm162_vm10, %v322_v24, %v159_v52 }
 0x120   :  { %v207_v38 = vmul.f32 %v163_v54, %v422_v57  ;;  %295 = vmatmul.msk.bf16.vlgmr.msra.gmra.mxu0 %vm28_vm0, %v234_v53 }
 0x122   :  { %v218_v58 = vmul.f32 %v478_v0, %v207_v38 }
 0x124   :  { %v229_v60 = vadd.f32 %v304_v12, %v218_v58 }
 0x126   :  { %v235_v61 = vpack.c.bf16 %v229_v60, %v228_v59 }
 0x128   :  { %296 = vmatmul.msk.bf16.vlgmr.msra.gmra.mxu1 %vm28_vm0, %v235_v61 }
 0x19b   :  { %v272_v56 = vpop.f32.mrf.mxu2 }
 0x19c   :  { %287 = vst.msk [vmem:[%s559_s4 + $0x20] sm:$0xff] %vm282_vm11, %v272_v56 }
 0x19d   :  { %v277_v62 = vpop.f32.mrf.mxu3  ;;  %v262_v57 = vpop.f32.mrf.mxu0 }
 0x19e   :  { %289 = vst.msk [vmem:[%s559_s4 + $0x30] sm:$0xff] %vm282_vm11, %v277_v62 }
 0x19f   :  { %283 = vst.msk [vmem:[%s559_s4] sm:$0xff] %vm282_vm11, %v262_v57 }
 0x1a3   :  { %v274_v63 = vpop.f32.mrf.mxu2 }
 0x1a4   :  { %288 = vst.msk [vmem:[%s559_s4 + $0x28] sm:$0xff] %vm282_vm11, %v274_v63 }
 0x1a5   :  { %v279_v0 = vpop.f32.mrf.mxu3  ;;  %v264_v1 = vpop.f32.mrf.mxu0 }
 0x1a6   :  { %290 = vst.msk [vmem:[%s559_s4 + $0x38] sm:$0xff] %vm282_vm11, %v279_v0  ;;  %v267_v2 = vpop.f32.mrf.mxu1 }
 0x1a7   :  { %284 = vst.msk [vmem:[%s559_s4 + $0x8] sm:$0xff] %vm282_vm11, %v264_v1 }
 0x1a8   :  { %285 = vst.msk [vmem:[%s559_s4 + $0x10] sm:$0xff] %vm282_vm11, %v267_v2 }
 0x1ae   :  { %v269_v3 = vpop.f32.mrf.mxu1 }
 0x1af   :  { %286 = vst.msk [vmem:[%s559_s4 + $0x18] sm:$0xff] %vm282_vm11, %v269_v3 }

// kernel: _lambda_.26
= control target key start
LH: loop header
LB: loop body
LE: loop exit
PB: predicated region body
PF: predicated region fallthrough
CT: control target
= control target key end

     0   :  { %s622_s21 = smov 0   ;;  %s676_s0 = inlined_call_operand.vmem [shape: f32[8,4,16], index: 0, kind: input, shape index: {}]   ;;  %s677_s1 = inlined_call_operand.vmem [shape: f32[8,4,16], index: 1, kind: input, shape index: {}]   ;;  %s678_s2 = inlined_call_operand.vmem [shape: f32[8,4,16], index: 2, kind: input, shape index: {}]   ;;  %s679_s3 = inlined_call_operand.vmem [shape: f32[8,4,16], index: 3, kind: input, shape index: {}]   ;;  %s680_s4 = inlined_call_operand.vmem [shape: f32[16,32], index: 4, kind: input, shape index: {}]   ;;  %s681_s5 = inlined_call_operand.vmem [shape: f32[1,32], index: 5, kind: input, shape index: {}]   ;;  %s682_s6 = inlined_call_operand.vmem [shape: f32[8,4,32], index: 6, kind: output, shape index: {}]  }
   0x1 LB: > { %s541_s22 = sadd.s32 4294967295, %s583_s21   ;;  %p545_p0 = scmp.ge.s32.totalorder %s583_s21, 1  ;;  %s583_s21 = sphi %s622_s21, %s16_s21  }
   0x2   : > { %p238_p1 = scmp.lt.s32.totalorder %s583_s21, 9 }
   0x4   : > { %p239_p2 = pnand %p545_p0, %p238_p1 }
   0x5   : > { %p278_p3 = scmp.lt.s32.totalorder (!%p239_p2), %s541_s22, 7  ;;  %s585_s30 = smov (!%p239_p2), 120  }
   0x6   : > { %242 = sbr.rel (%p239_p2) target bundleno = 915 (0x393), region = 44  ;;  %s586_s14 = smov (!%p239_p2), 8  }
   0xb   : > { %s684_s22 = smov (!%p278_p3, %s541_s22), 7  ;;  %vm304_vm0 = vcmask 64512   ;;  %vm324_vm1 = vcmask 27648   ;;  %vm342_vm2 = vcmask 1041408   ;;  %vm338_vm3 = vcmask 31744   ;;  %v426_v37 = vld [vmem:[%s680_s4] sm:$0xff] }
   0xc   : > { %s630_s23 = sshll.u32 %s684_s22, 2  ;;  %v427_v38 = vld [vmem:[%s680_s4 + $0x8] sm:$0xff]  ;;  %vm433_vm4 = vcmask 130048   ;;  %v568_v49 = vld [vmem:[%s681_s5] ss:$0 sm:$0xff]  ;;  %vm450_vm5 = vcmask 257024  }
   0xd   : > { %s285_s26 = scalar_lea.vmem %s677_s1, %s630_s23  ;;  %s281_s29 = scalar_lea.vmem %s676_s0, %s630_s23  ;;  %v428_v39 = vpack.c.bf16 %v427_v38, %v426_v37 }
   0xe   : > { %v300_v0 = vld [vmem:[%s285_s26] sm:$0xf]  ;;  %s289_s9 = scalar_lea.vmem %s678_s2, %s630_s23  ;;  %s293_s17 = scalar_lea.vmem %s679_s3, %s630_s23 }
   0xf   : > { %v303_v1 = vpack.c.bf16 %v300_v0, %v300_v0  ;;  %v299_v2 = vld [vmem:[%s281_s29] sm:$0xf]  ;;  %s297_s24 = scalar_lea.vmem %s682_s6, %s630_s23 }
  0x10   : > { %v302_v3 = vpack.c.bf16 %v299_v2, %v299_v2  ;;  %v301_v24 = vld [vmem:[%s289_s9] sm:$0xf] }
  0x11   : > { %363 = vrot.lane.b32.xlu0 %v303_v1, %s585_s30  ;;  %v309_v4 = vsel %vm304_vm0, %v303_v1, 0  ;;  %v337_v25 = vpack.c.bf16 %v301_v24, %v301_v24  ;;  %v423_v44 = vld [vmem:[%s293_s17] sm:$0xf] }
  0x12   : > { %318 = vmatpush.bf16.xpose.msra.mxu0 %v309_v4 }
  0x13   : > { %v344_v26 = vsel %vm342_vm2, %v337_v25, 0 }
  0x14   : > { %353 = vmatpush.bf16.msra.mxu1 %v344_v26 }
  0x18   : > { %444 = vmatpush.bf16.msrb.mxu1 %v428_v39 }
  0x19   : > { %360 = vrot.lane.b32.xlu0 %v302_v3, %s585_s30  ;;  %551 = vmatmul.msk.bf16.vlgmr.msra.gmra.mxu0 %vm304_vm0, %v302_v3 }
  0x83   : > { %v364_v5 = vpop.permute.xlu0 %363 }
  0x84   : > { %v369_v6 = vsel %vm304_vm0, %v364_v5, 0 }
  0x85   : > { %378 = vmatpush.bf16.xpose.msra.mxu2 %v369_v6 }
  0x8b   : > { %v361_v7 = vpop.permute.xlu0 %360 }
  0x8c   : > { %553 = vmatmul.msk.bf16.vlgmr.msra.gmra.mxu2 %vm304_vm0, %v361_v7 }
  0x96   : > { %v320_v8 = vpop.f32.mrf.mxu0 }
  0x97   : > { %v325_v12 = vsel %vm324_vm1, %v320_v8, -inf }
  0x9e   : > { %v322_v9 = vpop.f32.mrf.mxu0 }
 0x10f   : > { %v380_v10 = vpop.f32.mrf.mxu2 }
 0x110   : > { %v384_v11 = vsel %vm324_vm1, %v380_v10, -inf }
 0x111   : > { %385 = vmax.xlane.f32.xlu1 %v384_v11 }
 0x117   : > { %v382_v13 = vpop.f32.mrf.mxu2 }
 0x119   : > { %326 = vmax.xlane.f32.xlu1 %v325_v12 }
 0x184   : > { %v386_v14 = vpop.xlane.xlu1 %385 }
 0x185   : > { %v387_v15 = vsub.f32 %v380_v10, %v386_v14 }
 0x187   : > { %v388_v16 = vmul.f32 1.442695, %v387_v15 }
 0x189   : > { %569 = vpow2.f32 %v388_v16 }
 0x18c   : > { %v327_v17 = vpop.xlane.xlu1 %326 }
 0x18d   : > { %v328_v18 = vsub.f32 %v320_v8, %v327_v17 }
 0x18f   : > { %v570_v19 = vpop.eup %569  ;;  %v329_v20 = vmul.f32 1.442695, %v328_v18 }
 0x190   : > { %v390_v21 = vsel %vm324_vm1, %v570_v19, 0.0 }
 0x191   : > { %571 = vpow2.f32 %v329_v20  ;;  %391 = vadd.xlane.f32.xlu2 %v390_v21 }
 0x197   : > { %v572_v22 = vpop.eup %571 }
 0x198   : > { %v331_v23 = vsel %vm324_vm1, %v572_v22, 0.0 }
 0x199   : > { %332 = vadd.xlane.f32.xlu0 %v331_v23 }
 0x1a9   : > { %397 = vrot.lane.b32.xlu2 %v337_v25, %s585_s30 }
 0x204   : > { %v392_v27 = vpop.xlane.xlu2 %391 }
 0x205   : > { %573 = vrcp.f32 %v392_v27 }
 0x20b   : > { %v574_v28 = vpop.eup %573 }
 0x20c   : > { %v398_v29 = vpop.permute.xlu2 %397  ;;  %v333_v30 = vpop.xlane.xlu0 %332  ;;  %v394_v31 = vmul.f32 %v574_v28, %v570_v19 }
 0x20d   : > { %575 = vrcp.f32 %v333_v30  ;;  %v403_v32 = vsel %vm342_vm2, %v398_v29, 0 }
 0x20e   : > { %412 = vmatpush.bf16.msra.mxu3 %v403_v32  ;;  %v395_v33 = vpack.c.bf16 %v394_v31, %v394_v31 }
 0x211   : > { %554 = vmatmul.msk.bf16.vlgmr.msra.gmra.mxu3 %vm338_vm3, %v395_v33 }
 0x213   : > { %v576_v34 = vpop.eup %575 }
 0x214   : > { %v335_v35 = vmul.f32 %v576_v34, %v572_v22 }
 0x216   : > { %v336_v36 = vpack.c.bf16 %v335_v35, %v335_v35 }
 0x218   : > { %552 = vmatmul.msk.bf16.vlgmr.msra.gmra.mxu1 %vm338_vm3, %v336_v36 }
 0x294   : > { %v414_v40 = vpop.f32.mrf.mxu3 }
 0x295   : > { %419 = vrot.lane.b32.xlu1 %v414_v40, %s586_s14  ;;  %v355_v41 = vpop.f32.mrf.mxu1 }
 0x29c   : > { %v416_v42 = vpop.f32.mrf.mxu3 }
 0x29d   : > { %v357_v43 = vpop.f32.mrf.mxu1 }
 0x307   : > { %v420_v45 = vpop.permute.xlu1 %419 }
 0x308   : > { %v422_v46 = vsel %vm304_vm0, %v355_v41, %v420_v45 }
 0x309   : > { %v424_v47 = vmul.f32 %v423_v44, %v422_v46 }
 0x30b   : > { %v425_v48 = vpack.c.bf16 %v424_v47, %v424_v47 }
 0x30d   : > { %555 = vmatmul.msk.bf16.vlgmr.msrb.gmra.mxu1 %vm433_vm4, %v425_v48 }
 0x38a   : > { %v446_v50 = vpop.f32.mrf.mxu1 }
 0x38b   : > { %v447_v51 = vadd.f32 %v568_v49, %v446_v50 }
 0x38d   : > { %451 = vst.msk [vmem:[%s297_s24] sm:$0xf] %vm450_vm5, %v447_v51 }
 0x392   : > { %v448_v52 = vpop.f32.mrf.mxu1 }
 0x393 PF: > { %s16_s21 = sadd.s32 1, %s583_s21  }
 0x394   : > { %p13_p4 = scmp.ge.s32.totalorder %s16_s21, 10  }
 0x396   :  { %15 = sbr.rel (!%p13_p4) target bundleno = 1 (0x1), region = 83 }

// kernel: _lambda_.24
= control target key start
LH: loop header
LB: loop body
LE: loop exit
PB: predicated region body
PF: predicated region fallthrough
CT: control target
= control target key end

     0   :  { %s656_s24 = smov 0   ;;  %s718_s0 = inlined_call_operand.vmem [shape: f32[4,8,16], index: 0, kind: input, shape index: {}]   ;;  %s719_s1 = inlined_call_operand.vmem [shape: f32[4,8,16], index: 1, kind: input, shape index: {}]   ;;  %s720_s2 = inlined_call_operand.vmem [shape: f32[4,8,16], index: 2, kind: input, shape index: {}]   ;;  %s721_s3 = inlined_call_operand.vmem [shape: f32[4,8,16], index: 3, kind: input, shape index: {}]   ;;  %s722_s4 = inlined_call_operand.vmem [shape: f32[2,8,8], index: 4, kind: input, shape index: {}]   ;;  %s723_s5 = inlined_call_operand.vmem [shape: f32[16,32], index: 5, kind: input, shape index: {}]   ;;  %s724_s6 = inlined_call_operand.vmem [shape: f32[1,32], index: 6, kind: input, shape index: {}]   ;;  %s725_s7 = inlined_call_operand.vmem [shape: f32[4,8,32], index: 7, kind: output, shape index: {}]  }
   0x1 LB: > { %s569_s25 = sadd.s32 4294967295, %s612_s24   ;;  %p573_p0 = scmp.ge.s32.totalorder %s612_s24, 1  ;;  %s612_s24 = sphi %s656_s24, %s17_s24  }
   0x2   : > { %p263_p1 = scmp.lt.s32.totalorder %s612_s24, 5 }
   0x4   : > { %p264_p2 = pnand %p573_p0, %p263_p1 }
   0x5   : > { %p305_p3 = scmp.lt.s32.totalorder (!%p264_p2), %s569_s25, 3  ;;  %s614_s10 = smov (!%p264_p2), 120  }
   0x6   : > { %267 = sbr.rel (%p264_p2) target bundleno = 917 (0x395), region = 48  ;;  %s615_s22 = smov (!%p264_p2), 8  }
   0xb   : > { %s727_s25 = smov (!%p305_p3, %s569_s25), 3  ;;  %vm332_vm0 = vcmask 64512   ;;  %v581_v10 = vld [vmem:[%s722_s4 + $0x8] sm:$0xff]  ;;  %v331_v13 = vld [vmem:[%s722_s4] sm:$0xff]  ;;  %vm368_vm1 = vcmask 1043456   ;;  %vm461_vm2 = vcmask 130048  }
   0xc   : > { %s664_s26 = sshll.u32 %s727_s25, 3  ;;  %v454_v41 = vld [vmem:[%s723_s5] sm:$0xff]  ;;  %v455_v42 = vld [vmem:[%s723_s5 + $0x8] sm:$0xff]  ;;  %vm478_vm3 = vcmask 261120  }
   0xd   : > { %s312_s29 = scalar_lea.vmem %s719_s1, %s664_s26  ;;  %s308_s9 = scalar_lea.vmem %s718_s0, %s664_s26  ;;  %v456_v43 = vpack.c.bf16 %v455_v42, %v454_v41  ;;  %v597_v53 = vld [vmem:[%s724_s6] ss:$0 sm:$0xff] }
   0xe   : > { %v327_v0 = vld [vmem:[%s312_s29] sm:$0xff]  ;;  %s316_s17 = scalar_lea.vmem %s720_s2, %s664_s26  ;;  %s320_s27 = scalar_lea.vmem %s721_s3, %s664_s26 }
   0xf   : > { %v330_v1 = vpack.c.bf16 %v327_v0, %v327_v0  ;;  %v326_v2 = vld [vmem:[%s308_s9] sm:$0xff]  ;;  %s324_s9 = scalar_lea.vmem %s725_s7, %s664_s26 }
  0x10   : > { %v329_v3 = vpack.c.bf16 %v326_v2, %v326_v2  ;;  %v328_v28 = vld [vmem:[%s316_s17] sm:$0xff] }
  0x11   : > { %391 = vrot.lane.b32.xlu0 %v330_v1, %s614_s10  ;;  %v337_v4 = vsel %vm332_vm0, %v330_v1, 0  ;;  %v364_v29 = vpack.c.bf16 %v328_v28, %v328_v28  ;;  %v451_v48 = vld [vmem:[%s320_s27] sm:$0xff] }
  0x12   : > { %346 = vmatpush.bf16.xpose.msra.mxu0 %v337_v4 }
  0x13   : > { %v370_v30 = vsel %vm368_vm1, %v364_v29, 0 }
  0x14   : > { %379 = vmatpush.bf16.msra.mxu1 %v370_v30 }
  0x18   : > { %472 = vmatpush.bf16.msrb.mxu1 %v456_v43 }
  0x19   : > { %388 = vrot.lane.b32.xlu0 %v329_v3, %s614_s10  ;;  %579 = vmatmul.msk.bf16.vlgmr.msra.gmra.mxu0 %vm332_vm0, %v329_v3 }
  0x83   : > { %v392_v5 = vpop.permute.xlu0 %391 }
  0x84   : > { %v397_v6 = vsel %vm332_vm0, %v392_v5, 0 }
  0x85   : > { %406 = vmatpush.bf16.xpose.msra.mxu2 %v397_v6 }
  0x8b   : > { %v389_v7 = vpop.permute.xlu0 %388 }
  0x8c   : > { %582 = vmatmul.msk.bf16.vlgmr.msra.gmra.mxu2 %vm332_vm0, %v389_v7 }
  0x96   : > { %v348_v8 = vpop.f32.mrf.mxu0 }
  0x97   : > { %v349_v15 = vadd.f32 %v348_v8, %v331_v13 }
  0x99   : > { %v352_v17 = vsel %vm332_vm0, %v349_v15, -inf }
  0x9e   : > { %v350_v9 = vpop.f32.mrf.mxu0 }
 0x10f   : > { %v408_v11 = vpop.f32.mrf.mxu2 }
 0x110   : > { %v409_v12 = vadd.f32 %v581_v10, %v408_v11 }
 0x112   : > { %v412_v14 = vsel %vm332_vm0, %v409_v12, -inf }
 0x113   : > { %413 = vmax.xlane.f32.xlu1 %v412_v14 }
 0x117   : > { %v410_v16 = vpop.f32.mrf.mxu2 }
 0x11b   : > { %353 = vmax.xlane.f32.xlu1 %v352_v17 }
 0x186   : > { %v414_v18 = vpop.xlane.xlu1 %413 }
 0x187   : > { %v415_v19 = vsub.f32 %v409_v12, %v414_v18 }
 0x189   : > { %v416_v20 = vmul.f32 1.442695, %v415_v19 }
 0x18b   : > { %598 = vpow2.f32 %v416_v20 }
 0x18e   : > { %v354_v21 = vpop.xlane.xlu1 %353 }
 0x18f   : > { %v355_v22 = vsub.f32 %v349_v15, %v354_v21 }
 0x191   : > { %v599_v23 = vpop.eup %598  ;;  %v356_v24 = vmul.f32 1.442695, %v355_v22 }
 0x192   : > { %v418_v25 = vsel %vm332_vm0, %v599_v23, 0.0 }
 0x193   : > { %600 = vpow2.f32 %v356_v24  ;;  %419 = vadd.xlane.f32.xlu2 %v418_v25 }
 0x199   : > { %v601_v26 = vpop.eup %600 }
 0x19a   : > { %v358_v27 = vsel %vm332_vm0, %v601_v26, 0.0 }
 0x19b   : > { %359 = vadd.xlane.f32.xlu0 %v358_v27 }
 0x1ab   : > { %425 = vrot.lane.b32.xlu2 %v364_v29, %s614_s10 }
 0x206   : > { %v420_v31 = vpop.xlane.xlu2 %419 }
 0x207   : > { %602 = vrcp.f32 %v420_v31 }
 0x20d   : > { %v603_v32 = vpop.eup %602 }
 0x20e   : > { %v426_v33 = vpop.permute.xlu2 %425  ;;  %v360_v34 = vpop.xlane.xlu0 %359  ;;  %v422_v35 = vmul.f32 %v603_v32, %v599_v23 }
 0x20f   : > { %604 = vrcp.f32 %v360_v34  ;;  %v431_v36 = vsel %vm368_vm1, %v426_v33, 0 }
 0x210   : > { %440 = vmatpush.bf16.msra.mxu3 %v431_v36  ;;  %v423_v37 = vpack.c.bf16 %v422_v35, %v422_v35 }
 0x213   : > { %583 = vmatmul.msk.bf16.vlgmr.msra.gmra.mxu3 %vm332_vm0, %v423_v37 }
 0x215   : > { %v605_v38 = vpop.eup %604 }
 0x216   : > { %v362_v39 = vmul.f32 %v605_v38, %v601_v26 }
 0x218   : > { %v363_v40 = vpack.c.bf16 %v362_v39, %v362_v39 }
 0x21a   : > { %580 = vmatmul.msk.bf16.vlgmr.msra.gmra.mxu1 %vm332_vm0, %v363_v40 }
 0x296   : > { %v442_v44 = vpop.f32.mrf.mxu3 }
 0x297   : > { %447 = vrot.lane.b32.xlu1 %v442_v44, %s615_s22  ;;  %v381_v45 = vpop.f32.mrf.mxu1 }
 0x29e   : > { %v444_v46 = vpop.f32.mrf.mxu3 }
 0x29f   : > { %v383_v47 = vpop.f32.mrf.mxu1 }
 0x309   : > { %v448_v49 = vpop.permute.xlu1 %447 }
 0x30a   : > { %v450_v50 = vsel %vm332_vm0, %v381_v45, %v448_v49 }
 0x30b   : > { %v452_v51 = vmul.f32 %v451_v48, %v450_v50 }
 0x30d   : > { %v453_v52 = vpack.c.bf16 %v452_v51, %v452_v51 }
 0x30f   : > { %584 = vmatmul.msk.bf16.vlgmr.msrb.gmra.mxu1 %vm461_vm2, %v453_v52 }
 0x38c   : > { %v474_v54 = vpop.f32.mrf.mxu1 }
 0x38d   : > { %v475_v55 = vadd.f32 %v597_v53, %v474_v54 }
 0x38f   : > { %479 = vst.msk [vmem:[%s324_s9] sm:$0xff] %vm478_vm3, %v475_v55 }
 0x394   : > { %v476_v56 = vpop.f32.mrf.mxu1 }
 0x395 PF: > { %s17_s24 = sadd.s32 1, %s612_s24  }
 0x396   : > { %p14_p4 = scmp.ge.s32.totalorder %s17_s24, 6  }
 0x398   :  { %16 = sbr.rel (!%p14_p4) target bundleno = 1 (0x1), region = 88 }

// kernel: _lambda_.27
= control target key start
LH: loop header
LB: loop body
LE: loop exit
PB: predicated region body
PF: predicated region fallthrough
CT: control target
= control target key end

     0   :  { %vm33_vm0 = vcmask 261120   ;;  %v266_v8 = vmov 32.0   ;;  %s467_s0 = inlined_call_operand.vmem [shape: f32[32,32], index: 0, kind: input, shape index: {}]   ;;  %s468_s1 = inlined_call_operand.vmem [shape: f32[1,32], index: 1, kind: input, shape index: {}]   ;;  %s469_s2 = inlined_call_operand.vmem [shape: f32[1,32], index: 2, kind: input, shape index: {}]   ;;  %s470_s4 = inlined_call_operand.vmem [shape: f32[1,128], index: 4, kind: input, shape index: {}]   ;;  %s471_s3 = inlined_call_operand.vmem [shape: f32[32,128], index: 3, kind: input, shape index: {}]   ;;  %s472_s5 = inlined_call_operand.vmem [shape: f32[128,32], index: 5, kind: input, shape index: {}]   ;;  %s473_s6 = inlined_call_operand.vmem [shape: f32[1,32], index: 6, kind: input, shape index: {}]   ;;  %s474_s7 = inlined_call_operand.vmem [shape: f32[32,32], index: 7, kind: output, shape index: {}]  }
   0x1   :  { %v29_v0 = vld [vmem:[%s467_s0 + $0x10] sm:$0xff]  ;;  %v27_v1 = vld [vmem:[%s467_s0] sm:$0xff]  ;;  %v30_v4 = vld [vmem:[%s467_s0 + $0x18] sm:$0xff]  ;;  %256 = vrcp.f32 %v266_v8 }
   0x2   :  { %v40_v2 = vsel %vm33_vm0, %v29_v0, 0.0  ;;  %v34_v3 = vsel %vm33_vm0, %v27_v1, 0.0  ;;  %v28_v5 = vld [vmem:[%s467_s0 + $0x8] sm:$0xff]  ;;  %v43_v6 = vsel %vm33_vm0, %v30_v4, 0.0  ;;  %v147_v35 = vld [vmem:[%s471_s3 + $0x10] sm:$0xff]  ;;  %v148_v36 = vld [vmem:[%s471_s3 + $0x18] sm:$0xff] }
   0x3   :  { %41 = vadd.xlane.f32.xlu1 %v40_v2  ;;  %35 = vadd.xlane.f32.xlu0 %v34_v3  ;;  %v37_v7 = vsel %vm33_vm0, %v28_v5, 0.0  ;;  %v150_v37 = vpack.c.bf16 %v148_v36, %v147_v35  ;;  %v145_v39 = vld [vmem:[%s471_s3] sm:$0xff]  ;;  %v146_v40 = vld [vmem:[%s471_s3 + $0x8] sm:$0xff] }
   0x4   :  { %v149_v43 = vpack.c.bf16 %v146_v40, %v145_v39 }
   0x5   :  { %167 = vmatpush.bf16.msra.mxu0 %v150_v37 }
   0x7   :  { %v257_v9 = vpop.eup %256 }
   0x8   :  { %v47_v10 = vmul.f32 32.0, %v257_v9  ;;  %vm51_vm1 = vweird.f32 %v257_v9 }
   0x9   :  { %168 = vmatpush.bf16.msra.mxu0 %v149_v43 }
   0xa   :  { %v48_v11 = vsub.f32 1.0, %v47_v10 }
   0xb   :  { %44 = vadd.xlane.f32.xlu1 %v43_v6  ;;  %38 = vadd.xlane.f32.xlu0 %v37_v7  ;;  %v198_v6 = vld [vmem:[%s472_s5 + $0x60] sm:$0xff] }
   0xc   :  { %v49_v12 = vmul.f32 %v257_v9, %v48_v11  ;;  %v199_v11 = vld [vmem:[%s472_s5 + $0x68] sm:$0xff] }
   0xe   :  { %v50_v13 = vadd.f32 %v257_v9, %v49_v12 }
  0x10   :  { %v52_v14 = vsel %vm51_vm1, %v257_v9, %v50_v13 }
  0x76   :  { %v42_v15 = vpop.xlane.xlu1 %41  ;;  %v36_v16 = vpop.xlane.xlu0 %35 }
  0x77   :  { %v55_v17 = vmul.f32 %v52_v14, %v42_v15  ;;  %v53_v18 = vmul.f32 %v52_v14, %v36_v16  ;;  %v252_v16 = vld [vmem:[%s468_s1] ss:$0 sm:$0xff] }
  0x79   :  { %v323_v19 = vsub.f32 %v29_v0, %v55_v17  ;;  %v325_v20 = vsub.f32 %v27_v1, %v53_v18  ;;  %v196_v17 = vld [vmem:[%s472_s5 + $0x50] sm:$0xff]  ;;  %v197_v18 = vld [vmem:[%s472_s5 + $0x58] sm:$0xff] }
  0x7b   :  { %v63_v21 = vmul.f32 %v323_v19, %v323_v19  ;;  %v61_v22 = vmul.f32 %v325_v20, %v325_v20 }
  0x7d   :  { %v71_v23 = vsel %vm33_vm0, %v63_v21, 0.0  ;;  %v65_v24 = vsel %vm33_vm0, %v61_v22, 0.0 }
  0x7e   :  { %v45_v25 = vpop.xlane.xlu1 %44  ;;  %72 = vadd.xlane.f32.xlu0 %v71_v23  ;;  %66 = vadd.xlane.f32.xlu2 %v65_v24  ;;  %v39_v26 = vpop.xlane.xlu0 %38 }
  0x7f   :  { %v56_v27 = vmul.f32 %v52_v14, %v45_v25  ;;  %v54_v28 = vmul.f32 %v52_v14, %v39_v26 }
  0x81   :  { %v333_v29 = vsub.f32 %v30_v4, %v56_v27  ;;  %v335_v30 = vsub.f32 %v28_v5, %v54_v28  ;;  %v200_v4 = vld [vmem:[%s472_s5 + $0x70] sm:$0xff]  ;;  %v201_v5 = vld [vmem:[%s472_s5 + $0x78] sm:$0xff]  ;;  %v253_v27 = vld [vmem:[%s469_s2] ss:$0 sm:$0xff] }
  0x82   :  { %v209_v10 = vpack.c.bf16 %v201_v5, %v200_v4  ;;  %v194_v28 = vld [vmem:[%s472_s5 + $0x40] sm:$0xff] }
  0x83   :  { %v64_v31 = vmul.f32 %v333_v29, %v333_v29  ;;  %v62_v32 = vmul.f32 %v335_v30, %v335_v30 }
  0x84   :  { %214 = vmatpush.bf16.msra.mxu1 %v209_v10  ;;  %243 = vmatpush.bf16.msra.mxu2 %v209_v10 }
  0x85   :  { %v74_v33 = vsel %vm33_vm0, %v64_v31, 0.0  ;;  %v68_v34 = vsel %vm33_vm0, %v62_v32, 0.0  ;;  %v195_v31 = vld [vmem:[%s472_s5 + $0x48] sm:$0xff] }
  0x86   :  { %75 = vadd.xlane.f32.xlu1 %v74_v33  ;;  %69 = vadd.xlane.f32.xlu2 %v68_v34  ;;  %v206_v34 = vpack.c.bf16 %v195_v31, %v194_v28 }
  0xf1   :  { %v67_v38 = vpop.xlane.xlu2 %66  ;;  %v73_v42 = vpop.xlane.xlu0 %72 }
  0xf2   :  { %v77_v41 = vmul.f32 %v67_v38, %v52_v14  ;;  %v79_v45 = vmul.f32 %v73_v42, %v52_v14 }
  0xf4   :  { %v81_v44 = vadd.f32 1e-05, %v77_v41  ;;  %v355_v46 = vadd.f32 1e-05, %v79_v45 }
  0xf6   :  { %258 = vrsqrt.f32 %v81_v44  ;;  %vm91_vm3 = vweird.f32 %v81_v44  ;;  %vm111_vm10 = vweird.f32 %v355_v46 }
  0xf7   :  { %260 = vrsqrt.f32 %v355_v46 }
  0xf9   :  { %v76_v47 = vpop.xlane.xlu1 %75  ;;  %v70_v48 = vpop.xlane.xlu2 %69 }
  0xfa   :  { %v80_v49 = vmul.f32 %v76_v47, %v52_v14  ;;  %v78_v50 = vmul.f32 %v70_v48, %v52_v14  ;;  %v208_v14 = vpack.c.bf16 %v199_v11, %v198_v6  ;;  %v192_v48 = vld [vmem:[%s472_s5 + $0x30] sm:$0xff] }
  0xfc   :  { %v259_v51 = vpop.eup %258  ;;  %v357_v52 = vadd.f32 1e-05, %v80_v49  ;;  %v82_v53 = vadd.f32 1e-05, %v78_v50  ;;  %215 = vmatpush.bf16.msra.mxu1 %v208_v14  ;;  %244 = vmatpush.bf16.msra.mxu2 %v208_v14  ;;  %v193_v49 = vld [vmem:[%s472_s5 + $0x38] sm:$0xff] }
  0xfd   :  { %v86_v54 = vmul.f32 %v259_v51, %v81_v44  ;;  %v361_v57 = vpop.eup %260  ;;  %vm92_vm2 = vweird.f32 %v259_v51  ;;  %v205_v50 = vpack.c.bf16 %v193_v49, %v192_v48 }
  0xfe   :  { %262 = vrsqrt.f32 %v357_v52  ;;  %v106_v63 = vmul.f32 %v361_v57, %v355_v46  ;;  %vm369_vm4 = vmor %vm91_vm3, %vm92_vm2  ;;  %vm101_vm6 = vweird.f32 %v82_v53  ;;  %vm121_vm8 = vweird.f32 %v357_v52 }
  0xff   :  { %v87_v55 = vmul.f32 %v259_v51, %v86_v54  ;;  %264 = vrsqrt.f32 %v82_v53  ;;  %vm112_vm11 = vweird.f32 %v361_v57 }
 0x100   :  { %v107_v8 = vmul.f32 %v361_v57, %v106_v63  ;;  %vm113_vm13 = vmor %vm111_vm10, %vm112_vm11 }
 0x101   :  { %v88_v56 = vmul.f32 0.5, %v87_v55  ;;  %v186_v55 = vld [vmem:[%s472_s5] sm:$0xff] }
 0x102   :  { %v108_v21 = vmul.f32 0.5, %v107_v8 }
 0x103   :  { %v89_v58 = vsub.f32 1.5, %v88_v56  ;;  %v187_v56 = vld [vmem:[%s472_s5 + $0x8] sm:$0xff] }
 0x104   :  { %v363_v59 = vpop.eup %262  ;;  %v109_v32 = vsub.f32 1.5, %v108_v21 }
 0x105   :  { %v265_v60 = vpop.eup %264  ;;  %v116_v61 = vmul.f32 %v363_v59, %v357_v52  ;;  %v90_v62 = vmul.f32 %v259_v51, %v89_v58  ;;  %vm122_vm9 = vweird.f32 %v363_v59  ;;  %v188_v52 = vld [vmem:[%s472_s5 + $0x10] sm:$0xff] }
 0x106   :  { %v96_v0 = vmul.f32 %v265_v60, %v82_v53  ;;  %vm102_vm5 = vweird.f32 %v265_v60  ;;  %vm123_vm12 = vmor %vm121_vm8, %vm122_vm9  ;;  %v110_v37 = vmul.f32 %v361_v57, %v109_v32  ;;  %v189_v53 = vld [vmem:[%s472_s5 + $0x18] sm:$0xff] }
 0x107   :  { %v117_v2 = vmul.f32 %v363_v59, %v116_v61  ;;  %v94_v7 = vsel %vm369_vm4, %v259_v51, %v90_v62  ;;  %vm103_vm7 = vmor %vm101_vm6, %vm102_vm5  ;;  %v203_v54 = vpack.c.bf16 %v189_v53, %v188_v52 }
 0x108   :  { %v97_v3 = vmul.f32 %v265_v60, %v96_v0  ;;  %v125_v15 = vmul.f32 %v94_v7, %v325_v20  ;;  %v207_v20 = vpack.c.bf16 %v197_v18, %v196_v17  ;;  %v114_v40 = vsel %vm113_vm13, %v361_v57, %v110_v37 }
 0x109   :  { %v118_v12 = vmul.f32 0.5, %v117_v2  ;;  %v127_v42 = vmul.f32 %v114_v40, %v323_v19  ;;  %v190_v19 = vld [vmem:[%s472_s5 + $0x20] sm:$0xff]  ;;  %v202_v57 = vpack.c.bf16 %v187_v56, %v186_v55 }
 0x10a   :  { %v98_v9 = vmul.f32 0.5, %v97_v3  ;;  %v132_v26 = vmul.f32 %v252_v16, %v125_v15  ;;  %216 = vmatpush.bf16.msra.mxu1 %v207_v20  ;;  %245 = vmatpush.bf16.msra.mxu2 %v207_v20 }
 0x10b   :  { %v119_v23 = vsub.f32 1.5, %v118_v12  ;;  %v134_v44 = vmul.f32 %v252_v16, %v127_v42 }
 0x10c   :  { %v99_v13 = vsub.f32 1.5, %v98_v9  ;;  %v139_v35 = vadd.f32 %v253_v27, %v132_v26  ;;  %v255_v9 = vld [vmem:[%s473_s6] ss:$0 sm:$0xff] }
 0x10d   :  { %v141_v46 = vadd.f32 %v253_v27, %v134_v44 }
 0x10e   :  { %v100_v22 = vmul.f32 %v265_v60, %v99_v13  ;;  %217 = vmatpush.bf16.msra.mxu1 %v206_v34  ;;  %246 = vmatpush.bf16.msra.mxu2 %v206_v34 }
 0x110   :  { %v104_v24 = vsel %vm103_vm7, %v265_v60, %v100_v22 }
 0x111   :  { %v126_v25 = vmul.f32 %v104_v24, %v335_v30  ;;  %v120_v30 = vmul.f32 %v363_v59, %v119_v23 }
 0x112   :  { %218 = vmatpush.bf16.msra.mxu1 %v205_v50  ;;  %247 = vmatpush.bf16.msra.mxu2 %v205_v50 }
 0x113   :  { %v133_v33 = vmul.f32 %v252_v16, %v126_v25  ;;  %v124_v39 = vsel %vm123_vm12, %v363_v59, %v120_v30  ;;  %v254_v59 = vld [vmem:[%s470_s4] ss:$0 sm:$0xff] }
 0x114   :  { %v128_v41 = vmul.f32 %v124_v39, %v333_v29  ;;  %v191_v29 = vld [vmem:[%s472_s5 + $0x28] sm:$0xff] }
 0x115   :  { %v140_v36 = vadd.f32 %v253_v27, %v133_v33  ;;  %v204_v51 = vpack.c.bf16 %v191_v29, %v190_v19 }
 0x116   :  { %v135_v43 = vmul.f32 %v252_v16, %v128_v41 }
 0x117   :  { %v143_v38 = vpack.c.bf16 %v140_v36, %v139_v35  ;;  %219 = vmatpush.bf16.msra.mxu1 %v204_v51  ;;  %248 = vmatpush.bf16.msra.mxu2 %v204_v51 }
 0x118   :  { %v142_v45 = vadd.f32 %v253_v27, %v135_v43 }
 0x119   :  { %241 = vmatmul.msk.bf16.vlgmr.msra.gmra.mxu0 %vm33_vm0, %v143_v38 }
 0x11a   :  { %v144_v47 = vpack.c.bf16 %v142_v45, %v141_v46 }
 0x11b   :  { %220 = vmatpush.bf16.msra.mxu1 %v203_v54  ;;  %249 = vmatpush.bf16.msra.mxu2 %v203_v54 }
 0x11f   :  { %221 = vmatpush.bf16.msra.mxu1 %v202_v57  ;;  %250 = vmatpush.bf16.msra.mxu2 %v202_v57 }
 0x129   :  { %242 = vmatmul.msk.bf16.gmra.mxu0 %vm33_vm0, %v144_v47 }
 0x196   :  { %v170_v58 = vpop.f32.mrf.mxu0 }
 0x197   :  { %v171_v60 = vadd.f32 %v254_v59, %v170_v58 }
 0x199   :  { %v180_v63 = vmax.f32 %v171_v60, 0.0 }
 0x19e   :  { %v172_v61 = vpop.f32.mrf.mxu0 }
 0x19f   :  { %v173_v62 = vadd.f32 %v254_v59, %v172_v61 }
 0x1a1   :  { %v181_v0 = vmax.f32 %v173_v62, 0.0 }
 0x1a3   :  { %v184_v1 = vpack.c.bf16 %v181_v0, %v180_v63 }
 0x1a5   :  { %222 = vmatmul.bf16.vlgmr.msra.gmra.mxu1 %v184_v1 }
 0x1a6   :  { %v175_v2 = vpop.f32.mrf.mxu0 }
 0x1a7   :  { %v176_v3 = vadd.f32 %v254_v59, %v175_v2 }
 0x1a9   :  { %v182_v6 = vmax.f32 %v176_v3, 0.0 }
 0x1ae   :  { %v177_v4 = vpop.f32.mrf.mxu0 }
 0x1af   :  { %v178_v5 = vadd.f32 %v254_v59, %v177_v4 }
 0x1b1   :  { %v183_v7 = vmax.f32 %v178_v5, 0.0 }
 0x1b3   :  { %v185_v8 = vpack.c.bf16 %v183_v7, %v182_v6 }
 0x1b5   :  { %227 = vmatmul.bf16.vlgmr.msra.gmra.mxu2 %v185_v8 }
 0x222   :  { %v223_v10 = vpop.f32.mrf.mxu1 }
 0x223   :  { %v224_v11 = vadd.f32 %v255_v9, %v223_v10 }
 0x225   :  { %233 = vst.msk [vmem:[%s474_s7] sm:$0xff] %vm33_vm0, %v224_v11 }
 0x22a   :  { %v225_v12 = vpop.f32.mrf.mxu1 }
 0x22b   :  { %v226_v13 = vadd.f32 %v255_v9, %v225_v12 }
 0x22d   :  { %234 = vst.msk [vmem:[%s474_s7 + $0x8] sm:$0xff] %vm33_vm0, %v226_v13 }
 0x238   :  { %v228_v14 = vpop.f32.mrf.mxu2 }
 0x239   :  { %v229_v15 = vadd.f32 %v255_v9, %v228_v14 }
 0x23b   :  { %235 = vst.msk [vmem:[%s474_s7 + $0x10] sm:$0xff] %vm33_vm0, %v229_v15 }
 0x240   :  { %v230_v16 = vpop.f32.mrf.mxu2 }
 0x241   :  { %v231_v17 = vadd.f32 %v255_v9, %v230_v16 }
 0x243   :  { %236 = vst.msk [vmem:[%s474_s7 + $0x18] sm:$0xff] %vm33_vm0, %v231_v17 }

// kernel: _lambda_.29
= control target key start
LH: loop header
LB: loop body
LE: loop exit
PB: predicated region body
PF: predicated region fallthrough
CT: control target
= control target key end

     0   :  { %vm66_vm0 = vcmask 1041408   ;;  %vm53_vm1 = vcmask 31744   ;;  %vm16_vm2 = vcmask 523264   ;;  %v156_v7 = vmov 0.0   ;;  %s230_s0 = inlined_call_operand.vmem [shape: f32[4,64], index: 0, kind: input, shape index: {}]   ;;  %s231_s1 = inlined_call_operand.vmem [shape: f32[4,64], index: 1, kind: input, shape index: {}]   ;;  %s232_s2 = inlined_call_operand.vmem [shape: f32[64,64], index: 2, kind: output, shape index: {}]  }
   0x1   :  { %v33_v0 = vld [vmem:[%s230_s0] sm:$0xf]  ;;  %17 = vst.msk [vmem:[#allocation2] sm:$0xff] %vm16_vm2, %v156_v7 }
   0x2   :  { %v35_v1 = vld [vmem:[%s231_s1] sm:$0xf]  ;;  %v34_v2 = vpack.c.bf16 %v33_v0, %v33_v0  ;;  %18 = vst.msk [vmem:[#allocation2 + $0x8] sm:$0xff] %vm16_vm2, %v156_v7 }
   0x3   :  { %v36_v3 = vpack.c.bf16 %v35_v1, %v35_v1  ;;  %19 = vst.msk [vmem:[#allocation2 + $0x10] sm:$0xff] %vm16_vm2, %v156_v7 }
   0x4   :  { %37 = vxpose.xlu0.c.b16.start.end [1/1] (short) (narrow) %v34_v2, 64  ;;  %20 = vst.msk [vmem:[#allocation2 + $0x18] sm:$0xff] %vm16_vm2, %v156_v7 }
   0x5   :  { %v68_v4 = vsel %vm66_vm0, %v36_v3, 0  ;;  %21 = vst.msk [vmem:[#allocation2 + $0x20] sm:$0xff] %vm16_vm2, %v156_v7 }
   0x6   :  { %77 = vmatpush.bf16.msra.mxu0 %v68_v4  ;;  %151 = vmatpush.bf16.msra.mxu1 %v68_v4  ;;  %22 = vst.msk [vmem:[#allocation2 + $0x28] sm:$0xff] %vm16_vm2, %v156_v7 }
   0x7   :  { %152 = vmatpush.bf16.msra.mxu2 %v68_v4  ;;  %153 = vmatpush.bf16.msra.mxu3 %v68_v4  ;;  %23 = vst.msk [vmem:[#allocation2 + $0x30] sm:$0xff] %vm16_vm2, %v156_v7 }
   0x8   :  { %24 = vst.msk [vmem:[#allocation2 + $0x38] sm:$0xff] %vm16_vm2, %v156_v7  ;;  %v25_v10 = vld [vmem:[#allocation2] sm:$0xff] }
   0x9   :  { %v26_v13 = vld [vmem:[#allocation2 + $0x8] sm:$0xff] }
   0xa   :  { %v27_v18 = vld [vmem:[#allocation2 + $0x10] sm:$0xff] }
   0xb   :  { %v28_v23 = vld [vmem:[#allocation2 + $0x18] sm:$0xff] }
   0xc   :  { %v29_v30 = vld [vmem:[#allocation2 + $0x20] sm:$0xff] }
   0xd   :  { %v30_v33 = vld [vmem:[#allocation2 + $0x28] sm:$0xff] }
   0xe   :  { %v31_v38 = vld [vmem:[#allocation2 + $0x30] sm:$0xff] }
   0xf   :  { %v32_v43 = vld [vmem:[#allocation2 + $0x38] sm:$0xff] }
  0xb0   :  { %v45_v5 = vpop.trf.xlu0 }
  0xb1   :  { %147 = vmatmul.msk.bf16.vlgmr.msra.gmra.mxu0 %vm53_vm1, %v45_v5 }
  0xc0   :  { %v46_v6 = vpop.trf.xlu0 }
  0xc1   :  { %148 = vmatmul.msk.bf16.vlgmr.msra.gmra.mxu1 %vm53_vm1, %v46_v6 }
  0xd0   :  { %v47_v8 = vpop.trf.xlu0 }
  0xd1   :  { %149 = vmatmul.msk.bf16.vlgmr.msra.gmra.mxu2 %vm53_vm1, %v47_v8 }
  0xe0   :  { %v48_v9 = vpop.trf.xlu0 }
  0xe1   :  { %150 = vmatmul.msk.bf16.vlgmr.msra.gmra.mxu3 %vm53_vm1, %v48_v9 }
 0x12e   :  { %v79_v11 = vpop.f32.mrf.mxu0 }
 0x12f   :  { %v99_v12 = vadd.f32 %v79_v11, %v25_v10 }
 0x131   :  { %108 = vst.msk [vmem:[#allocation2] sm:$0xff] %vm16_vm2, %v99_v12 }
 0x136   :  { %v81_v14 = vpop.f32.mrf.mxu0 }
 0x137   :  { %v100_v15 = vadd.f32 %v81_v14, %v26_v13 }
 0x138   :  { %v119_v16 = vld [vmem:[#allocation2] sm:$0xff] }
 0x139   :  { %v127_v17 = vmul.f32 0.25, %v119_v16  ;;  %109 = vst.msk [vmem:[#allocation2 + $0x8] sm:$0xff] %vm16_vm2, %v100_v15 }
 0x13b   :  { %135 = vst.msk [vmem:[%s232_s2] sm:$0xff] %vm16_vm2, %v127_v17 }
 0x13e   :  { %v84_v19 = vpop.f32.mrf.mxu1 }
 0x13f   :  { %v101_v20 = vadd.f32 %v84_v19, %v27_v18 }
 0x140   :  { %v120_v21 = vld [vmem:[#allocation2 + $0x8] sm:$0xff] }
 0x141   :  { %v128_v22 = vmul.f32 0.25, %v120_v21  ;;  %110 = vst.msk [vmem:[#allocation2 + $0x10] sm:$0xff] %vm16_vm2, %v101_v20 }
 0x143   :  { %136 = vst.msk [vmem:[%s232_s2 + $0x8] sm:$0xff] %vm16_vm2, %v128_v22 }
 0x146   :  { %v86_v24 = vpop.f32.mrf.mxu1 }
 0x147   :  { %v102_v25 = vadd.f32 %v86_v24, %v28_v23 }
 0x148   :  { %v121_v26 = vld [vmem:[#allocation2 + $0x10] sm:$0xff] }
 0x149   :  { %v129_v27 = vmul.f32 0.25, %v121_v26  ;;  %111 = vst.msk [vmem:[#allocation2 + $0x18] sm:$0xff] %vm16_vm2, %v102_v25 }
 0x14b   :  { %137 = vst.msk [vmem:[%s232_s2 + $0x10] sm:$0xff] %vm16_vm2, %v129_v27 }
 0x150   :  { %v122_v28 = vld [vmem:[#allocation2 + $0x18] sm:$0xff] }
 0x151   :  { %v130_v29 = vmul.f32 0.25, %v122_v28 }
 0x153   :  { %138 = vst.msk [vmem:[%s232_s2 + $0x18] sm:$0xff] %vm16_vm2, %v130_v29 }
 0x154   :  { %v89_v31 = vpop.f32.mrf.mxu2 }
 0x155   :  { %v103_v32 = vadd.f32 %v89_v31, %v29_v30 }
 0x157   :  { %112 = vst.msk [vmem:[#allocation2 + $0x20] sm:$0xff] %vm16_vm2, %v103_v32 }
 0x15c   :  { %v91_v34 = vpop.f32.mrf.mxu2 }
 0x15d   :  { %v104_v35 = vadd.f32 %v91_v34, %v30_v33 }
 0x15e   :  { %v123_v36 = vld [vmem:[#allocation2 + $0x20] sm:$0xff] }
 0x15f   :  { %v131_v37 = vmul.f32 0.25, %v123_v36  ;;  %113 = vst.msk [vmem:[#allocation2 + $0x28] sm:$0xff] %vm16_vm2, %v104_v35 }
 0x161   :  { %139 = vst.msk [vmem:[%s232_s2 + $0x20] sm:$0xff] %vm16_vm2, %v131_v37 }
 0x164   :  { %v94_v39 = vpop.f32.mrf.mxu3 }
 0x165   :  { %v105_v40 = vadd.f32 %v94_v39, %v31_v38 }
 0x166   :  { %v124_v41 = vld [vmem:[#allocation2 + $0x28] sm:$0xff] }
 0x167   :  { %v132_v42 = vmul.f32 0.25, %v124_v41  ;;  %114 = vst.msk [vmem:[#allocation2 + $0x30] sm:$0xff] %vm16_vm2, %v105_v40 }
 0x169   :  { %140 = vst.msk [vmem:[%s232_s2 + $0x28] sm:$0xff] %vm16_vm2, %v132_v42 }
 0x16c   :  { %v96_v44 = vpop.f32.mrf.mxu3 }
 0x16d   :  { %v106_v45 = vadd.f32 %v96_v44, %v32_v43 }
 0x16e   :  { %v125_v46 = vld [vmem:[#allocation2 + $0x30] sm:$0xff] }
 0x16f   :  { %v133_v47 = vmul.f32 0.25, %v125_v46  ;;  %115 = vst.msk [vmem:[#allocation2 + $0x38] sm:$0xff] %vm16_vm2, %v106_v45 }
 0x171   :  { %141 = vst.msk [vmem:[%s232_s2 + $0x30] sm:$0xff] %vm16_vm2, %v133_v47 }
 0x176   :  { %v126_v48 = vld [vmem:[#allocation2 + $0x38] sm:$0xff] }
 0x177   :  { %v134_v49 = vmul.f32 0.25, %v126_v48 }
 0x179   :  { %142 = vst.msk [vmem:[%s232_s2 + $0x38] sm:$0xff] %vm16_vm2, %v134_v49 }

// kernel: _lambda_.28
= control target key start
LH: loop header
LB: loop body
LE: loop exit
PB: predicated region body
PF: predicated region fallthrough
CT: control target
= control target key end

     0   :  { %vm29_vm0 = vcmask 261120   ;;  %v228_v8 = vmov 32.0   ;;  %vm176_vm14 = vcmask 64512   ;;  %s229_s17 = smov 120   ;;  %s360_s0 = inlined_call_operand.vmem [shape: f32[32,32], index: 0, kind: input, shape index: {}]   ;;  %s361_s1 = inlined_call_operand.vmem [shape: f32[1,32], index: 1, kind: input, shape index: {}]   ;;  %s362_s2 = inlined_call_operand.vmem [shape: f32[1,32], index: 2, kind: input, shape index: {}]   ;;  %s363_s4 = inlined_call_operand.vmem [shape: f32[1,16], index: 4, kind: input, shape index: {}]   ;;  %s364_s3 = inlined_call_operand.vmem [shape: f32[32,16], index: 3, kind: input, shape index: {}]   ;;  %s365_s5 = inlined_call_operand.vmem [shape: f32[32,8], index: 5, kind: output, shape index: {0}]   ;;  %s366_s6 = inlined_call_operand.vmem [shape: f32[32,8], index: 6, kind: output, shape index: {1}]  }
   0x1   :  { %v25_v0 = vld [vmem:[%s360_s0 + $0x10] sm:$0xff]  ;;  %v23_v1 = vld [vmem:[%s360_s0] sm:$0xff]  ;;  %v26_v4 = vld [vmem:[%s360_s0 + $0x18] sm:$0xff]  ;;  %218 = vrcp.f32 %v228_v8 }
   0x2   :  { %v36_v2 = vsel %vm29_vm0, %v25_v0, 0.0  ;;  %v30_v3 = vsel %vm29_vm0, %v23_v1, 0.0  ;;  %v24_v5 = vld [vmem:[%s360_s0 + $0x8] sm:$0xff]  ;;  %v39_v6 = vsel %vm29_vm0, %v26_v4, 0.0  ;;  %v143_v35 = vld [vmem:[%s364_s3 + $0x10] sm:$0xff]  ;;  %v144_v36 = vld [vmem:[%s364_s3 + $0x18] sm:$0xff] }
   0x3   :  { %37 = vadd.xlane.f32.xlu1 %v36_v2  ;;  %31 = vadd.xlane.f32.xlu0 %v30_v3  ;;  %v33_v7 = vsel %vm29_vm0, %v24_v5, 0.0  ;;  %v146_v37 = vpack.c.bf16 %v144_v36, %v143_v35  ;;  %v141_v40 = vld [vmem:[%s364_s3] sm:$0xff]  ;;  %v142_v41 = vld [vmem:[%s364_s3 + $0x8] sm:$0xff] }
   0x4   :  { %v145_v44 = vpack.c.bf16 %v142_v41, %v141_v40 }
   0x5   :  { %163 = vmatpush.bf16.msra.mxu0 %v146_v37  ;;  %211 = vmatpush.bf16.msra.mxu1 %v146_v37 }
   0x7   :  { %v219_v9 = vpop.eup %218 }
   0x8   :  { %v43_v10 = vmul.f32 32.0, %v219_v9  ;;  %vm47_vm1 = vweird.f32 %v219_v9 }
   0x9   :  { %164 = vmatpush.bf16.msra.mxu0 %v145_v44  ;;  %212 = vmatpush.bf16.msra.mxu1 %v145_v44 }
   0xa   :  { %v44_v11 = vsub.f32 1.0, %v43_v10 }
   0xb   :  { %40 = vadd.xlane.f32.xlu1 %v39_v6  ;;  %34 = vadd.xlane.f32.xlu0 %v33_v7 }
   0xc   :  { %v45_v12 = vmul.f32 %v219_v9, %v44_v11 }
   0xe   :  { %v46_v13 = vadd.f32 %v219_v9, %v45_v12 }
  0x10   :  { %v48_v14 = vsel %vm47_vm1, %v219_v9, %v46_v13 }
  0x76   :  { %v38_v15 = vpop.xlane.xlu1 %37  ;;  %v32_v16 = vpop.xlane.xlu0 %31 }
  0x77   :  { %v51_v17 = vmul.f32 %v48_v14, %v38_v15  ;;  %v49_v18 = vmul.f32 %v48_v14, %v32_v16 }
  0x79   :  { %v281_v19 = vsub.f32 %v25_v0, %v51_v17  ;;  %v283_v20 = vsub.f32 %v23_v1, %v49_v18 }
  0x7b   :  { %v59_v21 = vmul.f32 %v281_v19, %v281_v19  ;;  %v57_v22 = vmul.f32 %v283_v20, %v283_v20 }
  0x7d   :  { %v67_v23 = vsel %vm29_vm0, %v59_v21, 0.0  ;;  %v61_v24 = vsel %vm29_vm0, %v57_v22, 0.0 }
  0x7e   :  { %v41_v25 = vpop.xlane.xlu1 %40  ;;  %68 = vadd.xlane.f32.xlu0 %v67_v23  ;;  %62 = vadd.xlane.f32.xlu2 %v61_v24  ;;  %v35_v26 = vpop.xlane.xlu0 %34 }
  0x7f   :  { %v52_v27 = vmul.f32 %v48_v14, %v41_v25  ;;  %v50_v28 = vmul.f32 %v48_v14, %v35_v26 }
  0x81   :  { %v291_v29 = vsub.f32 %v26_v4, %v52_v27  ;;  %v293_v30 = vsub.f32 %v24_v5, %v50_v28 }
  0x83   :  { %v60_v31 = vmul.f32 %v291_v29, %v291_v29  ;;  %v58_v32 = vmul.f32 %v293_v30, %v293_v30 }
  0x85   :  { %v70_v33 = vsel %vm29_vm0, %v60_v31, 0.0  ;;  %v64_v34 = vsel %vm29_vm0, %v58_v32, 0.0 }
  0x86   :  { %71 = vadd.xlane.f32.xlu1 %v70_v33  ;;  %65 = vadd.xlane.f32.xlu2 %v64_v34 }
  0xf1   :  { %v63_v38 = vpop.xlane.xlu2 %62  ;;  %v69_v39 = vpop.xlane.xlu0 %68 }
  0xf2   :  { %v73_v42 = vmul.f32 %v63_v38, %v48_v14  ;;  %v75_v43 = vmul.f32 %v69_v39, %v48_v14 }
  0xf4   :  { %v77_v45 = vadd.f32 1e-05, %v73_v42  ;;  %v79_v46 = vadd.f32 1e-05, %v75_v43 }
  0xf6   :  { %220 = vrsqrt.f32 %v77_v45  ;;  %vm107_vm2 = vweird.f32 %v79_v46  ;;  %vm87_vm5 = vweird.f32 %v77_v45 }
  0xf7   :  { %222 = vrsqrt.f32 %v79_v46 }
  0xf9   :  { %v72_v47 = vpop.xlane.xlu1 %71  ;;  %v66_v48 = vpop.xlane.xlu2 %65 }
  0xfa   :  { %v76_v49 = vmul.f32 %v72_v47, %v48_v14  ;;  %v74_v50 = vmul.f32 %v66_v48, %v48_v14  ;;  %v215_v14 = vld [vmem:[%s361_s1] ss:$0 sm:$0xff] }
  0xfc   :  { %v221_v51 = vpop.eup %220  ;;  %v80_v52 = vadd.f32 1e-05, %v76_v49  ;;  %v78_v53 = vadd.f32 1e-05, %v74_v50 }
  0xfd   :  { %v223_v54 = vpop.eup %222  ;;  %v82_v55 = vmul.f32 %v221_v51, %v77_v45  ;;  %vm88_vm4 = vweird.f32 %v221_v51 }
  0xfe   :  { %v102_v56 = vmul.f32 %v223_v54, %v79_v46  ;;  %224 = vrsqrt.f32 %v80_v52  ;;  %vm108_vm3 = vweird.f32 %v223_v54  ;;  %vm89_vm7 = vmor %vm87_vm5, %vm88_vm4  ;;  %vm117_vm8 = vweird.f32 %v80_v52 }
  0xff   :  { %v83_v57 = vmul.f32 %v221_v51, %v82_v55  ;;  %226 = vrsqrt.f32 %v78_v53  ;;  %vm109_vm6 = vmor %vm107_vm2, %vm108_vm3  ;;  %vm97_vm12 = vweird.f32 %v78_v53 }
 0x100   :  { %v103_v58 = vmul.f32 %v223_v54, %v102_v56 }
 0x101   :  { %v84_v59 = vmul.f32 0.5, %v83_v57 }
 0x102   :  { %v104_v60 = vmul.f32 0.5, %v103_v58 }
 0x103   :  { %v85_v61 = vsub.f32 1.5, %v84_v59 }
 0x104   :  { %v225_v62 = vpop.eup %224  ;;  %v105_v63 = vsub.f32 1.5, %v104_v60 }
 0x105   :  { %v227_v0 = vpop.eup %226  ;;  %v112_v1 = vmul.f32 %v225_v62, %v80_v52  ;;  %v86_v2 = vmul.f32 %v221_v51, %v85_v61  ;;  %vm118_vm9 = vweird.f32 %v225_v62 }
 0x106   :  { %v106_v3 = vmul.f32 %v223_v54, %v105_v63  ;;  %v92_v4 = vmul.f32 %v227_v0, %v78_v53  ;;  %vm98_vm10 = vweird.f32 %v227_v0  ;;  %vm119_vm11 = vmor %vm117_vm8, %vm118_vm9 }
 0x107   :  { %v113_v5 = vmul.f32 %v225_v62, %v112_v1  ;;  %v90_v9 = vsel %vm89_vm7, %v221_v51, %v86_v2  ;;  %vm99_vm13 = vmor %vm97_vm12, %vm98_vm10 }
 0x108   :  { %v93_v6 = vmul.f32 %v227_v0, %v92_v4  ;;  %v110_v7 = vsel %vm109_vm6, %v223_v54, %v106_v3  ;;  %v121_v15 = vmul.f32 %v90_v9, %v283_v20 }
 0x109   :  { %v114_v8 = vmul.f32 0.5, %v113_v5  ;;  %v123_v12 = vmul.f32 %v110_v7, %v281_v19  ;;  %v216_v19 = vld [vmem:[%s362_s2] ss:$0 sm:$0xff] }
 0x10a   :  { %v94_v10 = vmul.f32 0.5, %v93_v6  ;;  %v128_v25 = vmul.f32 %v215_v14, %v121_v15 }
 0x10b   :  { %v115_v11 = vsub.f32 1.5, %v114_v8  ;;  %v130_v23 = vmul.f32 %v215_v14, %v123_v12 }
 0x10c   :  { %v95_v13 = vsub.f32 1.5, %v94_v10  ;;  %v135_v31 = vadd.f32 %v216_v19, %v128_v25 }
 0x10d   :  { %v116_v16 = vmul.f32 %v225_v62, %v115_v11  ;;  %v137_v20 = vadd.f32 %v216_v19, %v130_v23 }
 0x10e   :  { %v96_v17 = vmul.f32 %v227_v0, %v95_v13 }
 0x10f   :  { %v120_v18 = vsel %vm119_vm11, %v225_v62, %v116_v16 }
 0x110   :  { %v124_v21 = vmul.f32 %v120_v18, %v291_v29  ;;  %v100_v22 = vsel %vm99_vm13, %v227_v0, %v96_v17  ;;  %v217_v29 = vld [vmem:[%s363_s4] ss:$0 sm:$0xff] }
 0x111   :  { %v122_v24 = vmul.f32 %v100_v22, %v293_v30 }
 0x112   :  { %v131_v26 = vmul.f32 %v215_v14, %v124_v21 }
 0x113   :  { %v129_v27 = vmul.f32 %v215_v14, %v122_v24 }
 0x114   :  { %v138_v28 = vadd.f32 %v216_v19, %v131_v26 }
 0x115   :  { %v136_v32 = vadd.f32 %v216_v19, %v129_v27 }
 0x116   :  { %v140_v33 = vpack.c.bf16 %v138_v28, %v137_v20 }
 0x117   :  { %v139_v34 = vpack.c.bf16 %v136_v32, %v135_v31 }
 0x118   :  { %210 = vmatmul.msk.bf16.vlgmr.msra.gmra.mxu1 %vm29_vm0, %v140_v33 }
 0x119   :  { %209 = vmatmul.msk.bf16.vlgmr.msra.gmra.mxu0 %vm29_vm0, %v139_v34 }
 0x195   :  { %v171_v35 = vpop.f32.mrf.mxu1 }
 0x196   :  { %v166_v30 = vpop.f32.mrf.mxu0  ;;  %v172_v36 = vadd.f32 %v217_v29, %v171_v35 }
 0x197   :  { %v167_v37 = vadd.f32 %v217_v29, %v166_v30 }
 0x198   :  { %179 = vst.msk [vmem:[%s365_s5 + $0x10] sm:$0xff] %vm176_vm14, %v172_v36  ;;  %189 = vrot.lane.b32.xlu1 %v172_v36, %s229_s17 }
 0x199   :  { %177 = vst.msk [vmem:[%s365_s5] sm:$0xff] %vm176_vm14, %v167_v37  ;;  %185 = vrot.lane.b32.xlu2 %v167_v37, %s229_s17 }
 0x19d   :  { %v173_v38 = vpop.f32.mrf.mxu1 }
 0x19e   :  { %v168_v39 = vpop.f32.mrf.mxu0  ;;  %v174_v40 = vadd.f32 %v217_v29, %v173_v38 }
 0x19f   :  { %v169_v41 = vadd.f32 %v217_v29, %v168_v39 }
 0x1a0   :  { %180 = vst.msk [vmem:[%s365_s5 + $0x18] sm:$0xff] %vm176_vm14, %v174_v40 }
 0x1a1   :  { %178 = vst.msk [vmem:[%s365_s5 + $0x8] sm:$0xff] %vm176_vm14, %v169_v41  ;;  %187 = vrot.lane.b32.xlu0 %v169_v41, %s229_s17  ;;  %191 = vrot.lane.b32.xlu2 %v174_v40, %s229_s17 }
 0x1f3   :  { %v186_v42 = vpop.permute.xlu2 %185 }
 0x1f4   :  { %197 = vst.msk [vmem:[%s366_s6] sm:$0xff] %vm176_vm14, %v186_v42 }
 0x1fb   :  { %v192_v43 = vpop.permute.xlu2 %191 }
 0x1fc   :  { %200 = vst.msk [vmem:[%s366_s6 + $0x18] sm:$0xff] %vm176_vm14, %v192_v43 }
 0x20a   :  { %v190_v44 = vpop.permute.xlu1 %189 }
 0x20b   :  { %199 = vst.msk [vmem:[%s366_s6 + $0x10] sm:$0xff] %vm176_vm14, %v190_v44 }
 0x213   :  { %v188_v45 = vpop.permute.xlu0 %187 }
 0x214   :  { %198 = vst.msk [vmem:[%s366_s6 + $0x8] sm:$0xff] %vm176_vm14, %v188_v45 }

// kernel: _lambda_.30
= control target key start
LH: loop header
LB: loop body
LE: loop exit
PB: predicated region body
PF: predicated region fallthrough
CT: control target
= control target key end

     0   :  { %vm43_vm0 = vcmask 523264   ;;  %vm85_vm1 = vcmask 130048   ;;  %s218_s1 = inlined_call_operand.vmem [shape: f32[64,16], index: 1, kind: input, shape index: {}]   ;;  %s219_s2 = inlined_call_operand.vmem [shape: f32[1,16], index: 2, kind: input, shape index: {}]   ;;  %s220_s0 = inlined_call_operand.vmem [shape: f32[64,64], index: 0, kind: input, shape index: {}]   ;;  %s221_s3 = inlined_call_operand.vmem [shape: f32[64,16], index: 3, kind: output, shape index: {}]  }
   0x1   :  { %v33_v0 = vld [vmem:[%s218_s1 + $0x30] sm:$0xff]  ;;  %v34_v1 = vld [vmem:[%s218_s1 + $0x38] sm:$0xff]  ;;  %v31_v2 = vld [vmem:[%s218_s1 + $0x20] sm:$0xff] }
   0x2   :  { %v38_v3 = vpack.c.bf16 %v34_v1, %v33_v0  ;;  %v32_v4 = vld [vmem:[%s218_s1 + $0x28] sm:$0xff]  ;;  %v29_v6 = vld [vmem:[%s218_s1 + $0x10] sm:$0xff]  ;;  %v30_v7 = vld [vmem:[%s218_s1 + $0x18] sm:$0xff] }
   0x3   :  { %v37_v5 = vpack.c.bf16 %v32_v4, %v31_v2  ;;  %v36_v8 = vpack.c.bf16 %v30_v7, %v29_v6  ;;  %v27_v9 = vld [vmem:[%s218_s1] sm:$0xff]  ;;  %v28_v10 = vld [vmem:[%s218_s1 + $0x8] sm:$0xff]  ;;  %v17_v14 = vld [vmem:[%s220_s0 + $0x10] sm:$0xff] }
   0x4   :  { %60 = vmatpush.bf16.msra.mxu0 %v38_v3  ;;  %102 = vmatpush.bf16.msra.mxu1 %v38_v3  ;;  %v15_v11 = vld [vmem:[%s220_s0] sm:$0xff]  ;;  %v16_v12 = vld [vmem:[%s220_s0 + $0x8] sm:$0xff]  ;;  %v35_v13 = vpack.c.bf16 %v28_v10, %v27_v9  ;;  %v18_v15 = vld [vmem:[%s220_s0 + $0x18] sm:$0xff] }
   0x5   :  { %103 = vmatpush.bf16.msra.mxu2 %v38_v3  ;;  %104 = vmatpush.bf16.msra.mxu3 %v38_v3  ;;  %v19_v16 = vld [vmem:[%s220_s0 + $0x20] sm:$0xff]  ;;  %v20_v17 = vld [vmem:[%s220_s0 + $0x28] sm:$0xff]  ;;  %v21_v18 = vld [vmem:[%s220_s0 + $0x30] sm:$0xff]  ;;  %v23_v20 = vpack.c.bf16 %v16_v12, %v15_v11  ;;  %v24_v21 = vpack.c.bf16 %v18_v15, %v17_v14 }
   0x6   :  { %v22_v19 = vld [vmem:[%s220_s0 + $0x38] sm:$0xff]  ;;  %v25_v22 = vpack.c.bf16 %v20_v17, %v19_v16  ;;  %v114_v24 = vld [vmem:[%s219_s2] ss:$0 sm:$0xff] }
   0x7   :  { %v26_v23 = vpack.c.bf16 %v22_v19, %v21_v18 }
   0x8   :  { %61 = vmatpush.bf16.msra.mxu0 %v37_v5  ;;  %105 = vmatpush.bf16.msra.mxu1 %v37_v5 }
   0x9   :  { %106 = vmatpush.bf16.msra.mxu2 %v37_v5  ;;  %107 = vmatpush.bf16.msra.mxu3 %v37_v5 }
   0xc   :  { %62 = vmatpush.bf16.msra.mxu0 %v36_v8  ;;  %108 = vmatpush.bf16.msra.mxu1 %v36_v8 }
   0xd   :  { %109 = vmatpush.bf16.msra.mxu2 %v36_v8  ;;  %110 = vmatpush.bf16.msra.mxu3 %v36_v8 }
  0x10   :  { %63 = vmatpush.bf16.msra.mxu0 %v35_v13  ;;  %111 = vmatpush.bf16.msra.mxu1 %v35_v13 }
  0x11   :  { %112 = vmatpush.bf16.msra.mxu2 %v35_v13  ;;  %113 = vmatpush.bf16.msra.mxu3 %v35_v13 }
  0x13   :  { %98 = vmatmul.msk.bf16.vlgmr.msra.gmra.mxu0 %vm43_vm0, %v23_v20  ;;  %99 = vmatmul.msk.bf16.vlgmr.msra.gmra.mxu1 %vm43_vm0, %v24_v21 }
  0x14   :  { %100 = vmatmul.msk.bf16.vlgmr.msra.gmra.mxu2 %vm43_vm0, %v25_v22  ;;  %101 = vmatmul.msk.bf16.vlgmr.msra.gmra.mxu3 %vm43_vm0, %v26_v23 }
  0x90   :  { %v65_v25 = vpop.f32.mrf.mxu0  ;;  %v70_v26 = vpop.f32.mrf.mxu1 }
  0x91   :  { %v66_v27 = vadd.f32 %v114_v24, %v65_v25  ;;  %v71_v28 = vadd.f32 %v114_v24, %v70_v26 }
  0x93   :  { %86 = vst.msk [vmem:[%s221_s3] sm:$0xff] %vm85_vm1, %v66_v27 }
  0x94   :  { %88 = vst.msk [vmem:[%s221_s3 + $0x10] sm:$0xff] %vm85_vm1, %v71_v28 }
  0x97   :  { %v75_v29 = vpop.f32.mrf.mxu2  ;;  %v80_v30 = vpop.f32.mrf.mxu3 }
  0x98   :  { %v76_v31 = vadd.f32 %v114_v24, %v75_v29  ;;  %v81_v32 = vadd.f32 %v114_v24, %v80_v30  ;;  %v67_v33 = vpop.f32.mrf.mxu0  ;;  %v72_v34 = vpop.f32.mrf.mxu1 }
  0x99   :  { %v68_v35 = vadd.f32 %v114_v24, %v67_v33  ;;  %v73_v36 = vadd.f32 %v114_v24, %v72_v34 }
  0x9a   :  { %90 = vst.msk [vmem:[%s221_s3 + $0x20] sm:$0xff] %vm85_vm1, %v76_v31 }
  0x9b   :  { %92 = vst.msk [vmem:[%s221_s3 + $0x30] sm:$0xff] %vm85_vm1, %v81_v32 }
  0x9c   :  { %87 = vst.msk [vmem:[%s221_s3 + $0x8] sm:$0xff] %vm85_vm1, %v68_v35 }
  0x9d   :  { %89 = vst.msk [vmem:[%s221_s3 + $0x18] sm:$0xff] %vm85_vm1, %v73_v36 }
  0x9f   :  { %v77_v37 = vpop.f32.mrf.mxu2  ;;  %v82_v38 = vpop.f32.mrf.mxu3 }
  0xa0   :  { %v78_v39 = vadd.f32 %v114_v24, %v77_v37  ;;  %v83_v40 = vadd.f32 %v114_v24, %v82_v38 }
  0xa2   :  { %91 = vst.msk [vmem:[%s221_s3 + $0x28] sm:$0xff] %vm85_vm1, %v78_v39 }
  0xa3   :  { %93 = vst.msk [vmem:[%s221_s3 + $0x38] sm:$0xff] %vm85_vm1, %v83_v40 }

// kernel: _lambda_.32
= control target key start
LH: loop header
LB: loop body
LE: loop exit
PB: predicated region body
PF: predicated region fallthrough
CT: control target
= control target key end

     0   :  { %s289_s9 = smov 0   ;;  %s303_s0 = inlined_call_operand.vmem [shape: f32[16,8,8], index: 0, kind: input, shape index: {}]   ;;  %s304_s1 = inlined_call_operand.vmem [shape: f32[16,8,8], index: 1, kind: input, shape index: {}]   ;;  %s305_s2 = inlined_call_operand.vmem [shape: f32[16,8,8], index: 2, kind: output, shape index: {}]  }
   0x1 LB: > { %s247_s10 = sadd.s32 4294967295, %s272_s9   ;;  %p251_p0 = scmp.ge.s32.totalorder %s272_s9, 1  ;;  %s272_s9 = sphi %s289_s9, %s12_s9  }
   0x2   : > { %p120_p1 = scmp.lt.s32.totalorder %s272_s9, 17 }
   0x4   : > { %p121_p2 = pnand %p251_p0, %p120_p1 }
   0x5   : > { %p144_p3 = scmp.lt.s32.totalorder (!%p121_p2), %s247_s10, 15 }
   0x6   : > { %124 = sbr.rel (%p121_p2) target bundleno = 159 (0x9f), region = 28 }
   0xb   : > { %s307_s10 = smov (!%p144_p3, %s247_s10), 15  ;;  %vm161_vm0 = vcmask 64512  }
   0xc   : > { %s252_s11 = sshll.u32 %s307_s10, 3 }
   0xd   : > { %s151_s14 = scalar_lea.vmem %s304_s1, %s252_s11  ;;  %s147_s17 = scalar_lea.vmem %s303_s0, %s252_s11 }
   0xe   : > { %v159_v0 = vld [vmem:[%s151_s14] sm:$0xff]  ;;  %s155_s20 = scalar_lea.vmem %s305_s2, %s252_s11 }
   0xf   : > { %v160_v1 = vpack.c.bf16 %v159_v0, %v159_v0  ;;  %v157_v3 = vld [vmem:[%s147_s17] sm:$0xff] }
  0x10   : > { %v158_v4 = vpack.c.bf16 %v157_v3, %v157_v3 }
  0x11   : > { %v166_v2 = vsel %vm161_vm0, %v160_v1, 0 }
  0x12   : > { %175 = vmatpush.bf16.xpose.msra.mxu0 %v166_v2 }
  0x19   : > { %255 = vmatmul.msk.bf16.vlgmr.msra.gmra.mxu0 %vm161_vm0, %v158_v4 }
  0x96   : > { %v177_v5 = vpop.f32.mrf.mxu0 }
  0x97   : > { %181 = vst.msk [vmem:[%s155_s20] sm:$0xff] %vm161_vm0, %v177_v5 }
  0x9e   : > { %v179_v6 = vpop.f32.mrf.mxu0 }
  0x9f PF: > { %s12_s9 = sadd.s32 1, %s272_s9  }
  0xa0   : > { %p9_p4 = scmp.ge.s32.totalorder %s12_s9, 18  }
  0xa2   :  { %11 = sbr.rel (!%p9_p4) target bundleno = 1 (0x1), region = 61 }

// kernel: _lambda_.31
= control target key start
LH: loop header
LB: loop body
LE: loop exit
PB: predicated region body
PF: predicated region fallthrough
CT: control target
= control target key end

     0   :  { %vm34_vm0 = vcmask 130048   ;;  %v656_v16 = vmov 16.0   ;;  %s657_s23 = smov 112   ;;  %s659_s30 = smov 96   ;;  %s1054_s0 = inlined_call_operand.vmem [shape: f32[64,16], index: 0, kind: input, shape index: {}]   ;;  %s1055_s1 = inlined_call_operand.vmem [shape: f32[1,16], index: 1, kind: input, shape index: {}]   ;;  %s1056_s2 = inlined_call_operand.vmem [shape: f32[1,16], index: 2, kind: input, shape index: {}]   ;;  %s1057_s4 = inlined_call_operand.vmem [shape: f32[1,80], index: 4, kind: input, shape index: {}]   ;;  %s1058_s3 = inlined_call_operand.vmem [shape: f32[16,80], index: 3, kind: input, shape index: {}]   ;;  %s1059_s5 = inlined_call_operand.vmem [shape: f32[64,16], index: 5, kind: output, shape index: {0}]   ;;  %s1060_s7 = inlined_call_operand.vmem [shape: f32[64,16], index: 7, kind: output, shape index: {2}]   ;;  %s1061_s6 = inlined_call_operand.vmem [shape: f32[64,16], index: 6, kind: output, shape index: {1}]  }
   0x1   :  { %v30_v0 = vld [vmem:[%s1054_s0 + $0x30] sm:$0xff]  ;;  %v28_v1 = vld [vmem:[%s1054_s0 + $0x20] sm:$0xff]  ;;  %v31_v6 = vld [vmem:[%s1054_s0 + $0x38] sm:$0xff]  ;;  %606 = vrcp.f32 %v656_v16 }
   0x2   :  { %v24_v2 = vld [vmem:[%s1054_s0] sm:$0xff]  ;;  %v53_v3 = vsel %vm34_vm0, %v30_v0, 0.0  ;;  %v47_v4 = vsel %vm34_vm0, %v28_v1, 0.0  ;;  %v29_v7 = vld [vmem:[%s1054_s0 + $0x28] sm:$0xff]  ;;  %v56_v9 = vsel %vm34_vm0, %v31_v6, 0.0  ;;  %v26_v12 = vld [vmem:[%s1054_s0 + $0x10] sm:$0xff] }
   0x3   :  { %v35_v5 = vsel %vm34_vm0, %v24_v2, 0.0  ;;  %54 = vadd.xlane.f32.xlu1 %v53_v3  ;;  %48 = vadd.xlane.f32.xlu0 %v47_v4  ;;  %v25_v8 = vld [vmem:[%s1054_s0 + $0x8] sm:$0xff]  ;;  %v50_v10 = vsel %vm34_vm0, %v29_v7, 0.0  ;;  %v27_v13 = vld [vmem:[%s1054_s0 + $0x18] sm:$0xff]  ;;  %v41_v14 = vsel %vm34_vm0, %v26_v12, 0.0 }
   0x4   :  { %36 = vadd.xlane.f32.xlu2 %v35_v5  ;;  %v38_v11 = vsel %vm34_vm0, %v25_v8, 0.0  ;;  %v44_v15 = vsel %vm34_vm0, %v27_v13, 0.0  ;;  %v244_v5 = vld [vmem:[%s1058_s3] sm:$0xff] }
   0x7   :  { %v607_v17 = vpop.eup %606 }
   0x8   :  { %v60_v18 = vmul.f32 16.0, %v607_v17  ;;  %vm64_vm1 = vweird.f32 %v607_v17 }
   0xa   :  { %v61_v19 = vsub.f32 1.0, %v60_v18 }
   0xb   :  { %57 = vadd.xlane.f32.xlu1 %v56_v9  ;;  %51 = vadd.xlane.f32.xlu0 %v50_v10 }
   0xc   :  { %39 = vadd.xlane.f32.xlu2 %v38_v11  ;;  %v62_v20 = vmul.f32 %v607_v17, %v61_v19 }
   0xe   :  { %v63_v21 = vadd.f32 %v607_v17, %v62_v20 }
  0x10   :  { %v732_v22 = vsel %vm64_vm1, %v607_v17, %v63_v21 }
  0x13   :  { %42 = vadd.xlane.f32.xlu0 %v41_v14  ;;  %45 = vadd.xlane.f32.xlu1 %v44_v15 }
  0x76   :  { %v55_v23 = vpop.xlane.xlu1 %54  ;;  %v49_v24 = vpop.xlane.xlu0 %48 }
  0x77   :  { %v72_v25 = vmul.f32 %v732_v22, %v55_v23  ;;  %v70_v26 = vmul.f32 %v732_v22, %v49_v24  ;;  %v37_v27 = vpop.xlane.xlu2 %36 }
  0x78   :  { %v66_v40 = vmul.f32 %v732_v22, %v37_v27 }
  0x79   :  { %v736_v28 = vsub.f32 %v30_v0, %v72_v25  ;;  %v738_v29 = vsub.f32 %v28_v1, %v70_v26 }
  0x7a   :  { %v762_v47 = vsub.f32 %v24_v2, %v66_v40 }
  0x7b   :  { %v88_v30 = vmul.f32 %v736_v28, %v736_v28  ;;  %v86_v31 = vmul.f32 %v738_v29, %v738_v29 }
  0x7c   :  { %v82_v56 = vmul.f32 %v762_v47, %v762_v47 }
  0x7d   :  { %v108_v32 = vsel %vm34_vm0, %v88_v30, 0.0  ;;  %v102_v33 = vsel %vm34_vm0, %v86_v31, 0.0 }
  0x7e   :  { %v58_v34 = vpop.xlane.xlu1 %57  ;;  %v52_v35 = vpop.xlane.xlu0 %51  ;;  %109 = vadd.xlane.f32.xlu1 %v108_v32  ;;  %103 = vadd.xlane.f32.xlu2 %v102_v33  ;;  %v90_v60 = vsel %vm34_vm0, %v82_v56, 0.0 }
  0x7f   :  { %v73_v36 = vmul.f32 %v732_v22, %v58_v34  ;;  %v71_v37 = vmul.f32 %v732_v22, %v52_v35  ;;  %v40_v38 = vpop.xlane.xlu2 %39 }
  0x80   :  { %v67_v39 = vmul.f32 %v732_v22, %v40_v38 }
  0x81   :  { %v750_v41 = vsub.f32 %v31_v6, %v73_v36  ;;  %v752_v42 = vsub.f32 %v29_v7, %v71_v37  ;;  %v245_v6 = vld [vmem:[%s1058_s3 + $0x8] sm:$0xff] }
  0x82   :  { %v754_v43 = vsub.f32 %v25_v8, %v67_v39  ;;  %v246_v7 = vpack.c.bf16 %v245_v6, %v244_v5 }
  0x83   :  { %v87_v44 = vmul.f32 %v752_v42, %v752_v42  ;;  %v89_v45 = vmul.f32 %v750_v41, %v750_v41 }
  0x84   :  { %v83_v46 = vmul.f32 %v754_v43, %v754_v43  ;;  %597 = vmatpush.bf16.msra.mxu2 %v246_v7  ;;  %598 = vmatpush.bf16.msra.mxu3 %v246_v7 }
  0x85   :  { %v105_v48 = vsel %vm34_vm0, %v87_v44, 0.0  ;;  %v111_v49 = vsel %vm34_vm0, %v89_v45, 0.0  ;;  %270 = vmatpush.bf16.msra.mxu0 %v246_v7  ;;  %596 = vmatpush.bf16.msra.mxu1 %v246_v7 }
  0x86   :  { %106 = vadd.xlane.f32.xlu0 %v105_v48  ;;  %v43_v50 = vpop.xlane.xlu0 %42  ;;  %112 = vadd.xlane.f32.xlu2 %v111_v49  ;;  %v93_v51 = vsel %vm34_vm0, %v83_v46, 0.0  ;;  %v46_v52 = vpop.xlane.xlu1 %45 }
  0x87   :  { %v68_v53 = vmul.f32 %v732_v22, %v43_v50  ;;  %94 = vadd.xlane.f32.xlu1 %v93_v51  ;;  %v69_v54 = vmul.f32 %v732_v22, %v46_v52 }
  0x89   :  { %v769_v55 = vsub.f32 %v26_v12, %v68_v53  ;;  %v773_v57 = vsub.f32 %v27_v13, %v69_v54 }
  0x8b   :  { %v84_v58 = vmul.f32 %v769_v55, %v769_v55  ;;  %v85_v61 = vmul.f32 %v773_v57, %v773_v57 }
  0x8d   :  { %v96_v59 = vsel %vm34_vm0, %v84_v58, 0.0  ;;  %v99_v62 = vsel %vm34_vm0, %v85_v61, 0.0 }
  0x8e   :  { %97 = vadd.xlane.f32.xlu2 %v96_v59  ;;  %91 = vadd.xlane.f32.xlu0 %v90_v60 }
  0x96   :  { %100 = vadd.xlane.f32.xlu0 %v99_v62 }
  0xf1   :  { %v110_v63 = vpop.xlane.xlu1 %109  ;;  %v104_v0 = vpop.xlane.xlu2 %103 }
  0xf2   :  { %v120_v1 = vmul.f32 %v110_v63, %v732_v22  ;;  %v118_v2 = vmul.f32 %v104_v0, %v732_v22  ;;  %v839_v0 = vld [vmem:[%s1055_s1] ss:$0 sm:$0xff] }
  0xf4   :  { %v128_v3 = vadd.f32 1e-05, %v120_v1  ;;  %v126_v4 = vadd.f32 1e-05, %v118_v2 }
  0xf6   :  { %608 = vrsqrt.f32 %v128_v3  ;;  %vm196_vm2 = vweird.f32 %v128_v3  ;;  %vm176_vm5 = vweird.f32 %v126_v4 }
  0xf7   :  { %610 = vrsqrt.f32 %v126_v4 }
  0xf9   :  { %v107_v8 = vpop.xlane.xlu0 %106  ;;  %v113_v9 = vpop.xlane.xlu2 %112 }
  0xfa   :  { %v119_v10 = vmul.f32 %v107_v8, %v732_v22  ;;  %v95_v11 = vpop.xlane.xlu1 %94  ;;  %v121_v12 = vmul.f32 %v113_v9, %v732_v22 }
  0xfb   :  { %v115_v13 = vmul.f32 %v95_v11, %v732_v22 }
  0xfc   :  { %v609_v14 = vpop.eup %608  ;;  %v793_v15 = vadd.f32 1e-05, %v119_v10  ;;  %v795_v16 = vadd.f32 1e-05, %v121_v12  ;;  %v604_v12 = vld [vmem:[%s1056_s2] ss:$0 sm:$0xff] }
  0xfd   :  { %v611_v17 = vpop.eup %610  ;;  %v191_v18 = vmul.f32 %v609_v14, %v128_v3  ;;  %v797_v19 = vadd.f32 1e-05, %v115_v13  ;;  %vm197_vm4 = vweird.f32 %v609_v14 }
  0xfe   :  { %v171_v20 = vmul.f32 %v611_v17, %v126_v4  ;;  %612 = vrsqrt.f32 %v793_v15  ;;  %vm177_vm3 = vweird.f32 %v611_v17  ;;  %vm186_vm7 = vweird.f32 %v793_v15  ;;  %vm825_vm8 = vmor %vm196_vm2, %vm197_vm4 }
  0xff   :  { %v192_v21 = vmul.f32 %v609_v14, %v191_v18  ;;  %614 = vrsqrt.f32 %v797_v19  ;;  %vm814_vm6 = vmor %vm176_vm5, %vm177_vm3  ;;  %vm146_vm9 = vweird.f32 %v797_v19  ;;  %vm206_vm10 = vweird.f32 %v795_v16 }
 0x100   :  { %v172_v23 = vmul.f32 %v611_v17, %v171_v20  ;;  %616 = vrsqrt.f32 %v795_v16 }
 0x101   :  { %v193_v24 = vmul.f32 0.5, %v192_v21  ;;  %v92_v25 = vpop.xlane.xlu0 %91  ;;  %v98_v26 = vpop.xlane.xlu2 %97 }
 0x102   :  { %v173_v27 = vmul.f32 0.5, %v172_v23  ;;  %v114_v30 = vmul.f32 %v92_v25, %v732_v22  ;;  %v116_v31 = vmul.f32 %v98_v26, %v732_v22 }
 0x103   :  { %v194_v32 = vsub.f32 1.5, %v193_v24 }
 0x104   :  { %v613_v33 = vpop.eup %612  ;;  %v174_v34 = vsub.f32 1.5, %v173_v27  ;;  %v804_v35 = vadd.f32 1e-05, %v114_v30  ;;  %v809_v38 = vadd.f32 1e-05, %v116_v31 }
 0x105   :  { %v806_v36 = vpop.eup %614  ;;  %v181_v37 = vmul.f32 %v613_v33, %v793_v15  ;;  %v195_v40 = vmul.f32 %v609_v14, %v194_v32  ;;  %vm187_vm11 = vweird.f32 %v613_v33 }
 0x106   :  { %v617_v39 = vpop.eup %616  ;;  %v175_v44 = vmul.f32 %v611_v17, %v174_v34  ;;  %v141_v45 = vmul.f32 %v806_v36, %v797_v19  ;;  %618 = vrsqrt.f32 %v804_v35  ;;  %vm147_vm12 = vweird.f32 %v806_v36  ;;  %vm188_vm14 = vmor %vm186_vm7, %vm187_vm11 }
 0x107   :  { %v182_v48 = vmul.f32 %v613_v33, %v181_v37  ;;  %v201_v49 = vmul.f32 %v617_v39, %v795_v16  ;;  %620 = vrsqrt.f32 %v809_v38  ;;  %v199_v58 = vsel %vm825_vm8, %v609_v14, %v195_v40  ;;  %vm849_vm15 = vmor %vm146_vm9, %vm147_vm12 }
 0x108   :  { %v179_v50 = vsel %vm814_vm6, %v611_v17, %v175_v44  ;;  %v142_v51 = vmul.f32 %v806_v36, %v141_v45  ;;  %vm207_vm13 = vweird.f32 %v617_v39  ;;  %v216_v4 = vmul.f32 %v199_v58, %v736_v28 }
 0x109   :  { %v183_v53 = vmul.f32 0.5, %v182_v48  ;;  %v202_v54 = vmul.f32 %v617_v39, %v201_v49  ;;  %v101_v56 = vpop.xlane.xlu0 %100  ;;  %v214_v61 = vmul.f32 %v179_v50, %v738_v29  ;;  %vm208_vm1 = vmor %vm206_vm10, %vm207_vm13  ;;  %vm136_vm2 = vweird.f32 %v804_v35 }
 0x10a   :  { %v143_v59 = vmul.f32 0.5, %v142_v51  ;;  %v117_v60 = vmul.f32 %v101_v56, %v732_v22  ;;  %v227_v19 = vmul.f32 %v839_v0, %v216_v4  ;;  %vm156_vm4 = vweird.f32 %v809_v38 }
 0x10b   :  { %v184_v62 = vsub.f32 1.5, %v183_v53  ;;  %v203_v63 = vmul.f32 0.5, %v202_v54  ;;  %v225_v11 = vmul.f32 %v839_v0, %v214_v61 }
 0x10c   :  { %v619_v1 = vpop.eup %618  ;;  %v144_v2 = vsub.f32 1.5, %v143_v59  ;;  %v125_v3 = vadd.f32 1e-05, %v117_v60 }
 0x10d   :  { %v185_v5 = vmul.f32 %v613_v33, %v184_v62  ;;  %v204_v22 = vsub.f32 1.5, %v203_v63  ;;  %v131_v29 = vmul.f32 %v619_v1, %v804_v35  ;;  %v621_v7 = vpop.eup %620  ;;  %vm137_vm3 = vweird.f32 %v619_v1 }
 0x10e   :  { %v145_v6 = vmul.f32 %v806_v36, %v144_v2  ;;  %622 = vrsqrt.f32 %v125_v3  ;;  %v151_v14 = vmul.f32 %v621_v7, %v809_v38  ;;  %v236_v16 = vadd.f32 %v604_v12, %v225_v11  ;;  %vm138_vm5 = vmor %vm136_vm2, %vm137_vm3 }
 0x10f   :  { %v189_v8 = vsel %vm188_vm14, %v613_v33, %v185_v5  ;;  %v205_v10 = vmul.f32 %v617_v39, %v204_v22  ;;  %v132_v28 = vmul.f32 %v619_v1, %v131_v29  ;;  %vm157_vm6 = vweird.f32 %v621_v7 }
 0x110   :  { %v215_v13 = vmul.f32 %v189_v8, %v752_v42  ;;  %v149_v15 = vsel %vm849_vm15, %v806_v36, %v145_v6  ;;  %v152_v21 = vmul.f32 %v621_v7, %v151_v14  ;;  %vm158_vm7 = vmor %vm156_vm4, %vm157_vm6  ;;  %vm166_vm9 = vweird.f32 %v125_v3 }
 0x111   :  { %v209_v17 = vsel %vm208_vm1, %v617_v39, %v205_v10  ;;  %v133_v18 = vmul.f32 0.5, %v132_v28  ;;  %v211_v25 = vmul.f32 %v149_v15, %v754_v43 }
 0x112   :  { %v217_v20 = vmul.f32 %v209_v17, %v750_v41  ;;  %v226_v23 = vmul.f32 %v839_v0, %v215_v13  ;;  %v153_v26 = vmul.f32 0.5, %v152_v21  ;;  %v238_v41 = vadd.f32 %v604_v12, %v227_v19 }
 0x113   :  { %v134_v42 = vsub.f32 1.5, %v133_v18  ;;  %v222_v44 = vmul.f32 %v839_v0, %v211_v25 }
 0x114   :  { %v623_v24 = vpop.eup %622  ;;  %v237_v27 = vadd.f32 %v604_v12, %v226_v23  ;;  %v228_v30 = vmul.f32 %v839_v0, %v217_v20  ;;  %v154_v33 = vsub.f32 1.5, %v153_v26 }
 0x115   :  { %v135_v31 = vmul.f32 %v619_v1, %v134_v42  ;;  %v161_v32 = vmul.f32 %v623_v24, %v125_v3  ;;  %vm167_vm8 = vweird.f32 %v623_v24  ;;  %v233_v51 = vadd.f32 %v604_v12, %v222_v44 }
 0x116   :  { %v242_v34 = vpack.c.bf16 %v237_v27, %v236_v16  ;;  %v239_v36 = vadd.f32 %v604_v12, %v228_v30  ;;  %v155_v40 = vmul.f32 %v621_v7, %v154_v33  ;;  %vm168_vm10 = vmor %vm166_vm9, %vm167_vm8 }
 0x117   :  { %v139_v35 = vsel %vm138_vm5, %v619_v1, %v135_v31  ;;  %v162_v37 = vmul.f32 %v623_v24, %v161_v32 }
 0x118   :  { %v210_v39 = vmul.f32 %v139_v35, %v762_v47  ;;  %586 = vmatmul.msk.bf16.vlgmr.msra.gmra.mxu2 %vm34_vm0, %v242_v34  ;;  %v243_v43 = vpack.c.bf16 %v239_v36, %v238_v41  ;;  %v159_v46 = vsel %vm158_vm7, %v621_v7, %v155_v40 }
 0x119   :  { %v163_v45 = vmul.f32 0.5, %v162_v37  ;;  %v212_v50 = vmul.f32 %v159_v46, %v769_v55  ;;  %v605_v55 = vld [vmem:[%s1057_s4] ss:$0 sm:$0xff]  ;;  %s658_s4 = smov 64  }
 0x11a   :  { %587 = vmatmul.msk.bf16.vlgmr.msra.gmra.mxu3 %vm34_vm0, %v243_v43  ;;  %v221_v48 = vmul.f32 %v839_v0, %v210_v39 }
 0x11b   :  { %v164_v49 = vsub.f32 1.5, %v163_v45  ;;  %v223_v56 = vmul.f32 %v839_v0, %v212_v50 }
 0x11c   :  { %v232_v47 = vadd.f32 %v604_v12, %v221_v48 }
 0x11d   :  { %v165_v52 = vmul.f32 %v623_v24, %v164_v49  ;;  %v234_v59 = vadd.f32 %v604_v12, %v223_v56 }
 0x11e   :  { %v240_v53 = vpack.c.bf16 %v233_v51, %v232_v47 }
 0x11f   :  { %v169_v54 = vsel %vm168_vm10, %v623_v24, %v165_v52 }
 0x120   :  { %v213_v38 = vmul.f32 %v169_v54, %v773_v57  ;;  %584 = vmatmul.msk.bf16.vlgmr.msra.gmra.mxu0 %vm34_vm0, %v240_v53 }
 0x122   :  { %v224_v58 = vmul.f32 %v839_v0, %v213_v38 }
 0x124   :  { %v235_v60 = vadd.f32 %v604_v12, %v224_v58 }
 0x126   :  { %v241_v61 = vpack.c.bf16 %v235_v60, %v234_v59 }
 0x128   :  { %585 = vmatmul.msk.bf16.vlgmr.msra.gmra.mxu1 %vm34_vm0, %v241_v61 }
 0x19b   :  { %v282_v62 = vpop.f32.mrf.mxu2 }
 0x19c   :  { %v283_v63 = vadd.f32 %v605_v55, %v282_v62 }
 0x19d   :  { %v272_v1 = vpop.f32.mrf.mxu0  ;;  %v287_v0 = vpop.f32.mrf.mxu3 }
 0x19e   :  { %v592_v2 = vmul.f32 -1.442695, %v283_v63  ;;  %v273_v57 = vadd.f32 %v605_v55, %v272_v1  ;;  %v901_v31 = vadd.f32 %v605_v55, %v287_v0 }
 0x1a0   :  { %624 = vpow2.f32 %v592_v2  ;;  %v588_v3 = vmul.f32 -1.442695, %v273_v57  ;;  %452 = vrot.lane.b32.xlu1 %v273_v57, %s657_s23 }
 0x1a2   :  { %626 = vpow2.f32 %v588_v3 }
 0x1a3   :  { %v284_v12 = vpop.f32.mrf.mxu2 }
 0x1a4   :  { %v894_v17 = vadd.f32 %v605_v55, %v284_v12 }
 0x1a5   :  { %v274_v4 = vpop.f32.mrf.mxu0  ;;  %v277_v29 = vpop.f32.mrf.mxu1 }
 0x1a6   :  { %v625_v5 = vpop.eup %624  ;;  %v275_v22 = vadd.f32 %v605_v55, %v274_v4  ;;  %v278_v7 = vadd.f32 %v605_v55, %v277_v29  ;;  %v289_v11 = vpop.f32.mrf.mxu3 }
 0x1a7   :  { %v320_v6 = vadd.f32 1.0, %v625_v5  ;;  %v892_v13 = vadd.f32 %v605_v55, %v289_v11  ;;  %v594_v11 = vmul.f32 -1.442695, %v901_v31 }
 0x1a8   :  { %454 = vrot.lane.b32.xlu2 %v275_v22, %s657_s23  ;;  %460 = vrot.lane.b32.xlu1 %v283_v63, %s657_s23  ;;  %v627_v8 = vpop.eup %626  ;;  %v589_v9 = vmul.f32 -1.442695, %v275_v22  ;;  %v590_v28 = vmul.f32 -1.442695, %v278_v7 }
 0x1a9   :  { %628 = vrcp.f32 %v320_v6  ;;  %456 = vrot.lane.b32.xlu0 %v278_v7, %s657_s23  ;;  %v316_v10 = vadd.f32 1.0, %v627_v8  ;;  %v395_v42 = vand.u32 2147483648, %v320_v6  ;;  %v393_v24 = vand.u32 2147483647, %v320_v6 }
 0x1aa   :  { %vm389_vm12 = vweird.f32 %v320_v6 }
 0x1ab   :  { %630 = vrcp.f32 %v316_v10  ;;  %v396_v34 = vor.u32 1.1754944e-38, %v395_v42  ;;  %v335_v36 = vand.u32 2147483648, %v316_v10  ;;  %v333_v37 = vand.u32 2147483647, %v316_v10 }
 0x1ac   :  { %632 = vpow2.f32 %v589_v9  ;;  %vm394_vm15 = vcmp.eq.f32.partialorder %v393_v24, 8.507059e+37  ;;  %vm329_vm1 = vweird.f32 %v316_v10 }
 0x1ad   :  { %634 = vpow2.f32 %v590_v28  ;;  %v279_v14 = vpop.f32.mrf.mxu1  ;;  %v336_v45 = vor.u32 1.1754944e-38, %v335_v36  ;;  %vm334_vm3 = vcmp.eq.f32.partialorder %v333_v37, 8.507059e+37 }
 0x1ae   :  { %v280_v18 = vadd.f32 %v605_v55, %v279_v14 }
 0x1af   :  { %v629_v15 = vpop.eup %628 }
 0x1b0   :  { %466 = vrot.lane.b32.xlu1 %v892_v13, %s657_s23  ;;  %v385_v19 = vmul.f32 %v629_v15, %v320_v6  ;;  %v591_v20 = vmul.f32 -1.442695, %v280_v18  ;;  %458 = vrot.lane.b32.xlu2 %v280_v18, %s657_s23  ;;  %vm390_vm11 = vweird.f32 %v629_v15  ;;  %v593_v18 = vmul.f32 -1.442695, %v894_v17 }
 0x1b1   :  { %462 = vrot.lane.b32.xlu0 %v894_v17, %s657_s23  ;;  %v631_v21 = vpop.eup %630  ;;  %vm391_vm13 = vmor %vm389_vm12, %vm390_vm11 }
 0x1b2   :  { %v386_v23 = vsub.f32 1.0, %v385_v19  ;;  %v633_v16 = vpop.eup %632  ;;  %v325_v25 = vmul.f32 %v631_v21, %v316_v10  ;;  %636 = vpow2.f32 %v591_v20  ;;  %vm330_vm14 = vweird.f32 %v631_v21 }
 0x1b3   :  { %v635_v26 = vpop.eup %634  ;;  %v317_v27 = vadd.f32 1.0, %v633_v16  ;;  %vm331_vm2 = vmor %vm329_vm1, %vm330_vm14 }
 0x1b4   :  { %v387_v30 = vmul.f32 %v629_v15, %v386_v23  ;;  %v318_v32 = vadd.f32 1.0, %v635_v26  ;;  %v326_v41 = vsub.f32 1.0, %v325_v25 }
 0x1b5   :  { %638 = vrcp.f32 %v317_v27  ;;  %v350_v54 = vand.u32 2147483648, %v317_v27  ;;  %v348_v58 = vand.u32 2147483647, %v317_v27  ;;  %vm344_vm6 = vweird.f32 %v317_v27 }
 0x1b6   :  { %v388_v33 = vadd.f32 %v629_v15, %v387_v30  ;;  %640 = vrcp.f32 %v318_v32  ;;  %v327_v35 = vmul.f32 %v631_v21, %v326_v41  ;;  %v365_v59 = vand.u32 2147483648, %v318_v32 }
 0x1b7   :  { %v363_v61 = vand.u32 2147483647, %v318_v32  ;;  %v351_v63 = vor.u32 1.1754944e-38, %v350_v54  ;;  %vm359_vm8 = vweird.f32 %v318_v32  ;;  %vm349_vm9 = vcmp.eq.f32.partialorder %v348_v58, 8.507059e+37 }
 0x1b8   :  { %v392_v39 = vsel %vm391_vm13, %v629_v15, %v388_v33  ;;  %464 = vrot.lane.b32.xlu2 %v901_v31, %s657_s23  ;;  %v328_v43 = vadd.f32 %v631_v21, %v327_v35  ;;  %v637_v44 = vpop.eup %636  ;;  %v366_v3 = vor.u32 1.1754944e-38, %v365_v59  ;;  %v595_v15 = vmul.f32 -1.442695, %v892_v13 }
 0x1b9   :  { %v905_v40 = vsel %vm394_vm15, %v396_v34, %v392_v39  ;;  %v319_v46 = vadd.f32 1.0, %v637_v44  ;;  %vm364_vm11 = vcmp.eq.f32.partialorder %v363_v61, 8.507059e+37 }
 0x1ba   :  { %548 = vrot.lane.b32.xlu0 %v905_v40, %s658_s4  ;;  %v332_v48 = vsel %vm331_vm2, %v631_v21, %v328_v43 }
 0x1bb   :  { %v639_v49 = vpop.eup %638  ;;  %v909_v50 = vsel %vm334_vm3, %v336_v45, %v332_v48  ;;  %642 = vrcp.f32 %v319_v46  ;;  %v380_v29 = vand.u32 2147483648, %v319_v46  ;;  %v378_v7 = vand.u32 2147483647, %v319_v46 }
 0x1bc   :  { %v641_v47 = vpop.eup %640  ;;  %540 = vrot.lane.b32.xlu1 %v909_v50, %s658_s4  ;;  %v340_v51 = vmul.f32 %v639_v49, %v317_v27  ;;  %vm345_vm4 = vweird.f32 %v639_v49  ;;  %vm374_vm13 = vweird.f32 %v319_v46  ;;  %644 = vpow2.f32 %v594_v11 }
 0x1bd   :  { %v355_v52 = vmul.f32 %v641_v47, %v318_v32  ;;  %vm360_vm5 = vweird.f32 %v641_v47  ;;  %vm346_vm7 = vmor %vm344_vm6, %vm345_vm4  ;;  %v381_v9 = vor.u32 1.1754944e-38, %v380_v29  ;;  %vm379_vm15 = vcmp.eq.f32.partialorder %v378_v7, 8.507059e+37 }
 0x1be   :  { %v341_v53 = vsub.f32 1.0, %v340_v51  ;;  %vm361_vm10 = vmor %vm359_vm8, %vm360_vm5 }
 0x1bf   :  { %v356_v38 = vsub.f32 1.0, %v355_v52 }
 0x1c0   :  { %v342_v56 = vmul.f32 %v639_v49, %v341_v53 }
 0x1c1   :  { %v357_v60 = vmul.f32 %v641_v47, %v356_v38  ;;  %v643_v55 = vpop.eup %642 }
 0x1c2   :  { %v343_v62 = vadd.f32 %v639_v49, %v342_v56  ;;  %v370_v2 = vmul.f32 %v643_v55, %v319_v46  ;;  %vm375_vm12 = vweird.f32 %v643_v55  ;;  %v645_v12 = vpop.eup %644 }
 0x1c3   :  { %v358_v1 = vadd.f32 %v641_v47, %v357_v60  ;;  %vm376_vm14 = vmor %vm374_vm13, %vm375_vm12  ;;  %v322_v14 = vadd.f32 1.0, %v645_v12 }
 0x1c4   :  { %v347_v57 = vsel %vm346_vm7, %v639_v49, %v343_v62  ;;  %v371_v5 = vsub.f32 1.0, %v370_v2 }
 0x1c5   :  { %v352_v0 = vsel %vm349_vm9, %v351_v63, %v347_v57  ;;  %v362_v4 = vsel %vm361_vm10, %v641_v47, %v358_v1  ;;  %646 = vrcp.f32 %v322_v14  ;;  %v425_v41 = vand.u32 2147483648, %v322_v14 }
 0x1c6   :  { %542 = vrot.lane.b32.xlu0 %v352_v0, %s658_s4  ;;  %v914_v22 = vsel %vm364_vm11, %v366_v3, %v362_v4  ;;  %v372_v6 = vmul.f32 %v643_v55, %v371_v5  ;;  %648 = vpow2.f32 %v595_v15  ;;  %vm419_vm2 = vweird.f32 %v322_v14 }
 0x1c7   :  { %544 = vrot.lane.b32.xlu2 %v914_v22, %s658_s4  ;;  %650 = vpow2.f32 %v593_v18  ;;  %v423_v33 = vand.u32 2147483647, %v322_v14  ;;  %v426_v37 = vor.u32 1.1754944e-38, %v425_v41 }
 0x1c8   :  { %v373_v8 = vadd.f32 %v643_v55, %v372_v6 }
 0x1c9   :  { %vm424_vm4 = vcmp.eq.f32.partialorder %v423_v33, 8.507059e+37 }
 0x1ca   :  { %v377_v10 = vsel %vm376_vm14, %v643_v55, %v373_v8 }
 0x1cb   :  { %v382_v28 = vsel %vm379_vm15, %v381_v9, %v377_v10  ;;  %v647_v19 = vpop.eup %646 }
 0x1cc   :  { %546 = vrot.lane.b32.xlu1 %v382_v28, %s658_s4  ;;  %v649_v20 = vpop.eup %648  ;;  %v415_v23 = vmul.f32 %v647_v19, %v322_v14  ;;  %vm420_vm1 = vweird.f32 %v647_v19 }
 0x1cd   :  { %v651_v21 = vpop.eup %650  ;;  %v922_v42 = vadd.f32 1.0, %v649_v20  ;;  %vm421_vm3 = vmor %vm419_vm2, %vm420_vm1 }
 0x1ce   :  { %v924_v24 = vadd.f32 1.0, %v651_v21  ;;  %v416_v26 = vsub.f32 1.0, %v415_v23 }
 0x1cf   :  { %652 = vrcp.f32 %v922_v42  ;;  %v440_v56 = vand.u32 2147483648, %v922_v42  ;;  %vm434_vm7 = vweird.f32 %v922_v42 }
 0x1d0   :  { %654 = vrcp.f32 %v924_v24  ;;  %v417_v13 = vmul.f32 %v647_v19, %v416_v26  ;;  %v410_v59 = vand.u32 2147483648, %v924_v24  ;;  %vm404_vm9 = vweird.f32 %v924_v24 }
 0x1d1   :  { %v408_v60 = vand.u32 2147483647, %v924_v24  ;;  %v441_v55 = vor.u32 1.1754944e-38, %v440_v56 }
 0x1d2   :  { %v418_v31 = vadd.f32 %v647_v19, %v417_v13  ;;  %v411_v63 = vor.u32 1.1754944e-38, %v410_v59 }
 0x1d3   :  { %vm409_vm12 = vcmp.eq.f32.partialorder %v408_v60, 8.507059e+37 }
 0x1d4   :  { %v422_v36 = vsel %vm421_vm3, %v647_v19, %v418_v31 }
 0x1d5   :  { %v653_v27 = vpop.eup %652  ;;  %v427_v44 = vsel %vm424_vm4, %v426_v37, %v422_v36 }
 0x1d6   :  { %v655_v32 = vpop.eup %654  ;;  %v430_v34 = vmul.f32 %v653_v27, %v922_v42  ;;  %vm435_vm5 = vweird.f32 %v653_v27 }
 0x1d7   :  { %v400_v35 = vmul.f32 %v655_v32, %v924_v24  ;;  %vm405_vm6 = vweird.f32 %v655_v32  ;;  %vm436_vm8 = vmor %vm434_vm7, %vm435_vm5 }
 0x1d8   :  { %v431_v46 = vsub.f32 1.0, %v430_v34  ;;  %vm406_vm10 = vmor %vm404_vm9, %vm405_vm6 }
 0x1d9   :  { %v401_v49 = vsub.f32 1.0, %v400_v35 }
 0x1da   :  { %v432_v47 = vmul.f32 %v653_v27, %v431_v46 }
 0x1dc   :  { %v433_v54 = vadd.f32 %v653_v27, %v432_v47 }
 0x1de   :  { %v437_v61 = vsel %vm436_vm8, %v653_v27, %v433_v54 }
 0x202   :  { %v455_v16 = vpop.permute.xlu2 %454 }
 0x203   :  { %v926_v25 = vmul.f32 %v455_v16, %v352_v0 }
 0x205   :  { %485 = vst.msk [vmem:[%s1059_s5 + $0x8] sm:$0xff] %vm34_vm0, %v926_v25 }
 0x20a   :  { %v459_v17 = vpop.permute.xlu2 %458 }
 0x20b   :  { %v935_v30 = vmul.f32 %v459_v17, %v382_v28 }
 0x20d   :  { %487 = vst.msk [vmem:[%s1059_s5 + $0x18] sm:$0xff] %vm34_vm0, %v935_v30 }
 0x212   :  { %v453_v39 = vpop.permute.xlu1 %452  ;;  %v465_v45 = vpop.permute.xlu2 %464 }
 0x213   :  { %v476_v43 = vmul.f32 %v453_v39, %v909_v50  ;;  %v482_v48 = vmul.f32 %v465_v45, %v427_v44  ;;  %v402_v50 = vmul.f32 %v655_v32, %v401_v49 }
 0x215   :  { %484 = vst.msk [vmem:[%s1059_s5] sm:$0xff] %vm34_vm0, %v476_v43  ;;  %500 = vrot.lane.b32.xlu0 %v476_v43, %s659_s30  ;;  %v403_v58 = vadd.f32 %v655_v32, %v402_v50 }
 0x216   :  { %490 = vst.msk [vmem:[%s1059_s5 + $0x30] sm:$0xff] %vm34_vm0, %v482_v48 }
 0x217   :  { %v407_v62 = vsel %vm406_vm10, %v655_v32, %v403_v58 }
 0x218   :  { %v412_v0 = vsel %vm409_vm12, %v411_v63, %v407_v62 }
 0x21a   :  { %v461_v51 = vpop.permute.xlu1 %460 }
 0x21b   :  { %v480_v52 = vmul.f32 %v461_v51, %v905_v40  ;;  %v457_v53 = vpop.permute.xlu0 %456  ;;  %v438_v40 = vand.u32 2147483647, %v922_v42 }
 0x21c   :  { %v478_v38 = vmul.f32 %v457_v53, %v914_v22 }
 0x21d   :  { %488 = vst.msk [vmem:[%s1059_s5 + $0x20] sm:$0xff] %vm34_vm0, %v480_v52  ;;  %508 = vrot.lane.b32.xlu2 %v480_v52, %s659_s30  ;;  %512 = vrot.lane.b32.xlu0 %v482_v48, %s659_s30  ;;  %vm439_vm11 = vcmp.eq.f32.partialorder %v438_v40, 8.507059e+37 }
 0x21e   :  { %486 = vst.msk [vmem:[%s1059_s5 + $0x10] sm:$0xff] %vm34_vm0, %v478_v38  ;;  %504 = vrot.lane.b32.xlu1 %v478_v38, %s659_s30  ;;  %v442_v57 = vsel %vm439_vm11, %v441_v55, %v437_v61 }
 0x221   :  { %v545_v1 = vpop.permute.xlu2 %544 }
 0x222   :  { %v467_v2 = vpop.permute.xlu1 %466  ;;  %566 = vst.msk [vmem:[%s1060_s7 + $0x10] sm:$0xff] %vm34_vm0, %v545_v1 }
 0x223   :  { %v483_v3 = vmul.f32 %v467_v2, %v442_v57  ;;  %v463_v4 = vpop.permute.xlu0 %462 }
 0x224   :  { %v481_v5 = vmul.f32 %v463_v4, %v412_v0 }
 0x225   :  { %491 = vst.msk [vmem:[%s1059_s5 + $0x38] sm:$0xff] %vm34_vm0, %v483_v3  ;;  %502 = vrot.lane.b32.xlu2 %v926_v25, %s659_s30  ;;  %506 = vrot.lane.b32.xlu0 %v935_v30, %s659_s30 }
 0x226   :  { %489 = vst.msk [vmem:[%s1059_s5 + $0x28] sm:$0xff] %vm34_vm0, %v481_v5  ;;  %510 = vrot.lane.b32.xlu1 %v481_v5, %s659_s30 }
 0x22c   :  { %v549_v22 = vpop.permute.xlu0 %548 }
 0x22d   :  { %568 = vst.msk [vmem:[%s1060_s7 + $0x20] sm:$0xff] %vm34_vm0, %v549_v22  ;;  %514 = vrot.lane.b32.xlu2 %v483_v3, %s659_s30  ;;  %554 = vrot.lane.b32.xlu0 %v442_v57, %s658_s4 }
 0x22e   :  { %552 = vrot.lane.b32.xlu1 %v427_v44, %s658_s4  ;;  %v541_v29 = vpop.permute.xlu1 %540 }
 0x22f   :  { %564 = vst.msk [vmem:[%s1060_s7] sm:$0xff] %vm34_vm0, %v541_v29 }
 0x235   :  { %550 = vrot.lane.b32.xlu2 %v412_v0, %s658_s4 }
 0x238   :  { %v543_v6 = vpop.permute.xlu0 %542 }
 0x239   :  { %565 = vst.msk [vmem:[%s1060_s7 + $0x8] sm:$0xff] %vm34_vm0, %v543_v6 }
 0x23e   :  { %v547_v7 = vpop.permute.xlu1 %546 }
 0x23f   :  { %567 = vst.msk [vmem:[%s1060_s7 + $0x18] sm:$0xff] %vm34_vm0, %v547_v7 }
 0x277   :  { %v509_v8 = vpop.permute.xlu2 %508 }
 0x278   :  { %528 = vst.msk [vmem:[%s1061_s6 + $0x20] sm:$0xff] %vm34_vm0, %v509_v8 }
 0x27f   :  { %v503_v9 = vpop.permute.xlu2 %502 }
 0x280   :  { %525 = vst.msk [vmem:[%s1061_s6 + $0x8] sm:$0xff] %vm34_vm0, %v503_v9 }
 0x287   :  { %v501_v10 = vpop.permute.xlu0 %500  ;;  %v515_v28 = vpop.permute.xlu2 %514 }
 0x288   :  { %524 = vst.msk [vmem:[%s1061_s6] sm:$0xff] %vm34_vm0, %v501_v10 }
 0x289   :  { %531 = vst.msk [vmem:[%s1061_s6 + $0x38] sm:$0xff] %vm34_vm0, %v515_v28 }
 0x28f   :  { %v513_v11 = vpop.permute.xlu0 %512  ;;  %v551_v12 = vpop.permute.xlu2 %550 }
 0x290   :  { %v505_v14 = vpop.permute.xlu1 %504  ;;  %530 = vst.msk [vmem:[%s1061_s6 + $0x30] sm:$0xff] %vm34_vm0, %v513_v11 }
 0x291   :  { %526 = vst.msk [vmem:[%s1061_s6 + $0x10] sm:$0xff] %vm34_vm0, %v505_v14 }
 0x292   :  { %569 = vst.msk [vmem:[%s1060_s7 + $0x28] sm:$0xff] %vm34_vm0, %v551_v12 }
 0x297   :  { %v507_v15 = vpop.permute.xlu0 %506 }
 0x298   :  { %v511_v18 = vpop.permute.xlu1 %510  ;;  %527 = vst.msk [vmem:[%s1061_s6 + $0x18] sm:$0xff] %vm34_vm0, %v507_v15 }
 0x299   :  { %529 = vst.msk [vmem:[%s1061_s6 + $0x28] sm:$0xff] %vm34_vm0, %v511_v18 }
 0x29f   :  { %v555_v19 = vpop.permute.xlu0 %554 }
 0x2a0   :  { %v553_v20 = vpop.permute.xlu1 %552  ;;  %571 = vst.msk [vmem:[%s1060_s7 + $0x38] sm:$0xff] %vm34_vm0, %v555_v19 }
 0x2a1   :  { %570 = vst.msk [vmem:[%s1060_s7 + $0x30] sm:$0xff] %vm34_vm0, %v553_v20 }

// kernel: _lambda_.33
= control target key start
LH: loop header
LB: loop body
LE: loop exit
PB: predicated region body
PF: predicated region fallthrough
CT: control target
= control target key end

     0   :  { %vm34_vm0 = vcmask 130048   ;;  %v349_v16 = vmov 16.0   ;;  %s618_s0 = inlined_call_operand.vmem [shape: f32[64,16], index: 0, kind: input, shape index: {}]   ;;  %s619_s2 = inlined_call_operand.vmem [shape: f32[1,16], index: 2, kind: input, shape index: {}]   ;;  %s620_s3 = inlined_call_operand.vmem [shape: f32[1,16], index: 3, kind: input, shape index: {}]   ;;  %s621_s5 = inlined_call_operand.vmem [shape: f32[1,16], index: 5, kind: input, shape index: {}]   ;;  %s622_s4 = inlined_call_operand.vmem [shape: f32[16,16], index: 4, kind: input, shape index: {}]   ;;  %s623_s1 = inlined_call_operand.vmem [shape: f32[64,16], index: 1, kind: input, shape index: {}]   ;;  %s624_s6 = inlined_call_operand.vmem [shape: f32[64,16], index: 6, kind: output, shape index: {}]  }
   0x1   :  { %v30_v0 = vld [vmem:[%s618_s0 + $0x30] sm:$0xff]  ;;  %v28_v1 = vld [vmem:[%s618_s0 + $0x20] sm:$0xff]  ;;  %v31_v6 = vld [vmem:[%s618_s0 + $0x38] sm:$0xff]  ;;  %331 = vrcp.f32 %v349_v16 }
   0x2   :  { %v24_v2 = vld [vmem:[%s618_s0] sm:$0xff]  ;;  %v53_v3 = vsel %vm34_vm0, %v30_v0, 0.0  ;;  %v47_v4 = vsel %vm34_vm0, %v28_v1, 0.0  ;;  %v29_v7 = vld [vmem:[%s618_s0 + $0x28] sm:$0xff]  ;;  %v56_v9 = vsel %vm34_vm0, %v31_v6, 0.0  ;;  %v26_v12 = vld [vmem:[%s618_s0 + $0x10] sm:$0xff] }
   0x3   :  { %v35_v5 = vsel %vm34_vm0, %v24_v2, 0.0  ;;  %54 = vadd.xlane.f32.xlu1 %v53_v3  ;;  %48 = vadd.xlane.f32.xlu0 %v47_v4  ;;  %v25_v8 = vld [vmem:[%s618_s0 + $0x8] sm:$0xff]  ;;  %v50_v10 = vsel %vm34_vm0, %v29_v7, 0.0  ;;  %v27_v13 = vld [vmem:[%s618_s0 + $0x18] sm:$0xff]  ;;  %v41_v14 = vsel %vm34_vm0, %v26_v12, 0.0 }
   0x4   :  { %36 = vadd.xlane.f32.xlu2 %v35_v5  ;;  %v38_v11 = vsel %vm34_vm0, %v25_v8, 0.0  ;;  %v44_v15 = vsel %vm34_vm0, %v27_v13, 0.0  ;;  %v244_v5 = vld [vmem:[%s622_s4] sm:$0xff] }
   0x7   :  { %v332_v17 = vpop.eup %331 }
   0x8   :  { %v60_v18 = vmul.f32 16.0, %v332_v17  ;;  %vm64_vm1 = vweird.f32 %v332_v17 }
   0xa   :  { %v61_v19 = vsub.f32 1.0, %v60_v18 }
   0xb   :  { %57 = vadd.xlane.f32.xlu1 %v56_v9  ;;  %51 = vadd.xlane.f32.xlu0 %v50_v10 }
   0xc   :  { %39 = vadd.xlane.f32.xlu2 %v38_v11  ;;  %v62_v20 = vmul.f32 %v332_v17, %v61_v19 }
   0xe   :  { %v63_v21 = vadd.f32 %v332_v17, %v62_v20 }
  0x10   :  { %v417_v22 = vsel %vm64_vm1, %v332_v17, %v63_v21 }
  0x13   :  { %42 = vadd.xlane.f32.xlu0 %v41_v14  ;;  %45 = vadd.xlane.f32.xlu1 %v44_v15 }
  0x76   :  { %v55_v23 = vpop.xlane.xlu1 %54  ;;  %v49_v24 = vpop.xlane.xlu0 %48 }
  0x77   :  { %v72_v25 = vmul.f32 %v417_v22, %v55_v23  ;;  %v70_v26 = vmul.f32 %v417_v22, %v49_v24  ;;  %v37_v27 = vpop.xlane.xlu2 %36 }
  0x78   :  { %v66_v36 = vmul.f32 %v417_v22, %v37_v27 }
  0x79   :  { %v421_v28 = vsub.f32 %v30_v0, %v72_v25  ;;  %v423_v29 = vsub.f32 %v28_v1, %v70_v26 }
  0x7a   :  { %v441_v44 = vsub.f32 %v24_v2, %v66_v36 }
  0x7b   :  { %v88_v30 = vmul.f32 %v421_v28, %v421_v28  ;;  %v86_v31 = vmul.f32 %v423_v29, %v423_v29 }
  0x7c   :  { %v82_v55 = vmul.f32 %v441_v44, %v441_v44 }
  0x7d   :  { %v108_v32 = vsel %vm34_vm0, %v88_v30, 0.0  ;;  %v102_v33 = vsel %vm34_vm0, %v86_v31, 0.0 }
  0x7e   :  { %v58_v34 = vpop.xlane.xlu1 %57  ;;  %v52_v35 = vpop.xlane.xlu0 %51  ;;  %109 = vadd.xlane.f32.xlu1 %v108_v32  ;;  %103 = vadd.xlane.f32.xlu2 %v102_v33  ;;  %v90_v59 = vsel %vm34_vm0, %v82_v55, 0.0 }
  0x7f   :  { %v73_v37 = vmul.f32 %v417_v22, %v58_v34  ;;  %v71_v38 = vmul.f32 %v417_v22, %v52_v35  ;;  %v40_v39 = vpop.xlane.xlu2 %39 }
  0x80   :  { %v67_v40 = vmul.f32 %v417_v22, %v40_v39 }
  0x81   :  { %v435_v41 = vsub.f32 %v31_v6, %v73_v37  ;;  %v437_v42 = vsub.f32 %v29_v7, %v71_v38  ;;  %v245_v6 = vld [vmem:[%s622_s4 + $0x8] sm:$0xff] }
  0x82   :  { %v439_v43 = vsub.f32 %v25_v8, %v67_v40  ;;  %v246_v7 = vpack.c.bf16 %v245_v6, %v244_v5 }
  0x83   :  { %v87_v45 = vmul.f32 %v437_v42, %v437_v42  ;;  %v89_v46 = vmul.f32 %v435_v41, %v435_v41 }
  0x84   :  { %v83_v47 = vmul.f32 %v439_v43, %v439_v43  ;;  %325 = vmatpush.bf16.msra.mxu2 %v246_v7  ;;  %326 = vmatpush.bf16.msra.mxu3 %v246_v7 }
  0x85   :  { %v105_v48 = vsel %vm34_vm0, %v87_v45, 0.0  ;;  %v111_v49 = vsel %vm34_vm0, %v89_v46, 0.0  ;;  %270 = vmatpush.bf16.msra.mxu0 %v246_v7  ;;  %324 = vmatpush.bf16.msra.mxu1 %v246_v7 }
  0x86   :  { %106 = vadd.xlane.f32.xlu0 %v105_v48  ;;  %v43_v50 = vpop.xlane.xlu0 %42  ;;  %112 = vadd.xlane.f32.xlu2 %v111_v49  ;;  %v93_v51 = vsel %vm34_vm0, %v83_v47, 0.0  ;;  %v46_v52 = vpop.xlane.xlu1 %45 }
  0x87   :  { %v68_v53 = vmul.f32 %v417_v22, %v43_v50  ;;  %94 = vadd.xlane.f32.xlu1 %v93_v51  ;;  %v69_v54 = vmul.f32 %v417_v22, %v46_v52 }
  0x89   :  { %v456_v56 = vsub.f32 %v26_v12, %v68_v53  ;;  %v458_v57 = vsub.f32 %v27_v13, %v69_v54 }
  0x8b   :  { %v84_v58 = vmul.f32 %v456_v56, %v456_v56  ;;  %v85_v61 = vmul.f32 %v458_v57, %v458_v57 }
  0x8d   :  { %v96_v60 = vsel %vm34_vm0, %v84_v58, 0.0  ;;  %v99_v62 = vsel %vm34_vm0, %v85_v61, 0.0 }
  0x8e   :  { %97 = vadd.xlane.f32.xlu2 %v96_v60  ;;  %91 = vadd.xlane.f32.xlu0 %v90_v59 }
  0x96   :  { %100 = vadd.xlane.f32.xlu0 %v99_v62 }
  0xf1   :  { %v110_v63 = vpop.xlane.xlu1 %109  ;;  %v104_v0 = vpop.xlane.xlu2 %103 }
  0xf2   :  { %v120_v1 = vmul.f32 %v110_v63, %v417_v22  ;;  %v118_v2 = vmul.f32 %v104_v0, %v417_v22  ;;  %v514_v0 = vld [vmem:[%s619_s2] ss:$0 sm:$0xff] }
  0xf4   :  { %v128_v3 = vadd.f32 1e-05, %v120_v1  ;;  %v126_v4 = vadd.f32 1e-05, %v118_v2 }
  0xf6   :  { %333 = vrsqrt.f32 %v128_v3  ;;  %vm196_vm2 = vweird.f32 %v128_v3  ;;  %vm176_vm5 = vweird.f32 %v126_v4 }
  0xf7   :  { %335 = vrsqrt.f32 %v126_v4 }
  0xf9   :  { %v107_v8 = vpop.xlane.xlu0 %106  ;;  %v113_v9 = vpop.xlane.xlu2 %112 }
  0xfa   :  { %v119_v10 = vmul.f32 %v107_v8, %v417_v22  ;;  %v95_v11 = vpop.xlane.xlu1 %94  ;;  %v121_v12 = vmul.f32 %v113_v9, %v417_v22 }
  0xfb   :  { %v115_v13 = vmul.f32 %v95_v11, %v417_v22 }
  0xfc   :  { %v334_v14 = vpop.eup %333  ;;  %v127_v15 = vadd.f32 1e-05, %v119_v10  ;;  %v478_v16 = vadd.f32 1e-05, %v121_v12  ;;  %v329_v12 = vld [vmem:[%s620_s3] ss:$0 sm:$0xff] }
  0xfd   :  { %v336_v17 = vpop.eup %335  ;;  %v191_v18 = vmul.f32 %v334_v14, %v128_v3  ;;  %v123_v19 = vadd.f32 1e-05, %v115_v13  ;;  %vm197_vm4 = vweird.f32 %v334_v14 }
  0xfe   :  { %v171_v20 = vmul.f32 %v336_v17, %v126_v4  ;;  %337 = vrsqrt.f32 %v127_v15  ;;  %vm177_vm3 = vweird.f32 %v336_v17  ;;  %vm186_vm7 = vweird.f32 %v127_v15  ;;  %vm501_vm8 = vmor %vm196_vm2, %vm197_vm4 }
  0xff   :  { %v192_v21 = vmul.f32 %v334_v14, %v191_v18  ;;  %339 = vrsqrt.f32 %v123_v19  ;;  %vm491_vm6 = vmor %vm176_vm5, %vm177_vm3  ;;  %vm146_vm9 = vweird.f32 %v123_v19  ;;  %vm206_vm12 = vweird.f32 %v478_v16 }
 0x100   :  { %v172_v23 = vmul.f32 %v336_v17, %v171_v20  ;;  %341 = vrsqrt.f32 %v478_v16 }
 0x101   :  { %v193_v24 = vmul.f32 0.5, %v192_v21  ;;  %v92_v25 = vpop.xlane.xlu0 %91  ;;  %v98_v26 = vpop.xlane.xlu2 %97 }
 0x102   :  { %v173_v27 = vmul.f32 0.5, %v172_v23  ;;  %v114_v30 = vmul.f32 %v92_v25, %v417_v22  ;;  %v116_v31 = vmul.f32 %v98_v26, %v417_v22 }
 0x103   :  { %v194_v32 = vsub.f32 1.5, %v193_v24 }
 0x104   :  { %v338_v33 = vpop.eup %337  ;;  %v174_v34 = vsub.f32 1.5, %v173_v27  ;;  %v483_v35 = vadd.f32 1e-05, %v114_v30  ;;  %v487_v38 = vadd.f32 1e-05, %v116_v31 }
 0x105   :  { %v485_v36 = vpop.eup %339  ;;  %v181_v37 = vmul.f32 %v338_v33, %v127_v15  ;;  %v195_v40 = vmul.f32 %v334_v14, %v194_v32  ;;  %vm187_vm10 = vweird.f32 %v338_v33 }
 0x106   :  { %v342_v39 = vpop.eup %341  ;;  %v175_v45 = vmul.f32 %v336_v17, %v174_v34  ;;  %v141_v46 = vmul.f32 %v485_v36, %v123_v19  ;;  %343 = vrsqrt.f32 %v483_v35  ;;  %vm147_vm11 = vweird.f32 %v485_v36  ;;  %vm188_vm14 = vmor %vm186_vm7, %vm187_vm10 }
 0x107   :  { %v182_v48 = vmul.f32 %v338_v33, %v181_v37  ;;  %v201_v49 = vmul.f32 %v342_v39, %v478_v16  ;;  %345 = vrsqrt.f32 %v487_v38  ;;  %v199_v58 = vsel %vm501_vm8, %v334_v14, %v195_v40  ;;  %vm523_vm15 = vmor %vm146_vm9, %vm147_vm11 }
 0x108   :  { %v179_v50 = vsel %vm491_vm6, %v336_v17, %v175_v45  ;;  %v142_v51 = vmul.f32 %v485_v36, %v141_v46  ;;  %vm207_vm13 = vweird.f32 %v342_v39  ;;  %v216_v4 = vmul.f32 %v199_v58, %v421_v28 }
 0x109   :  { %v183_v53 = vmul.f32 0.5, %v182_v48  ;;  %v202_v54 = vmul.f32 %v342_v39, %v201_v49  ;;  %v101_v55 = vpop.xlane.xlu0 %100  ;;  %v214_v61 = vmul.f32 %v179_v50, %v423_v29  ;;  %vm208_vm1 = vmor %vm206_vm12, %vm207_vm13  ;;  %vm136_vm2 = vweird.f32 %v483_v35 }
 0x10a   :  { %v143_v59 = vmul.f32 0.5, %v142_v51  ;;  %v117_v60 = vmul.f32 %v101_v55, %v417_v22  ;;  %v227_v19 = vmul.f32 %v514_v0, %v216_v4  ;;  %vm156_vm4 = vweird.f32 %v487_v38 }
 0x10b   :  { %v184_v62 = vsub.f32 1.5, %v183_v53  ;;  %v203_v63 = vmul.f32 0.5, %v202_v54  ;;  %v225_v28 = vmul.f32 %v514_v0, %v214_v61 }
 0x10c   :  { %v344_v1 = vpop.eup %343  ;;  %v144_v2 = vsub.f32 1.5, %v143_v59  ;;  %v125_v3 = vadd.f32 1e-05, %v117_v60 }
 0x10d   :  { %v185_v22 = vmul.f32 %v338_v33, %v184_v62  ;;  %v204_v29 = vsub.f32 1.5, %v203_v63  ;;  %v131_v5 = vmul.f32 %v344_v1, %v483_v35  ;;  %v346_v8 = vpop.eup %345  ;;  %vm137_vm3 = vweird.f32 %v344_v1 }
 0x10e   :  { %v145_v6 = vmul.f32 %v485_v36, %v144_v2  ;;  %347 = vrsqrt.f32 %v125_v3  ;;  %v151_v14 = vmul.f32 %v346_v8, %v487_v38  ;;  %v236_v16 = vadd.f32 %v329_v12, %v225_v28  ;;  %vm138_vm5 = vmor %vm136_vm2, %vm137_vm3 }
 0x10f   :  { %v189_v9 = vsel %vm188_vm14, %v338_v33, %v185_v22  ;;  %v205_v10 = vmul.f32 %v342_v39, %v204_v29  ;;  %v132_v11 = vmul.f32 %v344_v1, %v131_v5  ;;  %vm157_vm6 = vweird.f32 %v346_v8 }
 0x110   :  { %v215_v13 = vmul.f32 %v189_v9, %v437_v42  ;;  %v149_v15 = vsel %vm523_vm15, %v485_v36, %v145_v6  ;;  %v152_v21 = vmul.f32 %v346_v8, %v151_v14  ;;  %vm158_vm7 = vmor %vm156_vm4, %vm157_vm6  ;;  %vm166_vm9 = vweird.f32 %v125_v3 }
 0x111   :  { %v209_v17 = vsel %vm208_vm1, %v342_v39, %v205_v10  ;;  %v133_v18 = vmul.f32 0.5, %v132_v11  ;;  %v211_v25 = vmul.f32 %v149_v15, %v439_v43  ;;  %v299_v11 = vld [vmem:[%s623_s1 + $0x38] sm:$0xff] }
 0x112   :  { %v217_v20 = vmul.f32 %v209_v17, %v435_v41  ;;  %v226_v23 = vmul.f32 %v514_v0, %v215_v13  ;;  %v153_v26 = vmul.f32 0.5, %v152_v21  ;;  %v238_v41 = vadd.f32 %v329_v12, %v227_v19 }
 0x113   :  { %v134_v42 = vsub.f32 1.5, %v133_v18  ;;  %v222_v45 = vmul.f32 %v514_v0, %v211_v25  ;;  %v294_v18 = vld [vmem:[%s623_s1 + $0x10] sm:$0xff] }
 0x114   :  { %v348_v24 = vpop.eup %347  ;;  %v237_v27 = vadd.f32 %v329_v12, %v226_v23  ;;  %v228_v30 = vmul.f32 %v514_v0, %v217_v20  ;;  %v154_v33 = vsub.f32 1.5, %v153_v26 }
 0x115   :  { %v135_v31 = vmul.f32 %v344_v1, %v134_v42  ;;  %v161_v32 = vmul.f32 %v348_v24, %v125_v3  ;;  %vm167_vm8 = vweird.f32 %v348_v24  ;;  %v233_v51 = vadd.f32 %v329_v12, %v222_v45  ;;  %v292_v3 = vld [vmem:[%s623_s1] sm:$0xff] }
 0x116   :  { %v242_v34 = vpack.c.bf16 %v237_v27, %v236_v16  ;;  %v239_v36 = vadd.f32 %v329_v12, %v228_v30  ;;  %v155_v40 = vmul.f32 %v346_v8, %v154_v33  ;;  %vm168_vm10 = vmor %vm166_vm9, %vm167_vm8  ;;  %v295_v16 = vld [vmem:[%s623_s1 + $0x18] sm:$0xff] }
 0x117   :  { %v139_v35 = vsel %vm138_vm5, %v344_v1, %v135_v31  ;;  %v162_v37 = vmul.f32 %v348_v24, %v161_v32 }
 0x118   :  { %v210_v39 = vmul.f32 %v139_v35, %v441_v44  ;;  %322 = vmatmul.msk.bf16.vlgmr.msra.gmra.mxu2 %vm34_vm0, %v242_v34  ;;  %v243_v43 = vpack.c.bf16 %v239_v36, %v238_v41  ;;  %v159_v47 = vsel %vm158_vm7, %v346_v8, %v155_v40  ;;  %v297_v8 = vld [vmem:[%s623_s1 + $0x28] sm:$0xff] }
 0x119   :  { %v163_v46 = vmul.f32 0.5, %v162_v37  ;;  %v212_v50 = vmul.f32 %v159_v47, %v456_v56  ;;  %v330_v56 = vld [vmem:[%s621_s5] ss:$0 sm:$0xff] }
 0x11a   :  { %323 = vmatmul.msk.bf16.vlgmr.msra.gmra.mxu3 %vm34_vm0, %v243_v43  ;;  %v221_v48 = vmul.f32 %v514_v0, %v210_v39 }
 0x11b   :  { %v164_v49 = vsub.f32 1.5, %v163_v46  ;;  %v223_v55 = vmul.f32 %v514_v0, %v212_v50 }
 0x11c   :  { %v232_v44 = vadd.f32 %v329_v12, %v221_v48 }
 0x11d   :  { %v165_v52 = vmul.f32 %v348_v24, %v164_v49  ;;  %v234_v59 = vadd.f32 %v329_v12, %v223_v55 }
 0x11e   :  { %v240_v53 = vpack.c.bf16 %v233_v51, %v232_v44 }
 0x11f   :  { %v169_v54 = vsel %vm168_vm10, %v348_v24, %v165_v52 }
 0x120   :  { %v213_v38 = vmul.f32 %v169_v54, %v458_v57  ;;  %320 = vmatmul.msk.bf16.vlgmr.msra.gmra.mxu0 %vm34_vm0, %v240_v53  ;;  %v296_v57 = vld [vmem:[%s623_s1 + $0x20] sm:$0xff] }
 0x122   :  { %v224_v58 = vmul.f32 %v514_v0, %v213_v38  ;;  %v298_v0 = vld [vmem:[%s623_s1 + $0x30] sm:$0xff] }
 0x124   :  { %v235_v60 = vadd.f32 %v329_v12, %v224_v58  ;;  %v293_v12 = vld [vmem:[%s623_s1 + $0x8] sm:$0xff] }
 0x126   :  { %v241_v61 = vpack.c.bf16 %v235_v60, %v234_v59 }
 0x128   :  { %321 = vmatmul.msk.bf16.vlgmr.msra.gmra.mxu1 %vm34_vm0, %v241_v61 }
 0x19b   :  { %v282_v62 = vpop.f32.mrf.mxu2 }
 0x19c   :  { %v283_v63 = vadd.f32 %v330_v56, %v282_v62 }
 0x19d   :  { %v287_v1 = vpop.f32.mrf.mxu3  ;;  %v272_v2 = vpop.f32.mrf.mxu0 }
 0x19e   :  { %v304_v4 = vmul.f32 %v296_v57, %v283_v63  ;;  %v288_v22 = vadd.f32 %v330_v56, %v287_v1  ;;  %v273_v29 = vadd.f32 %v330_v56, %v272_v2 }
 0x1a0   :  { %312 = vst.msk [vmem:[%s624_s6 + $0x20] sm:$0xff] %vm34_vm0, %v304_v4  ;;  %v306_v5 = vmul.f32 %v298_v0, %v288_v22  ;;  %v300_v6 = vmul.f32 %v292_v3, %v273_v29 }
 0x1a2   :  { %314 = vst.msk [vmem:[%s624_s6 + $0x30] sm:$0xff] %vm34_vm0, %v306_v5 }
 0x1a3   :  { %308 = vst.msk [vmem:[%s624_s6] sm:$0xff] %vm34_vm0, %v300_v6  ;;  %v284_v7 = vpop.f32.mrf.mxu2 }
 0x1a4   :  { %v285_v9 = vadd.f32 %v330_v56, %v284_v7 }
 0x1a5   :  { %v289_v10 = vpop.f32.mrf.mxu3  ;;  %v274_v28 = vpop.f32.mrf.mxu0 }
 0x1a6   :  { %v305_v13 = vmul.f32 %v297_v8, %v285_v9  ;;  %v290_v14 = vadd.f32 %v330_v56, %v289_v10  ;;  %v275_v15 = vadd.f32 %v330_v56, %v274_v28  ;;  %v277_v17 = vpop.f32.mrf.mxu1 }
 0x1a7   :  { %v278_v19 = vadd.f32 %v330_v56, %v277_v17 }
 0x1a8   :  { %313 = vst.msk [vmem:[%s624_s6 + $0x28] sm:$0xff] %vm34_vm0, %v305_v13  ;;  %v307_v20 = vmul.f32 %v299_v11, %v290_v14  ;;  %v301_v21 = vmul.f32 %v293_v12, %v275_v15 }
 0x1a9   :  { %v302_v23 = vmul.f32 %v294_v18, %v278_v19 }
 0x1aa   :  { %315 = vst.msk [vmem:[%s624_s6 + $0x38] sm:$0xff] %vm34_vm0, %v307_v20 }
 0x1ab   :  { %309 = vst.msk [vmem:[%s624_s6 + $0x8] sm:$0xff] %vm34_vm0, %v301_v21 }
 0x1ac   :  { %310 = vst.msk [vmem:[%s624_s6 + $0x10] sm:$0xff] %vm34_vm0, %v302_v23 }
 0x1ae   :  { %v279_v42 = vpop.f32.mrf.mxu1 }
 0x1af   :  { %v280_v24 = vadd.f32 %v330_v56, %v279_v42 }
 0x1b1   :  { %v303_v25 = vmul.f32 %v295_v16, %v280_v24 }
 0x1b3   :  { %311 = vst.msk [vmem:[%s624_s6 + $0x18] sm:$0xff] %vm34_vm0, %v303_v25 }

// kernel: _lambda_.35
= control target key start
LH: loop header
LB: loop body
LE: loop exit
PB: predicated region body
PF: predicated region fallthrough
CT: control target
= control target key end

     0   :  { %s307_s9 = smov 0   ;;  %s327_s0 = inlined_call_operand.vmem [shape: f32[16,8,8], index: 0, kind: input, shape index: {}]   ;;  %s328_s1 = inlined_call_operand.vmem [shape: f32[16,8,8], index: 1, kind: input, shape index: {}]   ;;  %s329_s2 = inlined_call_operand.vmem [shape: f32[16,8,8], index: 2, kind: output, shape index: {}]  }
   0x1 LB: > { %s264_s10 = sadd.s32 4294967295, %s290_s9   ;;  %p268_p0 = scmp.ge.s32.totalorder %s290_s9, 1  ;;  %s290_s9 = sphi %s307_s9, %s12_s9  }
   0x2   : > { %p120_p1 = scmp.lt.s32.totalorder %s290_s9, 17 }
   0x4   : > { %p121_p2 = pnand %p268_p0, %p120_p1 }
   0x5   : > { %p144_p3 = scmp.lt.s32.totalorder (!%p121_p2), %s264_s10, 15 }
   0x6   : > { %124 = sbr.rel (%p121_p2) target bundleno = 324 (0x144), region = 28 }
   0xb   : > { %s331_s10 = smov (!%p144_p3, %s264_s10), 15  ;;  %vm181_vm0 = vcmask 1043456   ;;  %vm177_vm1 = vcmask 64512  }
   0xc   : > { %s269_s11 = sshll.u32 %s331_s10, 3 }
   0xd   : > { %s147_s14 = scalar_lea.vmem %s327_s0, %s269_s11  ;;  %s151_s17 = scalar_lea.vmem %s328_s1, %s269_s11 }
   0xe   : > { %v157_v0 = vld [vmem:[%s147_s14] sm:$0xff]  ;;  %s155_s20 = scalar_lea.vmem %s329_s2, %s269_s11 }
   0xf   : > { %v159_v1 = vld [vmem:[%s151_s17] sm:$0xff]  ;;  %v158_v2 = vpack.c.bf16 %v157_v0, %v157_v0 }
  0x10   : > { %v160_v3 = vpack.c.bf16 %v159_v1, %v159_v1 }
  0x11   : > { %161 = vxpose.xlu0.c.b16.start.end [1/1] (short) (narrow) %v158_v2, 16 }
  0x12   : > { %v183_v4 = vsel %vm181_vm0, %v160_v3, 0 }
  0x13   : > { %192 = vmatpush.bf16.msra.mxu0 %v183_v4 }
  0xbd   : > { %v169_v5 = vpop.trf.xlu0 }
  0xbe   : > { %272 = vmatmul.msk.bf16.vlgmr.msra.gmra.mxu0 %vm177_vm1, %v169_v5 }
 0x13b   : > { %v194_v6 = vpop.f32.mrf.mxu0 }
 0x13c   : > { %198 = vst.msk [vmem:[%s155_s20] sm:$0xff] %vm177_vm1, %v194_v6 }
 0x143   : > { %v196_v7 = vpop.f32.mrf.mxu0 }
 0x144 PF: > { %s12_s9 = sadd.s32 1, %s290_s9  }
 0x145   : > { %p9_p4 = scmp.ge.s32.totalorder %s12_s9, 18  }
 0x147   :  { %11 = sbr.rel (!%p9_p4) target bundleno = 1 (0x1), region = 61 }

// kernel: _lambda_.37
= control target key start
LH: loop header
LB: loop body
LE: loop exit
PB: predicated region body
PF: predicated region fallthrough
CT: control target
= control target key end

     0   :  { %vm35_vm0 = vcmask 130048   ;;  %v654_v16 = vmov 16.0   ;;  %s656_s15 = smov 64   ;;  %s1199_s0 = inlined_call_operand.vmem [shape: f32[64,16], index: 0, kind: input, shape index: {}]   ;;  %s1200_s1 = inlined_call_operand.vmem [shape: f32[1,16], index: 1, kind: input, shape index: {}]   ;;  %s1201_s2 = inlined_call_operand.vmem [shape: f32[1,16], index: 2, kind: input, shape index: {}]   ;;  %s1202_s4 = inlined_call_operand.vmem [shape: f32[1,128], index: 4, kind: input, shape index: {}]   ;;  %s1203_s3 = inlined_call_operand.vmem [shape: f32[16,128], index: 3, kind: input, shape index: {}]   ;;  %s1204_s5 = inlined_call_operand.vmem [shape: f32[64,32], index: 5, kind: output, shape index: {0}]   ;;  %s1205_s6 = inlined_call_operand.vmem [shape: f32[64,32], index: 6, kind: output, shape index: {1}]   ;;  %s1206_s7 = inlined_call_operand.vmem [shape: f32[64,32], index: 7, kind: output, shape index: {2}]   ;;  %s1207_s8 = inlined_call_operand.vmem [shape: f32[64,32], index: 8, kind: output, shape index: {3}]  }
   0x1   :  { %v31_v0 = vld [vmem:[%s1199_s0 + $0x30] sm:$0xff]  ;;  %v29_v1 = vld [vmem:[%s1199_s0 + $0x20] sm:$0xff]  ;;  %v32_v6 = vld [vmem:[%s1199_s0 + $0x38] sm:$0xff]  ;;  %604 = vrcp.f32 %v654_v16 }
   0x2   :  { %v25_v2 = vld [vmem:[%s1199_s0] sm:$0xff]  ;;  %v54_v3 = vsel %vm35_vm0, %v31_v0, 0.0  ;;  %v48_v4 = vsel %vm35_vm0, %v29_v1, 0.0  ;;  %v30_v7 = vld [vmem:[%s1199_s0 + $0x28] sm:$0xff]  ;;  %v57_v9 = vsel %vm35_vm0, %v32_v6, 0.0  ;;  %v27_v12 = vld [vmem:[%s1199_s0 + $0x10] sm:$0xff] }
   0x3   :  { %v36_v5 = vsel %vm35_vm0, %v25_v2, 0.0  ;;  %55 = vadd.xlane.f32.xlu1 %v54_v3  ;;  %49 = vadd.xlane.f32.xlu0 %v48_v4  ;;  %v26_v8 = vld [vmem:[%s1199_s0 + $0x8] sm:$0xff]  ;;  %v51_v10 = vsel %vm35_vm0, %v30_v7, 0.0  ;;  %v28_v13 = vld [vmem:[%s1199_s0 + $0x18] sm:$0xff]  ;;  %v42_v14 = vsel %vm35_vm0, %v27_v12, 0.0 }
   0x4   :  { %37 = vadd.xlane.f32.xlu2 %v36_v5  ;;  %v39_v11 = vsel %vm35_vm0, %v26_v8, 0.0  ;;  %v45_v15 = vsel %vm35_vm0, %v28_v13, 0.0  ;;  %v245_v5 = vld [vmem:[%s1203_s3] sm:$0xff] }
   0x7   :  { %v605_v17 = vpop.eup %604 }
   0x8   :  { %v61_v18 = vmul.f32 16.0, %v605_v17  ;;  %vm65_vm1 = vweird.f32 %v605_v17 }
   0xa   :  { %v62_v19 = vsub.f32 1.0, %v61_v18 }
   0xb   :  { %58 = vadd.xlane.f32.xlu1 %v57_v9  ;;  %52 = vadd.xlane.f32.xlu0 %v51_v10 }
   0xc   :  { %40 = vadd.xlane.f32.xlu2 %v39_v11  ;;  %v63_v20 = vmul.f32 %v605_v17, %v62_v19 }
   0xe   :  { %v64_v21 = vadd.f32 %v605_v17, %v63_v20 }
  0x10   :  { %v735_v22 = vsel %vm65_vm1, %v605_v17, %v64_v21 }
  0x13   :  { %43 = vadd.xlane.f32.xlu0 %v42_v14  ;;  %46 = vadd.xlane.f32.xlu1 %v45_v15 }
  0x76   :  { %v56_v23 = vpop.xlane.xlu1 %55  ;;  %v50_v24 = vpop.xlane.xlu0 %49 }
  0x77   :  { %v73_v25 = vmul.f32 %v735_v22, %v56_v23  ;;  %v71_v26 = vmul.f32 %v735_v22, %v50_v24  ;;  %v38_v27 = vpop.xlane.xlu2 %37 }
  0x78   :  { %v67_v36 = vmul.f32 %v735_v22, %v38_v27 }
  0x79   :  { %v739_v28 = vsub.f32 %v31_v0, %v73_v25  ;;  %v741_v29 = vsub.f32 %v29_v1, %v71_v26 }
  0x7a   :  { %v759_v44 = vsub.f32 %v25_v2, %v67_v36 }
  0x7b   :  { %v89_v30 = vmul.f32 %v739_v28, %v739_v28  ;;  %v87_v31 = vmul.f32 %v741_v29, %v741_v29 }
  0x7c   :  { %v83_v55 = vmul.f32 %v759_v44, %v759_v44 }
  0x7d   :  { %v109_v32 = vsel %vm35_vm0, %v89_v30, 0.0  ;;  %v103_v33 = vsel %vm35_vm0, %v87_v31, 0.0 }
  0x7e   :  { %v59_v34 = vpop.xlane.xlu1 %58  ;;  %v53_v35 = vpop.xlane.xlu0 %52  ;;  %110 = vadd.xlane.f32.xlu1 %v109_v32  ;;  %104 = vadd.xlane.f32.xlu2 %v103_v33  ;;  %v91_v59 = vsel %vm35_vm0, %v83_v55, 0.0 }
  0x7f   :  { %v74_v37 = vmul.f32 %v735_v22, %v59_v34  ;;  %v72_v38 = vmul.f32 %v735_v22, %v53_v35  ;;  %v41_v39 = vpop.xlane.xlu2 %40 }
  0x80   :  { %v68_v40 = vmul.f32 %v735_v22, %v41_v39 }
  0x81   :  { %v753_v41 = vsub.f32 %v32_v6, %v74_v37  ;;  %v755_v42 = vsub.f32 %v30_v7, %v72_v38  ;;  %v246_v6 = vld [vmem:[%s1203_s3 + $0x8] sm:$0xff] }
  0x82   :  { %v757_v43 = vsub.f32 %v26_v8, %v68_v40  ;;  %v247_v7 = vpack.c.bf16 %v246_v6, %v245_v5 }
  0x83   :  { %v88_v45 = vmul.f32 %v755_v42, %v755_v42  ;;  %v90_v46 = vmul.f32 %v753_v41, %v753_v41 }
  0x84   :  { %v84_v47 = vmul.f32 %v757_v43, %v757_v43  ;;  %595 = vmatpush.bf16.msra.mxu2 %v247_v7  ;;  %596 = vmatpush.bf16.msra.mxu3 %v247_v7 }
  0x85   :  { %v106_v48 = vsel %vm35_vm0, %v88_v45, 0.0  ;;  %v112_v49 = vsel %vm35_vm0, %v90_v46, 0.0  ;;  %271 = vmatpush.bf16.msra.mxu0 %v247_v7  ;;  %594 = vmatpush.bf16.msra.mxu1 %v247_v7 }
  0x86   :  { %107 = vadd.xlane.f32.xlu0 %v106_v48  ;;  %v44_v50 = vpop.xlane.xlu0 %43  ;;  %113 = vadd.xlane.f32.xlu2 %v112_v49  ;;  %v94_v51 = vsel %vm35_vm0, %v84_v47, 0.0  ;;  %v47_v52 = vpop.xlane.xlu1 %46 }
  0x87   :  { %v69_v53 = vmul.f32 %v735_v22, %v44_v50  ;;  %95 = vadd.xlane.f32.xlu1 %v94_v51  ;;  %v70_v54 = vmul.f32 %v735_v22, %v47_v52 }
  0x89   :  { %v774_v56 = vsub.f32 %v27_v12, %v69_v53  ;;  %v776_v57 = vsub.f32 %v28_v13, %v70_v54 }
  0x8b   :  { %v85_v58 = vmul.f32 %v774_v56, %v774_v56  ;;  %v86_v61 = vmul.f32 %v776_v57, %v776_v57 }
  0x8d   :  { %v97_v60 = vsel %vm35_vm0, %v85_v58, 0.0  ;;  %v100_v62 = vsel %vm35_vm0, %v86_v61, 0.0 }
  0x8e   :  { %98 = vadd.xlane.f32.xlu2 %v97_v60  ;;  %92 = vadd.xlane.f32.xlu0 %v91_v59 }
  0x96   :  { %101 = vadd.xlane.f32.xlu0 %v100_v62 }
  0xf1   :  { %v111_v63 = vpop.xlane.xlu1 %110  ;;  %v105_v0 = vpop.xlane.xlu2 %104 }
  0xf2   :  { %v121_v1 = vmul.f32 %v111_v63, %v735_v22  ;;  %v119_v2 = vmul.f32 %v105_v0, %v735_v22  ;;  %v832_v0 = vld [vmem:[%s1200_s1] ss:$0 sm:$0xff] }
  0xf4   :  { %v129_v3 = vadd.f32 1e-05, %v121_v1  ;;  %v127_v4 = vadd.f32 1e-05, %v119_v2 }
  0xf6   :  { %606 = vrsqrt.f32 %v129_v3  ;;  %vm197_vm2 = vweird.f32 %v129_v3  ;;  %vm177_vm5 = vweird.f32 %v127_v4 }
  0xf7   :  { %608 = vrsqrt.f32 %v127_v4 }
  0xf9   :  { %v108_v8 = vpop.xlane.xlu0 %107  ;;  %v114_v9 = vpop.xlane.xlu2 %113 }
  0xfa   :  { %v120_v10 = vmul.f32 %v108_v8, %v735_v22  ;;  %v96_v11 = vpop.xlane.xlu1 %95  ;;  %v122_v12 = vmul.f32 %v114_v9, %v735_v22 }
  0xfb   :  { %v116_v13 = vmul.f32 %v96_v11, %v735_v22 }
  0xfc   :  { %v607_v14 = vpop.eup %606  ;;  %v128_v15 = vadd.f32 1e-05, %v120_v10  ;;  %v796_v16 = vadd.f32 1e-05, %v122_v12  ;;  %v602_v12 = vld [vmem:[%s1201_s2] ss:$0 sm:$0xff] }
  0xfd   :  { %v609_v17 = vpop.eup %608  ;;  %v192_v18 = vmul.f32 %v607_v14, %v129_v3  ;;  %v124_v19 = vadd.f32 1e-05, %v116_v13  ;;  %vm198_vm4 = vweird.f32 %v607_v14 }
  0xfe   :  { %v172_v20 = vmul.f32 %v609_v17, %v127_v4  ;;  %610 = vrsqrt.f32 %v128_v15  ;;  %vm178_vm3 = vweird.f32 %v609_v17  ;;  %vm187_vm7 = vweird.f32 %v128_v15  ;;  %vm819_vm8 = vmor %vm197_vm2, %vm198_vm4 }
  0xff   :  { %v193_v21 = vmul.f32 %v607_v14, %v192_v18  ;;  %612 = vrsqrt.f32 %v124_v19  ;;  %vm809_vm6 = vmor %vm177_vm5, %vm178_vm3  ;;  %vm147_vm9 = vweird.f32 %v124_v19  ;;  %vm207_vm12 = vweird.f32 %v796_v16 }
 0x100   :  { %v173_v23 = vmul.f32 %v609_v17, %v172_v20  ;;  %614 = vrsqrt.f32 %v796_v16 }
 0x101   :  { %v194_v24 = vmul.f32 0.5, %v193_v21  ;;  %v93_v25 = vpop.xlane.xlu0 %92  ;;  %v99_v26 = vpop.xlane.xlu2 %98 }
 0x102   :  { %v174_v27 = vmul.f32 0.5, %v173_v23  ;;  %v115_v30 = vmul.f32 %v93_v25, %v735_v22  ;;  %v117_v31 = vmul.f32 %v99_v26, %v735_v22 }
 0x103   :  { %v195_v32 = vsub.f32 1.5, %v194_v24 }
 0x104   :  { %v611_v33 = vpop.eup %610  ;;  %v175_v34 = vsub.f32 1.5, %v174_v27  ;;  %v801_v35 = vadd.f32 1e-05, %v115_v30  ;;  %v805_v38 = vadd.f32 1e-05, %v117_v31 }
 0x105   :  { %v803_v36 = vpop.eup %612  ;;  %v182_v37 = vmul.f32 %v611_v33, %v128_v15  ;;  %v196_v40 = vmul.f32 %v607_v14, %v195_v32  ;;  %vm188_vm10 = vweird.f32 %v611_v33 }
 0x106   :  { %v615_v39 = vpop.eup %614  ;;  %v176_v45 = vmul.f32 %v609_v17, %v175_v34  ;;  %v142_v46 = vmul.f32 %v803_v36, %v124_v19  ;;  %616 = vrsqrt.f32 %v801_v35  ;;  %vm148_vm11 = vweird.f32 %v803_v36  ;;  %vm189_vm14 = vmor %vm187_vm7, %vm188_vm10 }
 0x107   :  { %v183_v48 = vmul.f32 %v611_v33, %v182_v37  ;;  %v202_v49 = vmul.f32 %v615_v39, %v796_v16  ;;  %618 = vrsqrt.f32 %v805_v38  ;;  %v200_v58 = vsel %vm819_vm8, %v607_v14, %v196_v40  ;;  %vm841_vm15 = vmor %vm147_vm9, %vm148_vm11 }
 0x108   :  { %v180_v50 = vsel %vm809_vm6, %v609_v17, %v176_v45  ;;  %v143_v51 = vmul.f32 %v803_v36, %v142_v46  ;;  %vm208_vm13 = vweird.f32 %v615_v39  ;;  %v217_v4 = vmul.f32 %v200_v58, %v739_v28 }
 0x109   :  { %v184_v53 = vmul.f32 0.5, %v183_v48  ;;  %v203_v54 = vmul.f32 %v615_v39, %v202_v49  ;;  %v102_v55 = vpop.xlane.xlu0 %101  ;;  %v215_v61 = vmul.f32 %v180_v50, %v741_v29  ;;  %vm209_vm1 = vmor %vm207_vm12, %vm208_vm13  ;;  %vm137_vm2 = vweird.f32 %v801_v35 }
 0x10a   :  { %v144_v59 = vmul.f32 0.5, %v143_v51  ;;  %v118_v60 = vmul.f32 %v102_v55, %v735_v22  ;;  %v228_v19 = vmul.f32 %v832_v0, %v217_v4  ;;  %vm157_vm4 = vweird.f32 %v805_v38 }
 0x10b   :  { %v185_v62 = vsub.f32 1.5, %v184_v53  ;;  %v204_v63 = vmul.f32 0.5, %v203_v54  ;;  %v226_v28 = vmul.f32 %v832_v0, %v215_v61  ;;  %vm293_vm11 = vcmask 261120  }
 0x10c   :  { %v617_v1 = vpop.eup %616  ;;  %v145_v2 = vsub.f32 1.5, %v144_v59  ;;  %v126_v3 = vadd.f32 1e-05, %v118_v60 }
 0x10d   :  { %v186_v22 = vmul.f32 %v611_v33, %v185_v62  ;;  %v205_v29 = vsub.f32 1.5, %v204_v63  ;;  %v132_v5 = vmul.f32 %v617_v1, %v801_v35  ;;  %v619_v8 = vpop.eup %618  ;;  %vm138_vm3 = vweird.f32 %v617_v1 }
 0x10e   :  { %v146_v6 = vmul.f32 %v803_v36, %v145_v2  ;;  %620 = vrsqrt.f32 %v126_v3  ;;  %v152_v14 = vmul.f32 %v619_v8, %v805_v38  ;;  %v237_v16 = vadd.f32 %v602_v12, %v226_v28  ;;  %vm139_vm5 = vmor %vm137_vm2, %vm138_vm3 }
 0x10f   :  { %v190_v9 = vsel %vm189_vm14, %v611_v33, %v186_v22  ;;  %v206_v10 = vmul.f32 %v615_v39, %v205_v29  ;;  %v133_v11 = vmul.f32 %v617_v1, %v132_v5  ;;  %vm158_vm6 = vweird.f32 %v619_v8 }
 0x110   :  { %v216_v13 = vmul.f32 %v190_v9, %v755_v42  ;;  %v150_v15 = vsel %vm841_vm15, %v803_v36, %v146_v6  ;;  %v153_v21 = vmul.f32 %v619_v8, %v152_v14  ;;  %vm159_vm7 = vmor %vm157_vm4, %vm158_vm6  ;;  %vm167_vm9 = vweird.f32 %v126_v3 }
 0x111   :  { %v210_v17 = vsel %vm209_vm1, %v615_v39, %v206_v10  ;;  %v134_v18 = vmul.f32 0.5, %v133_v11  ;;  %v212_v25 = vmul.f32 %v150_v15, %v757_v43 }
 0x112   :  { %v218_v20 = vmul.f32 %v210_v17, %v753_v41  ;;  %v227_v23 = vmul.f32 %v832_v0, %v216_v13  ;;  %v154_v26 = vmul.f32 0.5, %v153_v21  ;;  %v239_v41 = vadd.f32 %v602_v12, %v228_v19 }
 0x113   :  { %v135_v42 = vsub.f32 1.5, %v134_v18  ;;  %v223_v45 = vmul.f32 %v832_v0, %v212_v25 }
 0x114   :  { %v621_v24 = vpop.eup %620  ;;  %v238_v27 = vadd.f32 %v602_v12, %v227_v23  ;;  %v229_v30 = vmul.f32 %v832_v0, %v218_v20  ;;  %v155_v33 = vsub.f32 1.5, %v154_v26 }
 0x115   :  { %v136_v31 = vmul.f32 %v617_v1, %v135_v42  ;;  %v162_v32 = vmul.f32 %v621_v24, %v126_v3  ;;  %vm168_vm8 = vweird.f32 %v621_v24  ;;  %v234_v51 = vadd.f32 %v602_v12, %v223_v45 }
 0x116   :  { %v243_v34 = vpack.c.bf16 %v238_v27, %v237_v16  ;;  %v240_v36 = vadd.f32 %v602_v12, %v229_v30  ;;  %v156_v40 = vmul.f32 %v619_v8, %v155_v33  ;;  %vm169_vm10 = vmor %vm167_vm9, %vm168_vm8 }
 0x117   :  { %v140_v35 = vsel %vm139_vm5, %v617_v1, %v136_v31  ;;  %v163_v37 = vmul.f32 %v621_v24, %v162_v32 }
 0x118   :  { %v211_v39 = vmul.f32 %v140_v35, %v759_v44  ;;  %584 = vmatmul.msk.bf16.vlgmr.msra.gmra.mxu2 %vm35_vm0, %v243_v34  ;;  %v244_v43 = vpack.c.bf16 %v240_v36, %v239_v41  ;;  %v160_v47 = vsel %vm159_vm7, %v619_v8, %v156_v40 }
 0x119   :  { %v164_v46 = vmul.f32 0.5, %v163_v37  ;;  %v213_v50 = vmul.f32 %v160_v47, %v774_v56  ;;  %v603_v56 = vld [vmem:[%s1202_s4] ss:$0 sm:$0xff]  ;;  %s655_s4 = smov 96  }
 0x11a   :  { %585 = vmatmul.msk.bf16.vlgmr.msra.gmra.mxu3 %vm35_vm0, %v244_v43  ;;  %v222_v48 = vmul.f32 %v832_v0, %v211_v39 }
 0x11b   :  { %v165_v49 = vsub.f32 1.5, %v164_v46  ;;  %v224_v55 = vmul.f32 %v832_v0, %v213_v50 }
 0x11c   :  { %v233_v44 = vadd.f32 %v602_v12, %v222_v48 }
 0x11d   :  { %v166_v52 = vmul.f32 %v621_v24, %v165_v49  ;;  %v235_v59 = vadd.f32 %v602_v12, %v224_v55 }
 0x11e   :  { %v241_v53 = vpack.c.bf16 %v234_v51, %v233_v44 }
 0x11f   :  { %v170_v54 = vsel %vm169_vm10, %v621_v24, %v166_v52 }
 0x120   :  { %v214_v38 = vmul.f32 %v170_v54, %v776_v57  ;;  %582 = vmatmul.msk.bf16.vlgmr.msra.gmra.mxu0 %vm35_vm0, %v241_v53 }
 0x122   :  { %v225_v58 = vmul.f32 %v832_v0, %v214_v38 }
 0x124   :  { %v236_v60 = vadd.f32 %v602_v12, %v225_v58 }
 0x126   :  { %v242_v61 = vpack.c.bf16 %v236_v60, %v235_v59 }
 0x128   :  { %583 = vmatmul.msk.bf16.vlgmr.msra.gmra.mxu1 %vm35_vm0, %v242_v61 }
 0x19b   :  { %v283_v62 = vpop.f32.mrf.mxu2 }
 0x19c   :  { %v284_v63 = vadd.f32 %v603_v56, %v283_v62 }
 0x19d   :  { %v288_v1 = vpop.f32.mrf.mxu3  ;;  %v273_v57 = vpop.f32.mrf.mxu0 }
 0x19e   :  { %298 = vst.msk [vmem:[%s1204_s5 + $0x20] sm:$0xff] %vm293_vm11, %v284_v63  ;;  %v884_v0 = vadd.f32 %v603_v56, %v288_v1  ;;  %v274_v2 = vadd.f32 %v603_v56, %v273_v57  ;;  %v590_v4 = vmul.f32 -1.442695, %v284_v63 }
 0x1a0   :  { %300 = vst.msk [vmem:[%s1204_s5 + $0x30] sm:$0xff] %vm293_vm11, %v884_v0  ;;  %v586_v3 = vmul.f32 -1.442695, %v274_v2  ;;  %322 = vrot.lane.b32.xlu2 %v884_v0, %s655_s4  ;;  %310 = vrot.lane.b32.xlu1 %v274_v2, %s655_s4  ;;  %v592_v10 = vmul.f32 -1.442695, %v884_v0 }
 0x1a1   :  { %294 = vst.msk [vmem:[%s1204_s5] sm:$0xff] %vm293_vm11, %v274_v2 }
 0x1a2   :  { %622 = vpow2.f32 %v586_v3 }
 0x1a3   :  { %v285_v22 = vpop.f32.mrf.mxu2  ;;  %624 = vpow2.f32 %v590_v4 }
 0x1a4   :  { %v898_v29 = vadd.f32 %v603_v56, %v285_v22  ;;  %626 = vpow2.f32 %v592_v10 }
 0x1a5   :  { %v290_v5 = vpop.f32.mrf.mxu3  ;;  %v275_v6 = vpop.f32.mrf.mxu0 }
 0x1a6   :  { %299 = vst.msk [vmem:[%s1204_s5 + $0x28] sm:$0xff] %vm293_vm11, %v898_v29  ;;  %v905_v7 = vadd.f32 %v603_v56, %v290_v5  ;;  %v907_v8 = vadd.f32 %v603_v56, %v275_v6  ;;  %v278_v9 = vpop.f32.mrf.mxu1  ;;  %v591_v12 = vmul.f32 -1.442695, %v898_v29 }
 0x1a7   :  { %v279_v11 = vadd.f32 %v603_v56, %v278_v9 }
 0x1a8   :  { %301 = vst.msk [vmem:[%s1204_s5 + $0x38] sm:$0xff] %vm293_vm11, %v905_v7  ;;  %350 = vrot.lane.b32.xlu2 %v284_v63, %s656_s15  ;;  %v623_v28 = vpop.eup %622  ;;  %v587_v17 = vmul.f32 -1.442695, %v907_v8  ;;  %v593_v16 = vmul.f32 -1.442695, %v905_v7 }
 0x1a9   :  { %295 = vst.msk [vmem:[%s1204_s5 + $0x8] sm:$0xff] %vm293_vm11, %v907_v8  ;;  %346 = vrot.lane.b32.xlu1 %v279_v11, %s656_s15  ;;  %314 = vrot.lane.b32.xlu0 %v279_v11, %s655_s4  ;;  %v924_v13 = vadd.f32 1.0, %v623_v28  ;;  %v588_v14 = vmul.f32 -1.442695, %v279_v11  ;;  %v625_v15 = vpop.eup %624 }
 0x1aa   :  { %296 = vst.msk [vmem:[%s1204_s5 + $0x10] sm:$0xff] %vm293_vm11, %v279_v11  ;;  %v932_v18 = vadd.f32 1.0, %v625_v15  ;;  %v627_v21 = vpop.eup %626 }
 0x1ab   :  { %628 = vrcp.f32 %v924_v13  ;;  %v946_v27 = vadd.f32 1.0, %v627_v21  ;;  %v415_v52 = vand.u32 2147483647, %v924_v13  ;;  %v417_v53 = vand.u32 2147483648, %v924_v13 }
 0x1ac   :  { %630 = vpow2.f32 %v591_v12  ;;  %vm411_vm12 = vweird.f32 %v924_v13  ;;  %vm471_vm14 = vweird.f32 %v932_v18  ;;  %v475_v57 = vand.u32 2147483647, %v932_v18 }
 0x1ad   :  { %632 = vpow2.f32 %v588_v14  ;;  %vm416_vm15 = vcmp.eq.f32.partialorder %v415_v52, 8.507059e+37  ;;  %vm501_vm8 = vweird.f32 %v946_v27 }
 0x1ae   :  { %v280_v19 = vpop.f32.mrf.mxu1  ;;  %634 = vpow2.f32 %v587_v17 }
 0x1af   :  { %v281_v20 = vadd.f32 %v603_v56, %v280_v19  ;;  %636 = vrcp.f32 %v932_v18 }
 0x1b0   :  { %312 = vrot.lane.b32.xlu2 %v907_v8, %s655_s4 }
 0x1b1   :  { %297 = vst.msk [vmem:[%s1204_s5 + $0x18] sm:$0xff] %vm293_vm11, %v281_v20  ;;  %v589_v23 = vmul.f32 -1.442695, %v281_v20  ;;  %318 = vrot.lane.b32.xlu1 %v284_v63, %s655_s4  ;;  %342 = vrot.lane.b32.xlu0 %v274_v2, %s656_s15  ;;  %v942_v42 = vpop.eup %628  ;;  %v418_v63 = vor.u32 1.1754944e-38, %v417_v53  ;;  %s657_s5 = smov 32  }
 0x1b2   :  { %v631_v24 = vpop.eup %630  ;;  %v407_v31 = vmul.f32 %v942_v42, %v924_v13  ;;  %vm412_vm0 = vweird.f32 %v942_v42 }
 0x1b3   :  { %v633_v25 = vpop.eup %632  ;;  %638 = vpow2.f32 %v589_v23  ;;  %v952_v32 = vadd.f32 1.0, %v631_v24  ;;  %vm1001_vm13 = vmor %vm411_vm12, %vm412_vm0  ;;  %vm476_vm0 = vcmp.eq.f32.partialorder %v475_v57, 8.507059e+37 }
 0x1b4   :  { %v635_v26 = vpop.eup %634  ;;  %v948_v30 = vadd.f32 1.0, %v633_v25  ;;  %640 = vpow2.f32 %v593_v16  ;;  %v408_v34 = vsub.f32 1.0, %v407_v31 }
 0x1b5   :  { %v955_v41 = vpop.eup %636  ;;  %v957_v33 = vadd.f32 1.0, %v635_v26  ;;  %v492_v26 = vand.u32 2147483648, %v952_v32 }
 0x1b6   :  { %642 = vrcp.f32 %v948_v30  ;;  %v467_v37 = vmul.f32 %v955_v41, %v932_v18  ;;  %v409_v43 = vmul.f32 %v942_v42, %v408_v34  ;;  %vm472_vm1 = vweird.f32 %v955_v41 }
 0x1b7   :  { %644 = vrcp.f32 %v946_v27  ;;  %v447_v6 = vand.u32 2147483648, %v948_v30  ;;  %vm441_vm4 = vweird.f32 %v948_v30  ;;  %vm1034_vm5 = vmor %vm471_vm14, %vm472_vm1  ;;  %vm486_vm1 = vweird.f32 %v952_v32 }
 0x1b8   :  { %316 = vrot.lane.b32.xlu2 %v281_v20, %s655_s4  ;;  %646 = vrcp.f32 %v952_v32  ;;  %v468_v47 = vsub.f32 1.0, %v467_v37  ;;  %v410_v44 = vadd.f32 %v942_v42, %v409_v43  ;;  %v490_v37 = vand.u32 2147483647, %v952_v32 }
 0x1b9   :  { %324 = vrot.lane.b32.xlu1 %v905_v7, %s655_s4  ;;  %354 = vrot.lane.b32.xlu0 %v884_v0, %s656_s15  ;;  %v639_v36 = vpop.eup %638  ;;  %648 = vrcp.f32 %v957_v33  ;;  %v432_v43 = vand.u32 2147483648, %v957_v33 }
 0x1ba   :  { %v966_v35 = vadd.f32 1.0, %v639_v36  ;;  %v641_v39 = vpop.eup %640  ;;  %v469_v38 = vmul.f32 %v955_v41, %v468_v47  ;;  %v414_v56 = vsel %vm1001_vm13, %v942_v42, %v410_v44  ;;  %v430_v47 = vand.u32 2147483647, %v957_v33 }
 0x1bb   :  { %v981_v49 = vadd.f32 1.0, %v641_v39  ;;  %v419_v4 = vsel %vm416_vm15, %v418_v63, %v414_v56 }
 0x1bc   :  { %v971_v40 = vpop.eup %642  ;;  %650 = vrcp.f32 %v966_v35  ;;  %v470_v0 = vadd.f32 %v955_v41, %v469_v38  ;;  %v462_v28 = vand.u32 2147483648, %v966_v35  ;;  %vm456_vm7 = vweird.f32 %v966_v35 }
 0x1bd   :  { %v437_v45 = vmul.f32 %v971_v40, %v948_v30  ;;  %v977_v46 = vpop.eup %644  ;;  %652 = vrcp.f32 %v981_v49  ;;  %vm442_vm2 = vweird.f32 %v971_v40  ;;  %v460_v13 = vand.u32 2147483647, %v966_v35 }
 0x1be   :  { %v979_v48 = vpop.eup %646  ;;  %v497_v58 = vmul.f32 %v977_v46, %v946_v27  ;;  %vm1040_vm6 = vmor %vm441_vm4, %vm442_vm2  ;;  %v474_v17 = vsel %vm1034_vm5, %v955_v41, %v470_v0  ;;  %v463_v16 = vor.u32 1.1754944e-38, %v462_v28  ;;  %vm502_vm13 = vweird.f32 %v977_v46 }
 0x1bf   :  { %v438_v50 = vsub.f32 1.0, %v437_v45  ;;  %v990_v51 = vpop.eup %648  ;;  %v482_v55 = vmul.f32 %v979_v48, %v952_v32  ;;  %vm461_vm12 = vcmp.eq.f32.partialorder %v460_v13, 8.507059e+37  ;;  %vm487_vm14 = vweird.f32 %v979_v48  ;;  %vm1078_vm2 = vmor %vm501_vm8, %vm502_vm13 }
 0x1c0   :  { %344 = vrot.lane.b32.xlu2 %v907_v8, %s656_s15  ;;  %v422_v62 = vmul.f32 %v990_v51, %v957_v33  ;;  %v498_v3 = vsub.f32 1.0, %v497_v58  ;;  %v477_v8 = vand.u32 2147483648, %v932_v18  ;;  %vm427_vm15 = vweird.f32 %v990_v51 }
 0x1c1   :  { %352 = vrot.lane.b32.xlu1 %v898_v29, %s656_s15  ;;  %348 = vrot.lane.b32.xlu0 %v281_v20, %s656_s15  ;;  %v439_v60 = vmul.f32 %v971_v40, %v438_v50  ;;  %v483_v2 = vsub.f32 1.0, %v482_v55  ;;  %v448_v20 = vor.u32 1.1754944e-38, %v447_v6  ;;  %v505_v45 = vand.u32 2147483647, %v946_v27 }
 0x1c2   :  { %v651_v54 = vpop.eup %650  ;;  %v423_v9 = vsub.f32 1.0, %v422_v62  ;;  %v499_v19 = vmul.f32 %v977_v46, %v498_v3  ;;  %v478_v24 = vor.u32 1.1754944e-38, %v477_v8  ;;  %vm426_vm4 = vweird.f32 %v957_v33 }
 0x1c3   :  { %v452_v61 = vmul.f32 %v651_v54, %v966_v35  ;;  %v440_v22 = vadd.f32 %v971_v40, %v439_v60  ;;  %vm457_vm3 = vweird.f32 %v651_v54  ;;  %v1025_v10 = vpop.eup %652  ;;  %v484_v18 = vmul.f32 %v979_v48, %v483_v2  ;;  %vm428_vm5 = vmor %vm426_vm4, %vm427_vm15 }
 0x1c4   :  { %vm1050_vm9 = vmor %vm456_vm7, %vm457_vm3  ;;  %v424_v23 = vmul.f32 %v990_v51, %v423_v9  ;;  %v512_v42 = vmul.f32 %v1025_v10, %v981_v49  ;;  %v479_v31 = vsel %vm476_vm0, %v478_v24, %v474_v17  ;;  %v500_v34 = vadd.f32 %v977_v46, %v499_v19 }
 0x1c5   :  { %v453_v1 = vsub.f32 1.0, %v452_v61  ;;  %v444_v14 = vsel %vm1040_vm6, %v971_v40, %v440_v22  ;;  %v485_v41 = vadd.f32 %v979_v48, %v484_v18  ;;  %v507_v40 = vand.u32 2147483648, %v946_v27  ;;  %vm488_vm3 = vmor %vm486_vm1, %vm487_vm14 }
 0x1c6   :  { %v425_v36 = vadd.f32 %v990_v51, %v424_v23  ;;  %v513_v35 = vsub.f32 1.0, %v512_v42  ;;  %v493_v32 = vor.u32 1.1754944e-38, %v492_v26  ;;  %v504_v44 = vsel %vm1078_vm2, %v977_v46, %v500_v34 }
 0x1c7   :  { %v454_v5 = vmul.f32 %v651_v54, %v453_v1  ;;  %v489_v50 = vsel %vm488_vm3, %v979_v48, %v485_v41  ;;  %vm491_vm6 = vcmp.eq.f32.partialorder %v490_v37, 8.507059e+37  ;;  %v433_v38 = vor.u32 1.1754944e-38, %v432_v43 }
 0x1c8   :  { %356 = vrot.lane.b32.xlu2 %v905_v7, %s656_s15  ;;  %v445_v7 = vand.u32 2147483647, %v948_v30  ;;  %v429_v52 = vsel %vm428_vm5, %v990_v51, %v425_v36  ;;  %v514_v53 = vmul.f32 %v1025_v10, %v513_v35  ;;  %v494_v27 = vsel %vm491_vm6, %v493_v32, %v489_v50 }
 0x1c9   :  { %534 = vrot.lane.b32.xlu1 %v419_v4, %s657_s5  ;;  %320 = vrot.lane.b32.xlu0 %v898_v29, %s655_s4  ;;  %v455_v11 = vadd.f32 %v651_v54, %v454_v5  ;;  %vm506_vm7 = vcmp.eq.f32.partialorder %v505_v45, 8.507059e+37  ;;  %vm431_vm8 = vcmp.eq.f32.partialorder %v430_v47, 8.507059e+37  ;;  %v522_v51 = vand.u32 2147483648, %v981_v49 }
 0x1ca   :  { %vm446_vm10 = vcmp.eq.f32.partialorder %v445_v7, 8.507059e+37  ;;  %v434_v48 = vsel %vm431_vm8, %v433_v38, %v429_v52  ;;  %v515_v46 = vadd.f32 %v1025_v10, %v514_v53  ;;  %v520_v55 = vand.u32 2147483647, %v981_v49 }
 0x1cb   :  { %v459_v21 = vsel %vm1050_vm9, %v651_v54, %v455_v11  ;;  %v449_v25 = vsel %vm446_vm10, %v448_v20, %v444_v14  ;;  %v508_v54 = vor.u32 1.1754944e-38, %v507_v40  ;;  %vm517_vm9 = vweird.f32 %v1025_v10 }
 0x1cc   :  { %v464_v30 = vsel %vm461_vm12, %v463_v16, %v459_v21  ;;  %vm516_vm10 = vweird.f32 %v981_v49  ;;  %v523_v59 = vor.u32 1.1754944e-38, %v522_v51  ;;  %vm521_vm12 = vcmp.eq.f32.partialorder %v520_v55, 8.507059e+37 }
 0x1cd   :  { %v509_v33 = vsel %vm506_vm7, %v508_v54, %v504_v44  ;;  %vm518_vm0 = vmor %vm516_vm10, %vm517_vm9 }
 0x1ce   :  { %v519_v58 = vsel %vm518_vm0, %v1025_v10, %v515_v46 }
 0x1cf   :  { %v524_v60 = vsel %vm521_vm12, %v523_v59, %v519_v58 }
 0x1d0   :  { %538 = vrot.lane.b32.xlu2 %v449_v25, %s657_s5 }
 0x1d1   :  { %540 = vrot.lane.b32.xlu1 %v464_v30, %s657_s5  ;;  %542 = vrot.lane.b32.xlu0 %v479_v31, %s657_s5 }
 0x1d8   :  { %544 = vrot.lane.b32.xlu2 %v494_v27, %s657_s5 }
 0x1d9   :  { %546 = vrot.lane.b32.xlu1 %v509_v33, %s657_s5  ;;  %536 = vrot.lane.b32.xlu0 %v434_v48, %s657_s5 }
 0x1e1   :  { %548 = vrot.lane.b32.xlu0 %v524_v60, %s657_s5 }
 0x1fa   :  { %v323_v61 = vpop.permute.xlu2 %322 }
 0x1fb   :  { %340 = vst.msk [vmem:[%s1205_s6 + $0x30] sm:$0xff] %vm293_vm11, %v323_v61 }
 0x202   :  { %v351_v56 = vpop.permute.xlu2 %350 }
 0x203   :  { %370 = vst.msk [vmem:[%s1206_s7 + $0x20] sm:$0xff] %vm293_vm11, %v351_v56 }
 0x20a   :  { %v313_v49 = vpop.permute.xlu2 %312 }
 0x20b   :  { %335 = vst.msk [vmem:[%s1205_s6 + $0x8] sm:$0xff] %vm293_vm11, %v313_v49 }
 0x212   :  { %v317_v62 = vpop.permute.xlu2 %316  ;;  %v311_v63 = vpop.permute.xlu1 %310 }
 0x213   :  { %337 = vst.msk [vmem:[%s1205_s6 + $0x18] sm:$0xff] %vm293_vm11, %v317_v62 }
 0x214   :  { %334 = vst.msk [vmem:[%s1205_s6] sm:$0xff] %vm293_vm11, %v311_v63 }
 0x21a   :  { %v345_v1 = vpop.permute.xlu2 %344 }
 0x21b   :  { %367 = vst.msk [vmem:[%s1206_s7 + $0x8] sm:$0xff] %vm293_vm11, %v345_v1  ;;  %v347_v57 = vpop.permute.xlu1 %346  ;;  %v315_v0 = vpop.permute.xlu0 %314 }
 0x21c   :  { %368 = vst.msk [vmem:[%s1206_s7 + $0x10] sm:$0xff] %vm293_vm11, %v347_v57 }
 0x21d   :  { %336 = vst.msk [vmem:[%s1205_s6 + $0x10] sm:$0xff] %vm293_vm11, %v315_v0 }
 0x222   :  { %v357_v2 = vpop.permute.xlu2 %356 }
 0x223   :  { %373 = vst.msk [vmem:[%s1206_s7 + $0x38] sm:$0xff] %vm293_vm11, %v357_v2  ;;  %v319_v3 = vpop.permute.xlu1 %318  ;;  %v343_v4 = vpop.permute.xlu0 %342 }
 0x224   :  { %338 = vst.msk [vmem:[%s1205_s6 + $0x20] sm:$0xff] %vm293_vm11, %v319_v3 }
 0x225   :  { %366 = vst.msk [vmem:[%s1206_s7] sm:$0xff] %vm293_vm11, %v343_v4 }
 0x22a   :  { %v539_v22 = vpop.permute.xlu2 %538 }
 0x22b   :  { %560 = vst.msk [vmem:[%s1207_s8 + $0x10] sm:$0xff] %vm293_vm11, %v539_v22  ;;  %v325_v5 = vpop.permute.xlu1 %324  ;;  %v355_v6 = vpop.permute.xlu0 %354 }
 0x22c   :  { %341 = vst.msk [vmem:[%s1205_s6 + $0x38] sm:$0xff] %vm293_vm11, %v325_v5 }
 0x22d   :  { %372 = vst.msk [vmem:[%s1206_s7 + $0x30] sm:$0xff] %vm293_vm11, %v355_v6 }
 0x232   :  { %v545_v8 = vpop.permute.xlu2 %544 }
 0x233   :  { %563 = vst.msk [vmem:[%s1207_s8 + $0x28] sm:$0xff] %vm293_vm11, %v545_v8  ;;  %v353_v9 = vpop.permute.xlu1 %352  ;;  %v349_v10 = vpop.permute.xlu0 %348 }
 0x234   :  { %371 = vst.msk [vmem:[%s1206_s7 + $0x28] sm:$0xff] %vm293_vm11, %v353_v9 }
 0x235   :  { %369 = vst.msk [vmem:[%s1206_s7 + $0x18] sm:$0xff] %vm293_vm11, %v349_v10 }
 0x23b   :  { %v535_v7 = vpop.permute.xlu1 %534  ;;  %v321_v11 = vpop.permute.xlu0 %320 }
 0x23c   :  { %558 = vst.msk [vmem:[%s1207_s8] sm:$0xff] %vm293_vm11, %v535_v7 }
 0x23d   :  { %339 = vst.msk [vmem:[%s1205_s6 + $0x28] sm:$0xff] %vm293_vm11, %v321_v11 }
 0x243   :  { %v541_v28 = vpop.permute.xlu1 %540  ;;  %v543_v29 = vpop.permute.xlu0 %542 }
 0x244   :  { %561 = vst.msk [vmem:[%s1207_s8 + $0x18] sm:$0xff] %vm293_vm11, %v541_v28 }
 0x245   :  { %562 = vst.msk [vmem:[%s1207_s8 + $0x20] sm:$0xff] %vm293_vm11, %v543_v29 }
 0x24b   :  { %v547_v12 = vpop.permute.xlu1 %546  ;;  %v537_v13 = vpop.permute.xlu0 %536 }
 0x24c   :  { %564 = vst.msk [vmem:[%s1207_s8 + $0x30] sm:$0xff] %vm293_vm11, %v547_v12 }
 0x24d   :  { %559 = vst.msk [vmem:[%s1207_s8 + $0x8] sm:$0xff] %vm293_vm11, %v537_v13 }
 0x253   :  { %v549_v14 = vpop.permute.xlu0 %548 }
 0x254   :  { %565 = vst.msk [vmem:[%s1207_s8 + $0x38] sm:$0xff] %vm293_vm11, %v549_v14 }

// kernel: _lambda_.39
= control target key start
LH: loop header
LB: loop body
LE: loop exit
PB: predicated region body
PF: predicated region fallthrough
CT: control target
= control target key end

     0   :  { %s659_s24 = smov 0   ;;  %s728_s0 = inlined_call_operand.vmem [shape: f32[8,8,32], index: 0, kind: input, shape index: {}]   ;;  %s729_s1 = inlined_call_operand.vmem [shape: f32[8,8,32], index: 1, kind: input, shape index: {}]   ;;  %s730_s2 = inlined_call_operand.vmem [shape: f32[8,8,32], index: 2, kind: input, shape index: {}]   ;;  %s731_s3 = inlined_call_operand.vmem [shape: f32[8,8,32], index: 3, kind: input, shape index: {}]   ;;  %s732_s4 = inlined_call_operand.vmem [shape: f32[2,8,8], index: 4, kind: input, shape index: {}]   ;;  %s733_s5 = inlined_call_operand.vmem [shape: f32[32,16], index: 5, kind: input, shape index: {}]   ;;  %s734_s6 = inlined_call_operand.vmem [shape: f32[1,16], index: 6, kind: input, shape index: {}]   ;;  %s735_s7 = inlined_call_operand.vmem [shape: f32[8,8,16], index: 7, kind: output, shape index: {}]  }
   0x1 LB: > { %s572_s25 = sadd.s32 4294967295, %s615_s24   ;;  %p576_p0 = scmp.ge.s32.totalorder %s615_s24, 1  ;;  %s615_s24 = sphi %s659_s24, %s17_s24  }
   0x2   : > { %p263_p1 = scmp.lt.s32.totalorder %s615_s24, 9 }
   0x4   : > { %p264_p2 = pnand %p576_p0, %p263_p1 }
   0x5   : > { %p305_p3 = scmp.lt.s32.totalorder (!%p264_p2), %s572_s25, 7  ;;  %s617_s10 = smov (!%p264_p2), 112  }
   0x6   : > { %267 = sbr.rel (%p264_p2) target bundleno = 917 (0x395), region = 48  ;;  %s618_s28 = smov (!%p264_p2), 16  }
   0xb   : > { %s737_s25 = smov (!%p305_p3, %s572_s25), 7  ;;  %vm332_vm0 = vcmask 130048   ;;  %v584_v10 = vld [vmem:[%s732_s4 + $0x8] sm:$0xff]  ;;  %vm352_vm1 = vcmask 64512   ;;  %v331_v13 = vld [vmem:[%s732_s4] sm:$0xff]  ;;  %vm369_vm2 = vcmask 1043456  }
   0xc   : > { %s667_s26 = sshll.u32 %s737_s25, 3  ;;  %v457_v41 = vld [vmem:[%s733_s5 + $0x10] sm:$0xff]  ;;  %v458_v42 = vld [vmem:[%s733_s5 + $0x18] sm:$0xff]  ;;  %v455_v43 = vld [vmem:[%s733_s5] sm:$0xff]  ;;  %vm465_vm3 = vcmask 261120  }
   0xd   : > { %s312_s29 = scalar_lea.vmem %s729_s1, %s667_s26  ;;  %s308_s9 = scalar_lea.vmem %s728_s0, %s667_s26  ;;  %v460_v44 = vpack.c.bf16 %v458_v42, %v457_v41  ;;  %v456_v45 = vld [vmem:[%s733_s5 + $0x8] sm:$0xff]  ;;  %v600_v56 = vld [vmem:[%s734_s6] ss:$0 sm:$0xff] }
   0xe   : > { %v327_v0 = vld [vmem:[%s312_s29] sm:$0xff]  ;;  %s316_s17 = scalar_lea.vmem %s730_s2, %s667_s26  ;;  %v459_v46 = vpack.c.bf16 %v456_v45, %v455_v43  ;;  %s320_s8 = scalar_lea.vmem %s731_s3, %s667_s26 }
   0xf   : > { %v330_v1 = vpack.c.bf16 %v327_v0, %v327_v0  ;;  %v326_v2 = vld [vmem:[%s308_s9] sm:$0xff]  ;;  %s324_s13 = scalar_lea.vmem %s735_s7, %s667_s26 }
  0x10   : > { %v329_v3 = vpack.c.bf16 %v326_v2, %v326_v2  ;;  %v328_v28 = vld [vmem:[%s316_s17] sm:$0xff] }
  0x11   : > { %392 = vrot.lane.b32.xlu0 %v330_v1, %s617_s10  ;;  %v337_v4 = vsel %vm332_vm0, %v330_v1, 0  ;;  %v365_v29 = vpack.c.bf16 %v328_v28, %v328_v28  ;;  %v452_v51 = vld [vmem:[%s320_s8] sm:$0xff] }
  0x12   : > { %346 = vmatpush.bf16.xpose.msra.mxu0 %v337_v4 }
  0x13   : > { %v371_v30 = vsel %vm369_vm2, %v365_v29, 0 }
  0x14   : > { %380 = vmatpush.bf16.msra.mxu1 %v371_v30 }
  0x18   : > { %475 = vmatpush.bf16.msrb.mxu1 %v460_v44 }
  0x19   : > { %389 = vrot.lane.b32.xlu0 %v329_v3, %s617_s10  ;;  %582 = vmatmul.msk.bf16.vlgmr.msra.gmra.mxu0 %vm332_vm0, %v329_v3 }
  0x1c   : > { %476 = vmatpush.bf16.msrb.mxu1 %v459_v46 }
  0x83   : > { %v393_v5 = vpop.permute.xlu0 %392 }
  0x84   : > { %v398_v6 = vsel %vm332_vm0, %v393_v5, 0 }
  0x85   : > { %407 = vmatpush.bf16.xpose.msra.mxu2 %v398_v6 }
  0x8b   : > { %v390_v7 = vpop.permute.xlu0 %389 }
  0x8c   : > { %585 = vmatmul.msk.bf16.vlgmr.msra.gmra.mxu2 %vm332_vm0, %v390_v7 }
  0x96   : > { %v348_v8 = vpop.f32.mrf.mxu0 }
  0x97   : > { %v349_v15 = vadd.f32 %v348_v8, %v331_v13 }
  0x99   : > { %v353_v17 = vsel %vm352_vm1, %v349_v15, -inf }
  0x9e   : > { %v350_v9 = vpop.f32.mrf.mxu0 }
 0x10f   : > { %v409_v11 = vpop.f32.mrf.mxu2 }
 0x110   : > { %v410_v12 = vadd.f32 %v584_v10, %v409_v11 }
 0x112   : > { %v413_v14 = vsel %vm352_vm1, %v410_v12, -inf }
 0x113   : > { %414 = vmax.xlane.f32.xlu1 %v413_v14 }
 0x117   : > { %v411_v16 = vpop.f32.mrf.mxu2 }
 0x11b   : > { %354 = vmax.xlane.f32.xlu1 %v353_v17 }
 0x186   : > { %v415_v18 = vpop.xlane.xlu1 %414 }
 0x187   : > { %v416_v19 = vsub.f32 %v410_v12, %v415_v18 }
 0x189   : > { %v417_v20 = vmul.f32 1.442695, %v416_v19 }
 0x18b   : > { %601 = vpow2.f32 %v417_v20 }
 0x18e   : > { %v355_v21 = vpop.xlane.xlu1 %354 }
 0x18f   : > { %v356_v22 = vsub.f32 %v349_v15, %v355_v21 }
 0x191   : > { %v602_v23 = vpop.eup %601  ;;  %v357_v24 = vmul.f32 1.442695, %v356_v22 }
 0x192   : > { %v419_v25 = vsel %vm352_vm1, %v602_v23, 0.0 }
 0x193   : > { %603 = vpow2.f32 %v357_v24  ;;  %420 = vadd.xlane.f32.xlu2 %v419_v25 }
 0x199   : > { %v604_v26 = vpop.eup %603 }
 0x19a   : > { %v359_v27 = vsel %vm352_vm1, %v604_v26, 0.0 }
 0x19b   : > { %360 = vadd.xlane.f32.xlu0 %v359_v27 }
 0x1ab   : > { %426 = vrot.lane.b32.xlu2 %v365_v29, %s617_s10 }
 0x206   : > { %v421_v31 = vpop.xlane.xlu2 %420 }
 0x207   : > { %605 = vrcp.f32 %v421_v31 }
 0x20d   : > { %v606_v32 = vpop.eup %605 }
 0x20e   : > { %v427_v33 = vpop.permute.xlu2 %426  ;;  %v361_v34 = vpop.xlane.xlu0 %360  ;;  %v423_v35 = vmul.f32 %v606_v32, %v602_v23 }
 0x20f   : > { %607 = vrcp.f32 %v361_v34  ;;  %v432_v36 = vsel %vm369_vm2, %v427_v33, 0 }
 0x210   : > { %441 = vmatpush.bf16.msra.mxu3 %v432_v36  ;;  %v424_v37 = vpack.c.bf16 %v423_v35, %v423_v35 }
 0x213   : > { %586 = vmatmul.msk.bf16.vlgmr.msra.gmra.mxu3 %vm352_vm1, %v424_v37 }
 0x215   : > { %v608_v38 = vpop.eup %607 }
 0x216   : > { %v363_v39 = vmul.f32 %v608_v38, %v604_v26 }
 0x218   : > { %v364_v40 = vpack.c.bf16 %v363_v39, %v363_v39 }
 0x21a   : > { %583 = vmatmul.msk.bf16.vlgmr.msra.gmra.mxu1 %vm352_vm1, %v364_v40 }
 0x296   : > { %v443_v47 = vpop.f32.mrf.mxu3 }
 0x297   : > { %448 = vrot.lane.b32.xlu1 %v443_v47, %s618_s28  ;;  %v382_v48 = vpop.f32.mrf.mxu1 }
 0x29e   : > { %v445_v49 = vpop.f32.mrf.mxu3 }
 0x29f   : > { %v384_v50 = vpop.f32.mrf.mxu1 }
 0x309   : > { %v449_v52 = vpop.permute.xlu1 %448 }
 0x30a   : > { %v451_v53 = vsel %vm332_vm0, %v382_v48, %v449_v52 }
 0x30b   : > { %v453_v54 = vmul.f32 %v452_v51, %v451_v53 }
 0x30d   : > { %v454_v55 = vpack.c.bf16 %v453_v54, %v453_v54 }
 0x30f   : > { %587 = vmatmul.msk.bf16.vlgmr.msrb.gmra.mxu1 %vm465_vm3, %v454_v55 }
 0x38c   : > { %v478_v57 = vpop.f32.mrf.mxu1 }
 0x38d   : > { %v479_v58 = vadd.f32 %v600_v56, %v478_v57 }
 0x38f   : > { %482 = vst.msk [vmem:[%s324_s13] sm:$0xff] %vm332_vm0, %v479_v58 }
 0x394   : > { %v480_v59 = vpop.f32.mrf.mxu1 }
 0x395 PF: > { %s17_s24 = sadd.s32 1, %s615_s24  }
 0x396   : > { %p14_p4 = scmp.ge.s32.totalorder %s17_s24, 10  }
 0x398   :  { %16 = sbr.rel (!%p14_p4) target bundleno = 1 (0x1), region = 88 }

// kernel: _lambda_.43
= control target key start
LH: loop header
LB: loop body
LE: loop exit
PB: predicated region body
PF: predicated region fallthrough
CT: control target
= control target key end

     0   :  { %vm37_vm0 = vcmask 130048   ;;  %v413_v16 = vmov 16.0   ;;  %s721_s0 = inlined_call_operand.vmem [shape: f32[64,16], index: 0, kind: input, shape index: {}]   ;;  %s722_s1 = inlined_call_operand.vmem [shape: f32[1,16], index: 1, kind: input, shape index: {}]   ;;  %s723_s2 = inlined_call_operand.vmem [shape: f32[1,16], index: 2, kind: input, shape index: {}]   ;;  %s724_s4 = inlined_call_operand.vmem [shape: f32[1,64], index: 4, kind: input, shape index: {}]   ;;  %s725_s3 = inlined_call_operand.vmem [shape: f32[16,64], index: 3, kind: input, shape index: {}]   ;;  %s726_s6 = inlined_call_operand.vmem [shape: f32[1,16], index: 6, kind: input, shape index: {}]   ;;  %s727_s5 = inlined_call_operand.vmem [shape: f32[64,16], index: 5, kind: input, shape index: {}]   ;;  %s728_s7 = inlined_call_operand.vmem [shape: f32[64,16], index: 7, kind: output, shape index: {}]  }
   0x1   :  { %v31_v0 = vld [vmem:[%s721_s0 + $0x20] sm:$0xff]  ;;  %v29_v1 = vld [vmem:[%s721_s0 + $0x10] sm:$0xff]  ;;  %v32_v6 = vld [vmem:[%s721_s0 + $0x28] sm:$0xff]  ;;  %395 = vrcp.f32 %v413_v16 }
   0x2   :  { %v27_v2 = vld [vmem:[%s721_s0] sm:$0xff]  ;;  %v50_v3 = vsel %vm37_vm0, %v31_v0, 0.0  ;;  %v44_v4 = vsel %vm37_vm0, %v29_v1, 0.0  ;;  %v30_v7 = vld [vmem:[%s721_s0 + $0x18] sm:$0xff]  ;;  %v28_v8 = vld [vmem:[%s721_s0 + $0x8] sm:$0xff]  ;;  %v53_v9 = vsel %vm37_vm0, %v32_v6, 0.0 }
   0x3   :  { %v38_v5 = vsel %vm37_vm0, %v27_v2, 0.0  ;;  %51 = vadd.xlane.f32.xlu1 %v50_v3  ;;  %45 = vadd.xlane.f32.xlu0 %v44_v4  ;;  %v47_v10 = vsel %vm37_vm0, %v30_v7, 0.0  ;;  %v41_v11 = vsel %vm37_vm0, %v28_v8, 0.0  ;;  %v33_v12 = vld [vmem:[%s721_s0 + $0x30] sm:$0xff]  ;;  %v34_v13 = vld [vmem:[%s721_s0 + $0x38] sm:$0xff]  ;;  %v247_v4 = vld [vmem:[%s725_s3] sm:$0xff] }
   0x4   :  { %39 = vadd.xlane.f32.xlu2 %v38_v5  ;;  %v56_v14 = vsel %vm37_vm0, %v33_v12, 0.0  ;;  %v59_v15 = vsel %vm37_vm0, %v34_v13, 0.0  ;;  %v248_v5 = vld [vmem:[%s725_s3 + $0x8] sm:$0xff] }
   0x7   :  { %v396_v17 = vpop.eup %395 }
   0x8   :  { %v63_v18 = vmul.f32 16.0, %v396_v17  ;;  %vm67_vm1 = vweird.f32 %v396_v17 }
   0xa   :  { %v64_v19 = vsub.f32 1.0, %v63_v18 }
   0xb   :  { %54 = vadd.xlane.f32.xlu1 %v53_v9  ;;  %48 = vadd.xlane.f32.xlu0 %v47_v10 }
   0xc   :  { %42 = vadd.xlane.f32.xlu2 %v41_v11  ;;  %v65_v20 = vmul.f32 %v396_v17, %v64_v19 }
   0xe   :  { %v66_v21 = vadd.f32 %v396_v17, %v65_v20 }
  0x10   :  { %v486_v22 = vsel %vm67_vm1, %v396_v17, %v66_v21 }
  0x13   :  { %57 = vadd.xlane.f32.xlu0 %v56_v14  ;;  %60 = vadd.xlane.f32.xlu1 %v59_v15 }
  0x76   :  { %v52_v23 = vpop.xlane.xlu1 %51  ;;  %v46_v24 = vpop.xlane.xlu0 %45 }
  0x77   :  { %v73_v25 = vmul.f32 %v486_v22, %v52_v23  ;;  %v71_v26 = vmul.f32 %v486_v22, %v46_v24  ;;  %v40_v27 = vpop.xlane.xlu2 %39 }
  0x78   :  { %v69_v36 = vmul.f32 %v486_v22, %v40_v27 }
  0x79   :  { %v490_v28 = vsub.f32 %v31_v0, %v73_v25  ;;  %v492_v29 = vsub.f32 %v29_v1, %v71_v26 }
  0x7a   :  { %v510_v44 = vsub.f32 %v27_v2, %v69_v36 }
  0x7b   :  { %v89_v30 = vmul.f32 %v490_v28, %v490_v28  ;;  %v87_v31 = vmul.f32 %v492_v29, %v492_v29 }
  0x7c   :  { %v85_v55 = vmul.f32 %v510_v44, %v510_v44 }
  0x7d   :  { %v105_v32 = vsel %vm37_vm0, %v89_v30, 0.0  ;;  %v99_v33 = vsel %vm37_vm0, %v87_v31, 0.0 }
  0x7e   :  { %106 = vadd.xlane.f32.xlu1 %v105_v32  ;;  %v55_v34 = vpop.xlane.xlu1 %54  ;;  %v49_v35 = vpop.xlane.xlu0 %48  ;;  %100 = vadd.xlane.f32.xlu2 %v99_v33  ;;  %v93_v59 = vsel %vm37_vm0, %v85_v55, 0.0 }
  0x7f   :  { %v74_v37 = vmul.f32 %v486_v22, %v55_v34  ;;  %v72_v38 = vmul.f32 %v486_v22, %v49_v35  ;;  %v43_v39 = vpop.xlane.xlu2 %42 }
  0x80   :  { %v70_v40 = vmul.f32 %v486_v22, %v43_v39 }
  0x81   :  { %v504_v41 = vsub.f32 %v32_v6, %v74_v37  ;;  %v506_v42 = vsub.f32 %v30_v7, %v72_v38  ;;  %v249_v6 = vpack.c.bf16 %v248_v5, %v247_v4 }
  0x82   :  { %v508_v43 = vsub.f32 %v28_v8, %v70_v40 }
  0x83   :  { %v88_v45 = vmul.f32 %v506_v42, %v506_v42  ;;  %v90_v46 = vmul.f32 %v504_v41, %v504_v41  ;;  %385 = vmatpush.bf16.msra.mxu3 %v249_v6  ;;  %273 = vmatpush.bf16.msra.mxu0 %v249_v6 }
  0x84   :  { %v86_v47 = vmul.f32 %v508_v43, %v508_v43 }
  0x85   :  { %v102_v48 = vsel %vm37_vm0, %v88_v45, 0.0  ;;  %v108_v49 = vsel %vm37_vm0, %v90_v46, 0.0 }
  0x86   :  { %103 = vadd.xlane.f32.xlu0 %v102_v48  ;;  %v58_v50 = vpop.xlane.xlu0 %57  ;;  %109 = vadd.xlane.f32.xlu2 %v108_v49  ;;  %v96_v51 = vsel %vm37_vm0, %v86_v47, 0.0  ;;  %v61_v52 = vpop.xlane.xlu1 %60 }
  0x87   :  { %v75_v53 = vmul.f32 %v486_v22, %v58_v50  ;;  %97 = vadd.xlane.f32.xlu1 %v96_v51  ;;  %v76_v54 = vmul.f32 %v486_v22, %v61_v52 }
  0x89   :  { %v525_v56 = vsub.f32 %v33_v12, %v75_v53  ;;  %v527_v57 = vsub.f32 %v34_v13, %v76_v54 }
  0x8b   :  { %v91_v58 = vmul.f32 %v525_v56, %v525_v56  ;;  %v92_v61 = vmul.f32 %v527_v57, %v527_v57 }
  0x8d   :  { %v111_v60 = vsel %vm37_vm0, %v91_v58, 0.0  ;;  %v114_v62 = vsel %vm37_vm0, %v92_v61, 0.0 }
  0x8e   :  { %112 = vadd.xlane.f32.xlu2 %v111_v60  ;;  %94 = vadd.xlane.f32.xlu0 %v93_v59 }
  0x96   :  { %115 = vadd.xlane.f32.xlu0 %v114_v62  ;;  %v584_v62 = vld [vmem:[%s722_s1] ss:$0 sm:$0xff] }
  0xf1   :  { %v107_v63 = vpop.xlane.xlu1 %106  ;;  %v101_v0 = vpop.xlane.xlu2 %100 }
  0xf2   :  { %v119_v1 = vmul.f32 %v101_v0, %v486_v22  ;;  %v121_v2 = vmul.f32 %v107_v63, %v486_v22 }
  0xf4   :  { %v127_v3 = vadd.f32 1e-05, %v119_v1  ;;  %v544_v7 = vadd.f32 1e-05, %v121_v2 }
  0xf6   :  { %397 = vrsqrt.f32 %v127_v3  ;;  %vm159_vm3 = vweird.f32 %v127_v3  ;;  %vm179_vm13 = vweird.f32 %v544_v7 }
  0xf7   :  { %399 = vrsqrt.f32 %v544_v7 }
  0xf9   :  { %v104_v8 = vpop.xlane.xlu0 %103  ;;  %v110_v9 = vpop.xlane.xlu2 %109 }
  0xfa   :  { %v120_v10 = vmul.f32 %v104_v8, %v486_v22  ;;  %v98_v11 = vpop.xlane.xlu1 %97  ;;  %v122_v12 = vmul.f32 %v110_v9, %v486_v22  ;;  %v600_v8 = vld [vmem:[%s723_s2] ss:$0 sm:$0xff] }
  0xfb   :  { %v118_v13 = vmul.f32 %v98_v11, %v486_v22 }
  0xfc   :  { %v128_v14 = vadd.f32 1e-05, %v120_v10  ;;  %v550_v15 = vadd.f32 1e-05, %v122_v12  ;;  %v398_v16 = vpop.eup %397 }
  0xfd   :  { %v126_v17 = vadd.f32 1e-05, %v118_v13  ;;  %v154_v18 = vmul.f32 %v398_v16, %v127_v3  ;;  %v553_v23 = vpop.eup %399  ;;  %vm160_vm2 = vweird.f32 %v398_v16 }
  0xfe   :  { %401 = vrsqrt.f32 %v128_v14  ;;  %v174_v33 = vmul.f32 %v553_v23, %v544_v7  ;;  %vm566_vm4 = vmor %vm159_vm3, %vm160_vm2  ;;  %vm169_vm5 = vweird.f32 %v128_v14  ;;  %vm189_vm11 = vweird.f32 %v550_v15 }
  0xff   :  { %403 = vrsqrt.f32 %v126_v17  ;;  %v155_v19 = vmul.f32 %v398_v16, %v154_v18  ;;  %vm149_vm7 = vweird.f32 %v126_v17  ;;  %vm180_vm14 = vweird.f32 %v553_v23 }
 0x100   :  { %405 = vrsqrt.f32 %v550_v15  ;;  %v175_v47 = vmul.f32 %v553_v23, %v174_v33  ;;  %vm620_vm3 = vmor %vm179_vm13, %vm180_vm14 }
 0x101   :  { %v95_v20 = vpop.xlane.xlu0 %94  ;;  %v113_v21 = vpop.xlane.xlu2 %112  ;;  %v156_v24 = vmul.f32 0.5, %v155_v19 }
 0x102   :  { %v117_v25 = vmul.f32 %v95_v20, %v486_v22  ;;  %v123_v31 = vmul.f32 %v113_v21, %v486_v22  ;;  %v176_v63 = vmul.f32 0.5, %v175_v47 }
 0x103   :  { %v157_v27 = vsub.f32 1.5, %v156_v24 }
 0x104   :  { %v402_v26 = vpop.eup %401  ;;  %v556_v30 = vadd.f32 1e-05, %v117_v25  ;;  %v570_v46 = vadd.f32 1e-05, %v123_v31  ;;  %v177_v9 = vsub.f32 1.5, %v176_v63 }
 0x105   :  { %v404_v32 = vpop.eup %403  ;;  %v164_v34 = vmul.f32 %v402_v26, %v128_v14  ;;  %v158_v36 = vmul.f32 %v398_v16, %v157_v27  ;;  %vm170_vm6 = vweird.f32 %v402_v26 }
 0x106   :  { %v561_v35 = vpop.eup %405  ;;  %v144_v37 = vmul.f32 %v404_v32, %v126_v17  ;;  %407 = vrsqrt.f32 %v556_v30  ;;  %vm150_vm8 = vweird.f32 %v404_v32  ;;  %vm171_vm9 = vmor %vm169_vm5, %vm170_vm6  ;;  %vm139_vm15 = vweird.f32 %v556_v30 }
 0x107   :  { %v165_v38 = vmul.f32 %v402_v26, %v164_v34  ;;  %v184_v39 = vmul.f32 %v561_v35, %v550_v15  ;;  %v162_v48 = vsel %vm566_vm4, %v398_v16, %v158_v36  ;;  %409 = vrsqrt.f32 %v570_v46  ;;  %vm589_vm10 = vmor %vm149_vm7, %vm150_vm8 }
 0x108   :  { %v145_v45 = vmul.f32 %v404_v32, %v144_v37  ;;  %v215_v59 = vmul.f32 %v162_v48, %v492_v29  ;;  %vm190_vm12 = vweird.f32 %v561_v35  ;;  %v178_v20 = vmul.f32 %v553_v23, %v177_v9  ;;  %v309_v29 = vld [vmem:[%s727_s5 + $0x10] sm:$0xff] }
 0x109   :  { %v166_v49 = vmul.f32 0.5, %v165_v38  ;;  %v185_v50 = vmul.f32 %v561_v35, %v184_v39  ;;  %v116_v51 = vpop.xlane.xlu0 %115  ;;  %vm613_vm2 = vmor %vm189_vm11, %vm190_vm12  ;;  %vm199_vm7 = vweird.f32 %v570_v46  ;;  %vm323_vm11 = vcmask 523264  }
 0x10a   :  { %v146_v52 = vmul.f32 0.5, %v145_v45  ;;  %v124_v53 = vmul.f32 %v116_v51, %v486_v22  ;;  %v226_v6 = vmul.f32 %v584_v62, %v215_v59  ;;  %v182_v33 = vsel %vm620_vm3, %v553_v23, %v178_v20 }
 0x10b   :  { %v167_v54 = vsub.f32 1.5, %v166_v49  ;;  %v186_v55 = vmul.f32 0.5, %v185_v50 }
 0x10c   :  { %v408_v58 = vpop.eup %407  ;;  %v147_v60 = vsub.f32 1.5, %v146_v52  ;;  %v579_v61 = vadd.f32 1e-05, %v124_v53  ;;  %v237_v7 = vadd.f32 %v600_v8, %v226_v6 }
 0x10d   :  { %v168_v0 = vmul.f32 %v402_v26, %v167_v54  ;;  %v134_v22 = vmul.f32 %v408_v58, %v556_v30  ;;  %v187_v3 = vsub.f32 1.5, %v186_v55  ;;  %v410_v12 = vpop.eup %409  ;;  %vm140_vm1 = vweird.f32 %v408_v58 }
 0x10e   :  { %v148_v1 = vmul.f32 %v404_v32, %v147_v60  ;;  %411 = vrsqrt.f32 %v579_v61  ;;  %v194_v25 = vmul.f32 %v410_v12, %v570_v46  ;;  %vm141_vm4 = vmor %vm139_vm15, %vm140_vm1  ;;  %vm209_vm5 = vweird.f32 %v579_v61 }
 0x10f   :  { %v172_v2 = vsel %vm171_vm9, %v402_v26, %v168_v0  ;;  %v135_v4 = vmul.f32 %v408_v58, %v134_v22  ;;  %v188_v13 = vmul.f32 %v561_v35, %v187_v3  ;;  %vm200_vm8 = vweird.f32 %v410_v12  ;;  %v313_v0 = vld [vmem:[%s727_s5 + $0x30] sm:$0xff]  ;;  %v312_v22 = vld [vmem:[%s727_s5 + $0x28] sm:$0xff] }
 0x110   :  { %v216_v5 = vmul.f32 %v172_v2, %v506_v42  ;;  %v152_v10 = vsel %vm589_vm10, %v404_v32, %v148_v1  ;;  %v195_v34 = vmul.f32 %v410_v12, %v194_v25  ;;  %vm201_vm10 = vmor %vm199_vm7, %vm200_vm8  ;;  %v310_v2 = vld [vmem:[%s727_s5 + $0x18] sm:$0xff] }
 0x111   :  { %v136_v11 = vmul.f32 0.5, %v135_v4  ;;  %v214_v17 = vmul.f32 %v152_v10, %v508_v43  ;;  %v192_v26 = vsel %vm613_vm2, %v561_v35, %v188_v13  ;;  %v217_v35 = vmul.f32 %v182_v33, %v490_v28  ;;  %v307_v4 = vld [vmem:[%s727_s5] sm:$0xff] }
 0x112   :  { %v227_v42 = vmul.f32 %v584_v62, %v216_v5  ;;  %v218_v36 = vmul.f32 %v192_v26, %v504_v41  ;;  %v196_v40 = vmul.f32 0.5, %v195_v34  ;;  %v316_v3 = vpack.c.bf16 %v310_v2, %v309_v29  ;;  %v308_v5 = vld [vmem:[%s727_s5 + $0x8] sm:$0xff]  ;;  %v393_v10 = vld [vmem:[%s724_s4] ss:$0 sm:$0xff] }
 0x113   :  { %v137_v14 = vsub.f32 1.5, %v136_v11  ;;  %v225_v32 = vmul.f32 %v584_v62, %v214_v17  ;;  %v228_v23 = vmul.f32 %v584_v62, %v217_v35  ;;  %v315_v6 = vpack.c.bf16 %v308_v5, %v307_v4  ;;  %v394_v35 = vld [vmem:[%s726_s6] ss:$0 sm:$0xff] }
 0x114   :  { %v412_v16 = vpop.eup %411  ;;  %v238_v19 = vadd.f32 %v600_v8, %v227_v42  ;;  %v229_v47 = vmul.f32 %v584_v62, %v218_v36  ;;  %v197_v49 = vsub.f32 1.5, %v196_v40 }
 0x115   :  { %v138_v24 = vmul.f32 %v408_v58, %v137_v14  ;;  %v204_v43 = vmul.f32 %v412_v16, %v579_v61  ;;  %vm210_vm6 = vweird.f32 %v412_v16  ;;  %v239_v50 = vadd.f32 %v600_v8, %v228_v23 }
 0x116   :  { %v244_v15 = vpack.c.bf16 %v238_v19, %v237_v7  ;;  %v240_v41 = vadd.f32 %v600_v8, %v229_v47  ;;  %vm211_vm9 = vmor %vm209_vm5, %vm210_vm6  ;;  %v198_v51 = vmul.f32 %v410_v12, %v197_v49 }
 0x117   :  { %v142_v27 = vsel %vm141_vm4, %v408_v58, %v138_v24  ;;  %v205_v30 = vmul.f32 %v412_v16, %v204_v43 }
 0x118   :  { %v213_v31 = vmul.f32 %v142_v27, %v510_v44  ;;  %378 = vmatmul.msk.bf16.vlgmr.msra.gmra.mxu3 %vm37_vm0, %v244_v15  ;;  %v236_v44 = vadd.f32 %v600_v8, %v225_v32  ;;  %v245_v52 = vpack.c.bf16 %v240_v41, %v239_v50  ;;  %v202_v54 = vsel %vm201_vm10, %v410_v12, %v198_v51 }
 0x119   :  { %v206_v38 = vmul.f32 0.5, %v205_v30  ;;  %v219_v58 = vmul.f32 %v202_v54, %v525_v56 }
 0x11a   :  { %v224_v37 = vmul.f32 %v584_v62, %v213_v31 }
 0x11b   :  { %v207_v48 = vsub.f32 1.5, %v206_v38  ;;  %v230_v46 = vmul.f32 %v584_v62, %v219_v58 }
 0x11c   :  { %v235_v39 = vadd.f32 %v600_v8, %v224_v37 }
 0x11d   :  { %v208_v28 = vmul.f32 %v412_v16, %v207_v48  ;;  %v241_v61 = vadd.f32 %v600_v8, %v230_v46 }
 0x11e   :  { %v243_v45 = vpack.c.bf16 %v236_v44, %v235_v39 }
 0x11f   :  { %v212_v53 = vsel %vm211_vm9, %v412_v16, %v208_v28 }
 0x120   :  { %377 = vmatmul.msk.bf16.vlgmr.msra.gmra.mxu0 %vm37_vm0, %v243_v45  ;;  %v220_v55 = vmul.f32 %v212_v53, %v527_v57  ;;  %v314_v57 = vld [vmem:[%s727_s5 + $0x38] sm:$0xff] }
 0x121   :  { %v318_v56 = vpack.c.bf16 %v314_v57, %v313_v0 }
 0x122   :  { %v231_v59 = vmul.f32 %v584_v62, %v220_v55  ;;  %v311_v62 = vld [vmem:[%s727_s5 + $0x20] sm:$0xff] }
 0x123   :  { %340 = vmatpush.bf16.msra.mxu1 %v318_v56  ;;  %386 = vmatpush.bf16.msra.mxu2 %v318_v56  ;;  %v317_v1 = vpack.c.bf16 %v312_v22, %v311_v62 }
 0x124   :  { %v242_v60 = vadd.f32 %v600_v8, %v231_v59 }
 0x126   :  { %v246_v63 = vpack.c.bf16 %v242_v60, %v241_v61 }
 0x127   :  { %341 = vmatpush.bf16.msra.mxu1 %v317_v1  ;;  %387 = vmatpush.bf16.msra.mxu2 %v317_v1 }
 0x128   :  { %379 = vmatmul.msk.bf16.gmra.mxu3 %vm37_vm0, %v245_v52 }
 0x12b   :  { %342 = vmatpush.bf16.msra.mxu1 %v316_v3  ;;  %388 = vmatpush.bf16.msra.mxu2 %v316_v3 }
 0x12f   :  { %343 = vmatpush.bf16.msra.mxu1 %v315_v6  ;;  %389 = vmatpush.bf16.msra.mxu2 %v315_v6 }
 0x138   :  { %380 = vmatmul.msk.bf16.gmra.mxu3 %vm37_vm0, %v246_v63 }
 0x19b   :  { %v280_v8 = vpop.f32.mrf.mxu3 }
 0x19c   :  { %v281_v21 = vadd.f32 %v393_v10, %v280_v8 }
 0x19d   :  { %v275_v9 = vpop.f32.mrf.mxu0 }
 0x19e   :  { %v276_v12 = vadd.f32 %v393_v10, %v275_v9  ;;  %v297_v26 = vmax.f32 %v281_v21, 0.0 }
 0x1a0   :  { %v295_v14 = vmax.f32 %v276_v12, 0.0 }
 0x1a3   :  { %v282_v11 = vpop.f32.mrf.mxu3 }
 0x1a4   :  { %v283_v7 = vadd.f32 %v393_v10, %v282_v11 }
 0x1a5   :  { %v277_v42 = vpop.f32.mrf.mxu0 }
 0x1a6   :  { %v278_v13 = vadd.f32 %v393_v10, %v277_v42  ;;  %v298_v25 = vmax.f32 %v283_v7, 0.0 }
 0x1a8   :  { %v296_v16 = vmax.f32 %v278_v13, 0.0  ;;  %v304_v30 = vpack.c.bf16 %v298_v25, %v297_v26 }
 0x1aa   :  { %v303_v17 = vpack.c.bf16 %v296_v16, %v295_v14 }
 0x1ab   :  { %v285_v18 = vpop.f32.mrf.mxu3 }
 0x1ac   :  { %381 = vmatmul.msk.bf16.vlgmr.msra.gmra.mxu1 %vm323_vm11, %v303_v17  ;;  %v286_v19 = vadd.f32 %v393_v10, %v285_v18 }
 0x1ae   :  { %v299_v43 = vmax.f32 %v286_v19, 0.0 }
 0x1b3   :  { %v287_v20 = vpop.f32.mrf.mxu3 }
 0x1b4   :  { %v288_v24 = vadd.f32 %v393_v10, %v287_v20 }
 0x1b6   :  { %v300_v15 = vmax.f32 %v288_v24, 0.0 }
 0x1b8   :  { %v305_v27 = vpack.c.bf16 %v300_v15, %v299_v43 }
 0x1ba   :  { %383 = vmatmul.msk.bf16.vlgmr.msra.gmra.mxu2 %vm323_vm11, %v305_v27 }
 0x1bb   :  { %v290_v31 = vpop.f32.mrf.mxu3 }
 0x1bc   :  { %382 = vmatmul.msk.bf16.gmra.mxu1 %vm323_vm11, %v304_v30  ;;  %v291_v32 = vadd.f32 %v393_v10, %v290_v31 }
 0x1be   :  { %v301_v36 = vmax.f32 %v291_v32, 0.0 }
 0x1c3   :  { %v292_v33 = vpop.f32.mrf.mxu3 }
 0x1c4   :  { %v293_v34 = vadd.f32 %v393_v10, %v292_v33 }
 0x1c6   :  { %v302_v37 = vmax.f32 %v293_v34, 0.0 }
 0x1c8   :  { %v306_v38 = vpack.c.bf16 %v302_v37, %v301_v36 }
 0x1ca   :  { %384 = vmatmul.msk.bf16.gmra.mxu2 %vm323_vm11, %v306_v38 }
 0x229   :  { %v345_v39 = vpop.f32.mrf.mxu1 }
 0x22a   :  { %v346_v44 = vadd.f32 %v394_v35, %v345_v39 }
 0x22c   :  { %365 = vst.msk [vmem:[%s728_s7] sm:$0xff] %vm37_vm0, %v346_v44 }
 0x231   :  { %v347_v40 = vpop.f32.mrf.mxu1 }
 0x232   :  { %v348_v45 = vadd.f32 %v394_v35, %v347_v40 }
 0x234   :  { %366 = vst.msk [vmem:[%s728_s7 + $0x8] sm:$0xff] %vm37_vm0, %v348_v45 }
 0x239   :  { %v350_v47 = vpop.f32.mrf.mxu1 }
 0x23a   :  { %v351_v48 = vadd.f32 %v394_v35, %v350_v47 }
 0x23c   :  { %367 = vst.msk [vmem:[%s728_s7 + $0x10] sm:$0xff] %vm37_vm0, %v351_v48 }
 0x23d   :  { %v355_v23 = vpop.f32.mrf.mxu2 }
 0x23e   :  { %v356_v49 = vadd.f32 %v394_v35, %v355_v23 }
 0x240   :  { %369 = vst.msk [vmem:[%s728_s7 + $0x20] sm:$0xff] %vm37_vm0, %v356_v49 }
 0x241   :  { %v352_v41 = vpop.f32.mrf.mxu1 }
 0x242   :  { %v353_v28 = vadd.f32 %v394_v35, %v352_v41 }
 0x244   :  { %368 = vst.msk [vmem:[%s728_s7 + $0x18] sm:$0xff] %vm37_vm0, %v353_v28 }
 0x245   :  { %v357_v50 = vpop.f32.mrf.mxu2 }
 0x246   :  { %v358_v51 = vadd.f32 %v394_v35, %v357_v50 }
 0x248   :  { %370 = vst.msk [vmem:[%s728_s7 + $0x28] sm:$0xff] %vm37_vm0, %v358_v51 }
 0x24d   :  { %v360_v52 = vpop.f32.mrf.mxu2 }
 0x24e   :  { %v361_v53 = vadd.f32 %v394_v35, %v360_v52 }
 0x250   :  { %371 = vst.msk [vmem:[%s728_s7 + $0x30] sm:$0xff] %vm37_vm0, %v361_v53 }
 0x255   :  { %v362_v54 = vpop.f32.mrf.mxu2 }
 0x256   :  { %v363_v55 = vadd.f32 %v394_v35, %v362_v54 }
 0x258   :  { %372 = vst.msk [vmem:[%s728_s7 + $0x38] sm:$0xff] %vm37_vm0, %v363_v55 }

</bundles_post_ra>
